<compile_context>
chip_gen: v7x
topology: tpu7x:2x2x1
jax: 0.10.0
libtpu: 0.0.40
codegen_flags: <defaults>
</compile_context>

<pallas_src>
import jax
import jax.numpy as jnp
from jax.experimental import pallas as pl
from jax.experimental.pallas import tpu as pltpu

# ---------------- config (small, consistent with the module) ----------------
B = 2
H = W = 8                    # feature_map_size = 8  =>  H = W = feature_map_size
L = H * W
BL = B * L                   # batch folded into rows -> (128, 32) activation slab
C = 32                       # dim
NUM_HEADS = 4
HEAD_DIM = C // NUM_HEADS
SCALE = HEAD_DIM ** -0.5
MLP_RATIO = 4.0
HIDDEN = int(C * MLP_RATIO)  # 128
WS = 8                       # window length (= feature_map_size)
NWIN = B * W                 # windows per branch after the batch fold (= B*H too)
SHIFT_SIZE = 3               # any 0 < shift_size < window_size enables the block
EPS = 1e-5
SQRT2 = 2.0 ** 0.5
NEG_INF = -1e9               # finite mask value (exp underflows to exactly 0)

assert H == W


# ------------------------------ fused kernel --------------------------------
def _block_kernel(x_ref, pool_ref, scat_ref, w_in_ref, w2_ref, vec_ref, bias_ref,
                  o_ref):
    f32 = jnp.float32
    y = x_ref[...].astype(f32)            # (BL, C) token-major, batch folded in rows
    pool_all = pool_ref[...]              # (2*NWIN, BL)   rows 0:16 vert, 16:32 horiz
    scat_all = scat_ref[...]              # (BL, 2*NWIN)
    w_in_all = w_in_ref[...]              # (2C, 3C+C+HIDDEN) = (64, 256)
    w2_all = w2_ref[...]                  # (2*HIDDEN, C)     = (256, 32)
    vec_all = vec_ref[...]                # (16, 128)

    def branch(y, br):
        # --- unpack this branch's parameters (static slices of loaded values) ---
        wi = w_in_all[br * C:(br + 1) * C, :]
        wqkv = wi[:, :3 * C]                       # (C, 3C)  qk scale pre-folded
        wproj = wi[:, 3 * C:4 * C]                 # (C, C)
        w1 = wi[:, 4 * C:4 * C + HIDDEN]           # (C, HIDDEN)
        w2b = w2_all[br * HIDDEN:(br + 1) * HIDDEN, :]   # (HIDDEN, C)
        vb = vec_all[br * 8:(br + 1) * 8, :]       # (8, 128)
        bqkv = vb[0:1, :3 * C]
        bproj = vb[1:2, :C]
        gamma = vb[2:3, :C]
        beta = vb[3:4, :C]
        b1 = vb[4:5, :HIDDEN]
        b2 = vb[5:6, :C]
        pool_b = pool_all[br * NWIN:(br + 1) * NWIN, :]   # (NWIN, BL)
        scat_b = scat_all[:, br * NWIN:(br + 1) * NWIN]   # (BL, NWIN)

        # --- InstanceNorm per (batch, window): stats over WS tokens x C channels ---
        m1 = jnp.dot(pool_b, y, preferred_element_type=f32)          # (NWIN, C)
        m2 = jnp.dot(pool_b, y * y, preferred_element_type=f32)
        mean_w = jnp.sum(m1, axis=-1, keepdims=True)                 # (NWIN, 1)
        var_w = jnp.sum(m2, axis=-1, keepdims=True) - mean_w * mean_w
        rstd_w = jax.lax.rsqrt(var_w + EPS)
        mean = jnp.dot(scat_b, jnp.broadcast_to(mean_w, (NWIN, C)),
                       preferred_element_type=f32)                   # (BL, C)
        rstd = jnp.dot(scat_b, jnp.broadcast_to(rstd_w, (NWIN, C)),
                       preferred_element_type=f32)
        xn = (y - mean) * rstd

        # --- window attention: full-length masked scores, head merge folded
        #     into the output projection (accumulated as a value) ---
        qkv = jnp.dot(xn, wqkv, preferred_element_type=f32) + bqkv   # (BL, 3C)
        attn = jnp.zeros((BL, C), f32)
        for hh in range(NUM_HEADS):                                  # static unroll
            c0 = hh * HEAD_DIM
            q = qkv[:, c0:c0 + HEAD_DIM]
            k = qkv[:, C + c0:C + c0 + HEAD_DIM]
            v = qkv[:, 2 * C + c0:2 * C + c0 + HEAD_DIM]
            # q @ k^T without an explicit transpose
            s = jax.lax.dot_general(q, k, (((1,), (1,)), ((), ())),
                                    preferred_element_type=f32)      # (BL, BL)
            s = s + bias_ref[br * NUM_HEADS + hh]                    # rel-bias + mask
            s = s - jnp.max(s, axis=-1, keepdims=True)
            e = jnp.exp(s)
            p = e * pl.reciprocal(jnp.sum(e, axis=-1, keepdims=True), approx=True)
            pv = jnp.dot(p, v, preferred_element_type=f32)           # (BL, HEAD_DIM)
            attn = attn + jnp.dot(pv, wproj[c0:c0 + HEAD_DIM, :],
                                  preferred_element_type=f32)
        y = y + attn + bproj                                         # residual

        # --- LayerNorm + MLP + residual ---
        mu = jnp.mean(y, axis=-1, keepdims=True)
        var = jnp.mean((y - mu) ** 2, axis=-1, keepdims=True)
        yn = (y - mu) * jax.lax.rsqrt(var + EPS) * gamma + beta
        hid = jnp.dot(yn, w1, preferred_element_type=f32) + b1
        hid = 0.5 * hid * (1.0 + jax.lax.erf(hid / SQRT2))           # exact GELU
        y = y + jnp.dot(hid, w2b, preferred_element_type=f32) + b2
        return y

    y = branch(y, 0)    # vertical  (column windows)
    y = branch(y, 1)    # horizontal (row windows)
    o_ref[...] = y.astype(o_ref.dtype)


# ------------------------------ wrapper --------------------------------------
def lr_transformer_block(x, packed):
    # x: (B, L, C) with L = H*W; shift_size > 0 path of LRTransformerBlock.forward
    if SHIFT_SIZE == 0:
        return x
    Bb, Lx, Cd = x.shape
    assert Bb == B and Lx == L and Cd == C, "input feature has wrong size"
    xf = x.reshape(BL, C)   # batch folded into rows (free, contiguous reshape)

    def const(shape):
        return pl.BlockSpec(shape, lambda i, _n=len(shape): (0,) * _n)

    out = pl.pallas_call(
        _block_kernel,
        out_shape=jax.ShapeDtypeStruct((BL, C), x.dtype),
        grid=(1,),
        in_specs=[
            const((BL, C)),                       # x (folded)
            const((2 * NWIN, BL)),                # instance-norm pooling (both branches)
            const((BL, 2 * NWIN)),                # window -> token scatter
            const((2 * C, 4 * C + HIDDEN)),       # [wqkv_f | wproj | w1] per branch
            const((2 * HIDDEN, C)),               # w2 per branch
            const((16, 128)),                     # packed bias/gamma/beta vectors
            const((2 * NUM_HEADS, BL, BL)),       # masked rel-pos bias per head/branch
        ],
        out_specs=const((BL, C)),
        compiler_params=pltpu.CompilerParams(
            dimension_semantics=("arbitrary",)),
        # NOTE(v7x): a 2-TC variant is grid=(B,) with per-batch (L,C) blocks and
        # ("parallel",) semantics; the folded single-step variant is the default
        # since the kernel is launch-bound.
    )(xf, packed["pool"], packed["scatter"], packed["w_in"], packed["w2"],
      packed["vec"], packed["bias"])
    return out.reshape(Bb, Lx, Cd)


# ------------------------------ parameters ----------------------------------
def make_rel_bias(table, ws):
    # window_size = (1, ws): relative_position_index[i, j] = i - j + (ws - 1)
    idx = jnp.arange(ws)[:, None] - jnp.arange(ws)[None, :] + (ws - 1)
    bias = table[idx]                                                 # (ws, ws, nh)
    return jnp.transpose(bias, (2, 0, 1)).astype(jnp.float32)         # (nh, ws, ws)


def init_params(key):
    ks = jax.random.split(key, 4)

    def nrm(k, shape, std=0.02):
        return (std * jax.random.normal(k, shape)).astype(jnp.float32)

    def attn_params(k):
        k1, k2, k3, k4, k5 = jax.random.split(k, 5)
        table = nrm(k5, ((2 * 1 - 1) * (2 * WS - 1), NUM_HEADS))      # (2*ws-1, nh)
        wqkv = nrm(k1, (C, 3 * C))       # stored as (in, out): y = x @ W + b
        bqkv = nrm(k2, (1, 3 * C))
        # fold the qk scale into the Q columns at init time (kernel uses *_f)
        qscale = jnp.concatenate([jnp.full((1, C), SCALE, jnp.float32),
                                  jnp.ones((1, 2 * C), jnp.float32)], axis=1)
        return dict(
            wqkv=wqkv, bqkv=bqkv,
            wqkv_f=wqkv * qscale, bqkv_f=bqkv * qscale,
            wproj=nrm(k3, (C, C)),
            bproj=nrm(k4, (1, C)),
            table=table,
            rel_bias=make_rel_bias(table, WS),     # (nh, ws, ws) for the reference
        )

    def mlp_params(k):
        k1, k2, k3, k4 = jax.random.split(k, 4)
        return dict(
            gamma=jnp.ones((1, C), jnp.float32),
            beta=jnp.zeros((1, C), jnp.float32),
            w1=nrm(k1, (C, HIDDEN)),
            b1=nrm(k2, (1, HIDDEN)),
            w2=nrm(k3, (HIDDEN, C)),
            b2=nrm(k4, (1, C)),
        )

    return dict(attn_v=attn_params(ks[0]), mlp_v=mlp_params(ks[1]),
                attn_h=attn_params(ks[2]), mlp_h=mlp_params(ks[3]))


def pack_kernel_inputs(params):
    f32 = jnp.float32
    pv, ph = params["attn_v"], params["attn_h"]
    mv, mh = params["mlp_v"], params["mlp_h"]

    # token -> (batch, row, col) coordinates of the folded (BL,) index
    idx = jnp.arange(BL)
    b_ = idx // L
    hh = (idx % L) // W
    ww = idx % W
    same_b = b_[:, None] == b_[None, :]

    def full_bias(table, pos, same_pos):
        # table: (2*ws-1, nh); pos: position within the window; same_pos: same-window mask
        same = same_b & same_pos
        rel = pos[:, None] - pos[None, :] + (WS - 1)                  # in [0, 2*ws-2]
        bias = jnp.transpose(table[rel], (2, 0, 1))                   # (nh, BL, BL)
        return jnp.where(same[None], bias, NEG_INF).astype(f32)

    bias_v = full_bias(pv["table"], hh, ww[:, None] == ww[None, :])   # column windows
    bias_h = full_bias(ph["table"], ww, hh[:, None] == hh[None, :])   # row windows
    bias = jnp.concatenate([bias_v, bias_h], axis=0)                  # (2*nh, BL, BL)

    # instance-norm pooling / scatter matrices (windows over batch x column / row)
    oh_v = jax.nn.one_hot(b_ * W + ww, NWIN, dtype=f32)               # (BL, NWIN)
    oh_h = jax.nn.one_hot(b_ * H + hh, NWIN, dtype=f32)
    scatter = jnp.concatenate([oh_v, oh_h], axis=1)                   # (BL, 2*NWIN)
    pool = jnp.concatenate([oh_v.T, oh_h.T], axis=0) / float(WS * C)  # (2*NWIN, BL)

    def w_in_slab(pa, pm):
        return jnp.concatenate([pa["wqkv_f"], pa["wproj"], pm["w1"]], axis=1)

    def vec_slab(pa, pm):
        rows = [pa["bqkv_f"], pa["bproj"], pm["gamma"], pm["beta"], pm["b1"], pm["b2"]]
        rows = [jnp.pad(r, ((0, 0), (0, 128 - r.shape[1]))) for r in rows]
        rows.append(jnp.zeros((2, 128), f32))
        return jnp.concatenate(rows, axis=0)                          # (8, 128)

    w_in = jnp.concatenate([w_in_slab(pv, mv), w_in_slab(ph, mh)], axis=0)
    w2 = jnp.concatenate([mv["w2"], mh["w2"]], axis=0)
    vec = jnp.concatenate([vec_slab(pv, mv), vec_slab(ph, mh)], axis=0)

    return dict(pool=pool, scatter=scatter, w_in=w_in, w2=w2, vec=vec, bias=bias)


# --------------------------- pure-JAX reference ------------------------------
def _ref_instance_norm(x):
    mean = jnp.mean(x, axis=(1, 2), keepdims=True)
    var = jnp.mean((x - mean) ** 2, axis=(1, 2), keepdims=True)
    return (x - mean) / jnp.sqrt(var + EPS)


def _ref_attention(x, p):
    Bn, N, Cd = x.shape
    qkv = x @ p["wqkv"] + p["bqkv"][0]          # raw (unfolded) weights, explicit scale
    q, k, v = qkv[..., :Cd], qkv[..., Cd:2 * Cd], qkv[..., 2 * Cd:]

    def heads(t):
        return t.reshape(Bn, N, NUM_HEADS, HEAD_DIM).transpose(0, 2, 1, 3)

    q, k, v = heads(q) * SCALE, heads(k), heads(v)
    a = q @ jnp.swapaxes(k, -1, -2) + p["rel_bias"][None]
    a = jax.nn.softmax(a, axis=-1)
    out = (a @ v).transpose(0, 2, 1, 3).reshape(Bn, N, Cd)
    return out @ p["wproj"] + p["bproj"][0]


def _ref_ln_mlp(x, p):
    mean = jnp.mean(x, axis=-1, keepdims=True)
    var = jnp.mean((x - mean) ** 2, axis=-1, keepdims=True)
    xn = (x - mean) / jnp.sqrt(var + EPS) * p["gamma"][0] + p["beta"][0]
    hdd = jax.nn.gelu(xn @ p["w1"] + p["b1"][0], approximate=False)
    return x + hdd @ p["w2"] + p["b2"][0]


def ref_block(x, params):
    Bb, Lx, Cd = x.shape
    shortcut = x
    xv = x.reshape(Bb, H, W, Cd).transpose(0, 2, 1, 3)
    xv = _ref_instance_norm(xv.reshape(Bb * W, H, Cd)).reshape(Bb, W, H, Cd)
    xv = xv.transpose(0, 2, 1, 3)
    av = _ref_attention(xv.transpose(0, 2, 1, 3).reshape(Bb * W, H, Cd), params["attn_v"])
    av = av.reshape(Bb, W, H, Cd).transpose(0, 2, 1, 3)
    x = shortcut + av.reshape(Bb, Lx, Cd)
    x = _ref_ln_mlp(x, params["mlp_v"])

    shortcut = x
    xh = x.reshape(Bb, H, W, Cd)
    xh = _ref_instance_norm(xh.reshape(Bb * H, W, Cd)).reshape(Bb, H, W, Cd)
    ah = _ref_attention(xh.reshape(Bb * H, W, Cd), params["attn_h"])
    x = shortcut + ah.reshape(Bb, Lx, Cd)
    x = _ref_ln_mlp(x, params["mlp_h"])
    return x


# ---------------------------------- main -------------------------------------
if __name__ == "__main__":
    key = jax.random.PRNGKey(0)
    kp, kx = jax.random.split(key)
    params = init_params(kp)
    packed = pack_kernel_inputs(params)
    x = jax.random.normal(kx, (B, L, C), jnp.float32)   # (B, L=H*W, C)

    fwd = jax.jit(lr_transformer_block)
    out = jax.block_until_ready(fwd(x, packed))
    ref = ref_block(x, params)

    assert out.shape == (B, L, C)
    # tolerance accounts for the approx EUP reciprocal in the softmax normalization
    if not bool(jnp.allclose(out, ref, atol=2e-3, rtol=2e-3)):
        raise AssertionError("Pallas output mismatch vs JAX reference")
    print("KERNEL_OK")
</pallas_src>

<mosaic_0001>
module attributes {stable_mosaic.version = 11 : i64} {
  func.func @_block_kernel(%arg0: i32, %arg1: memref<128x32xf32, #tpu.memory_space<vmem>>, %arg2: memref<32x128xf32, #tpu.memory_space<vmem>>, %arg3: memref<128x32xf32, #tpu.memory_space<vmem>>, %arg4: memref<64x256xf32, #tpu.memory_space<vmem>>, %arg5: memref<256x32xf32, #tpu.memory_space<vmem>>, %arg6: memref<16x128xf32, #tpu.memory_space<vmem>>, %arg7: memref<8x128x128xf32, #tpu.memory_space<vmem>>, %arg8: memref<128x32xf32, #tpu.memory_space<vmem>>) attributes {dimension_semantics = [#tpu.dimension_semantics<arbitrary>], iteration_bounds = array<i64: 1>, scalar_prefetch = 0 : i64, scratch_operands = 0 : i64, tpu.core_type = #tpu.core_type<tc>, window_params = [{pipeline_mode = #tpu.pipeline_mode<synchronous>, transform_indices = @transform_0, window_bounds = array<i64: 128, 32>}, {pipeline_mode = #tpu.pipeline_mode<synchronous>, transform_indices = @transform_1, window_bounds = array<i64: 32, 128>}, {pipeline_mode = #tpu.pipeline_mode<synchronous>, transform_indices = @transform_2, window_bounds = array<i64: 128, 32>}, {pipeline_mode = #tpu.pipeline_mode<synchronous>, transform_indices = @transform_3, window_bounds = array<i64: 64, 256>}, {pipeline_mode = #tpu.pipeline_mode<synchronous>, transform_indices = @transform_4, window_bounds = array<i64: 256, 32>}, {pipeline_mode = #tpu.pipeline_mode<synchronous>, transform_indices = @transform_5, window_bounds = array<i64: 16, 128>}, {pipeline_mode = #tpu.pipeline_mode<synchronous>, transform_indices = @transform_6, window_bounds = array<i64: 8, 128, 128>}, {pipeline_mode = #tpu.pipeline_mode<synchronous>, transform_indices = @transform_7, window_bounds = array<i64: 128, 32>}]} {
    %c0 = arith.constant 0 : index
    %c0_0 = arith.constant 0 : index
    %0 = vector.load %arg1[%c0, %c0_0] : memref<128x32xf32, #tpu.memory_space<vmem>>, vector<128x32xf32>
    %c0_1 = arith.constant 0 : index
    %c0_2 = arith.constant 0 : index
    %1 = vector.load %arg2[%c0_1, %c0_2] : memref<32x128xf32, #tpu.memory_space<vmem>>, vector<32x128xf32>
    %c0_3 = arith.constant 0 : index
    %c0_4 = arith.constant 0 : index
    %2 = vector.load %arg3[%c0_3, %c0_4] : memref<128x32xf32, #tpu.memory_space<vmem>>, vector<128x32xf32>
    %c0_5 = arith.constant 0 : index
    %c0_6 = arith.constant 0 : index
    %3 = vector.load %arg4[%c0_5, %c0_6] : memref<64x256xf32, #tpu.memory_space<vmem>>, vector<64x256xf32>
    %c0_7 = arith.constant 0 : index
    %c0_8 = arith.constant 0 : index
    %4 = vector.load %arg5[%c0_7, %c0_8] : memref<256x32xf32, #tpu.memory_space<vmem>>, vector<256x32xf32>
    %c0_9 = arith.constant 0 : index
    %c0_10 = arith.constant 0 : index
    %5 = vector.load %arg6[%c0_9, %c0_10] : memref<16x128xf32, #tpu.memory_space<vmem>>, vector<16x128xf32>
    %6 = vector.extract_strided_slice %3 {offsets = [0, 0], sizes = [32, 256], strides = [1, 1]} : vector<64x256xf32> to vector<32x256xf32>
    %7 = vector.extract_strided_slice %6 {offsets = [0, 0], sizes = [32, 96], strides = [1, 1]} : vector<32x256xf32> to vector<32x96xf32>
    %8 = vector.extract_strided_slice %6 {offsets = [0, 96], sizes = [32, 32], strides = [1, 1]} : vector<32x256xf32> to vector<32x32xf32>
    %9 = vector.extract_strided_slice %6 {offsets = [0, 128], sizes = [32, 128], strides = [1, 1]} : vector<32x256xf32> to vector<32x128xf32>
    %10 = vector.extract_strided_slice %4 {offsets = [0, 0], sizes = [128, 32], strides = [1, 1]} : vector<256x32xf32> to vector<128x32xf32>
    %11 = vector.extract_strided_slice %5 {offsets = [0, 0], sizes = [8, 128], strides = [1, 1]} : vector<16x128xf32> to vector<8x128xf32>
    %12 = vector.extract_strided_slice %11 {offsets = [0, 0], sizes = [1, 96], strides = [1, 1]} : vector<8x128xf32> to vector<1x96xf32>
    %13 = vector.extract_strided_slice %11 {offsets = [1, 0], sizes = [1, 32], strides = [1, 1]} : vector<8x128xf32> to vector<1x32xf32>
    %14 = vector.extract_strided_slice %11 {offsets = [2, 0], sizes = [1, 32], strides = [1, 1]} : vector<8x128xf32> to vector<1x32xf32>
    %15 = vector.extract_strided_slice %11 {offsets = [3, 0], sizes = [1, 32], strides = [1, 1]} : vector<8x128xf32> to vector<1x32xf32>
    %16 = vector.extract_strided_slice %11 {offsets = [4, 0], sizes = [1, 128], strides = [1, 1]} : vector<8x128xf32> to vector<1x128xf32>
    %17 = vector.extract_strided_slice %11 {offsets = [5, 0], sizes = [1, 32], strides = [1, 1]} : vector<8x128xf32> to vector<1x32xf32>
    %18 = vector.extract_strided_slice %1 {offsets = [0, 0], sizes = [16, 128], strides = [1, 1]} : vector<32x128xf32> to vector<16x128xf32>
    %19 = vector.extract_strided_slice %2 {offsets = [0, 0], sizes = [128, 16], strides = [1, 1]} : vector<128x32xf32> to vector<128x16xf32>
    %cst = arith.constant dense<0.000000e+00> : vector<16x32xf32>
    %20 = tpu.matmul %18, %0, %cst {dimension_numbers = #tpu.dot_dimension_numbers<[1], [0], [0], [1], [0, 0, 1, 1], [], []>} : vector<16x128xf32>, vector<128x32xf32>, vector<16x32xf32> -> vector<16x32xf32>
    %21 = arith.mulf %0, %0 : vector<128x32xf32>
    %cst_11 = arith.constant dense<0.000000e+00> : vector<16x32xf32>
    %22 = tpu.matmul %18, %21, %cst_11 {dimension_numbers = #tpu.dot_dimension_numbers<[1], [0], [0], [1], [0, 0, 1, 1], [], []>} : vector<16x128xf32>, vector<128x32xf32>, vector<16x32xf32> -> vector<16x32xf32>
    %cst_12 = arith.constant dense<0.000000e+00> : vector<16xf32>
    %23 = vector.multi_reduction <add>, %20, %cst_12 [1] : vector<16x32xf32> to vector<16xf32>
    %24 = vector.shape_cast %23 : vector<16xf32> to vector<16x1xf32>
    %cst_13 = arith.constant dense<0.000000e+00> : vector<16xf32>
    %25 = vector.multi_reduction <add>, %22, %cst_13 [1] : vector<16x32xf32> to vector<16xf32>
    %26 = vector.shape_cast %25 : vector<16xf32> to vector<16x1xf32>
    %27 = arith.mulf %24, %24 : vector<16x1xf32>
    %28 = arith.subf %26, %27 : vector<16x1xf32>
    %cst_14 = arith.constant 9.99999974E-6 : f32
    %29 = vector.broadcast %cst_14 : f32 to vector<16x1xf32>
    %30 = arith.addf %28, %29 : vector<16x1xf32>
    %31 = math.rsqrt %30 : vector<16x1xf32>
    %32 = vector.shape_cast %24 : vector<16x1xf32> to vector<16x1xf32>
    %33 = vector.broadcast %32 : vector<16x1xf32> to vector<16x32xf32>
    %cst_15 = arith.constant dense<0.000000e+00> : vector<128x32xf32>
    %34 = tpu.matmul %19, %33, %cst_15 {dimension_numbers = #tpu.dot_dimension_numbers<[1], [0], [0], [1], [0, 0, 1, 1], [], []>} : vector<128x16xf32>, vector<16x32xf32>, vector<128x32xf32> -> vector<128x32xf32>
    %35 = vector.shape_cast %31 : vector<16x1xf32> to vector<16x1xf32>
    %36 = vector.broadcast %35 : vector<16x1xf32> to vector<16x32xf32>
    %cst_16 = arith.constant dense<0.000000e+00> : vector<128x32xf32>
    %37 = tpu.matmul %19, %36, %cst_16 {dimension_numbers = #tpu.dot_dimension_numbers<[1], [0], [0], [1], [0, 0, 1, 1], [], []>} : vector<128x16xf32>, vector<16x32xf32>, vector<128x32xf32> -> vector<128x32xf32>
    %38 = arith.subf %0, %34 : vector<128x32xf32>
    %39 = arith.mulf %38, %37 : vector<128x32xf32>
    %cst_17 = arith.constant dense<0.000000e+00> : vector<128x96xf32>
    %40 = tpu.matmul %39, %7, %cst_17 {dimension_numbers = #tpu.dot_dimension_numbers<[1], [0], [0], [1], [0, 0, 1, 1], [], []>} : vector<128x32xf32>, vector<32x96xf32>, vector<128x96xf32> -> vector<128x96xf32>
    %41 = vector.broadcast %12 : vector<1x96xf32> to vector<128x96xf32>
    %42 = arith.addf %40, %41 : vector<128x96xf32>
    %cst_18 = arith.constant 0.000000e+00 : f32
    %43 = vector.broadcast %cst_18 : f32 to vector<128x32xf32>
    %44 = vector.extract_strided_slice %42 {offsets = [0, 0], sizes = [128, 8], strides = [1, 1]} : vector<128x96xf32> to vector<128x8xf32>
    %45 = vector.extract_strided_slice %42 {offsets = [0, 32], sizes = [128, 8], strides = [1, 1]} : vector<128x96xf32> to vector<128x8xf32>
    %46 = vector.extract_strided_slice %42 {offsets = [0, 64], sizes = [128, 8], strides = [1, 1]} : vector<128x96xf32> to vector<128x8xf32>
    %cst_19 = arith.constant dense<0.000000e+00> : vector<128x128xf32>
    %47 = tpu.matmul %44, %45, %cst_19 {dimension_numbers = #tpu.dot_dimension_numbers<[1], [1], [0], [0], [0, 0, 1, 0], [], []>} : vector<128x8xf32>, vector<128x8xf32>, vector<128x128xf32> -> vector<128x128xf32>
    %c0_20 = arith.constant 0 : index
    %c0_21 = arith.constant 0 : index
    %c0_22 = arith.constant 0 : index
    %48 = vector.load %arg7[%c0_20, %c0_21, %c0_22] : memref<8x128x128xf32, #tpu.memory_space<vmem>>, vector<1x128x128xf32>
    %49 = vector.shape_cast %48 : vector<1x128x128xf32> to vector<128x128xf32>
    %50 = arith.addf %47, %49 : vector<128x128xf32>
    %cst_23 = arith.constant dense<0xFF800000> : vector<128xf32>
    %51 = vector.multi_reduction <maximumf>, %50, %cst_23 [1] : vector<128x128xf32> to vector<128xf32>
    %52 = vector.shape_cast %51 : vector<128xf32> to vector<128x1xf32>
    %53 = vector.broadcast %52 : vector<128x1xf32> to vector<128x128xf32>
    %54 = arith.subf %50, %53 : vector<128x128xf32>
    %55 = math.exp %54 : vector<128x128xf32>
    %cst_24 = arith.constant dense<0.000000e+00> : vector<128xf32>
    %56 = vector.multi_reduction <add>, %55, %cst_24 [1] : vector<128x128xf32> to vector<128xf32>
    %57 = vector.shape_cast %56 : vector<128xf32> to vector<128x1xf32>
    %58 = tpu.reciprocal %57 {approx = true} : vector<128x1xf32> -> vector<128x1xf32>
    %59 = vector.broadcast %58 : vector<128x1xf32> to vector<128x128xf32>
    %60 = arith.mulf %55, %59 : vector<128x128xf32>
    %cst_25 = arith.constant dense<0.000000e+00> : vector<128x8xf32>
    %61 = tpu.matmul %60, %46, %cst_25 {dimension_numbers = #tpu.dot_dimension_numbers<[1], [0], [0], [1], [0, 0, 1, 1], [], []>} : vector<128x128xf32>, vector<128x8xf32>, vector<128x8xf32> -> vector<128x8xf32>
    %62 = vector.extract_strided_slice %8 {offsets = [0, 0], sizes = [8, 32], strides = [1, 1]} : vector<32x32xf32> to vector<8x32xf32>
    %cst_26 = arith.constant dense<0.000000e+00> : vector<128x32xf32>
    %63 = tpu.matmul %61, %62, %cst_26 {dimension_numbers = #tpu.dot_dimension_numbers<[1], [0], [0], [1], [0, 0, 1, 1], [], []>} : vector<128x8xf32>, vector<8x32xf32>, vector<128x32xf32> -> vector<128x32xf32>
    %64 = arith.addf %43, %63 : vector<128x32xf32>
    %65 = vector.extract_strided_slice %42 {offsets = [0, 8], sizes = [128, 8], strides = [1, 1]} : vector<128x96xf32> to vector<128x8xf32>
    %66 = vector.extract_strided_slice %42 {offsets = [0, 40], sizes = [128, 8], strides = [1, 1]} : vector<128x96xf32> to vector<128x8xf32>
    %67 = vector.extract_strided_slice %42 {offsets = [0, 72], sizes = [128, 8], strides = [1, 1]} : vector<128x96xf32> to vector<128x8xf32>
    %cst_27 = arith.constant dense<0.000000e+00> : vector<128x128xf32>
    %68 = tpu.matmul %65, %66, %cst_27 {dimension_numbers = #tpu.dot_dimension_numbers<[1], [1], [0], [0], [0, 0, 1, 0], [], []>} : vector<128x8xf32>, vector<128x8xf32>, vector<128x128xf32> -> vector<128x128xf32>
    %c1 = arith.constant 1 : index
    %c0_28 = arith.constant 0 : index
    %c0_29 = arith.constant 0 : index
    %69 = vector.load %arg7[%c1, %c0_28, %c0_29] : memref<8x128x128xf32, #tpu.memory_space<vmem>>, vector<1x128x128xf32>
    %70 = vector.shape_cast %69 : vector<1x128x128xf32> to vector<128x128xf32>
    %71 = arith.addf %68, %70 : vector<128x128xf32>
    %cst_30 = arith.constant dense<0xFF800000> : vector<128xf32>
    %72 = vector.multi_reduction <maximumf>, %71, %cst_30 [1] : vector<128x128xf32> to vector<128xf32>
    %73 = vector.shape_cast %72 : vector<128xf32> to vector<128x1xf32>
    %74 = vector.broadcast %73 : vector<128x1xf32> to vector<128x128xf32>
    %75 = arith.subf %71, %74 : vector<128x128xf32>
    %76 = math.exp %75 : vector<128x128xf32>
    %cst_31 = arith.constant dense<0.000000e+00> : vector<128xf32>
    %77 = vector.multi_reduction <add>, %76, %cst_31 [1] : vector<128x128xf32> to vector<128xf32>
    %78 = vector.shape_cast %77 : vector<128xf32> to vector<128x1xf32>
    %79 = tpu.reciprocal %78 {approx = true} : vector<128x1xf32> -> vector<128x1xf32>
    %80 = vector.broadcast %79 : vector<128x1xf32> to vector<128x128xf32>
    %81 = arith.mulf %76, %80 : vector<128x128xf32>
    %cst_32 = arith.constant dense<0.000000e+00> : vector<128x8xf32>
    %82 = tpu.matmul %81, %67, %cst_32 {dimension_numbers = #tpu.dot_dimension_numbers<[1], [0], [0], [1], [0, 0, 1, 1], [], []>} : vector<128x128xf32>, vector<128x8xf32>, vector<128x8xf32> -> vector<128x8xf32>
    %83 = vector.extract_strided_slice %8 {offsets = [8, 0], sizes = [8, 32], strides = [1, 1]} : vector<32x32xf32> to vector<8x32xf32>
    %cst_33 = arith.constant dense<0.000000e+00> : vector<128x32xf32>
    %84 = tpu.matmul %82, %83, %cst_33 {dimension_numbers = #tpu.dot_dimension_numbers<[1], [0], [0], [1], [0, 0, 1, 1], [], []>} : vector<128x8xf32>, vector<8x32xf32>, vector<128x32xf32> -> vector<128x32xf32>
    %85 = arith.addf %64, %84 : vector<128x32xf32>
    %86 = vector.extract_strided_slice %42 {offsets = [0, 16], sizes = [128, 8], strides = [1, 1]} : vector<128x96xf32> to vector<128x8xf32>
    %87 = vector.extract_strided_slice %42 {offsets = [0, 48], sizes = [128, 8], strides = [1, 1]} : vector<128x96xf32> to vector<128x8xf32>
    %88 = vector.extract_strided_slice %42 {offsets = [0, 80], sizes = [128, 8], strides = [1, 1]} : vector<128x96xf32> to vector<128x8xf32>
    %cst_34 = arith.constant dense<0.000000e+00> : vector<128x128xf32>
    %89 = tpu.matmul %86, %87, %cst_34 {dimension_numbers = #tpu.dot_dimension_numbers<[1], [1], [0], [0], [0, 0, 1, 0], [], []>} : vector<128x8xf32>, vector<128x8xf32>, vector<128x128xf32> -> vector<128x128xf32>
    %c2 = arith.constant 2 : index
    %c0_35 = arith.constant 0 : index
    %c0_36 = arith.constant 0 : index
    %90 = vector.load %arg7[%c2, %c0_35, %c0_36] : memref<8x128x128xf32, #tpu.memory_space<vmem>>, vector<1x128x128xf32>
    %91 = vector.shape_cast %90 : vector<1x128x128xf32> to vector<128x128xf32>
    %92 = arith.addf %89, %91 : vector<128x128xf32>
    %cst_37 = arith.constant dense<0xFF800000> : vector<128xf32>
    %93 = vector.multi_reduction <maximumf>, %92, %cst_37 [1] : vector<128x128xf32> to vector<128xf32>
    %94 = vector.shape_cast %93 : vector<128xf32> to vector<128x1xf32>
    %95 = vector.broadcast %94 : vector<128x1xf32> to vector<128x128xf32>
    %96 = arith.subf %92, %95 : vector<128x128xf32>
    %97 = math.exp %96 : vector<128x128xf32>
    %cst_38 = arith.constant dense<0.000000e+00> : vector<128xf32>
    %98 = vector.multi_reduction <add>, %97, %cst_38 [1] : vector<128x128xf32> to vector<128xf32>
    %99 = vector.shape_cast %98 : vector<128xf32> to vector<128x1xf32>
    %100 = tpu.reciprocal %99 {approx = true} : vector<128x1xf32> -> vector<128x1xf32>
    %101 = vector.broadcast %100 : vector<128x1xf32> to vector<128x128xf32>
    %102 = arith.mulf %97, %101 : vector<128x128xf32>
    %cst_39 = arith.constant dense<0.000000e+00> : vector<128x8xf32>
    %103 = tpu.matmul %102, %88, %cst_39 {dimension_numbers = #tpu.dot_dimension_numbers<[1], [0], [0], [1], [0, 0, 1, 1], [], []>} : vector<128x128xf32>, vector<128x8xf32>, vector<128x8xf32> -> vector<128x8xf32>
    %104 = vector.extract_strided_slice %8 {offsets = [16, 0], sizes = [8, 32], strides = [1, 1]} : vector<32x32xf32> to vector<8x32xf32>
    %cst_40 = arith.constant dense<0.000000e+00> : vector<128x32xf32>
    %105 = tpu.matmul %103, %104, %cst_40 {dimension_numbers = #tpu.dot_dimension_numbers<[1], [0], [0], [1], [0, 0, 1, 1], [], []>} : vector<128x8xf32>, vector<8x32xf32>, vector<128x32xf32> -> vector<128x32xf32>
    %106 = arith.addf %85, %105 : vector<128x32xf32>
    %107 = vector.extract_strided_slice %42 {offsets = [0, 24], sizes = [128, 8], strides = [1, 1]} : vector<128x96xf32> to vector<128x8xf32>
    %108 = vector.extract_strided_slice %42 {offsets = [0, 56], sizes = [128, 8], strides = [1, 1]} : vector<128x96xf32> to vector<128x8xf32>
    %109 = vector.extract_strided_slice %42 {offsets = [0, 88], sizes = [128, 8], strides = [1, 1]} : vector<128x96xf32> to vector<128x8xf32>
    %cst_41 = arith.constant dense<0.000000e+00> : vector<128x128xf32>
    %110 = tpu.matmul %107, %108, %cst_41 {dimension_numbers = #tpu.dot_dimension_numbers<[1], [1], [0], [0], [0, 0, 1, 0], [], []>} : vector<128x8xf32>, vector<128x8xf32>, vector<128x128xf32> -> vector<128x128xf32>
    %c3 = arith.constant 3 : index
    %c0_42 = arith.constant 0 : index
    %c0_43 = arith.constant 0 : index
    %111 = vector.load %arg7[%c3, %c0_42, %c0_43] : memref<8x128x128xf32, #tpu.memory_space<vmem>>, vector<1x128x128xf32>
    %112 = vector.shape_cast %111 : vector<1x128x128xf32> to vector<128x128xf32>
    %113 = arith.addf %110, %112 : vector<128x128xf32>
    %cst_44 = arith.constant dense<0xFF800000> : vector<128xf32>
    %114 = vector.multi_reduction <maximumf>, %113, %cst_44 [1] : vector<128x128xf32> to vector<128xf32>
    %115 = vector.shape_cast %114 : vector<128xf32> to vector<128x1xf32>
    %116 = vector.broadcast %115 : vector<128x1xf32> to vector<128x128xf32>
    %117 = arith.subf %113, %116 : vector<128x128xf32>
    %118 = math.exp %117 : vector<128x128xf32>
    %cst_45 = arith.constant dense<0.000000e+00> : vector<128xf32>
    %119 = vector.multi_reduction <add>, %118, %cst_45 [1] : vector<128x128xf32> to vector<128xf32>
    %120 = vector.shape_cast %119 : vector<128xf32> to vector<128x1xf32>
    %121 = tpu.reciprocal %120 {approx = true} : vector<128x1xf32> -> vector<128x1xf32>
    %122 = vector.broadcast %121 : vector<128x1xf32> to vector<128x128xf32>
    %123 = arith.mulf %118, %122 : vector<128x128xf32>
    %cst_46 = arith.constant dense<0.000000e+00> : vector<128x8xf32>
    %124 = tpu.matmul %123, %109, %cst_46 {dimension_numbers = #tpu.dot_dimension_numbers<[1], [0], [0], [1], [0, 0, 1, 1], [], []>} : vector<128x128xf32>, vector<128x8xf32>, vector<128x8xf32> -> vector<128x8xf32>
    %125 = vector.extract_strided_slice %8 {offsets = [24, 0], sizes = [8, 32], strides = [1, 1]} : vector<32x32xf32> to vector<8x32xf32>
    %cst_47 = arith.constant dense<0.000000e+00> : vector<128x32xf32>
    %126 = tpu.matmul %124, %125, %cst_47 {dimension_numbers = #tpu.dot_dimension_numbers<[1], [0], [0], [1], [0, 0, 1, 1], [], []>} : vector<128x8xf32>, vector<8x32xf32>, vector<128x32xf32> -> vector<128x32xf32>
    %127 = arith.addf %106, %126 : vector<128x32xf32>
    %128 = arith.addf %0, %127 : vector<128x32xf32>
    %129 = vector.broadcast %13 : vector<1x32xf32> to vector<128x32xf32>
    %130 = arith.addf %128, %129 : vector<128x32xf32>
    %cst_48 = arith.constant dense<0.000000e+00> : vector<128xf32>
    %131 = vector.multi_reduction <add>, %130, %cst_48 [1] : vector<128x32xf32> to vector<128xf32>
    %132 = vector.shape_cast %131 : vector<128xf32> to vector<128x1xf32>
    %cst_49 = arith.constant 3.200000e+01 : f32
    %133 = vector.broadcast %cst_49 : f32 to vector<128x1xf32>
    %134 = arith.divf %132, %133 : vector<128x1xf32>
    %135 = vector.broadcast %134 : vector<128x1xf32> to vector<128x32xf32>
    %136 = arith.subf %130, %135 : vector<128x32xf32>
    %137 = arith.mulf %136, %136 : vector<128x32xf32>
    %cst_50 = arith.constant dense<0.000000e+00> : vector<128xf32>
    %138 = vector.multi_reduction <add>, %137, %cst_50 [1] : vector<128x32xf32> to vector<128xf32>
    %139 = vector.shape_cast %138 : vector<128xf32> to vector<128x1xf32>
    %cst_51 = arith.constant 3.200000e+01 : f32
    %140 = vector.broadcast %cst_51 : f32 to vector<128x1xf32>
    %141 = arith.divf %139, %140 : vector<128x1xf32>
    %142 = vector.broadcast %134 : vector<128x1xf32> to vector<128x32xf32>
    %143 = arith.subf %130, %142 : vector<128x32xf32>
    %cst_52 = arith.constant 9.99999974E-6 : f32
    %144 = vector.broadcast %cst_52 : f32 to vector<128x1xf32>
    %145 = arith.addf %141, %144 : vector<128x1xf32>
    %146 = math.rsqrt %145 : vector<128x1xf32>
    %147 = vector.broadcast %146 : vector<128x1xf32> to vector<128x32xf32>
    %148 = arith.mulf %143, %147 : vector<128x32xf32>
    %149 = vector.broadcast %14 : vector<1x32xf32> to vector<128x32xf32>
    %150 = arith.mulf %148, %149 : vector<128x32xf32>
    %151 = vector.broadcast %15 : vector<1x32xf32> to vector<128x32xf32>
    %152 = arith.addf %150, %151 : vector<128x32xf32>
    %cst_53 = arith.constant dense<0.000000e+00> : vector<128x128xf32>
    %153 = tpu.matmul %152, %9, %cst_53 {dimension_numbers = #tpu.dot_dimension_numbers<[1], [0], [0], [1], [0, 0, 1, 1], [], []>} : vector<128x32xf32>, vector<32x128xf32>, vector<128x128xf32> -> vector<128x128xf32>
    %154 = vector.broadcast %16 : vector<1x128xf32> to vector<128x128xf32>
    %155 = arith.addf %153, %154 : vector<128x128xf32>
    %cst_54 = arith.constant 5.000000e-01 : f32
    %156 = vector.broadcast %cst_54 : f32 to vector<128x128xf32>
    %157 = arith.mulf %156, %155 : vector<128x128xf32>
    %cst_55 = arith.constant 1.41421354 : f32
    %158 = vector.broadcast %cst_55 : f32 to vector<128x128xf32>
    %159 = arith.divf %155, %158 : vector<128x128xf32>
    %160 = math.erf %159 : vector<128x128xf32>
    %cst_56 = arith.constant 1.000000e+00 : f32
    %161 = vector.broadcast %cst_56 : f32 to vector<128x128xf32>
    %162 = arith.addf %161, %160 : vector<128x128xf32>
    %163 = arith.mulf %157, %162 : vector<128x128xf32>
    %cst_57 = arith.constant dense<0.000000e+00> : vector<128x32xf32>
    %164 = tpu.matmul %163, %10, %cst_57 {dimension_numbers = #tpu.dot_dimension_numbers<[1], [0], [0], [1], [0, 0, 1, 1], [], []>} : vector<128x128xf32>, vector<128x32xf32>, vector<128x32xf32> -> vector<128x32xf32>
    %165 = arith.addf %130, %164 : vector<128x32xf32>
    %166 = vector.broadcast %17 : vector<1x32xf32> to vector<128x32xf32>
    %167 = arith.addf %165, %166 : vector<128x32xf32>
    %168 = vector.extract_strided_slice %3 {offsets = [32, 0], sizes = [32, 256], strides = [1, 1]} : vector<64x256xf32> to vector<32x256xf32>
    %169 = vector.extract_strided_slice %168 {offsets = [0, 0], sizes = [32, 96], strides = [1, 1]} : vector<32x256xf32> to vector<32x96xf32>
    %170 = vector.extract_strided_slice %168 {offsets = [0, 96], sizes = [32, 32], strides = [1, 1]} : vector<32x256xf32> to vector<32x32xf32>
    %171 = vector.extract_strided_slice %168 {offsets = [0, 128], sizes = [32, 128], strides = [1, 1]} : vector<32x256xf32> to vector<32x128xf32>
    %172 = vector.extract_strided_slice %4 {offsets = [128, 0], sizes = [128, 32], strides = [1, 1]} : vector<256x32xf32> to vector<128x32xf32>
    %173 = vector.extract_strided_slice %5 {offsets = [8, 0], sizes = [8, 128], strides = [1, 1]} : vector<16x128xf32> to vector<8x128xf32>
    %174 = vector.extract_strided_slice %173 {offsets = [0, 0], sizes = [1, 96], strides = [1, 1]} : vector<8x128xf32> to vector<1x96xf32>
    %175 = vector.extract_strided_slice %173 {offsets = [1, 0], sizes = [1, 32], strides = [1, 1]} : vector<8x128xf32> to vector<1x32xf32>
    %176 = vector.extract_strided_slice %173 {offsets = [2, 0], sizes = [1, 32], strides = [1, 1]} : vector<8x128xf32> to vector<1x32xf32>
    %177 = vector.extract_strided_slice %173 {offsets = [3, 0], sizes = [1, 32], strides = [1, 1]} : vector<8x128xf32> to vector<1x32xf32>
    %178 = vector.extract_strided_slice %173 {offsets = [4, 0], sizes = [1, 128], strides = [1, 1]} : vector<8x128xf32> to vector<1x128xf32>
    %179 = vector.extract_strided_slice %173 {offsets = [5, 0], sizes = [1, 32], strides = [1, 1]} : vector<8x128xf32> to vector<1x32xf32>
    %180 = vector.extract_strided_slice %1 {offsets = [16, 0], sizes = [16, 128], strides = [1, 1]} : vector<32x128xf32> to vector<16x128xf32>
    %181 = vector.extract_strided_slice %2 {offsets = [0, 16], sizes = [128, 16], strides = [1, 1]} : vector<128x32xf32> to vector<128x16xf32>
    %cst_58 = arith.constant dense<0.000000e+00> : vector<16x32xf32>
    %182 = tpu.matmul %180, %167, %cst_58 {dimension_numbers = #tpu.dot_dimension_numbers<[1], [0], [0], [1], [0, 0, 1, 1], [], []>} : vector<16x128xf32>, vector<128x32xf32>, vector<16x32xf32> -> vector<16x32xf32>
    %183 = arith.mulf %167, %167 : vector<128x32xf32>
    %cst_59 = arith.constant dense<0.000000e+00> : vector<16x32xf32>
    %184 = tpu.matmul %180, %183, %cst_59 {dimension_numbers = #tpu.dot_dimension_numbers<[1], [0], [0], [1], [0, 0, 1, 1], [], []>} : vector<16x128xf32>, vector<128x32xf32>, vector<16x32xf32> -> vector<16x32xf32>
    %cst_60 = arith.constant dense<0.000000e+00> : vector<16xf32>
    %185 = vector.multi_reduction <add>, %182, %cst_60 [1] : vector<16x32xf32> to vector<16xf32>
    %186 = vector.shape_cast %185 : vector<16xf32> to vector<16x1xf32>
    %cst_61 = arith.constant dense<0.000000e+00> : vector<16xf32>
    %187 = vector.multi_reduction <add>, %184, %cst_61 [1] : vector<16x32xf32> to vector<16xf32>
    %188 = vector.shape_cast %187 : vector<16xf32> to vector<16x1xf32>
    %189 = arith.mulf %186, %186 : vector<16x1xf32>
    %190 = arith.subf %188, %189 : vector<16x1xf32>
    %cst_62 = arith.constant 9.99999974E-6 : f32
    %191 = vector.broadcast %cst_62 : f32 to vector<16x1xf32>
    %192 = arith.addf %190, %191 : vector<16x1xf32>
    %193 = math.rsqrt %192 : vector<16x1xf32>
    %194 = vector.shape_cast %186 : vector<16x1xf32> to vector<16x1xf32>
    %195 = vector.broadcast %194 : vector<16x1xf32> to vector<16x32xf32>
    %cst_63 = arith.constant dense<0.000000e+00> : vector<128x32xf32>
    %196 = tpu.matmul %181, %195, %cst_63 {dimension_numbers = #tpu.dot_dimension_numbers<[1], [0], [0], [1], [0, 0, 1, 1], [], []>} : vector<128x16xf32>, vector<16x32xf32>, vector<128x32xf32> -> vector<128x32xf32>
    %197 = vector.shape_cast %193 : vector<16x1xf32> to vector<16x1xf32>
    %198 = vector.broadcast %197 : vector<16x1xf32> to vector<16x32xf32>
    %cst_64 = arith.constant dense<0.000000e+00> : vector<128x32xf32>
    %199 = tpu.matmul %181, %198, %cst_64 {dimension_numbers = #tpu.dot_dimension_numbers<[1], [0], [0], [1], [0, 0, 1, 1], [], []>} : vector<128x16xf32>, vector<16x32xf32>, vector<128x32xf32> -> vector<128x32xf32>
    %200 = arith.subf %167, %196 : vector<128x32xf32>
    %201 = arith.mulf %200, %199 : vector<128x32xf32>
    %cst_65 = arith.constant dense<0.000000e+00> : vector<128x96xf32>
    %202 = tpu.matmul %201, %169, %cst_65 {dimension_numbers = #tpu.dot_dimension_numbers<[1], [0], [0], [1], [0, 0, 1, 1], [], []>} : vector<128x32xf32>, vector<32x96xf32>, vector<128x96xf32> -> vector<128x96xf32>
    %203 = vector.broadcast %174 : vector<1x96xf32> to vector<128x96xf32>
    %204 = arith.addf %202, %203 : vector<128x96xf32>
    %cst_66 = arith.constant 0.000000e+00 : f32
    %205 = vector.broadcast %cst_66 : f32 to vector<128x32xf32>
    %206 = vector.extract_strided_slice %204 {offsets = [0, 0], sizes = [128, 8], strides = [1, 1]} : vector<128x96xf32> to vector<128x8xf32>
    %207 = vector.extract_strided_slice %204 {offsets = [0, 32], sizes = [128, 8], strides = [1, 1]} : vector<128x96xf32> to vector<128x8xf32>
    %208 = vector.extract_strided_slice %204 {offsets = [0, 64], sizes = [128, 8], strides = [1, 1]} : vector<128x96xf32> to vector<128x8xf32>
    %cst_67 = arith.constant dense<0.000000e+00> : vector<128x128xf32>
    %209 = tpu.matmul %206, %207, %cst_67 {dimension_numbers = #tpu.dot_dimension_numbers<[1], [1], [0], [0], [0, 0, 1, 0], [], []>} : vector<128x8xf32>, vector<128x8xf32>, vector<128x128xf32> -> vector<128x128xf32>
    %c4 = arith.constant 4 : index
    %c0_68 = arith.constant 0 : index
    %c0_69 = arith.constant 0 : index
    %210 = vector.load %arg7[%c4, %c0_68, %c0_69] : memref<8x128x128xf32, #tpu.memory_space<vmem>>, vector<1x128x128xf32>
    %211 = vector.shape_cast %210 : vector<1x128x128xf32> to vector<128x128xf32>
    %212 = arith.addf %209, %211 : vector<128x128xf32>
    %cst_70 = arith.constant dense<0xFF800000> : vector<128xf32>
    %213 = vector.multi_reduction <maximumf>, %212, %cst_70 [1] : vector<128x128xf32> to vector<128xf32>
    %214 = vector.shape_cast %213 : vector<128xf32> to vector<128x1xf32>
    %215 = vector.broadcast %214 : vector<128x1xf32> to vector<128x128xf32>
    %216 = arith.subf %212, %215 : vector<128x128xf32>
    %217 = math.exp %216 : vector<128x128xf32>
    %cst_71 = arith.constant dense<0.000000e+00> : vector<128xf32>
    %218 = vector.multi_reduction <add>, %217, %cst_71 [1] : vector<128x128xf32> to vector<128xf32>
    %219 = vector.shape_cast %218 : vector<128xf32> to vector<128x1xf32>
    %220 = tpu.reciprocal %219 {approx = true} : vector<128x1xf32> -> vector<128x1xf32>
    %221 = vector.broadcast %220 : vector<128x1xf32> to vector<128x128xf32>
    %222 = arith.mulf %217, %221 : vector<128x128xf32>
    %cst_72 = arith.constant dense<0.000000e+00> : vector<128x8xf32>
    %223 = tpu.matmul %222, %208, %cst_72 {dimension_numbers = #tpu.dot_dimension_numbers<[1], [0], [0], [1], [0, 0, 1, 1], [], []>} : vector<128x128xf32>, vector<128x8xf32>, vector<128x8xf32> -> vector<128x8xf32>
    %224 = vector.extract_strided_slice %170 {offsets = [0, 0], sizes = [8, 32], strides = [1, 1]} : vector<32x32xf32> to vector<8x32xf32>
    %cst_73 = arith.constant dense<0.000000e+00> : vector<128x32xf32>
    %225 = tpu.matmul %223, %224, %cst_73 {dimension_numbers = #tpu.dot_dimension_numbers<[1], [0], [0], [1], [0, 0, 1, 1], [], []>} : vector<128x8xf32>, vector<8x32xf32>, vector<128x32xf32> -> vector<128x32xf32>
    %226 = arith.addf %205, %225 : vector<128x32xf32>
    %227 = vector.extract_strided_slice %204 {offsets = [0, 8], sizes = [128, 8], strides = [1, 1]} : vector<128x96xf32> to vector<128x8xf32>
    %228 = vector.extract_strided_slice %204 {offsets = [0, 40], sizes = [128, 8], strides = [1, 1]} : vector<128x96xf32> to vector<128x8xf32>
    %229 = vector.extract_strided_slice %204 {offsets = [0, 72], sizes = [128, 8], strides = [1, 1]} : vector<128x96xf32> to vector<128x8xf32>
    %cst_74 = arith.constant dense<0.000000e+00> : vector<128x128xf32>
    %230 = tpu.matmul %227, %228, %cst_74 {dimension_numbers = #tpu.dot_dimension_numbers<[1], [1], [0], [0], [0, 0, 1, 0], [], []>} : vector<128x8xf32>, vector<128x8xf32>, vector<128x128xf32> -> vector<128x128xf32>
    %c5 = arith.constant 5 : index
    %c0_75 = arith.constant 0 : index
    %c0_76 = arith.constant 0 : index
    %231 = vector.load %arg7[%c5, %c0_75, %c0_76] : memref<8x128x128xf32, #tpu.memory_space<vmem>>, vector<1x128x128xf32>
    %232 = vector.shape_cast %231 : vector<1x128x128xf32> to vector<128x128xf32>
    %233 = arith.addf %230, %232 : vector<128x128xf32>
    %cst_77 = arith.constant dense<0xFF800000> : vector<128xf32>
    %234 = vector.multi_reduction <maximumf>, %233, %cst_77 [1] : vector<128x128xf32> to vector<128xf32>
    %235 = vector.shape_cast %234 : vector<128xf32> to vector<128x1xf32>
    %236 = vector.broadcast %235 : vector<128x1xf32> to vector<128x128xf32>
    %237 = arith.subf %233, %236 : vector<128x128xf32>
    %238 = math.exp %237 : vector<128x128xf32>
    %cst_78 = arith.constant dense<0.000000e+00> : vector<128xf32>
    %239 = vector.multi_reduction <add>, %238, %cst_78 [1] : vector<128x128xf32> to vector<128xf32>
    %240 = vector.shape_cast %239 : vector<128xf32> to vector<128x1xf32>
    %241 = tpu.reciprocal %240 {approx = true} : vector<128x1xf32> -> vector<128x1xf32>
    %242 = vector.broadcast %241 : vector<128x1xf32> to vector<128x128xf32>
    %243 = arith.mulf %238, %242 : vector<128x128xf32>
    %cst_79 = arith.constant dense<0.000000e+00> : vector<128x8xf32>
    %244 = tpu.matmul %243, %229, %cst_79 {dimension_numbers = #tpu.dot_dimension_numbers<[1], [0], [0], [1], [0, 0, 1, 1], [], []>} : vector<128x128xf32>, vector<128x8xf32>, vector<128x8xf32> -> vector<128x8xf32>
    %245 = vector.extract_strided_slice %170 {offsets = [8, 0], sizes = [8, 32], strides = [1, 1]} : vector<32x32xf32> to vector<8x32xf32>
    %cst_80 = arith.constant dense<0.000000e+00> : vector<128x32xf32>
    %246 = tpu.matmul %244, %245, %cst_80 {dimension_numbers = #tpu.dot_dimension_numbers<[1], [0], [0], [1], [0, 0, 1, 1], [], []>} : vector<128x8xf32>, vector<8x32xf32>, vector<128x32xf32> -> vector<128x32xf32>
    %247 = arith.addf %226, %246 : vector<128x32xf32>
    %248 = vector.extract_strided_slice %204 {offsets = [0, 16], sizes = [128, 8], strides = [1, 1]} : vector<128x96xf32> to vector<128x8xf32>
    %249 = vector.extract_strided_slice %204 {offsets = [0, 48], sizes = [128, 8], strides = [1, 1]} : vector<128x96xf32> to vector<128x8xf32>
    %250 = vector.extract_strided_slice %204 {offsets = [0, 80], sizes = [128, 8], strides = [1, 1]} : vector<128x96xf32> to vector<128x8xf32>
    %cst_81 = arith.constant dense<0.000000e+00> : vector<128x128xf32>
    %251 = tpu.matmul %248, %249, %cst_81 {dimension_numbers = #tpu.dot_dimension_numbers<[1], [1], [0], [0], [0, 0, 1, 0], [], []>} : vector<128x8xf32>, vector<128x8xf32>, vector<128x128xf32> -> vector<128x128xf32>
    %c6 = arith.constant 6 : index
    %c0_82 = arith.constant 0 : index
    %c0_83 = arith.constant 0 : index
    %252 = vector.load %arg7[%c6, %c0_82, %c0_83] : memref<8x128x128xf32, #tpu.memory_space<vmem>>, vector<1x128x128xf32>
    %253 = vector.shape_cast %252 : vector<1x128x128xf32> to vector<128x128xf32>
    %254 = arith.addf %251, %253 : vector<128x128xf32>
    %cst_84 = arith.constant dense<0xFF800000> : vector<128xf32>
    %255 = vector.multi_reduction <maximumf>, %254, %cst_84 [1] : vector<128x128xf32> to vector<128xf32>
    %256 = vector.shape_cast %255 : vector<128xf32> to vector<128x1xf32>
    %257 = vector.broadcast %256 : vector<128x1xf32> to vector<128x128xf32>
    %258 = arith.subf %254, %257 : vector<128x128xf32>
    %259 = math.exp %258 : vector<128x128xf32>
    %cst_85 = arith.constant dense<0.000000e+00> : vector<128xf32>
    %260 = vector.multi_reduction <add>, %259, %cst_85 [1] : vector<128x128xf32> to vector<128xf32>
    %261 = vector.shape_cast %260 : vector<128xf32> to vector<128x1xf32>
    %262 = tpu.reciprocal %261 {approx = true} : vector<128x1xf32> -> vector<128x1xf32>
    %263 = vector.broadcast %262 : vector<128x1xf32> to vector<128x128xf32>
    %264 = arith.mulf %259, %263 : vector<128x128xf32>
    %cst_86 = arith.constant dense<0.000000e+00> : vector<128x8xf32>
    %265 = tpu.matmul %264, %250, %cst_86 {dimension_numbers = #tpu.dot_dimension_numbers<[1], [0], [0], [1], [0, 0, 1, 1], [], []>} : vector<128x128xf32>, vector<128x8xf32>, vector<128x8xf32> -> vector<128x8xf32>
    %266 = vector.extract_strided_slice %170 {offsets = [16, 0], sizes = [8, 32], strides = [1, 1]} : vector<32x32xf32> to vector<8x32xf32>
    %cst_87 = arith.constant dense<0.000000e+00> : vector<128x32xf32>
    %267 = tpu.matmul %265, %266, %cst_87 {dimension_numbers = #tpu.dot_dimension_numbers<[1], [0], [0], [1], [0, 0, 1, 1], [], []>} : vector<128x8xf32>, vector<8x32xf32>, vector<128x32xf32> -> vector<128x32xf32>
    %268 = arith.addf %247, %267 : vector<128x32xf32>
    %269 = vector.extract_strided_slice %204 {offsets = [0, 24], sizes = [128, 8], strides = [1, 1]} : vector<128x96xf32> to vector<128x8xf32>
    %270 = vector.extract_strided_slice %204 {offsets = [0, 56], sizes = [128, 8], strides = [1, 1]} : vector<128x96xf32> to vector<128x8xf32>
    %271 = vector.extract_strided_slice %204 {offsets = [0, 88], sizes = [128, 8], strides = [1, 1]} : vector<128x96xf32> to vector<128x8xf32>
    %cst_88 = arith.constant dense<0.000000e+00> : vector<128x128xf32>
    %272 = tpu.matmul %269, %270, %cst_88 {dimension_numbers = #tpu.dot_dimension_numbers<[1], [1], [0], [0], [0, 0, 1, 0], [], []>} : vector<128x8xf32>, vector<128x8xf32>, vector<128x128xf32> -> vector<128x128xf32>
    %c7 = arith.constant 7 : index
    %c0_89 = arith.constant 0 : index
    %c0_90 = arith.constant 0 : index
    %273 = vector.load %arg7[%c7, %c0_89, %c0_90] : memref<8x128x128xf32, #tpu.memory_space<vmem>>, vector<1x128x128xf32>
    %274 = vector.shape_cast %273 : vector<1x128x128xf32> to vector<128x128xf32>
    %275 = arith.addf %272, %274 : vector<128x128xf32>
    %cst_91 = arith.constant dense<0xFF800000> : vector<128xf32>
    %276 = vector.multi_reduction <maximumf>, %275, %cst_91 [1] : vector<128x128xf32> to vector<128xf32>
    %277 = vector.shape_cast %276 : vector<128xf32> to vector<128x1xf32>
    %278 = vector.broadcast %277 : vector<128x1xf32> to vector<128x128xf32>
    %279 = arith.subf %275, %278 : vector<128x128xf32>
    %280 = math.exp %279 : vector<128x128xf32>
    %cst_92 = arith.constant dense<0.000000e+00> : vector<128xf32>
    %281 = vector.multi_reduction <add>, %280, %cst_92 [1] : vector<128x128xf32> to vector<128xf32>
    %282 = vector.shape_cast %281 : vector<128xf32> to vector<128x1xf32>
    %283 = tpu.reciprocal %282 {approx = true} : vector<128x1xf32> -> vector<128x1xf32>
    %284 = vector.broadcast %283 : vector<128x1xf32> to vector<128x128xf32>
    %285 = arith.mulf %280, %284 : vector<128x128xf32>
    %cst_93 = arith.constant dense<0.000000e+00> : vector<128x8xf32>
    %286 = tpu.matmul %285, %271, %cst_93 {dimension_numbers = #tpu.dot_dimension_numbers<[1], [0], [0], [1], [0, 0, 1, 1], [], []>} : vector<128x128xf32>, vector<128x8xf32>, vector<128x8xf32> -> vector<128x8xf32>
    %287 = vector.extract_strided_slice %170 {offsets = [24, 0], sizes = [8, 32], strides = [1, 1]} : vector<32x32xf32> to vector<8x32xf32>
    %cst_94 = arith.constant dense<0.000000e+00> : vector<128x32xf32>
    %288 = tpu.matmul %286, %287, %cst_94 {dimension_numbers = #tpu.dot_dimension_numbers<[1], [0], [0], [1], [0, 0, 1, 1], [], []>} : vector<128x8xf32>, vector<8x32xf32>, vector<128x32xf32> -> vector<128x32xf32>
    %289 = arith.addf %268, %288 : vector<128x32xf32>
    %290 = arith.addf %167, %289 : vector<128x32xf32>
    %291 = vector.broadcast %175 : vector<1x32xf32> to vector<128x32xf32>
    %292 = arith.addf %290, %291 : vector<128x32xf32>
    %cst_95 = arith.constant dense<0.000000e+00> : vector<128xf32>
    %293 = vector.multi_reduction <add>, %292, %cst_95 [1] : vector<128x32xf32> to vector<128xf32>
    %294 = vector.shape_cast %293 : vector<128xf32> to vector<128x1xf32>
    %cst_96 = arith.constant 3.200000e+01 : f32
    %295 = vector.broadcast %cst_96 : f32 to vector<128x1xf32>
    %296 = arith.divf %294, %295 : vector<128x1xf32>
    %297 = vector.broadcast %296 : vector<128x1xf32> to vector<128x32xf32>
    %298 = arith.subf %292, %297 : vector<128x32xf32>
    %299 = arith.mulf %298, %298 : vector<128x32xf32>
    %cst_97 = arith.constant dense<0.000000e+00> : vector<128xf32>
    %300 = vector.multi_reduction <add>, %299, %cst_97 [1] : vector<128x32xf32> to vector<128xf32>
    %301 = vector.shape_cast %300 : vector<128xf32> to vector<128x1xf32>
    %cst_98 = arith.constant 3.200000e+01 : f32
    %302 = vector.broadcast %cst_98 : f32 to vector<128x1xf32>
    %303 = arith.divf %301, %302 : vector<128x1xf32>
    %304 = vector.broadcast %296 : vector<128x1xf32> to vector<128x32xf32>
    %305 = arith.subf %292, %304 : vector<128x32xf32>
    %cst_99 = arith.constant 9.99999974E-6 : f32
    %306 = vector.broadcast %cst_99 : f32 to vector<128x1xf32>
    %307 = arith.addf %303, %306 : vector<128x1xf32>
    %308 = math.rsqrt %307 : vector<128x1xf32>
    %309 = vector.broadcast %308 : vector<128x1xf32> to vector<128x32xf32>
    %310 = arith.mulf %305, %309 : vector<128x32xf32>
    %311 = vector.broadcast %176 : vector<1x32xf32> to vector<128x32xf32>
    %312 = arith.mulf %310, %311 : vector<128x32xf32>
    %313 = vector.broadcast %177 : vector<1x32xf32> to vector<128x32xf32>
    %314 = arith.addf %312, %313 : vector<128x32xf32>
    %cst_100 = arith.constant dense<0.000000e+00> : vector<128x128xf32>
    %315 = tpu.matmul %314, %171, %cst_100 {dimension_numbers = #tpu.dot_dimension_numbers<[1], [0], [0], [1], [0, 0, 1, 1], [], []>} : vector<128x32xf32>, vector<32x128xf32>, vector<128x128xf32> -> vector<128x128xf32>
    %316 = vector.broadcast %178 : vector<1x128xf32> to vector<128x128xf32>
    %317 = arith.addf %315, %316 : vector<128x128xf32>
    %cst_101 = arith.constant 5.000000e-01 : f32
    %318 = vector.broadcast %cst_101 : f32 to vector<128x128xf32>
    %319 = arith.mulf %318, %317 : vector<128x128xf32>
    %cst_102 = arith.constant 1.41421354 : f32
    %320 = vector.broadcast %cst_102 : f32 to vector<128x128xf32>
    %321 = arith.divf %317, %320 : vector<128x128xf32>
    %322 = math.erf %321 : vector<128x128xf32>
    %cst_103 = arith.constant 1.000000e+00 : f32
    %323 = vector.broadcast %cst_103 : f32 to vector<128x128xf32>
    %324 = arith.addf %323, %322 : vector<128x128xf32>
    %325 = arith.mulf %319, %324 : vector<128x128xf32>
    %cst_104 = arith.constant dense<0.000000e+00> : vector<128x32xf32>
    %326 = tpu.matmul %325, %172, %cst_104 {dimension_numbers = #tpu.dot_dimension_numbers<[1], [0], [0], [1], [0, 0, 1, 1], [], []>} : vector<128x128xf32>, vector<128x32xf32>, vector<128x32xf32> -> vector<128x32xf32>
    %327 = arith.addf %292, %326 : vector<128x32xf32>
    %328 = vector.broadcast %179 : vector<1x32xf32> to vector<128x32xf32>
    %329 = arith.addf %327, %328 : vector<128x32xf32>
    %c0_105 = arith.constant 0 : index
    %c0_106 = arith.constant 0 : index
    %330 = vector.load %arg8[%c0_105, %c0_106] : memref<128x32xf32, #tpu.memory_space<vmem>>, vector<128x32xf32>
    tpu.vector_store %arg8[%c0_105, %c0_106], %329 {strides = array<i32>} : memref<128x32xf32, #tpu.memory_space<vmem>>, vector<128x32xf32>,
    return
  }
  func.func @transform_0(%arg0: i32) -> (i32, i32) {
    %c0_i32 = arith.constant 0 : i32
    %c0_i32_0 = arith.constant 0 : i32
    %c0_i32_1 = arith.constant 0 : i32
    return %c0_i32, %c0_i32_0 : i32, i32
  }
  func.func @transform_1(%arg0: i32) -> (i32, i32) {
    %c0_i32 = arith.constant 0 : i32
    %c0_i32_0 = arith.constant 0 : i32
    %c0_i32_1 = arith.constant 0 : i32
    return %c0_i32, %c0_i32_0 : i32, i32
  }
  func.func @transform_2(%arg0: i32) -> (i32, i32) {
    %c0_i32 = arith.constant 0 : i32
    %c0_i32_0 = arith.constant 0 : i32
    %c0_i32_1 = arith.constant 0 : i32
    return %c0_i32, %c0_i32_0 : i32, i32
  }
  func.func @transform_3(%arg0: i32) -> (i32, i32) {
    %c0_i32 = arith.constant 0 : i32
    %c0_i32_0 = arith.constant 0 : i32
    %c0_i32_1 = arith.constant 0 : i32
    return %c0_i32, %c0_i32_0 : i32, i32
  }
  func.func @transform_4(%arg0: i32) -> (i32, i32) {
    %c0_i32 = arith.constant 0 : i32
    %c0_i32_0 = arith.constant 0 : i32
    %c0_i32_1 = arith.constant 0 : i32
    return %c0_i32, %c0_i32_0 : i32, i32
  }
  func.func @transform_5(%arg0: i32) -> (i32, i32) {
    %c0_i32 = arith.constant 0 : i32
    %c0_i32_0 = arith.constant 0 : i32
    %c0_i32_1 = arith.constant 0 : i32
    return %c0_i32, %c0_i32_0 : i32, i32
  }
  func.func @transform_6(%arg0: i32) -> (i32, i32, i32) {
    %c0_i32 = arith.constant 0 : i32
    %c0_i32_0 = arith.constant 0 : i32
    %c0_i32_1 = arith.constant 0 : i32
    %c0_i32_2 = arith.constant 0 : i32
    return %c0_i32, %c0_i32_0, %c0_i32_1 : i32, i32, i32
  }
  func.func @transform_7(%arg0: i32) -> (i32, i32) {
    %c0_i32 = arith.constant 0 : i32
    %c0_i32_0 = arith.constant 0 : i32
    %c0_i32_1 = arith.constant 0 : i32
    return %c0_i32, %c0_i32_0 : i32, i32
  }
}

</mosaic_0001>

<bundles_post_ra>
// kernel: lr_transformer_block.1
= control target key start
LH: loop header
LB: loop body
LE: loop exit
PB: predicated region body
PF: predicated region fallthrough
CT: control target
= control target key end

     0   :  { %12 = vsyncpa [#allocation3], 0  ;;  %s15172_s24 = smov [#allocation2]   ;;  %s19071_s0 = inlined_call_operand.vmem [shape: f32[128,32], index: 0, kind: input, shape index: {}]   ;;  %s19072_s1 = inlined_call_operand.vmem [shape: f32[32,128], index: 1, kind: input, shape index: {}]   ;;  %s19073_s2 = inlined_call_operand.vmem [shape: f32[128,32], index: 2, kind: input, shape index: {}]   ;;  %s19074_s3 = inlined_call_operand.vmem [shape: f32[64,256], index: 3, kind: input, shape index: {}]   ;;  %s19075_s4 = inlined_call_operand.vmem [shape: f32[256,32], index: 4, kind: input, shape index: {}]   ;;  %s19076_s5 = inlined_call_operand.vmem [shape: f32[16,128], index: 5, kind: input, shape index: {}]   ;;  %s19077_s6 = inlined_call_operand.hbm [shape: f32[8,128,128], index: 6, kind: input, shape index: {}]   ;;  %s19078_s7 = inlined_call_operand.vmem [shape: f32[128,32], index: 7, kind: output, shape index: {}]  }
   0x1   :  { %s30_s25 = sshll.u32 %s15172_s24, 4  ;;  %s15148_s28 = scalar_lea.hbm %s19077_s6, 16384  ;;  %s31_s25 = int_to_ptr.vmem [resolvable:$true] %s30_s25 }
   0x2   :  { %p15149_p0 = scmp.ne.s32.totalorder %s19077_s6, %s15148_s28  ;;  %p15152_p1 = scmp.lt.u32.totalorder %s15148_s28, %s19077_s6 }
   0x4   :  { %p15154_p2 = pnand %p15152_p1, %p15149_p0 }
   0x6   :  { %15157 = shalt.err (!%p15154_p2)
}
   0x7   :  { %s15158_s10 = scalar_lea.vmem %s31_s25, 16384  ;;  %p15163_p4 = scmp.lt.s32.totalorder %s31_s25, %s31_s25 }
   0x8   :  { %p15159_p3 = scmp.ne.s32.totalorder %s31_s25, %s15158_s10  ;;  %p15164_p5 = scmp.lt.s32.totalorder %s15158_s10, %s15158_s10 }
   0xa   :  { %p15165_p6 = por %p15164_p5, %p15163_p4 }
   0xc   :  { %p15166_p7 = pnand %p15165_p6, %p15159_p3 }
   0xe   :  { %15169 = shalt.err (!%p15166_p7)
}
   0xf   :  { %s15173_s11 = smov 128   ;;  %s15174_s12 = smov 8  }
  0x10   :  { %36 = dma.hbm_to_vmem [thread:$0]  %s19077_s6, 16384, %s31_s25, [#allocation3], %s15173_s11, %s15173_s11, %s15174_s12  }
  0x11   :  { %15170 = dma.done.wait [#allocation3], 16384  }
  0x12   :  { %15171 = vsyncadd [#allocation3], 4294950912  ;;  %v15242_v0 = vld [vmem:[%s19071_s0] sm:$0xff]  ;;  %v15247_v1 = vld [vmem:[%s19071_s0 + $0x8] sm:$0xff]  ;;  %vm292_vm0 = vcmask 261120   ;;  %vm313_vm1 = vcmask 130048  }
  0x13   :  { %v15252_v2 = vld [vmem:[%s19071_s0 + $0x10] sm:$0xff]  ;;  %v12825_v3 = vpack.c.bf16 %v15247_v1, %v15242_v0  ;;  %v201_v4 = vmul.f32 %v15242_v0, %v15242_v0  ;;  %v202_v5 = vmul.f32 %v15247_v1, %v15247_v1  ;;  %v15263_v6 = vld [vmem:[%s19071_s0 + $0x18] sm:$0xff]  ;;  %v15270_v8 = vld [vmem:[%s19071_s0 + $0x20] sm:$0xff]  ;;  %vm945_vm2 = vcmask 64512   ;;  %s15175_s6 = smov 96   ;;  %s15176_s21 = smov 64  }
  0x14   :  { %v203_v7 = vmul.f32 %v15252_v2, %v15252_v2  ;;  %v15275_v9 = vld [vmem:[%s19071_s0 + $0x28] sm:$0xff]  ;;  %v12829_v10 = vpack.c.bf16 %v15263_v6, %v15252_v2  ;;  %v204_v11 = vmul.f32 %v15263_v6, %v15263_v6  ;;  %v205_v13 = vmul.f32 %v15270_v8, %v15270_v8  ;;  %v15288_v16 = vld [vmem:[%s19071_s0 + $0x30] sm:$0xff]  ;;  %v15293_v17 = vld [vmem:[%s19071_s0 + $0x38] sm:$0xff]  ;;  %s15177_s22 = smov 88   ;;  %s15178_s23 = smov 120  }
  0x15   :  { %12826 = vmatprep.subr.bf16.mxu0 %v12825_v3  ;;  %v12857_v12 = vpack.c.bf16 %v202_v5, %v201_v4  ;;  %v206_v14 = vmul.f32 %v15275_v9, %v15275_v9  ;;  %v12833_v18 = vpack.c.bf16 %v15275_v9, %v15270_v8  ;;  %v56_v19 = vld [vmem:[%s19072_s1] sm:$0xff]  ;;  %v207_v21 = vmul.f32 %v15288_v16, %v15288_v16  ;;  %v15312_v24 = vld [vmem:[%s19071_s0 + $0x48] sm:$0xff]  ;;  %v15323_v29 = vld [vmem:[%s19071_s0 + $0x50] sm:$0xff]  ;;  %s15179_s24 = smov 80   ;;  %s15180_s25 = smov 112  }
  0x16   :  { %12828 = vmatpush3.bf16.msra.mxu0 %v12825_v3  ;;  %v12861_v15 = vpack.c.bf16 %v204_v11, %v203_v7  ;;  %v208_v22 = vmul.f32 %v15293_v17, %v15293_v17  ;;  %v15307_v23 = vld [vmem:[%s19071_s0 + $0x40] sm:$0xff]  ;;  %11261 = vmatprep.mubr.f32.mxu0 %v56_v19  ;;  %v12837_v25 = vpack.c.bf16 %v15293_v17, %v15288_v16  ;;  %v15328_v30 = vld [vmem:[%s19071_s0 + $0x58] sm:$0xff]  ;;  %v15344_v36 = vld [vmem:[%s19071_s0 + $0x68] sm:$0xff]  ;;  %s15181_s26 = smov 56   ;;  %s15182_s27 = smov 72  }
  0x17   :  { %12858 = vmatprep.subr.bf16.mxu1 %v12857_v12  ;;  %12830 = vmatprep.subr.bf16.mxu0 %v12829_v10  ;;  %v12865_v20 = vpack.c.bf16 %v206_v14, %v205_v13  ;;  %v209_v27 = vmul.f32 %v15307_v23, %v15307_v23  ;;  %v210_v28 = vmul.f32 %v15312_v24, %v15312_v24  ;;  %v15339_v35 = vld [vmem:[%s19071_s0 + $0x60] sm:$0xff]  ;;  %v15355_v41 = vld [vmem:[%s19071_s0 + $0x70] sm:$0xff]  ;;  %v15360_v42 = vld [vmem:[%s19071_s0 + $0x78] sm:$0xff]  ;;  %s15183_s28 = smov 104   ;;  %s15184_s8 = smov 32  }
  0x18   :  { %12860 = vmatpush3.bf16.msra.mxu1 %v12857_v12  ;;  %11296 = vmatprep.mubr.f32.mxu1 %v56_v19  ;;  %v12869_v26 = vpack.c.bf16 %v208_v22, %v207_v21  ;;  %v12841_v31 = vpack.c.bf16 %v15312_v24, %v15307_v23  ;;  %v211_v33 = vmul.f32 %v15323_v29, %v15323_v29  ;;  %v57_v49 = vld [vmem:[%s19072_s1 + $0x8] sm:$0xff]  ;;  %v60_v58 = vld [vmem:[%s19073_s2] sm:$0xff]  ;;  %v78_v63 = vld [vmem:[%s19074_s3 + $0x10] sm:$0xff]  ;;  %s15185_s9 = smov 48   ;;  %s15186_s14 = smov 40  }
  0x19   :  { %12862 = vmatprep.subr.bf16.mxu1 %v12861_v15  ;;  %v12873_v32 = vpack.c.bf16 %v210_v28, %v209_v27  ;;  %v212_v34 = vmul.f32 %v15328_v30, %v15328_v30  ;;  %v12845_v37 = vpack.c.bf16 %v15328_v30, %v15323_v29  ;;  %v213_v39 = vmul.f32 %v15339_v35, %v15339_v35  ;;  %v76_v62 = vld [vmem:[%s19074_s3] sm:$0xff]  ;;  %v82_v14 = vld [vmem:[%s19074_s3 + $0x30] sm:$0xff]  ;;  %v63_v22 = vld [vmem:[%s19073_s2 + $0x18] sm:$0xff] }
  0x1a   :  { %12832 = vmatpush3.bf16.msra.mxu0 %v12829_v10  ;;  %v214_v40 = vmul.f32 %v15344_v36, %v15344_v36  ;;  %v12849_v43 = vpack.c.bf16 %v15344_v36, %v15339_v35  ;;  %v215_v45 = vmul.f32 %v15355_v41, %v15355_v41  ;;  %v216_v46 = vmul.f32 %v15360_v42, %v15360_v42  ;;  %v80_v13 = vld [vmem:[%s19074_s3 + $0x20] sm:$0xff]  ;;  %v66_v27 = vld [vmem:[%s19073_s2 + $0x30] sm:$0xff]  ;;  %vm15617_vm3 = vmpackc.low %vm945_vm2, %vm945_vm2 }
  0x1b   :  { %12834 = vmatprep.subr.bf16.mxu0 %v12833_v18  ;;  %v12877_v38 = vpack.c.bf16 %v212_v34, %v211_v33  ;;  %v12853_v47 = vpack.c.bf16 %v15360_v42, %v15355_v41  ;;  %v12897_v10 = vpack.c.bf16 %v78_v63, %v76_v62  ;;  %v12901_v21 = vpack.c.bf16 %v82_v14, %v80_v13  ;;  %v68_v33 = vld [vmem:[%s19073_s2 + $0x40] sm:$0xff] }
  0x1c   :  { %12864 = vmatpush3.bf16.msra.mxu1 %v12861_v15  ;;  %v12881_v44 = vpack.c.bf16 %v214_v40, %v213_v39  ;;  %v12885_v48 = vpack.c.bf16 %v216_v46, %v215_v45  ;;  %v71_v39 = vld [vmem:[%s19073_s2 + $0x58] sm:$0xff]  ;;  %v72_v40 = vld [vmem:[%s19073_s2 + $0x60] sm:$0xff] }
  0x1d   :  { %12866 = vmatprep.subr.bf16.mxu1 %v12865_v20  ;;  %v75_v45 = vld [vmem:[%s19073_s2 + $0x78] sm:$0xff] }
  0x1e   :  { %12836 = vmatpush3.bf16.msra.mxu0 %v12833_v18  ;;  %v61_v18 = vld [vmem:[%s19073_s2 + $0x8] sm:$0xff] }
  0x1f   :  { %12838 = vmatprep.subr.bf16.mxu0 %v12837_v25 }
  0x20   :  { %12868 = vmatpush3.bf16.msra.mxu1 %v12865_v20  ;;  %v62_v20 = vld [vmem:[%s19073_s2 + $0x10] sm:$0xff] }
  0x21   :  { %12870 = vmatprep.subr.bf16.mxu1 %v12869_v26 }
  0x22   :  { %12840 = vmatpush3.bf16.msra.mxu0 %v12837_v25  ;;  %v64_v25 = vld [vmem:[%s19073_s2 + $0x20] sm:$0xff] }
  0x23   :  { %12842 = vmatprep.subr.bf16.mxu0 %v12841_v31 }
  0x24   :  { %12872 = vmatpush3.bf16.msra.mxu1 %v12869_v26  ;;  %v65_v26 = vld [vmem:[%s19073_s2 + $0x28] sm:$0xff] }
  0x25   :  { %12874 = vmatprep.subr.bf16.mxu1 %v12873_v32 }
  0x26   :  { %12844 = vmatpush3.bf16.msra.mxu0 %v12841_v31  ;;  %v67_v31 = vld [vmem:[%s19073_s2 + $0x38] sm:$0xff] }
  0x27   :  { %12846 = vmatprep.subr.bf16.mxu0 %v12845_v37 }
  0x28   :  { %12876 = vmatpush3.bf16.msra.mxu1 %v12873_v32 }
  0x29   :  { %12878 = vmatprep.subr.bf16.mxu1 %v12877_v38 }
  0x2a   :  { %12848 = vmatpush3.bf16.msra.mxu0 %v12845_v37  ;;  %v69_v37 = vld [vmem:[%s19073_s2 + $0x48] sm:$0xff] }
  0x2b   :  { %12850 = vmatprep.subr.bf16.mxu0 %v12849_v43 }
  0x2c   :  { %12880 = vmatpush3.bf16.msra.mxu1 %v12877_v38  ;;  %v70_v38 = vld [vmem:[%s19073_s2 + $0x50] sm:$0xff] }
  0x2d   :  { %12882 = vmatprep.subr.bf16.mxu1 %v12881_v44 }
  0x2e   :  { %12852 = vmatpush3.bf16.msra.mxu0 %v12849_v43  ;;  %v73_v43 = vld [vmem:[%s19073_s2 + $0x68] sm:$0xff] }
  0x2f   :  { %12854 = vmatprep.subr.bf16.mxu0 %v12853_v47 }
  0x30   :  { %12884 = vmatpush3.bf16.msra.mxu1 %v12881_v44  ;;  %v74_v44 = vld [vmem:[%s19073_s2 + $0x70] sm:$0xff] }
  0x31   :  { %12886 = vmatprep.subr.bf16.mxu1 %v12885_v48 }
  0x32   :  { %12856 = vmatpush3.bf16.msra.mxu0 %v12853_v47 }
  0x34   :  { %12888 = vmatpush3.bf16.msra.mxu1 %v12885_v48 }
  0x35   :  { %11262 = vmatmul.mubr.f32.vlgmr.msra.gmra.mrb[0].mxu0 %v57_v49 }
  0x36   :  { %11303 = vmatprep.mubr.msk.f32.mxu0 %vm313_vm1, %v60_v58 }
  0x37   :  { %11297 = vmatmul.mubr.f32.vlgmr.msra.gmra.mrb[0].mxu1 %v57_v49 }
  0x38   :  { %11331 = vmatprep.mubr.msk.f32.mxu1 %vm313_vm1, %v60_v58 }
 0x108   :  { %v11263_v50 = vpop.f32.mrb[0].mxu0 }
 0x109   :  { %v192_v51 = vpop.f32.mrb[1].mxu0  ;;  %v296_v56 = vsel %vm292_vm0, %v11263_v50, 0.0 }
 0x10a   :  { %v11298_v52 = vpop.f32.mrb[0].mxu1  ;;  %v293_v53 = vsel %vm292_vm0, %v192_v51, 0.0 }
 0x10b   :  { %v283_v54 = vpop.f32.mrb[1].mxu1  ;;  %294 = vadd.xlane.f32.xlu0 %v293_v53  ;;  %v302_v57 = vsel %vm292_vm0, %v11298_v52, 0.0 }
 0x10c   :  { %v299_v55 = vsel %vm292_vm0, %v283_v54, 0.0 }
 0x10d   :  { %300 = vadd.xlane.f32.xlu1 %v299_v55 }
 0x10f   :  { %297 = vadd.xlane.f32.xlu0 %v296_v56 }
 0x111   :  { %303 = vadd.xlane.f32.xlu1 %v302_v57 }
 0x198   :  { %v295_v59 = vpop.xlane.xlu0 %294 }
 0x199   :  { %v305_v60 = vmul.f32 %v295_v59, %v295_v59 }
 0x19a   :  { %v301_v61 = vpop.xlane.xlu1 %300 }
 0x19b   :  { %v307_v3 = vsub.f32 %v301_v61, %v305_v60 }
 0x19c   :  { %v298_v4 = vpop.xlane.xlu0 %297 }
 0x19d   :  { %v306_v5 = vmul.f32 %v298_v4, %v298_v4  ;;  %v12889_v7 = vpack.c.bf16 %v298_v4, %v295_v59  ;;  %v309_v11 = vadd.f32 1e-05, %v307_v3 }
 0x19e   :  { %v304_v12 = vpop.xlane.xlu1 %303 }
 0x19f   :  { %v308_v15 = vsub.f32 %v304_v12, %v306_v5  ;;  %12890 = vmatprep.subr.bf16.mxu0 %v12889_v7  ;;  %14456 = vrsqrt.f32 %v309_v11 }
 0x1a0   :  { %12892 = vmatpush3.bf16.msra.mxu0 %v12889_v7 }
 0x1a1   :  { %v310_v19 = vadd.f32 1e-05, %v308_v15  ;;  %12898 = vmatprep.subr.bf16.mxu0 %v12897_v10 }
 0x1a3   :  { %14458 = vrsqrt.f32 %v310_v19  ;;  %11304 = vmatmul.mubr.msk.f32.vlgmr.msra.gmra.mrb[2].mxu0 %vm313_vm1, %v61_v18 }
 0x1a4   :  { %11306 = vmatprep.mubr.msk.f32.mxu0 %vm313_vm1, %v62_v20  ;;  %12900 = vmatpush3.bf16.msra.mxu0 %v12897_v10 }
 0x1a5   :  { %12902 = vmatprep.subr.bf16.mxu0 %v12901_v21 }
 0x1a7   :  { %11307 = vmatmul.mubr.msk.f32.gmra.mrb[4].mxu0 %vm313_vm1, %v63_v22 }
 0x1a8   :  { %11309 = vmatprep.mubr.msk.f32.mxu0 %vm313_vm1, %v64_v25  ;;  %12904 = vmatpush3.bf16.msra.mxu0 %v12901_v21 }
 0x1a9   :  { %v14457_v28 = vpop.eup %14456 }
 0x1ab   :  { %11310 = vmatmul.mubr.msk.f32.gmra.mrb[6].mxu0 %vm313_vm1, %v65_v26 }
 0x1ac   :  { %11312 = vmatprep.mubr.msk.f32.mxu0 %vm313_vm1, %v66_v27 }
 0x1ad   :  { %v14459_v32 = vpop.eup %14458 }
 0x1ae   :  { %v12893_v34 = vpack.c.bf16 %v14459_v32, %v14457_v28 }
 0x1af   :  { %11313 = vmatmul.mubr.msk.f32.gmra.mrb[8].mxu0 %vm313_vm1, %v67_v31 }
 0x1b0   :  { %12894 = vmatprep.subr.bf16.mxu1 %v12893_v34  ;;  %11315 = vmatprep.mubr.msk.f32.mxu0 %vm313_vm1, %v68_v33 }
 0x1b1   :  { %12896 = vmatpush3.bf16.msra.mxu1 %v12893_v34 }
 0x1b3   :  { %11316 = vmatmul.mubr.msk.f32.gmra.mrb[10].mxu0 %vm313_vm1, %v69_v37 }
 0x1b4   :  { %11332 = vmatmul.mubr.msk.f32.vlgmr.msra.gmra.mrb[2].mxu1 %vm313_vm1, %v61_v18  ;;  %11318 = vmatprep.mubr.msk.f32.mxu0 %vm313_vm1, %v70_v38 }
 0x1b5   :  { %11334 = vmatprep.mubr.msk.f32.mxu1 %vm313_vm1, %v62_v20 }
 0x1b7   :  { %11319 = vmatmul.mubr.msk.f32.gmra.mrb[12].mxu0 %vm313_vm1, %v71_v39 }
 0x1b8   :  { %11335 = vmatmul.mubr.msk.f32.gmra.mrb[4].mxu1 %vm313_vm1, %v63_v22  ;;  %11321 = vmatprep.mubr.msk.f32.mxu0 %vm313_vm1, %v72_v40 }
 0x1b9   :  { %11337 = vmatprep.mubr.msk.f32.mxu1 %vm313_vm1, %v64_v25 }
 0x1bb   :  { %11322 = vmatmul.mubr.msk.f32.gmra.mrb[14].mxu0 %vm313_vm1, %v73_v43 }
 0x1bc   :  { %11338 = vmatmul.mubr.msk.f32.gmra.mrb[6].mxu1 %vm313_vm1, %v65_v26  ;;  %11324 = vmatprep.mubr.msk.f32.mxu0 %vm313_vm1, %v74_v44 }
 0x1bd   :  { %11340 = vmatprep.mubr.msk.f32.mxu1 %vm313_vm1, %v66_v27 }
 0x1bf   :  { %11325 = vmatmul.mubr.msk.f32.gmra.mrb[16].mxu0 %vm313_vm1, %v75_v45 }
 0x1c0   :  { %11341 = vmatmul.mubr.msk.f32.gmra.mrb[8].mxu1 %vm313_vm1, %v67_v31 }
 0x1c1   :  { %11343 = vmatprep.mubr.msk.f32.mxu1 %vm313_vm1, %v68_v33 }
 0x1c4   :  { %11344 = vmatmul.mubr.msk.f32.gmra.mrb[10].mxu1 %vm313_vm1, %v69_v37 }
 0x1c5   :  { %11346 = vmatprep.mubr.msk.f32.mxu1 %vm313_vm1, %v70_v38 }
 0x1c8   :  { %11347 = vmatmul.mubr.msk.f32.gmra.mrb[12].mxu1 %vm313_vm1, %v71_v39 }
 0x1c9   :  { %11349 = vmatprep.mubr.msk.f32.mxu1 %vm313_vm1, %v72_v40 }
 0x1cc   :  { %11350 = vmatmul.mubr.msk.f32.gmra.mrb[14].mxu1 %vm313_vm1, %v73_v43 }
 0x1cd   :  { %11352 = vmatprep.mubr.msk.f32.mxu1 %vm313_vm1, %v74_v44 }
 0x1d0   :  { %11353 = vmatmul.mubr.msk.f32.gmra.mrb[16].mxu1 %vm313_vm1, %v75_v45 }
 0x276   :  { %v11305_v46 = vpop.f32.mrb[2].mxu0 }
 0x277   :  { %v428_v47 = vpop.f32.mrb[3].mxu0  ;;  %v653_v54 = vsub.f32 %v15247_v1, %v11305_v46 }
 0x278   :  { %v652_v55 = vsub.f32 %v15242_v0, %v428_v47 }
 0x27a   :  { %v11308_v48 = vpop.f32.mrb[4].mxu0 }
 0x27b   :  { %v438_v49 = vpop.f32.mrb[5].mxu0  ;;  %v655_v61 = vsub.f32 %v15263_v6, %v11308_v48  ;;  %v684_v48 = vlaneseq }
 0x27c   :  { %v654_v63 = vsub.f32 %v15252_v2, %v438_v49 }
 0x27d   :  { %v15501_v49 = vshrl.u32 %v684_v48, 7 }
 0x27e   :  { %v11311_v50 = vpop.f32.mrb[6].mxu0 }
 0x27f   :  { %v448_v51 = vpop.f32.mrb[7].mxu0  ;;  %v657_v0 = vsub.f32 %v15275_v9, %v11311_v50  ;;  %19110 = vst [vmem:[#allocation5_spill] sm:$0xff] %v15501_v49 }
 0x280   :  { %v656_v11 = vsub.f32 %v15270_v8, %v448_v51 }
 0x282   :  { %v11314_v52 = vpop.f32.mrb[8].mxu0 }
 0x283   :  { %v458_v53 = vpop.f32.mrb[9].mxu0  ;;  %v659_v15 = vsub.f32 %v15293_v17, %v11314_v52 }
 0x284   :  { %v658_v19 = vsub.f32 %v15288_v16, %v458_v53 }
 0x286   :  { %v11317_v56 = vpop.f32.mrb[10].mxu0 }
 0x287   :  { %v11333_v57 = vpop.f32.mrb[2].mxu1  ;;  %v468_v58 = vpop.f32.mrb[11].mxu0  ;;  %v661_v25 = vsub.f32 %v15312_v24, %v11317_v56 }
 0x288   :  { %v669_v59 = vmul.f32 %v11333_v57, %v653_v54  ;;  %v573_v60 = vpop.f32.mrb[3].mxu1  ;;  %v660_v27 = vsub.f32 %v15307_v23, %v468_v58 }
 0x289   :  { %v668_v62 = vmul.f32 %v652_v55, %v573_v60 }
 0x28a   :  { %v11320_v3 = vpop.f32.mrb[12].mxu0 }
 0x28b   :  { %v11336_v4 = vpop.f32.mrb[4].mxu1  ;;  %11363 = vmatprep.mubr.msk.f32.mxu0 %vm292_vm0, %v668_v62  ;;  %v478_v5 = vpop.f32.mrb[13].mxu0  ;;  %v663_v16 = vsub.f32 %v15328_v30, %v11320_v3 }
 0x28c   :  { %v671_v7 = vmul.f32 %v11336_v4, %v655_v61  ;;  %v583_v10 = vpop.f32.mrb[5].mxu1  ;;  %11364 = vmatmul.mubr.msk.f32.vlgmr.msra.gmra.mrb[18].mxu0 %vm292_vm0, %v669_v59  ;;  %v662_v33 = vsub.f32 %v15323_v29, %v478_v5 }
 0x28d   :  { %v670_v1 = vmul.f32 %v654_v63, %v583_v10 }
 0x28e   :  { %v11323_v12 = vpop.f32.mrb[14].mxu0 }
 0x28f   :  { %v11339_v13 = vpop.f32.mrb[6].mxu1  ;;  %11366 = vmatprep.mubr.msk.f32.mxu0 %vm292_vm0, %v670_v1  ;;  %v488_v6 = vpop.f32.mrb[15].mxu0  ;;  %v665_v23 = vsub.f32 %v15344_v36, %v11323_v12 }
 0x290   :  { %v673_v2 = vmul.f32 %v11339_v13, %v657_v0  ;;  %v593_v14 = vpop.f32.mrb[7].mxu1  ;;  %11367 = vmatmul.mubr.msk.f32.gmra.mrb[20].mxu0 %vm292_vm0, %v671_v7  ;;  %v664_v39 = vsub.f32 %v15339_v35, %v488_v6 }
 0x291   :  { %v672_v18 = vmul.f32 %v656_v11, %v593_v14 }
 0x292   :  { %v11326_v20 = vpop.f32.mrb[16].mxu0 }
 0x293   :  { %v11342_v21 = vpop.f32.mrb[8].mxu1  ;;  %11369 = vmatprep.mubr.msk.f32.mxu0 %vm292_vm0, %v672_v18  ;;  %v498_v9 = vpop.f32.mrb[17].mxu0  ;;  %v667_v29 = vsub.f32 %v15360_v42, %v11326_v20  ;;  %v19079_v42 = vsub.s32 0, %v15501_v49  ;;  %v1506_v49 = vld [vmem:[#allocation2 + $0xe8] sm:$0xff] }
 0x294   :  { %v675_v8 = vmul.f32 %v11342_v21, %v659_v15  ;;  %v603_v22 = vpop.f32.mrb[9].mxu1  ;;  %11370 = vmatmul.mubr.msk.f32.gmra.mrb[22].mxu0 %vm292_vm0, %v673_v2  ;;  %v666_v45 = vsub.f32 %v15355_v41, %v498_v9  ;;  %v124_v41 = vld [vmem:[%s19076_s5] sm:$0xff] }
 0x295   :  { %v674_v26 = vmul.f32 %v658_v19, %v603_v22  ;;  %v687_v50 = vrot.slane %v124_v41, %v19079_v42 }
 0x297   :  { %v11345_v28 = vpop.f32.mrb[10].mxu1  ;;  %11372 = vmatprep.mubr.msk.f32.mxu0 %vm292_vm0, %v674_v26 }
 0x298   :  { %v677_v17 = vmul.f32 %v11345_v28, %v661_v25  ;;  %v613_v31 = vpop.f32.mrb[11].mxu1  ;;  %11373 = vmatmul.mubr.msk.f32.gmra.mrb[24].mxu0 %vm292_vm0, %v675_v8 }
 0x299   :  { %v676_v32 = vmul.f32 %v660_v27, %v613_v31 }
 0x29b   :  { %v11348_v34 = vpop.f32.mrb[12].mxu1  ;;  %11375 = vmatprep.mubr.msk.f32.mxu0 %vm292_vm0, %v676_v32 }
 0x29c   :  { %v679_v37 = vmul.f32 %v11348_v34, %v663_v16  ;;  %v623_v24 = vpop.f32.mrb[13].mxu1  ;;  %11376 = vmatmul.mubr.msk.f32.gmra.mrb[26].mxu0 %vm292_vm0, %v677_v17  ;;  %v19111_v34 = vmov 0 }
 0x29d   :  { %v678_v38 = vmul.f32 %v662_v33, %v623_v24  ;;  %v19112_v34 = vsel %vm15617_vm3, 4294967295, %v19111_v34 }
 0x29e   :  { %19113 = vst [vmem:[#allocation6_spill] sm:$0xff] %v19112_v34 }
 0x29f   :  { %v11351_v40 = vpop.f32.mrb[14].mxu1  ;;  %11378 = vmatprep.mubr.msk.f32.mxu0 %vm292_vm0, %v678_v38 }
 0x2a0   :  { %v681_v43 = vmul.f32 %v11351_v40, %v665_v23  ;;  %v633_v30 = vpop.f32.mrb[15].mxu1  ;;  %11379 = vmatmul.mubr.msk.f32.gmra.mrb[28].mxu0 %vm292_vm0, %v679_v37 }
 0x2a1   :  { %v680_v44 = vmul.f32 %v664_v39, %v633_v30 }
 0x2a3   :  { %v11354_v46 = vpop.f32.mrb[16].mxu1  ;;  %11381 = vmatprep.mubr.msk.f32.mxu0 %vm292_vm0, %v680_v44 }
 0x2a4   :  { %v683_v47 = vmul.f32 %v11354_v46, %v667_v29  ;;  %v643_v36 = vpop.f32.mrb[17].mxu1  ;;  %11382 = vmatmul.mubr.msk.f32.gmra.mrb[30].mxu0 %vm292_vm0, %v681_v43 }
 0x2a5   :  { %v682_v35 = vmul.f32 %v666_v45, %v643_v36 }
 0x2a7   :  { %11384 = vmatprep.mubr.msk.f32.mxu0 %vm292_vm0, %v682_v35 }
 0x2a8   :  { %11385 = vmatmul.mubr.msk.f32.gmra.mrb[32].mxu0 %vm292_vm0, %v683_v47 }
 0x35f   :  { %v11365_v51 = vpop.f32.mrb[18].mxu0 }
 0x360   :  { %v15509_v52 = vadd.f32 %v11365_v51, %v687_v50  ;;  %v802_v53 = vpop.f32.mrb[19].mxu0 }
 0x361   :  { %v15511_v54 = vadd.f32 %v802_v53, %v687_v50 }
 0x363   :  { %11419 = vmatprep.mubr.msk.f32.mxu1 %vm945_vm2, %v15511_v54  ;;  %v11368_v55 = vpop.f32.mrb[20].mxu0  ;;  %v15517_v56 = vpack.i.bf16 %v15509_v52, %v15511_v54 }
 0x364   :  { %v15519_v57 = vadd.f32 %v11368_v55, %v687_v50  ;;  %v812_v58 = vpop.f32.mrb[21].mxu0 }
 0x365   :  { %13817 = vrot.lane.b32.xlu0 %v15517_v56, %s15175_s6  ;;  %v15523_v59 = vadd.f32 %v812_v58, %v687_v50 }
 0x367   :  { %v15527_v60 = vpack.i.bf16 %v15519_v57, %v15523_v59  ;;  %v11371_v61 = vpop.f32.mrb[22].mxu0 }
 0x368   :  { %v15529_v62 = vadd.f32 %v11371_v61, %v687_v50  ;;  %v822_v63 = vpop.f32.mrb[23].mxu0 }
 0x369   :  { %13822 = vrot.lane.b32.xlu1 %v15527_v60, %s15175_s6  ;;  %v15533_v3 = vadd.f32 %v822_v63, %v687_v50 }
 0x36b   :  { %v11374_v4 = vpop.f32.mrb[24].mxu0  ;;  %v15537_v5 = vpack.i.bf16 %v15529_v62, %v15533_v3 }
 0x36c   :  { %v15539_v7 = vadd.f32 %v11374_v4, %v687_v50  ;;  %v832_v10 = vpop.f32.mrb[25].mxu0 }
 0x36d   :  { %13827 = vrot.lane.b32.xlu1 %v15537_v5, %s15175_s6  ;;  %v15543_v0 = vadd.f32 %v832_v10, %v687_v50 }
 0x36f   :  { %v11377_v1 = vpop.f32.mrb[26].mxu0  ;;  %v15547_v11 = vpack.i.bf16 %v15539_v7, %v15543_v0 }
 0x370   :  { %v15549_v12 = vadd.f32 %v11377_v1, %v687_v50  ;;  %v842_v13 = vpop.f32.mrb[27].mxu0 }
 0x371   :  { %v15551_v6 = vadd.f32 %v842_v13, %v687_v50  ;;  %13832 = vrot.lane.b32.xlu1 %v15547_v11, %s15175_s6 }
 0x373   :  { %v11380_v2 = vpop.f32.mrb[28].mxu0  ;;  %v15557_v14 = vpack.i.bf16 %v15549_v12, %v15551_v6 }
 0x374   :  { %v15559_v15 = vadd.f32 %v11380_v2, %v687_v50  ;;  %v852_v18 = vpop.f32.mrb[29].mxu0 }
 0x375   :  { %v15561_v19 = vadd.f32 %v852_v18, %v687_v50  ;;  %13837 = vrot.lane.b32.xlu0 %v15557_v14, %s15175_s6 }
 0x377   :  { %v11383_v20 = vpop.f32.mrb[30].mxu0  ;;  %v15567_v21 = vpack.i.bf16 %v15559_v15, %v15561_v19 }
 0x378   :  { %v15569_v9 = vadd.f32 %v11383_v20, %v687_v50  ;;  %v862_v8 = vpop.f32.mrb[31].mxu0 }
 0x379   :  { %v15571_v22 = vadd.f32 %v862_v8, %v687_v50  ;;  %13842 = vrot.lane.b32.xlu1 %v15567_v21, %s15175_s6 }
 0x37b   :  { %v11386_v25 = vpop.f32.mrb[32].mxu0  ;;  %v15577_v26 = vpack.i.bf16 %v15569_v9, %v15571_v22 }
 0x37c   :  { %v15579_v27 = vadd.f32 %v11386_v25, %v687_v50  ;;  %v872_v28 = vpop.f32.mrb[33].mxu0 }
 0x37d   :  { %v15581_v17 = vadd.f32 %v872_v28, %v687_v50  ;;  %13847 = vrot.lane.b32.xlu0 %v15577_v26, %s15175_s6 }
 0x37f   :  { %v15587_v31 = vpack.i.bf16 %v15579_v27, %v15581_v17 }
 0x381   :  { %13857 = vrot.lane.b32.xlu0 %v15517_v56, %s15176_s21  ;;  %13852 = vrot.lane.b32.xlu1 %v15587_v31, %s15175_s6 }
 0x385   :  { %13872 = vrot.lane.b32.xlu0 %v15547_v11, %s15176_s21  ;;  %13862 = vrot.lane.b32.xlu1 %v15527_v60, %s15176_s21 }
 0x389   :  { %13877 = vrot.lane.b32.xlu0 %v15557_v14, %s15176_s21  ;;  %13867 = vrot.lane.b32.xlu1 %v15537_v5, %s15176_s21 }
 0x38d   :  { %13892 = vrot.lane.b32.xlu0 %v15517_v56, %s15177_s22  ;;  %13882 = vrot.lane.b32.xlu1 %v15567_v21, %s15176_s21 }
 0x391   :  { %13902 = vrot.lane.b32.xlu0 %v15537_v5, %s15177_s22  ;;  %13887 = vrot.lane.b32.xlu1 %v15577_v26, %s15176_s21 }
 0x395   :  { %13897 = vrot.lane.b32.xlu1 %v15527_v60, %s15177_s22 }
 0x399   :  { %13907 = vrot.lane.b32.xlu1 %v15547_v11, %s15177_s22 }
 0x39d   :  { %13912 = vrot.lane.b32.xlu1 %v15587_v31, %s15176_s21 }
 0x3d7   :  { %v13818_v16 = vpop.permute.xlu0 %13817 }
 0x3d8   :  { %v13820_v32 = vunpack.i.h.bf16 %v13818_v16  ;;  %v13819_v33 = vunpack.i.l.bf16 %v13818_v16 }
 0x3da   :  { %v12905_v37 = vpack.c.bf16 %v13820_v32, %v13819_v33 }
 0x3db   :  { %v13823_v24 = vpop.permute.xlu1 %13822 }
 0x3dc   :  { %12907 = vmatprep.subr.msk.bf16.mxu1 %vm15617_vm3, %v12905_v37  ;;  %v13825_v23 = vunpack.i.h.bf16 %v13823_v24  ;;  %v13824_v38 = vunpack.i.l.bf16 %v13823_v24 }
 0x3dd   :  { %12910 = vmatpush3.bf16.xpose.msk.msra.mxu1 %vm15617_vm3, %v12905_v37 }
 0x3de   :  { %v12911_v39 = vpack.c.bf16 %v13825_v23, %v13824_v38 }
 0x3df   :  { %v13828_v40 = vpop.permute.xlu1 %13827 }
 0x3e0   :  { %12913 = vmatprep.subr.msk.bf16.mxu1 %vm15617_vm3, %v12911_v39  ;;  %v13830_v43 = vunpack.i.h.bf16 %v13828_v40  ;;  %v13829_v30 = vunpack.i.l.bf16 %v13828_v40 }
 0x3e2   :  { %v12917_v29 = vpack.c.bf16 %v13830_v43, %v13829_v30 }
 0x3e3   :  { %v13833_v44 = vpop.permute.xlu1 %13832 }
 0x3e4   :  { %v13835_v45 = vunpack.i.h.bf16 %v13833_v44  ;;  %v13834_v46 = vunpack.i.l.bf16 %v13833_v44 }
 0x3e5   :  { %12916 = vmatpush3.bf16.xpose.msk.msra.mxu1 %vm15617_vm3, %v12911_v39 }
 0x3e6   :  { %12919 = vmatprep.subr.msk.bf16.mxu1 %vm15617_vm3, %v12917_v29  ;;  %v12923_v36 = vpack.c.bf16 %v13835_v45, %v13834_v46 }
 0x3e7   :  { %v13838_v47 = vpop.permute.xlu0 %13837 }
 0x3e8   :  { %v13840_v48 = vunpack.i.h.bf16 %v13838_v47  ;;  %v13839_v41 = vunpack.i.l.bf16 %v13838_v47 }
 0x3ea   :  { %v12929_v51 = vpack.c.bf16 %v13840_v48, %v13839_v41 }
 0x3eb   :  { %v13843_v35 = vpop.permute.xlu1 %13842 }
 0x3ec   :  { %v13845_v63 = vunpack.i.h.bf16 %v13843_v35  ;;  %v13844_v4 = vunpack.i.l.bf16 %v13843_v35 }
 0x3ed   :  { %12922 = vmatpush3.bf16.xpose.msk.msra.mxu1 %vm15617_vm3, %v12917_v29 }
 0x3ee   :  { %12925 = vmatprep.subr.msk.bf16.mxu1 %vm15617_vm3, %v12923_v36  ;;  %v12935_v20 = vpack.c.bf16 %v13845_v63, %v13844_v4 }
 0x3ef   :  { %v13848_v50 = vpop.permute.xlu0 %13847 }
 0x3f0   :  { %v13850_v24 = vunpack.i.h.bf16 %v13848_v50  ;;  %v13849_v23 = vunpack.i.l.bf16 %v13848_v50 }
 0x3f2   :  { %v12941_v29 = vpack.c.bf16 %v13850_v24, %v13849_v23 }
 0x3f3   :  { %v13858_v53 = vpop.permute.xlu0 %13857  ;;  %v13853_v55 = vpop.permute.xlu1 %13852 }
 0x3f4   :  { %v13860_v58 = vunpack.i.h.bf16 %v13858_v53  ;;  %v13859_v61 = vunpack.i.l.bf16 %v13858_v53  ;;  %v13854_v35 = vunpack.i.l.bf16 %v13853_v55 }
 0x3f5   :  { %12928 = vmatpush3.bf16.xpose.msk.msra.mxu1 %vm15617_vm3, %v12923_v36  ;;  %v13855_v36 = vunpack.i.h.bf16 %v13853_v55 }
 0x3f6   :  { %v12953_v10 = vpack.c.bf16 %v13860_v58, %v13859_v61  ;;  %12931 = vmatprep.subr.msk.bf16.mxu1 %vm15617_vm3, %v12929_v51 }
 0x3f7   :  { %v13873_v1 = vpop.permute.xlu0 %13872  ;;  %v13863_v13 = vpop.permute.xlu1 %13862  ;;  %v12947_v53 = vpack.c.bf16 %v13855_v36, %v13854_v35 }
 0x3f8   :  { %v13865_v2 = vunpack.i.h.bf16 %v13863_v13  ;;  %v13864_v18 = vunpack.i.l.bf16 %v13863_v13  ;;  %12954 = vmatprep.subr.bf16.mxu0 %v12953_v10  ;;  %v13875_v28 = vunpack.i.h.bf16 %v13873_v1  ;;  %v13874_v16 = vunpack.i.l.bf16 %v13873_v1 }
 0x3f9   :  { %12956 = vmatpush3.bf16.msra.mxu0 %v12953_v10 }
 0x3fa   :  { %v12957_v8 = vpack.c.bf16 %v13865_v2, %v13864_v18  ;;  %v12965_v30 = vpack.c.bf16 %v13875_v28, %v13874_v16 }
 0x3fb   :  { %v13868_v25 = vpop.permute.xlu1 %13867  ;;  %v13878_v37 = vpop.permute.xlu0 %13877 }
 0x3fc   :  { %v13870_v32 = vunpack.i.h.bf16 %v13868_v25  ;;  %v13869_v33 = vunpack.i.l.bf16 %v13868_v25  ;;  %12958 = vmatprep.subr.bf16.mxu0 %v12957_v8  ;;  %v13880_v40 = vunpack.i.h.bf16 %v13878_v37  ;;  %v13879_v43 = vunpack.i.l.bf16 %v13878_v37 }
 0x3fd   :  { %12934 = vmatpush3.bf16.xpose.msk.msra.mxu1 %vm15617_vm3, %v12929_v51  ;;  %12960 = vmatpush3.bf16.msra.mxu0 %v12957_v8  ;;  %v881_v8 = vld [vmem:[#allocation2] sm:$0xff] }
 0x3fe   :  { %v12961_v38 = vpack.c.bf16 %v13870_v32, %v13869_v33  ;;  %12937 = vmatprep.subr.msk.bf16.mxu1 %vm15617_vm3, %v12935_v20  ;;  %v12969_v47 = vpack.c.bf16 %v13880_v40, %v13879_v43  ;;  %v884_v33 = vld [vmem:[#allocation2 + $0x18] sm:$0xff] }
 0x3ff   :  { %v13883_v39 = vpop.permute.xlu1 %13882  ;;  %v13893_v63 = vpop.permute.xlu0 %13892 }
 0x400   :  { %12962 = vmatprep.subr.bf16.mxu0 %v12961_v38  ;;  %v13885_v45 = vunpack.i.h.bf16 %v13883_v39  ;;  %v13884_v46 = vunpack.i.l.bf16 %v13883_v39  ;;  %v13895_v4 = vunpack.i.h.bf16 %v13893_v63  ;;  %v13894_v10 = vunpack.i.l.bf16 %v13893_v63  ;;  %v883_v39 = vld [vmem:[#allocation2 + $0x10] sm:$0xff] }
 0x401   :  { %12964 = vmatpush3.bf16.msra.mxu0 %v12961_v38  ;;  %v886_v38 = vld [vmem:[#allocation2 + $0x28] sm:$0xff] }
 0x402   :  { %12966 = vmatprep.subr.bf16.mxu0 %v12965_v30  ;;  %v12973_v51 = vpack.c.bf16 %v13885_v45, %v13884_v46  ;;  %v15655_v18 = vpack.c.bf16 %v13895_v4, %v13894_v10  ;;  %v885_v45 = vld [vmem:[#allocation2 + $0x20] sm:$0xff] }
 0x403   :  { %v13888_v44 = vpop.permute.xlu1 %13887  ;;  %v889_v4 = vld [vmem:[#allocation2 + $0x40] sm:$0xff] }
 0x404   :  { %v13890_v41 = vunpack.i.h.bf16 %v13888_v44  ;;  %v13889_v50 = vunpack.i.l.bf16 %v13888_v44  ;;  %v888_v44 = vld [vmem:[#allocation2 + $0x38] sm:$0xff] }
 0x405   :  { %12940 = vmatpush3.bf16.xpose.msk.msra.mxu1 %vm15617_vm3, %v12935_v20  ;;  %12968 = vmatpush3.bf16.msra.mxu0 %v12965_v30  ;;  %v882_v20 = vld [vmem:[#allocation2 + $0x8] sm:$0xff] }
 0x406   :  { %12970 = vmatprep.subr.bf16.mxu0 %v12969_v47  ;;  %12943 = vmatprep.subr.msk.bf16.mxu1 %vm15617_vm3, %v12941_v29  ;;  %v12977_v61 = vpack.c.bf16 %v13890_v41, %v13889_v50  ;;  %v890_v41 = vld [vmem:[#allocation2 + $0x48] sm:$0xff]  ;;  %v887_v50 = vld [vmem:[#allocation2 + $0x30] sm:$0xff] }
 0x407   :  { %v15647_v48 = vpop.permute.xlu1 %13897 }
 0x409   :  { %12972 = vmatpush3.bf16.msra.mxu0 %v12969_v47 }
 0x40a   :  { %12974 = vmatprep.subr.bf16.mxu0 %v12973_v51 }
 0x40b   :  { %v15649_v58 = vpop.permute.xlu1 %13907 }
 0x40d   :  { %12946 = vmatpush3.bf16.xpose.msk.msra.mxu1 %vm15617_vm3, %v12941_v29  ;;  %12976 = vmatpush3.bf16.msra.mxu0 %v12973_v51 }
 0x40e   :  { %12978 = vmatprep.subr.bf16.mxu0 %v12977_v61  ;;  %12949 = vmatprep.subr.msk.bf16.mxu1 %vm15617_vm3, %v12947_v53 }
 0x40f   :  { %v13913_v55 = vpop.permute.xlu1 %13912 }
 0x410   :  { %v13915_v1 = vunpack.i.h.bf16 %v13913_v55  ;;  %v13914_v13 = vunpack.i.l.bf16 %v13913_v55  ;;  %v892_v55 = vld [vmem:[#allocation2 + $0x58] sm:$0xff] }
 0x411   :  { %12980 = vmatpush3.bf16.msra.mxu0 %v12977_v61 }
 0x412   :  { %v12981_v2 = vpack.c.bf16 %v13915_v1, %v13914_v13 }
 0x414   :  { %12982 = vmatprep.subr.bf16.mxu0 %v12981_v2 }
 0x415   :  { %12952 = vmatpush3.bf16.xpose.msk.msra.mxu1 %vm15617_vm3, %v12947_v53  ;;  %12984 = vmatpush3.bf16.msra.mxu0 %v12981_v2 }
 0x416   :  { %12987 = vmatprep.subr.msk.bf16.mxu0 %vm15617_vm3, %v15655_v18 }
 0x41c   :  { %11420 = vmatmul.mubr.msk.f32.vlgmr.msra.gmra.mrb[18].mxu1 %vm945_vm2, %v15509_v52 }
 0x41d   :  { %11422 = vmatprep.mubr.msk.f32.mxu1 %vm945_vm2, %v15523_v59 }
 0x420   :  { %11423 = vmatmul.mubr.msk.f32.gmra.mrb[20].mxu1 %vm945_vm2, %v15519_v57 }
 0x421   :  { %11425 = vmatprep.mubr.msk.f32.mxu1 %vm945_vm2, %v15533_v3 }
 0x424   :  { %11426 = vmatmul.mubr.msk.f32.gmra.mrb[22].mxu1 %vm945_vm2, %v15529_v62 }
 0x425   :  { %11428 = vmatprep.mubr.msk.f32.mxu1 %vm945_vm2, %v15543_v0 }
 0x428   :  { %11429 = vmatmul.mubr.msk.f32.gmra.mrb[24].mxu1 %vm945_vm2, %v15539_v7 }
 0x429   :  { %11431 = vmatprep.mubr.msk.f32.mxu1 %vm945_vm2, %v15551_v6 }
 0x42c   :  { %11432 = vmatmul.mubr.msk.f32.gmra.mrb[26].mxu1 %vm945_vm2, %v15549_v12 }
 0x42d   :  { %11434 = vmatprep.mubr.msk.f32.mxu1 %vm945_vm2, %v15561_v19 }
 0x430   :  { %11435 = vmatmul.mubr.msk.f32.gmra.mrb[28].mxu1 %vm945_vm2, %v15559_v15 }
 0x431   :  { %11437 = vmatprep.mubr.msk.f32.mxu1 %vm945_vm2, %v15571_v22 }
 0x434   :  { %11438 = vmatmul.mubr.msk.f32.gmra.mrb[30].mxu1 %vm945_vm2, %v15569_v9 }
 0x435   :  { %11440 = vmatprep.mubr.msk.f32.mxu1 %vm945_vm2, %v15581_v17 }
 0x438   :  { %11441 = vmatmul.mubr.msk.f32.gmra.mrb[32].mxu1 %vm945_vm2, %v15579_v27 }
 0x4ef   :  { %v11421_v25 = vpop.f32.mrb[18].mxu1 }
 0x4f0   :  { %v15692_v28 = vadd.f32 %v11421_v25, %v882_v20  ;;  %v1076_v16 = vpop.f32.mrb[19].mxu1  ;;  %v894_v20 = vld [vmem:[#allocation2 + $0x68] sm:$0xff] }
 0x4f1   :  { %v15694_v32 = vadd.f32 %v1076_v16, %v881_v8  ;;  %v891_v8 = vld [vmem:[#allocation2 + $0x50] sm:$0xff] }
 0x4f2   :  { %1157 = vmax.xlane.f32.xlu1 %v15692_v28 }
 0x4f3   :  { %v11424_v37 = vpop.f32.mrb[20].mxu1  ;;  %1155 = vmax.xlane.f32.xlu0 %v15694_v32 }
 0x4f4   :  { %v15698_v24 = vadd.f32 %v11424_v37, %v884_v33  ;;  %v1086_v23 = vpop.f32.mrb[21].mxu1 }
 0x4f5   :  { %v15703_v29 = vadd.f32 %v1086_v23, %v883_v39  ;;  %v896_v23 = vld [vmem:[#allocation2 + $0x78] sm:$0xff] }
 0x4f7   :  { %v11427_v40 = vpop.f32.mrb[22].mxu1  ;;  %1161 = vmax.xlane.f32.xlu0 %v15698_v24 }
 0x4f8   :  { %v15701_v43 = vadd.f32 %v11427_v40, %v886_v38  ;;  %v1096_v30 = vpop.f32.mrb[23].mxu1  ;;  %v893_v38 = vld [vmem:[#allocation2 + $0x60] sm:$0xff] }
 0x4f9   :  { %v15707_v35 = vadd.f32 %v1096_v30, %v885_v45  ;;  %v895_v45 = vld [vmem:[#allocation2 + $0x70] sm:$0xff] }
 0x4fa   :  { %1165 = vmax.xlane.f32.xlu1 %v15701_v43 }
 0x4fb   :  { %v11430_v46 = vpop.f32.mrb[24].mxu1  ;;  %1159 = vmax.xlane.f32.xlu0 %v15703_v29 }
 0x4fc   :  { %v1112_v47 = vadd.f32 %v11430_v46, %v888_v44  ;;  %v1106_v36 = vpop.f32.mrb[25].mxu1 }
 0x4fd   :  { %v1107_v63 = vadd.f32 %v1106_v36, %v887_v50  ;;  %v15735_v36 = vpop.permute.xlu0 %13902 }
 0x4fe   :  { %1169 = vmax.xlane.f32.xlu1 %v1112_v47 }
 0x4ff   :  { %v11433_v51 = vpop.f32.mrb[26].mxu1  ;;  %1163 = vmax.xlane.f32.xlu0 %v15707_v35 }
 0x500   :  { %v15710_v53 = vadd.f32 %v11433_v51, %v890_v41  ;;  %v1116_v61 = vpop.f32.mrb[27].mxu1 }
 0x501   :  { %v1117_v2 = vadd.f32 %v1116_v61, %v889_v4 }
 0x502   :  { %1173 = vmax.xlane.f32.xlu1 %v15710_v53 }
 0x503   :  { %v11436_v10 = vpop.f32.mrb[28].mxu1  ;;  %1167 = vmax.xlane.f32.xlu0 %v1107_v63 }
 0x504   :  { %v15713_v1 = vadd.f32 %v11436_v10, %v892_v55  ;;  %v1126_v13 = vpop.f32.mrb[29].mxu1 }
 0x505   :  { %v15718_v37 = vadd.f32 %v1126_v13, %v891_v8 }
 0x506   :  { %1177 = vmax.xlane.f32.xlu1 %v15713_v1 }
 0x507   :  { %v11439_v25 = vpop.f32.mrb[30].mxu1  ;;  %1171 = vmax.xlane.f32.xlu0 %v1117_v2 }
 0x508   :  { %v15716_v16 = vadd.f32 %v11439_v25, %v894_v20  ;;  %v1136_v33 = vpop.f32.mrb[31].mxu1 }
 0x509   :  { %v15724_v44 = vadd.f32 %v1136_v33, %v893_v38 }
 0x50a   :  { %1181 = vmax.xlane.f32.xlu1 %v15716_v16 }
 0x50b   :  { %v11442_v39 = vpop.f32.mrb[32].mxu1  ;;  %1175 = vmax.xlane.f32.xlu0 %v15718_v37 }
 0x50c   :  { %v15722_v40 = vadd.f32 %v11442_v39, %v896_v23  ;;  %v1146_v30 = vpop.f32.mrb[33].mxu1 }
 0x50d   :  { %v15728_v46 = vadd.f32 %v1146_v30, %v895_v45 }
 0x50e   :  { %1185 = vmax.xlane.f32.xlu1 %v15722_v40 }
 0x50f   :  { %1179 = vmax.xlane.f32.xlu0 %v15724_v44 }
 0x513   :  { %1183 = vmax.xlane.f32.xlu0 %v15728_v46 }
 0x51f   :  { %13922 = vrot.lane.b32.xlu1 %v15567_v21, %s15177_s22 }
 0x529   :  { %13917 = vrot.lane.b32.xlu0 %v15557_v14, %s15177_s22 }
 0x57f   :  { %v1158_v41 = vpop.xlane.xlu1 %1157 }
 0x580   :  { %v1188_v50 = vsub.f32 %v15692_v28, %v1158_v41  ;;  %v1156_v51 = vpop.xlane.xlu0 %1155 }
 0x581   :  { %v1187_v61 = vsub.f32 %v15694_v32, %v1156_v51 }
 0x582   :  { %v1205_v55 = vmul.f32 1.442695, %v1188_v50 }
 0x583   :  { %v1203_v4 = vmul.f32 1.442695, %v1187_v61 }
 0x584   :  { %14460 = vpow2.f32 %v1205_v55  ;;  %v1162_v10 = vpop.xlane.xlu0 %1161 }
 0x585   :  { %14462 = vpow2.f32 %v1203_v4  ;;  %v1190_v13 = vsub.f32 %v15698_v24, %v1162_v10 }
 0x587   :  { %v1209_v20 = vmul.f32 1.442695, %v1190_v13  ;;  %v1166_v8 = vpop.xlane.xlu1 %1165 }
 0x588   :  { %v1160_v25 = vpop.xlane.xlu0 %1159 }
 0x589   :  { %14464 = vpow2.f32 %v1209_v20 }
 0x58b   :  { %v1170_v33 = vpop.xlane.xlu1 %1169 }
 0x58c   :  { %v1194_v23 = vsub.f32 %v1112_v47, %v1170_v33  ;;  %v1164_v38 = vpop.xlane.xlu0 %1163 }
 0x58e   :  { %v15740_v39 = vpop.eup %14460  ;;  %v1217_v28 = vmul.f32 1.442695, %v1194_v23  ;;  %v1189_v23 = vsub.f32 %v15703_v29, %v1160_v25 }
 0x58f   :  { %v15742_v30 = vpop.eup %14462  ;;  %v1174_v32 = vpop.xlane.xlu1 %1173  ;;  %1237 = vadd.xlane.f32.xlu0 %v15740_v39 }
 0x590   :  { %14466 = vpow2.f32 %v1217_v28  ;;  %1235 = vadd.xlane.f32.xlu1 %v15742_v30  ;;  %v1168_v45 = vpop.xlane.xlu0 %1167  ;;  %v1196_v24 = vsub.f32 %v15710_v53, %v1174_v32  ;;  %v1192_v28 = vsub.f32 %v15701_v43, %v1166_v8  ;;  %v1207_v32 = vmul.f32 1.442695, %v1189_v23 }
 0x591   :  { %v1193_v41 = vsub.f32 %v1107_v63, %v1168_v45 }
 0x592   :  { %v1221_v61 = vmul.f32 1.442695, %v1196_v24  ;;  %v1213_v45 = vmul.f32 1.442695, %v1192_v28  ;;  %v1191_v24 = vsub.f32 %v15707_v35, %v1164_v38 }
 0x593   :  { %v15747_v50 = vpop.eup %14464  ;;  %v1215_v51 = vmul.f32 1.442695, %v1193_v41  ;;  %v1178_v4 = vpop.xlane.xlu1 %1177 }
 0x594   :  { %1241 = vadd.xlane.f32.xlu1 %v15747_v50  ;;  %v1172_v47 = vpop.xlane.xlu0 %1171  ;;  %v1198_v10 = vsub.f32 %v15713_v1, %v1178_v4 }
 0x595   :  { %14468 = vpow2.f32 %v1215_v51  ;;  %v1195_v55 = vsub.f32 %v1117_v2, %v1172_v47  ;;  %v1211_v51 = vmul.f32 1.442695, %v1191_v24 }
 0x596   :  { %14470 = vpow2.f32 %v1221_v61  ;;  %v1225_v53 = vmul.f32 1.442695, %v1198_v10 }
 0x597   :  { %v1219_v13 = vmul.f32 1.442695, %v1195_v55  ;;  %v1182_v61 = vpop.xlane.xlu1 %1181 }
 0x598   :  { %v1176_v41 = vpop.xlane.xlu0 %1175  ;;  %v1200_v29 = vsub.f32 %v15716_v16, %v1182_v61 }
 0x599   :  { %14472 = vpow2.f32 %v1219_v13  ;;  %v1197_v47 = vsub.f32 %v15718_v37, %v1176_v41 }
 0x59a   :  { %v15751_v20 = vpop.eup %14466  ;;  %14474 = vpow2.f32 %v1225_v53  ;;  %v1229_v35 = vmul.f32 1.442695, %v1200_v29 }
 0x59b   :  { %1249 = vadd.xlane.f32.xlu1 %v15751_v20  ;;  %14476 = vpow2.f32 %v1207_v32  ;;  %v1223_v25 = vmul.f32 1.442695, %v1197_v47  ;;  %v1186_v10 = vpop.xlane.xlu1 %1185 }
 0x59c   :  { %14478 = vpow2.f32 %v1213_v45  ;;  %v1180_v43 = vpop.xlane.xlu0 %1179  ;;  %v1202_v16 = vsub.f32 %v15722_v40, %v1186_v10 }
 0x59d   :  { %14480 = vpow2.f32 %v1211_v51  ;;  %v1199_v38 = vsub.f32 %v15724_v44, %v1180_v43  ;;  %v13899_v43 = vunpack.i.l.bf16 %v15647_v48 }
 0x59e   :  { %14482 = vpow2.f32 %v1223_v25  ;;  %v1233_v44 = vmul.f32 1.442695, %v1202_v16  ;;  %v13900_v25 = vunpack.i.h.bf16 %v15647_v48  ;;  %v13905_v48 = vunpack.i.h.bf16 %v15735_v36 }
 0x59f   :  { %v15754_v63 = vpop.eup %14468  ;;  %14484 = vpow2.f32 %v1229_v35  ;;  %v1227_v37 = vmul.f32 1.442695, %v1199_v38  ;;  %v13923_v41 = vpop.permute.xlu1 %13922 }
 0x5a0   :  { %1247 = vadd.xlane.f32.xlu1 %v15754_v63  ;;  %v15757_v33 = vpop.eup %14470  ;;  %v1184_v53 = vpop.xlane.xlu0 %1183 }
 0x5a1   :  { %14486 = vpow2.f32 %v1227_v37  ;;  %v1201_v23 = vsub.f32 %v15728_v46, %v1184_v53  ;;  %v12991_v37 = vpack.c.bf16 %v13900_v25, %v13899_v43 }
 0x5a2   :  { %14488 = vpow2.f32 %v1233_v44 }
 0x5a3   :  { %v15762_v1 = vpop.eup %14472  ;;  %v1231_v32 = vmul.f32 1.442695, %v1201_v23  ;;  %v13925_v23 = vunpack.i.h.bf16 %v13923_v41 }
 0x5a4   :  { %1253 = vadd.xlane.f32.xlu1 %v15757_v33  ;;  %v15765_v2 = vpop.eup %14474  ;;  %v13918_v46 = vpop.permute.xlu0 %13917 }
 0x5a5   :  { %13927 = vrot.lane.b32.xlu0 %v15577_v26, %s15177_s22  ;;  %v15775_v8 = vpop.eup %14476  ;;  %14490 = vpow2.f32 %v1231_v32  ;;  %v13920_v16 = vunpack.i.h.bf16 %v13918_v46  ;;  %v13919_v53 = vunpack.i.l.bf16 %v13918_v46  ;;  %v13924_v32 = vunpack.i.l.bf16 %v13923_v41 }
 0x5a6   :  { %v15779_v55 = vpop.eup %14478 }
 0x5a7   :  { %v15782_v4 = vpop.eup %14480  ;;  %v13009_v44 = vpack.c.bf16 %v13920_v16, %v13919_v53  ;;  %v13015_v46 = vpack.c.bf16 %v13925_v23, %v13924_v32 }
 0x5a8   :  { %1251 = vadd.xlane.f32.xlu1 %v15762_v1  ;;  %v15786_v13 = vpop.eup %14482 }
 0x5a9   :  { %v15790_v28 = vpop.eup %14484 }
 0x5ab   :  { %v15793_v45 = vpop.eup %14486 }
 0x5ac   :  { %1257 = vadd.xlane.f32.xlu1 %v15765_v2  ;;  %v15796_v40 = vpop.eup %14488 }
 0x5af   :  { %v15799_v24 = vpop.eup %14490 }
 0x5bd   :  { %1511 = vrot.lane.b32.xlu1 %v15509_v52, %s15178_s23 }
 0x5c4   :  { %1239 = vadd.xlane.f32.xlu0 %v15775_v8 }
 0x5c8   :  { %1245 = vadd.xlane.f32.xlu0 %v15779_v55 }
 0x5cc   :  { %1243 = vadd.xlane.f32.xlu0 %v15782_v4 }
 0x5d0   :  { %1255 = vadd.xlane.f32.xlu0 %v15786_v13 }
 0x5d4   :  { %1261 = vadd.xlane.f32.xlu0 %v15790_v28 }
 0x5d8   :  { %1259 = vadd.xlane.f32.xlu0 %v15793_v45 }
 0x5e1   :  { %1265 = vadd.xlane.f32.xlu1 %v15796_v40 }
 0x5e5   :  { %1263 = vadd.xlane.f32.xlu1 %v15799_v24 }
 0x5ee   :  { %13932 = vrot.lane.b32.xlu0 %v15587_v31, %s15177_s22 }
 0x5f2   :  { %1509 = vrot.lane.b32.xlu0 %v15511_v54, %s15178_s23 }
 0x5f6   :  { %1513 = vrot.lane.b32.xlu0 %v15523_v59, %s15178_s23  ;;  %1515 = vrot.lane.b32.xlu1 %v15519_v57, %s15178_s23 }
 0x5fa   :  { %1517 = vrot.lane.b32.xlu0 %v15533_v3, %s15178_s23  ;;  %1519 = vrot.lane.b32.xlu1 %v15529_v62, %s15178_s23 }
 0x5fe   :  { %1521 = vrot.lane.b32.xlu0 %v15543_v0, %s15178_s23  ;;  %1523 = vrot.lane.b32.xlu1 %v15539_v7, %s15178_s23 }
 0x602   :  { %1525 = vrot.lane.b32.xlu0 %v15551_v6, %s15178_s23  ;;  %1527 = vrot.lane.b32.xlu1 %v15549_v12, %s15178_s23 }
 0x606   :  { %1529 = vrot.lane.b32.xlu0 %v15561_v19, %s15178_s23  ;;  %1531 = vrot.lane.b32.xlu1 %v15559_v15, %s15178_s23 }
 0x60a   :  { %1533 = vrot.lane.b32.xlu0 %v15571_v22, %s15178_s23  ;;  %1535 = vrot.lane.b32.xlu1 %v15569_v9, %s15178_s23 }
 0x60e   :  { %1537 = vrot.lane.b32.xlu0 %v15581_v17, %s15178_s23  ;;  %1539 = vrot.lane.b32.xlu1 %v15579_v27, %s15178_s23 }
 0x612   :  { %13937 = vrot.lane.b32.xlu0 %v15517_v56, %s15179_s24  ;;  %13942 = vrot.lane.b32.xlu1 %v15527_v60, %s15179_s24 }
 0x616   :  { %13947 = vrot.lane.b32.xlu0 %v15537_v5, %s15179_s24  ;;  %13952 = vrot.lane.b32.xlu1 %v15547_v11, %s15179_s24 }
 0x61a   :  { %13957 = vrot.lane.b32.xlu0 %v15557_v14, %s15179_s24  ;;  %13962 = vrot.lane.b32.xlu1 %v15567_v21, %s15179_s24 }
 0x61c   :  { %v1238_v51 = vpop.xlane.xlu0 %1237 }
 0x61d   :  { %14492 = vrcp.f32 %v1238_v51  ;;  %v1236_v47 = vpop.xlane.xlu1 %1235 }
 0x61e   :  { %14494 = vrcp.f32 %v1236_v47  ;;  %13967 = vrot.lane.b32.xlu0 %v15577_v26, %s15179_s24  ;;  %13972 = vrot.lane.b32.xlu1 %v15587_v31, %s15179_s24 }
 0x620   :  { %v13928_v47 = vpop.permute.xlu0 %13927 }
 0x621   :  { %v13929_v25 = vunpack.i.l.bf16 %v13928_v47 }
 0x622   :  { %2530 = vrot.lane.b32.xlu0 %v15511_v54, %s15180_s25  ;;  %2532 = vrot.lane.b32.xlu1 %v15509_v52, %s15180_s25 }
 0x626   :  { %2536 = vrot.lane.b32.xlu0 %v15519_v57, %s15180_s25  ;;  %2534 = vrot.lane.b32.xlu1 %v15523_v59, %s15180_s25 }
 0x627   :  { %v14493_v61 = vpop.eup %14492 }
 0x628   :  { %v14495_v29 = vpop.eup %14494  ;;  %v1284_v38 = vmul.f32 %v14493_v61, %v15740_v39  ;;  %v13904_v39 = vunpack.i.l.bf16 %v15735_v36  ;;  %v13910_v36 = vunpack.i.h.bf16 %v15649_v58 }
 0x629   :  { %v1283_v35 = vmul.f32 %v14495_v29, %v15742_v30  ;;  %v13909_v30 = vunpack.i.l.bf16 %v15649_v58  ;;  %v1242_v58 = vpop.xlane.xlu1 %1241  ;;  %v13930_v29 = vunpack.i.h.bf16 %v13928_v47 }
 0x62a   :  { %2542 = vrot.lane.b32.xlu0 %v15543_v0, %s15180_s25  ;;  %2538 = vrot.lane.b32.xlu1 %v15533_v3, %s15180_s25  ;;  %14496 = vrcp.f32 %v1242_v58 }
 0x62b   :  { %11475 = vmatprep.mubr.f32.mxu0 %v1283_v35  ;;  %v13003_v10 = vpack.c.bf16 %v13910_v36, %v13909_v30  ;;  %v13021_v43 = vpack.c.bf16 %v13930_v29, %v13929_v25 }
 0x62c   :  { %11476 = vmatmul.mubr.f32.vlgmr.msra.gmra.mrb[34].mxu0 %v1284_v38 }
 0x62d   :  { %12990 = vmatpush3.bf16.xpose.msk.msra.mxu0 %vm15617_vm3, %v15655_v18  ;;  %v12997_v18 = vpack.c.bf16 %v13905_v48, %v13904_v39  ;;  %v1250_v51 = vpop.xlane.xlu1 %1249 }
 0x62e   :  { %12993 = vmatprep.subr.msk.bf16.mxu0 %vm15617_vm3, %v12991_v37  ;;  %2544 = vrot.lane.b32.xlu0 %v15539_v7, %s15180_s25 }
 0x62f   :  { %2540 = vrot.lane.b32.xlu1 %v15529_v62, %s15180_s25 }
 0x631   :  { %v1248_v61 = vpop.xlane.xlu1 %1247 }
 0x632   :  { %2546 = vrot.lane.b32.xlu0 %v15551_v6, %s15180_s25 }
 0x633   :  { %2558 = vrot.lane.b32.xlu1 %v15581_v17, %s15180_s25 }
 0x634   :  { %v14497_v48 = vpop.eup %14496 }
 0x635   :  { %12996 = vmatpush3.bf16.xpose.msk.msra.mxu0 %vm15617_vm3, %v12991_v37  ;;  %v1254_v35 = vpop.xlane.xlu1 %1253 }
 0x636   :  { %12999 = vmatprep.subr.msk.bf16.mxu0 %vm15617_vm3, %v12997_v18  ;;  %2548 = vrot.lane.b32.xlu0 %v15549_v12, %s15180_s25 }
 0x637   :  { %13992 = vrot.lane.b32.xlu1 %v15547_v11, %s15181_s26 }
 0x639   :  { %v1252_v39 = vpop.xlane.xlu1 %1251 }
 0x63a   :  { %2550 = vrot.lane.b32.xlu0 %v15561_v19, %s15180_s25 }
 0x63d   :  { %13002 = vmatpush3.bf16.xpose.msk.msra.mxu0 %vm15617_vm3, %v12997_v18 }
 0x63e   :  { %13005 = vmatprep.subr.msk.bf16.mxu0 %vm15617_vm3, %v13003_v10  ;;  %2552 = vrot.lane.b32.xlu0 %v15559_v15, %s15180_s25 }
 0x642   :  { %2554 = vrot.lane.b32.xlu0 %v15571_v22, %s15180_s25 }
 0x645   :  { %13008 = vmatpush3.bf16.xpose.msk.msra.mxu0 %vm15617_vm3, %v13003_v10  ;;  %v1286_v10 = vmul.f32 %v14497_v48, %v15747_v50 }
 0x646   :  { %13011 = vmatprep.subr.msk.bf16.mxu0 %vm15617_vm3, %v13009_v44  ;;  %2556 = vrot.lane.b32.xlu0 %v15569_v9, %s15180_s25 }
 0x64a   :  { %2560 = vrot.lane.b32.xlu0 %v15579_v27, %s15180_s25 }
 0x64d   :  { %13014 = vmatpush3.bf16.xpose.msk.msra.mxu0 %vm15617_vm3, %v13009_v44  ;;  %v1258_v44 = vpop.xlane.xlu1 %1257 }
 0x64e   :  { %13017 = vmatprep.subr.msk.bf16.mxu0 %vm15617_vm3, %v13015_v46  ;;  %13977 = vrot.lane.b32.xlu0 %v15517_v56, %s15181_s26 }
 0x651   :  { %v1240_v41 = vpop.xlane.xlu0 %1239  ;;  %v1512_v29 = vpop.permute.xlu1 %1511 }
 0x652   :  { %14498 = vrcp.f32 %v1240_v41  ;;  %13982 = vrot.lane.b32.xlu0 %v15527_v60, %s15181_s26 }
 0x653   :  { %14500 = vrcp.f32 %v1248_v61 }
 0x655   :  { %13020 = vmatpush3.bf16.xpose.msk.msra.mxu0 %vm15617_vm3, %v13015_v46  ;;  %v1246_v38 = vpop.xlane.xlu0 %1245 }
 0x656   :  { %13023 = vmatprep.subr.msk.bf16.mxu0 %vm15617_vm3, %v13021_v43  ;;  %13987 = vrot.lane.b32.xlu0 %v15537_v5, %s15181_s26  ;;  %14502 = vrcp.f32 %v1246_v38 }
 0x659   :  { %v1244_v37 = vpop.xlane.xlu0 %1243 }
 0x65a   :  { %14504 = vrcp.f32 %v1244_v37  ;;  %13997 = vrot.lane.b32.xlu0 %v15557_v14, %s15181_s26 }
 0x65b   :  { %14506 = vrcp.f32 %v1250_v51 }
 0x65c   :  { %v14499_v18 = vpop.eup %14498  ;;  %14508 = vrcp.f32 %v1252_v39 }
 0x65d   :  { %13026 = vmatpush3.bf16.xpose.msk.msra.mxu0 %vm15617_vm3, %v13021_v43  ;;  %v1256_v36 = vpop.xlane.xlu0 %1255  ;;  %v1285_v30 = vmul.f32 %v14499_v18, %v15775_v8  ;;  %14510 = vrcp.f32 %v1254_v35  ;;  %v14501_v53 = vpop.eup %14500 }
 0x65e   :  { %14512 = vrcp.f32 %v1256_v36  ;;  %v1289_v50 = vmul.f32 %v14501_v53, %v15754_v63 }
 0x65f   :  { %11478 = vmatprep.mubr.f32.mxu0 %v1285_v30  ;;  %14514 = vrcp.f32 %v1258_v44 }
 0x660   :  { %11479 = vmatmul.mubr.f32.gmra.mrb[36].mxu0 %v1286_v10  ;;  %v14503_v58 = vpop.eup %14502 }
 0x661   :  { %v1262_v16 = vpop.xlane.xlu0 %1261  ;;  %v1288_v46 = vmul.f32 %v14503_v58, %v15779_v55 }
 0x664   :  { %v14505_v23 = vpop.eup %14504 }
 0x665   :  { %v1260_v32 = vpop.xlane.xlu0 %1259  ;;  %v1287_v51 = vmul.f32 %v14505_v23, %v15782_v4  ;;  %v14507_v8 = vpop.eup %14506 }
 0x666   :  { %14516 = vrcp.f32 %v1260_v32  ;;  %v14509_v47 = vpop.eup %14508  ;;  %v1290_v43 = vmul.f32 %v14507_v8, %v15751_v20 }
 0x667   :  { %11481 = vmatprep.mubr.f32.mxu0 %v1287_v51  ;;  %14518 = vrcp.f32 %v1262_v16  ;;  %v14511_v35 = vpop.eup %14510  ;;  %v1291_v4 = vmul.f32 %v14509_v47, %v15762_v1 }
 0x668   :  { %11482 = vmatmul.mubr.f32.gmra.mrb[38].mxu0 %v1288_v46  ;;  %v14513_v38 = vpop.eup %14512  ;;  %v1292_v63 = vmul.f32 %v14511_v35, %v15757_v33 }
 0x669   :  { %11484 = vmatprep.mubr.f32.mxu0 %v1289_v50  ;;  %v13933_v61 = vpop.permute.xlu0 %13932  ;;  %v14515_v39 = vpop.eup %14514  ;;  %v1293_v20 = vmul.f32 %v14513_v38, %v15786_v13 }
 0x66a   :  { %v13935_v25 = vunpack.i.h.bf16 %v13933_v61  ;;  %v13934_v41 = vunpack.i.l.bf16 %v13933_v61  ;;  %v1294_v30 = vmul.f32 %v14515_v39, %v15765_v2 }
 0x66c   :  { %v13027_v37 = vpack.c.bf16 %v13935_v25, %v13934_v41  ;;  %11485 = vmatmul.mubr.f32.gmra.mrb[40].mxu0 %v1290_v43 }
 0x66d   :  { %11487 = vmatprep.mubr.f32.mxu0 %v1291_v4  ;;  %v1510_v55 = vpop.permute.xlu0 %1509 }
 0x66e   :  { %v1266_v48 = vpop.xlane.xlu1 %1265  ;;  %13029 = vmatprep.subr.msk.bf16.mxu0 %vm15617_vm3, %v13027_v37 }
 0x66f   :  { %13032 = vmatpush3.bf16.xpose.msk.msra.mxu0 %vm15617_vm3, %v13027_v37  ;;  %14520 = vrcp.f32 %v1266_v48 }
 0x670   :  { %v14517_v18 = vpop.eup %14516  ;;  %11488 = vmatmul.mubr.f32.gmra.mrb[42].mxu0 %v1292_v63 }
 0x671   :  { %11490 = vmatprep.mubr.f32.mxu0 %v1293_v20  ;;  %v1514_v1 = vpop.permute.xlu0 %1513  ;;  %v14519_v10 = vpop.eup %14518  ;;  %v1295_v16 = vmul.f32 %v14517_v18, %v15793_v45 }
 0x672   :  { %v1264_v36 = vpop.xlane.xlu1 %1263  ;;  %v1296_v44 = vmul.f32 %v14519_v10, %v15790_v28 }
 0x673   :  { %14522 = vrcp.f32 %v1264_v36 }
 0x674   :  { %11491 = vmatmul.mubr.f32.gmra.mrb[44].mxu0 %v1294_v30 }
 0x675   :  { %11493 = vmatprep.mubr.f32.mxu0 %v1295_v16  ;;  %v1518_v33 = vpop.permute.xlu0 %1517 }
 0x676   :  { %v1516_v53 = vpop.permute.xlu1 %1515 }
 0x678   :  { %11494 = vmatmul.mubr.f32.gmra.mrb[46].mxu0 %v1296_v44 }
 0x679   :  { %v1522_v13 = vpop.permute.xlu0 %1521  ;;  %v14521_v23 = vpop.eup %14520 }
 0x67a   :  { %v1520_v58 = vpop.permute.xlu1 %1519  ;;  %v1298_v2 = vmul.f32 %v14521_v23, %v15796_v40 }
 0x67d   :  { %v14523_v32 = vpop.eup %14522  ;;  %v1526_v51 = vpop.permute.xlu0 %1525 }
 0x67e   :  { %v1524_v46 = vpop.permute.xlu1 %1523  ;;  %v1297_v8 = vmul.f32 %v14523_v32, %v15799_v24 }
 0x680   :  { %11496 = vmatprep.mubr.f32.mxu0 %v1297_v8 }
 0x681   :  { %11497 = vmatmul.mubr.f32.gmra.mrb[48].mxu0 %v1298_v2  ;;  %v1530_v45 = vpop.permute.xlu0 %1529 }
 0x682   :  { %v1528_v50 = vpop.permute.xlu1 %1527  ;;  %11531 = vmatprep.mubr.msk.f32.mxu0 %vm945_vm2, %v1510_v55 }
 0x685   :  { %v1534_v47 = vpop.permute.xlu0 %1533  ;;  %11532 = vmatmul.mubr.msk.f32.vlgmr.msra.gmra.mrb[50].mxu0 %vm945_vm2, %v1512_v29 }
 0x686   :  { %v1532_v28 = vpop.permute.xlu1 %1531  ;;  %11534 = vmatprep.mubr.msk.f32.mxu0 %vm945_vm2, %v1514_v1 }
 0x689   :  { %v1538_v61 = vpop.permute.xlu0 %1537  ;;  %11535 = vmatmul.mubr.msk.f32.gmra.mrb[52].mxu0 %vm945_vm2, %v1516_v53 }
 0x68a   :  { %v1536_v25 = vpop.permute.xlu1 %1535  ;;  %11537 = vmatprep.mubr.msk.f32.mxu0 %vm945_vm2, %v1518_v33 }
 0x68d   :  { %v13938_v24 = vpop.permute.xlu0 %13937  ;;  %11538 = vmatmul.mubr.msk.f32.gmra.mrb[54].mxu0 %vm945_vm2, %v1520_v58 }
 0x68e   :  { %v13940_v40 = vunpack.i.h.bf16 %v13938_v24  ;;  %v13939_v41 = vunpack.i.l.bf16 %v13938_v24  ;;  %v1540_v43 = vpop.permute.xlu1 %1539  ;;  %11540 = vmatprep.mubr.msk.f32.mxu0 %vm945_vm2, %v1522_v13 }
 0x690   :  { %v13065_v35 = vpack.c.bf16 %v13940_v40, %v13939_v41 }
 0x691   :  { %v13948_v4 = vpop.permute.xlu0 %13947  ;;  %11541 = vmatmul.mubr.msk.f32.gmra.mrb[56].mxu0 %vm945_vm2, %v1524_v46 }
 0x692   :  { %v13943_v29 = vpop.permute.xlu1 %13942  ;;  %11543 = vmatprep.mubr.msk.f32.mxu0 %vm945_vm2, %v1526_v51  ;;  %13067 = vmatprep.subr.msk.bf16.mxu0 %vm15617_vm3, %v13065_v35  ;;  %v13950_v63 = vunpack.i.h.bf16 %v13948_v4  ;;  %v13949_v39 = vunpack.i.l.bf16 %v13948_v4 }
 0x693   :  { %v13945_v38 = vunpack.i.h.bf16 %v13943_v29  ;;  %v13944_v37 = vunpack.i.l.bf16 %v13943_v29  ;;  %13070 = vmatpush3.bf16.xpose.msk.msra.mxu0 %vm15617_vm3, %v13065_v35 }
 0x694   :  { %v13077_v18 = vpack.c.bf16 %v13950_v63, %v13949_v39 }
 0x695   :  { %v13071_v55 = vpack.c.bf16 %v13945_v38, %v13944_v37  ;;  %v13958_v48 = vpop.permute.xlu0 %13957  ;;  %11544 = vmatmul.mubr.msk.f32.gmra.mrb[58].mxu0 %vm945_vm2, %v1528_v50 }
 0x696   :  { %11546 = vmatprep.mubr.msk.f32.mxu0 %vm945_vm2, %v1530_v45  ;;  %v13953_v1 = vpop.permute.xlu1 %13952  ;;  %v13960_v13 = vunpack.i.h.bf16 %v13958_v48  ;;  %v13959_v58 = vunpack.i.l.bf16 %v13958_v48 }
 0x697   :  { %13073 = vmatprep.subr.msk.bf16.mxu0 %vm15617_vm3, %v13071_v55  ;;  %v13955_v30 = vunpack.i.h.bf16 %v13953_v1  ;;  %v13954_v10 = vunpack.i.l.bf16 %v13953_v1 }
 0x698   :  { %v13089_v32 = vpack.c.bf16 %v13960_v13, %v13959_v58 }
 0x699   :  { %v13968_v20 = vpop.permute.xlu0 %13967  ;;  %11547 = vmatmul.mubr.msk.f32.gmra.mrb[60].mxu0 %vm945_vm2, %v1532_v28  ;;  %v13083_v33 = vpack.c.bf16 %v13955_v30, %v13954_v10 }
 0x69a   :  { %11549 = vmatprep.mubr.msk.f32.mxu0 %vm945_vm2, %v1534_v47  ;;  %v13963_v53 = vpop.permute.xlu1 %13962 }
 0x69b   :  { %13076 = vmatpush3.bf16.xpose.msk.msra.mxu0 %vm15617_vm3, %v13071_v55  ;;  %v13965_v8 = vunpack.i.h.bf16 %v13963_v53  ;;  %v13964_v2 = vunpack.i.l.bf16 %v13963_v53 }
 0x69c   :  { %13079 = vmatprep.subr.msk.bf16.mxu0 %vm15617_vm3, %v13077_v18 }
 0x69d   :  { %v2531_v36 = vpop.permute.xlu0 %2530  ;;  %11550 = vmatmul.mubr.msk.f32.gmra.mrb[62].mxu0 %vm945_vm2, %v1536_v25  ;;  %v13095_v47 = vpack.c.bf16 %v13965_v8, %v13964_v2  ;;  %v13969_v25 = vunpack.i.l.bf16 %v13968_v20 }
 0x69e   :  { %11552 = vmatprep.mubr.msk.f32.mxu0 %vm945_vm2, %v1538_v61  ;;  %v13973_v51 = vpop.permute.xlu1 %13972  ;;  %v13970_v61 = vunpack.i.h.bf16 %v13968_v20 }
 0x69f   :  { %v13975_v4 = vunpack.i.h.bf16 %v13973_v51  ;;  %v13974_v29 = vunpack.i.l.bf16 %v13973_v51 }
 0x6a0   :  { %v13101_v41 = vpack.c.bf16 %v13970_v61, %v13969_v25 }
 0x6a1   :  { %v15970_v16 = vpop.permute.xlu0 %2536  ;;  %11553 = vmatmul.mubr.msk.f32.gmra.mrb[64].mxu0 %vm945_vm2, %v1540_v43  ;;  %v13107_v37 = vpack.c.bf16 %v13975_v4, %v13974_v29 }
 0x6a2   :  { %11695 = vmatprep.mubr.msk.f32.mxu0 %vm945_vm2, %v2531_v36  ;;  %v2533_v45 = vpop.permute.xlu1 %2532 }
 0x6a3   :  { %13082 = vmatpush3.bf16.xpose.msk.msra.mxu0 %vm15617_vm3, %v13077_v18 }
 0x6a4   :  { %13085 = vmatprep.subr.msk.bf16.mxu0 %vm15617_vm3, %v13083_v33 }
 0x6a5   :  { %v15978_v44 = vpop.permute.xlu0 %2542 }
 0x6a6   :  { %v2535_v24 = vpop.permute.xlu1 %2534 }
 0x6a9   :  { %v15980_v23 = vpop.permute.xlu0 %2544 }
 0x6aa   :  { %v2539_v43 = vpop.permute.xlu1 %2538 }
 0x6ab   :  { %13088 = vmatpush3.bf16.xpose.msk.msra.mxu0 %vm15617_vm3, %v13083_v33 }
 0x6ac   :  { %13091 = vmatprep.subr.msk.bf16.mxu0 %vm15617_vm3, %v13089_v32 }
 0x6ad   :  { %v15986_v46 = vpop.permute.xlu0 %2546 }
 0x6ae   :  { %v2541_v55 = vpop.permute.xlu1 %2540 }
 0x6b1   :  { %v2549_v50 = vpop.permute.xlu0 %2548 }
 0x6b2   :  { %v2559_v63 = vpop.permute.xlu1 %2558 }
 0x6b3   :  { %13094 = vmatpush3.bf16.xpose.msk.msra.mxu0 %vm15617_vm3, %v13089_v32 }
 0x6b4   :  { %13097 = vmatprep.subr.msk.bf16.mxu0 %vm15617_vm3, %v13095_v47 }
 0x6b5   :  { %v2551_v28 = vpop.permute.xlu0 %2550 }
 0x6b6   :  { %v13993_v33 = vpop.permute.xlu1 %13992 }
 0x6b7   :  { %v13995_v58 = vunpack.i.h.bf16 %v13993_v33  ;;  %v13994_v32 = vunpack.i.l.bf16 %v13993_v33 }
 0x6b9   :  { %v2553_v40 = vpop.permute.xlu0 %2552 }
 0x6bb   :  { %13100 = vmatpush3.bf16.xpose.msk.msra.mxu0 %vm15617_vm3, %v13095_v47 }
 0x6bc   :  { %13103 = vmatprep.subr.msk.bf16.mxu0 %vm15617_vm3, %v13101_v41 }
 0x6bd   :  { %v2555_v35 = vpop.permute.xlu0 %2554 }
 0x6c1   :  { %v2557_v38 = vpop.permute.xlu0 %2556 }
 0x6c3   :  { %13106 = vmatpush3.bf16.xpose.msk.msra.mxu0 %vm15617_vm3, %v13101_v41  ;;  %v13045_v41 = vpack.c.bf16 %v13995_v58, %v13994_v32  ;;  %v1498_v32 = vld [vmem:[#allocation2 + $0xa8] sm:$0xff] }
 0x6c4   :  { %13109 = vmatprep.subr.msk.bf16.mxu0 %vm15617_vm3, %v13107_v37 }
 0x6c5   :  { %v2561_v48 = vpop.permute.xlu0 %2560 }
 0x6c9   :  { %v13978_v39 = vpop.permute.xlu0 %13977 }
 0x6ca   :  { %v13980_v20 = vunpack.i.h.bf16 %v13978_v39  ;;  %v13979_v18 = vunpack.i.l.bf16 %v13978_v39  ;;  %v1493_v39 = vld [vmem:[#allocation2 + $0x80] sm:$0xff] }
 0x6cb   :  { %13112 = vmatpush3.bf16.xpose.msk.msra.mxu0 %vm15617_vm3, %v13107_v37 }
 0x6cc   :  { %v13033_v1 = vpack.c.bf16 %v13980_v20, %v13979_v18 }
 0x6cd   :  { %v13983_v36 = vpop.permute.xlu0 %13982 }
 0x6ce   :  { %v13985_v30 = vunpack.i.h.bf16 %v13983_v36  ;;  %v13984_v10 = vunpack.i.l.bf16 %v13983_v36  ;;  %13034 = vmatprep.subr.bf16.mxu1 %v13033_v1 }
 0x6cf   :  { %13036 = vmatpush3.bf16.msra.mxu1 %v13033_v1 }
 0x6d0   :  { %v13037_v53 = vpack.c.bf16 %v13985_v30, %v13984_v10  ;;  %v1496_v30 = vld [vmem:[#allocation2 + $0x98] sm:$0xff]  ;;  %v1495_v10 = vld [vmem:[#allocation2 + $0x90] sm:$0xff] }
 0x6d1   :  { %v13988_v13 = vpop.permute.xlu0 %13987 }
 0x6d2   :  { %v13990_v51 = vunpack.i.h.bf16 %v13988_v13  ;;  %v13989_v8 = vunpack.i.l.bf16 %v13988_v13  ;;  %13038 = vmatprep.subr.bf16.mxu1 %v13037_v53  ;;  %11696 = vmatmul.mubr.msk.f32.vlgmr.msra.gmra.mrb[66].mxu0 %vm945_vm2, %v2533_v45 }
 0x6d3   :  { %13040 = vmatpush3.bf16.msra.mxu1 %v13037_v53  ;;  %11698 = vmatprep.mubr.msk.f32.mxu0 %vm945_vm2, %v2535_v24 }
 0x6d4   :  { %v13041_v2 = vpack.c.bf16 %v13990_v51, %v13989_v8  ;;  %v1497_v51 = vld [vmem:[#allocation2 + $0xa0] sm:$0xff] }
 0x6d5   :  { %v13998_v47 = vpop.permute.xlu0 %13997 }
 0x6d6   :  { %v14000_v61 = vunpack.i.h.bf16 %v13998_v47  ;;  %v13999_v25 = vunpack.i.l.bf16 %v13998_v47  ;;  %13042 = vmatprep.subr.bf16.mxu1 %v13041_v2  ;;  %11699 = vmatmul.mubr.msk.f32.gmra.mrb[68].mxu0 %vm945_vm2, %v15970_v16 }
 0x6d7   :  { %13044 = vmatpush3.bf16.msra.mxu1 %v13041_v2  ;;  %11701 = vmatprep.mubr.msk.f32.mxu0 %vm945_vm2, %v2539_v43 }
 0x6d8   :  { %13046 = vmatprep.subr.bf16.mxu1 %v13045_v41  ;;  %v13049_v4 = vpack.c.bf16 %v14000_v61, %v13999_v25  ;;  %v1500_v25 = vld [vmem:[#allocation2 + $0xb8] sm:$0xff] }
 0x6da   :  { %11702 = vmatmul.mubr.msk.f32.gmra.mrb[70].mxu0 %vm945_vm2, %v2541_v55 }
 0x6db   :  { %13048 = vmatpush3.bf16.msra.mxu1 %v13045_v41  ;;  %11704 = vmatprep.mubr.msk.f32.mxu0 %vm945_vm2, %v15978_v44  ;;  %v1499_v41 = vld [vmem:[#allocation2 + $0xb0] sm:$0xff] }
 0x6dc   :  { %13050 = vmatprep.subr.bf16.mxu1 %v13049_v4 }
 0x6de   :  { %11705 = vmatmul.mubr.msk.f32.gmra.mrb[72].mxu0 %vm945_vm2, %v15980_v23 }
 0x6df   :  { %13052 = vmatpush3.bf16.msra.mxu1 %v13049_v4  ;;  %11707 = vmatprep.mubr.msk.f32.mxu0 %vm945_vm2, %v15986_v46 }
 0x6e2   :  { %11708 = vmatmul.mubr.msk.f32.gmra.mrb[74].mxu0 %vm945_vm2, %v2549_v50 }
 0x6e3   :  { %11710 = vmatprep.mubr.msk.f32.mxu0 %vm945_vm2, %v2551_v28 }
 0x6e6   :  { %11711 = vmatmul.mubr.msk.f32.gmra.mrb[76].mxu0 %vm945_vm2, %v2553_v40 }
 0x6e7   :  { %11713 = vmatprep.mubr.msk.f32.mxu0 %vm945_vm2, %v2555_v35 }
 0x6ea   :  { %11714 = vmatmul.mubr.msk.f32.gmra.mrb[78].mxu0 %vm945_vm2, %v2557_v38 }
 0x6eb   :  { %11716 = vmatprep.mubr.msk.f32.mxu0 %vm945_vm2, %v2559_v63  ;;  %v1494_v63 = vld [vmem:[#allocation2 + $0x88] sm:$0xff] }
 0x6ee   :  { %11717 = vmatmul.mubr.msk.f32.gmra.mrb[80].mxu0 %vm945_vm2, %v2561_v48 }
 0x6ff   :  { %v16021_v16 = vpop.f32.mrb[34].mxu0 }
 0x700   :  { %19114 = vst [vmem:[#allocation7_spill] sm:$0xff] %v16021_v16  ;;  %v16023_v44 = vpop.f32.mrb[35].mxu0 }
 0x701   :  { %19115 = vst [vmem:[#allocation8_spill] sm:$0xff] %v16023_v44 }
 0x733   :  { %v16025_v23 = vpop.f32.mrb[36].mxu0 }
 0x734   :  { %19116 = vst [vmem:[#allocation9_spill] sm:$0xff] %v16025_v23  ;;  %v16027_v46 = vpop.f32.mrb[37].mxu0 }
 0x735   :  { %19117 = vst [vmem:[#allocation10_spill] sm:$0xff] %v16027_v46 }
 0x73b   :  { %v16029_v45 = vpop.f32.mrb[38].mxu0 }
 0x73c   :  { %19118 = vst [vmem:[#allocation11_spill] sm:$0xff] %v16029_v45  ;;  %v16031_v50 = vpop.f32.mrb[39].mxu0 }
 0x73d   :  { %19119 = vst [vmem:[#allocation12_spill] sm:$0xff] %v16031_v50 }
 0x73f   :  { %v16033_v28 = vpop.f32.mrb[40].mxu0 }
 0x740   :  { %19120 = vst [vmem:[#allocation13_spill] sm:$0xff] %v16033_v28  ;;  %v16035_v24 = vpop.f32.mrb[41].mxu0 }
 0x741   :  { %19121 = vst [vmem:[#allocation14_spill] sm:$0xff] %v16035_v24 }
 0x743   :  { %v16037_v40 = vpop.f32.mrb[42].mxu0 }
 0x744   :  { %19122 = vst [vmem:[#allocation15_spill] sm:$0xff] %v16037_v40  ;;  %v16039_v43 = vpop.f32.mrb[43].mxu0 }
 0x745   :  { %19123 = vst [vmem:[#allocation16_spill] sm:$0xff] %v16039_v43 }
 0x747   :  { %v16041_v35 = vpop.f32.mrb[44].mxu0 }
 0x748   :  { %19124 = vst [vmem:[#allocation17_spill] sm:$0xff] %v16041_v35  ;;  %v16043_v29 = vpop.f32.mrb[45].mxu0 }
 0x749   :  { %19125 = vst [vmem:[#allocation18_spill] sm:$0xff] %v16043_v29 }
 0x74b   :  { %v16045_v38 = vpop.f32.mrb[46].mxu0 }
 0x74c   :  { %19126 = vst [vmem:[#allocation19_spill] sm:$0xff] %v16045_v38  ;;  %v16047_v37 = vpop.f32.mrb[47].mxu0 }
 0x74d   :  { %19127 = vst [vmem:[#allocation20_spill] sm:$0xff] %v16047_v37 }
 0x754   :  { %v16049_v55 = vpop.f32.mrb[48].mxu0 }
 0x755   :  { %19128 = vst [vmem:[#allocation21_spill] sm:$0xff] %v16049_v55  ;;  %v16051_v48 = vpop.f32.mrb[49].mxu0 }
 0x756   :  { %19129 = vst [vmem:[#allocation22_spill] sm:$0xff] %v16051_v48 }
 0x758   :  { %v11533_v20 = vpop.f32.mrb[50].mxu0 }
 0x759   :  { %v16053_v18 = vadd.f32 %v11533_v20, %v1494_v63  ;;  %v1703_v1 = vpop.f32.mrb[51].mxu0 }
 0x75a   :  { %v16055_v36 = vadd.f32 %v1703_v1, %v1493_v39  ;;  %v1502_v1 = vld [vmem:[#allocation2 + $0xc8] sm:$0xff] }
 0x75b   :  { %1784 = vmax.xlane.f32.xlu1 %v16053_v18 }
 0x75c   :  { %v11536_v33 = vpop.f32.mrb[52].mxu0  ;;  %1782 = vmax.xlane.f32.xlu0 %v16055_v36 }
 0x75d   :  { %v16059_v53 = vadd.f32 %v11536_v33, %v1496_v30  ;;  %v1713_v13 = vpop.f32.mrb[53].mxu0 }
 0x75e   :  { %v16061_v58 = vadd.f32 %v1713_v13, %v1495_v10  ;;  %v1501_v13 = vld [vmem:[#allocation2 + $0xc0] sm:$0xff] }
 0x75f   :  { %1788 = vmax.xlane.f32.xlu1 %v16059_v53 }
 0x760   :  { %v11539_v8 = vpop.f32.mrb[54].mxu0  ;;  %1786 = vmax.xlane.f32.xlu0 %v16061_v58 }
 0x761   :  { %v16065_v2 = vadd.f32 %v11539_v8, %v1498_v32  ;;  %v1723_v47 = vpop.f32.mrb[55].mxu0 }
 0x762   :  { %v16067_v61 = vadd.f32 %v1723_v47, %v1497_v51  ;;  %v1504_v47 = vld [vmem:[#allocation2 + $0xd8] sm:$0xff] }
 0x763   :  { %1792 = vmax.xlane.f32.xlu1 %v16065_v2 }
 0x764   :  { %v11542_v4 = vpop.f32.mrb[56].mxu0  ;;  %1790 = vmax.xlane.f32.xlu0 %v16067_v61 }
 0x765   :  { %v16071_v63 = vadd.f32 %v11542_v4, %v1500_v25  ;;  %v1733_v39 = vpop.f32.mrb[57].mxu0 }
 0x766   :  { %v16073_v20 = vadd.f32 %v1733_v39, %v1499_v41  ;;  %v1503_v39 = vld [vmem:[#allocation2 + $0xd0] sm:$0xff] }
 0x768   :  { %v11545_v30 = vpop.f32.mrb[58].mxu0  ;;  %1794 = vmax.xlane.f32.xlu1 %v16073_v20  ;;  %1796 = vmax.xlane.f32.xlu0 %v16071_v63 }
 0x769   :  { %v16077_v10 = vadd.f32 %v11545_v30, %v1502_v1  ;;  %v1743_v33 = vpop.f32.mrb[59].mxu0 }
 0x76a   :  { %v16080_v8 = vadd.f32 %v1743_v33, %v1501_v13  ;;  %v1505_v33 = vld [vmem:[#allocation2 + $0xe0] sm:$0xff] }
 0x76c   :  { %v11548_v32 = vpop.f32.mrb[60].mxu0  ;;  %1800 = vmax.xlane.f32.xlu1 %v16077_v10 }
 0x76d   :  { %v1753_v51 = vpop.f32.mrb[61].mxu0  ;;  %v16083_v4 = vadd.f32 %v11548_v32, %v1504_v47  ;;  %v1508_v32 = vld [vmem:[#allocation2 + $0xf8] sm:$0xff] }
 0x76e   :  { %v16086_v30 = vadd.f32 %v1753_v51, %v1503_v39  ;;  %v1507_v51 = vld [vmem:[#allocation2 + $0xf0] sm:$0xff] }
 0x770   :  { %v11551_v25 = vpop.f32.mrb[62].mxu0  ;;  %1798 = vmax.xlane.f32.xlu1 %v16080_v8 }
 0x771   :  { %v1763_v41 = vpop.f32.mrb[63].mxu0  ;;  %v16089_v55 = vadd.f32 %v11551_v25, %v1506_v49 }
 0x772   :  { %v16092_v13 = vadd.f32 %v1763_v41, %v1505_v33 }
 0x774   :  { %v11554_v42 = vpop.f32.mrb[64].mxu0  ;;  %1804 = vmax.xlane.f32.xlu1 %v16083_v4 }
 0x775   :  { %v1773_v1 = vpop.f32.mrb[65].mxu0  ;;  %v16097_v47 = vadd.f32 %v11554_v42, %v1508_v32 }
 0x776   :  { %v16100_v39 = vadd.f32 %v1773_v1, %v1507_v51 }
 0x778   :  { %1802 = vmax.xlane.f32.xlu1 %v16086_v30 }
 0x77c   :  { %1808 = vmax.xlane.f32.xlu1 %v16089_v55 }
 0x77e   :  { %14002 = vrot.lane.b32.xlu0 %v15567_v21, %s15181_s26 }
 0x780   :  { %1806 = vmax.xlane.f32.xlu1 %v16092_v13 }
 0x784   :  { %1812 = vmax.xlane.f32.xlu1 %v16097_v47 }
 0x788   :  { %1810 = vmax.xlane.f32.xlu1 %v16100_v39 }
 0x799   :  { %14007 = vrot.lane.b32.xlu1 %v15577_v26, %s15181_s26 }
 0x7a5   :  { %v16105_v49 = vpop.f32.mrb[66].mxu0 }
 0x7a6   :  { %v16107_v25 = vpop.f32.mrb[67].mxu0 }
 0x7a9   :  { %v16109_v41 = vpop.f32.mrb[68].mxu0 }
 0x7aa   :  { %v16111_v33 = vpop.f32.mrb[69].mxu0 }
 0x7ad   :  { %v16113_v42 = vpop.f32.mrb[70].mxu0 }
 0x7ae   :  { %v16115_v32 = vpop.f32.mrb[71].mxu0 }
 0x7b1   :  { %v16117_v48 = vpop.f32.mrb[72].mxu0 }
 0x7b2   :  { %19130 = vst [vmem:[#allocation23_spill] sm:$0xff] %v16117_v48  ;;  %v16119_v1 = vpop.f32.mrb[73].mxu0 }
 0x7b5   :  { %v16121_v51 = vpop.f32.mrb[74].mxu0 }
 0x7b6   :  { %v16123_v38 = vpop.f32.mrb[75].mxu0 }
 0x7b9   :  { %v16125_v37 = vpop.f32.mrb[76].mxu0 }
 0x7ba   :  { %19131 = vst [vmem:[#allocation24_spill] sm:$0xff] %v16125_v37  ;;  %v16127_v35 = vpop.f32.mrb[77].mxu0 }
 0x7bd   :  { %v16129_v29 = vpop.f32.mrb[78].mxu0 }
 0x7be   :  { %19132 = vst [vmem:[#allocation25_spill] sm:$0xff] %v16129_v29  ;;  %v16131_v40 = vpop.f32.mrb[79].mxu0 }
 0x7bf   :  { %19133 = vst [vmem:[#allocation26_spill] sm:$0xff] %v16131_v40 }
 0x7c1   :  { %v16133_v43 = vpop.f32.mrb[80].mxu0 }
 0x7c2   :  { %19134 = vst [vmem:[#allocation27_spill] sm:$0xff] %v16133_v43  ;;  %v16135_v28 = vpop.f32.mrb[81].mxu0 }
 0x7c3   :  { %19135 = vst [vmem:[#allocation28_spill] sm:$0xff] %v16135_v28 }
 0x7e8   :  { %v1785_v24 = vpop.xlane.xlu1 %1784 }
 0x7e9   :  { %v1815_v45 = vsub.f32 %v16053_v18, %v1785_v24  ;;  %v1783_v50 = vpop.xlane.xlu0 %1782 }
 0x7ea   :  { %v1814_v23 = vsub.f32 %v16055_v36, %v1783_v50 }
 0x7eb   :  { %v1832_v46 = vmul.f32 1.442695, %v1815_v45 }
 0x7ec   :  { %v1830_v16 = vmul.f32 1.442695, %v1814_v23  ;;  %v1789_v44 = vpop.xlane.xlu1 %1788 }
 0x7ed   :  { %14524 = vpow2.f32 %v1832_v46  ;;  %v1817_v48 = vsub.f32 %v16059_v53, %v1789_v44  ;;  %v1787_v34 = vpop.xlane.xlu0 %1786 }
 0x7ee   :  { %14526 = vpow2.f32 %v1830_v16  ;;  %v1816_v29 = vsub.f32 %v16061_v58, %v1787_v34 }
 0x7ef   :  { %v1836_v40 = vmul.f32 1.442695, %v1817_v48 }
 0x7f0   :  { %v1793_v43 = vpop.xlane.xlu1 %1792  ;;  %v1834_v28 = vmul.f32 1.442695, %v1816_v29 }
 0x7f1   :  { %14528 = vpow2.f32 %v1836_v40  ;;  %v1819_v37 = vsub.f32 %v16065_v2, %v1793_v43  ;;  %v1791_v24 = vpop.xlane.xlu0 %1790 }
 0x7f2   :  { %v1818_v18 = vsub.f32 %v16067_v61, %v1791_v24  ;;  %14530 = vpow2.f32 %v1834_v28 }
 0x7f3   :  { %v1840_v23 = vmul.f32 1.442695, %v1819_v37 }
 0x7f4   :  { %v1838_v50 = vmul.f32 1.442695, %v1818_v18 }
 0x7f5   :  { %v1795_v45 = vpop.xlane.xlu1 %1794  ;;  %v1797_v46 = vpop.xlane.xlu0 %1796 }
 0x7f6   :  { %14532 = vpow2.f32 %v1838_v50  ;;  %v1821_v44 = vsub.f32 %v16071_v63, %v1797_v46  ;;  %v1820_v40 = vsub.f32 %v16073_v20, %v1795_v45 }
 0x7f7   :  { %v16144_v16 = vpop.eup %14524  ;;  %14534 = vpow2.f32 %v1840_v23 }
 0x7f8   :  { %v16146_v34 = vpop.eup %14526  ;;  %1864 = vadd.xlane.f32.xlu1 %v16144_v16  ;;  %v1844_v43 = vmul.f32 1.442695, %v1821_v44  ;;  %v1842_v58 = vmul.f32 1.442695, %v1820_v40 }
 0x7f9   :  { %v1801_v29 = vpop.xlane.xlu1 %1800  ;;  %1862 = vadd.xlane.f32.xlu0 %v16146_v34  ;;  %v14003_v28 = vpop.permute.xlu0 %14002 }
 0x7fa   :  { %v14005_v37 = vunpack.i.h.bf16 %v14003_v28  ;;  %v14004_v48 = vunpack.i.l.bf16 %v14003_v28  ;;  %14536 = vpow2.f32 %v1844_v43 }
 0x7fb   :  { %v16151_v36 = vpop.eup %14528  ;;  %14538 = vpow2.f32 %v1842_v58 }
 0x7fc   :  { %1868 = vadd.xlane.f32.xlu1 %v16151_v36  ;;  %v13053_v53 = vpack.c.bf16 %v14005_v37, %v14004_v48  ;;  %v16155_v63 = vpop.eup %14530 }
 0x7fd   :  { %v1799_v2 = vpop.xlane.xlu1 %1798 }
 0x7fe   :  { %v1822_v61 = vsub.f32 %v16080_v8, %v1799_v2  ;;  %13054 = vmatprep.subr.bf16.mxu1 %v13053_v53 }
 0x7ff   :  { %13056 = vmatpush3.bf16.msra.mxu1 %v13053_v53 }
 0x800   :  { %v16157_v20 = vpop.eup %14532  ;;  %1866 = vadd.xlane.f32.xlu1 %v16155_v63  ;;  %v1846_v24 = vmul.f32 1.442695, %v1822_v61 }
 0x801   :  { %v1805_v18 = vpop.xlane.xlu1 %1804  ;;  %1870 = vadd.xlane.f32.xlu0 %v16157_v20  ;;  %v16161_v50 = vpop.eup %14534 }
 0x802   :  { %14540 = vpow2.f32 %v1846_v24 }
 0x804   :  { %1872 = vadd.xlane.f32.xlu1 %v16161_v50  ;;  %v16165_v45 = vpop.eup %14536 }
 0x805   :  { %v1803_v23 = vpop.xlane.xlu1 %1802  ;;  %v16168_v40 = vpop.eup %14538 }
 0x806   :  { %v1824_v8 = vsub.f32 %v16086_v30, %v1803_v23 }
 0x808   :  { %v1850_v46 = vmul.f32 1.442695, %v1824_v8  ;;  %1876 = vadd.xlane.f32.xlu1 %v16165_v45 }
 0x809   :  { %v1809_v44 = vpop.xlane.xlu1 %1808 }
 0x80a   :  { %14542 = vpow2.f32 %v1850_v46 }
 0x80c   :  { %1874 = vadd.xlane.f32.xlu1 %v16168_v40  ;;  %v16172_v37 = vpop.eup %14540 }
 0x80d   :  { %v1807_v43 = vpop.xlane.xlu1 %1806 }
 0x80e   :  { %v1826_v28 = vsub.f32 %v16092_v13, %v1807_v43 }
 0x810   :  { %v1854_v48 = vmul.f32 1.442695, %v1826_v28  ;;  %1878 = vadd.xlane.f32.xlu1 %v16172_v37 }
 0x811   :  { %v1813_v30 = vpop.xlane.xlu1 %1812 }
 0x812   :  { %14544 = vpow2.f32 %v1854_v48  ;;  %v1829_v2 = vsub.f32 %v16097_v47, %v1813_v30  ;;  %v1823_v47 = vsub.f32 %v16077_v10, %v1801_v29  ;;  %v1825_v30 = vsub.f32 %v16083_v4, %v1805_v18 }
 0x814   :  { %v16175_v53 = vpop.eup %14542  ;;  %v1860_v23 = vmul.f32 1.442695, %v1829_v2  ;;  %v1848_v48 = vmul.f32 1.442695, %v1823_v47  ;;  %v1852_v2 = vmul.f32 1.442695, %v1825_v30 }
 0x815   :  { %v1811_v58 = vpop.xlane.xlu1 %1810  ;;  %1882 = vadd.xlane.f32.xlu1 %v16175_v53  ;;  %v2518_v47 = vld [vmem:[#allocation2 + $0x120] sm:$0xff] }
 0x816   :  { %v1828_v61 = vsub.f32 %v16100_v39, %v1811_v58  ;;  %v16269_v30 = vadd.f32 %v16115_v32, %v2518_v47 }
 0x817   :  { %14012 = vrot.lane.b32.xlu0 %v15587_v31, %s15181_s26 }
 0x818   :  { %v1858_v13 = vmul.f32 1.442695, %v1828_v61  ;;  %v1827_v61 = vsub.f32 %v16089_v55, %v1809_v44  ;;  %v2517_v44 = vld [vmem:[#allocation2 + $0x118] sm:$0xff] }
 0x819   :  { %v14008_v24 = vpop.permute.xlu1 %14007 }
 0x81a   :  { %14546 = vpow2.f32 %v1858_v13  ;;  %v14010_v8 = vunpack.i.h.bf16 %v14008_v24  ;;  %v14009_v46 = vunpack.i.l.bf16 %v14008_v24  ;;  %v1856_v13 = vmul.f32 1.442695, %v1827_v61  ;;  %v2519_v61 = vld [vmem:[#allocation2 + $0x128] sm:$0xff] }
 0x81b   :  { %14548 = vpow2.f32 %v1860_v23 }
 0x81c   :  { %v16182_v43 = vpop.eup %14544  ;;  %v13057_v28 = vpack.c.bf16 %v14010_v8, %v14009_v46  ;;  %14550 = vpow2.f32 %v1848_v48 }
 0x81d   :  { %1886 = vadd.xlane.f32.xlu1 %v16182_v43  ;;  %14552 = vpow2.f32 %v1852_v2 }
 0x81e   :  { %13058 = vmatprep.subr.bf16.mxu1 %v13057_v28  ;;  %14554 = vpow2.f32 %v1856_v13 }
 0x81f   :  { %13060 = vmatpush3.bf16.msra.mxu1 %v13057_v28 }
 0x824   :  { %v16186_v39 = vpop.eup %14546 }
 0x825   :  { %1890 = vadd.xlane.f32.xlu1 %v16186_v39  ;;  %v16190_v58 = vpop.eup %14548 }
 0x826   :  { %v16194_v24 = vpop.eup %14550 }
 0x827   :  { %v16197_v10 = vpop.eup %14552 }
 0x828   :  { %v16202_v4 = vpop.eup %14554 }
 0x829   :  { %1892 = vadd.xlane.f32.xlu1 %v16190_v58 }
 0x836   :  { %1880 = vadd.xlane.f32.xlu0 %v16194_v24 }
 0x83a   :  { %1884 = vadd.xlane.f32.xlu0 %v16197_v10  ;;  %14017 = vrot.lane.b32.xlu1 %v15517_v56, %s15182_s27 }
 0x83e   :  { %1888 = vadd.xlane.f32.xlu0 %v16202_v4  ;;  %14022 = vrot.lane.b32.xlu1 %v15527_v60, %s15182_s27 }
 0x842   :  { %14032 = vrot.lane.b32.xlu1 %v15547_v11, %s15182_s27 }
 0x846   :  { %14037 = vrot.lane.b32.xlu1 %v15557_v14, %s15182_s27 }
 0x84a   :  { %14042 = vrot.lane.b32.xlu1 %v15567_v21, %s15182_s27 }
 0x84e   :  { %14047 = vrot.lane.b32.xlu1 %v15577_v26, %s15182_s27 }
 0x852   :  { %14052 = vrot.lane.b32.xlu1 %v15587_v31, %s15182_s27 }
 0x854   :  { %14027 = vrot.lane.b32.xlu0 %v15537_v5, %s15182_s27 }
 0x856   :  { %3370 = vrot.lane.b32.xlu1 %v15511_v54, %s15183_s28 }
 0x858   :  { %3372 = vrot.lane.b32.xlu0 %v15509_v52, %s15183_s28 }
 0x85a   :  { %3374 = vrot.lane.b32.xlu1 %v15523_v59, %s15183_s28  ;;  %v2514_v59 = vld [vmem:[#allocation2 + $0x100] sm:$0xff] }
 0x85c   :  { %3376 = vrot.lane.b32.xlu0 %v15519_v57, %s15183_s28 }
 0x85e   :  { %3378 = vrot.lane.b32.xlu1 %v15533_v3, %s15183_s28  ;;  %v2515_v3 = vld [vmem:[#allocation2 + $0x108] sm:$0xff] }
 0x860   :  { %3380 = vrot.lane.b32.xlu0 %v15529_v62, %s15183_s28 }
 0x862   :  { %3382 = vrot.lane.b32.xlu1 %v15543_v0, %s15183_s28  ;;  %v16250_v0 = vadd.f32 %v16107_v25, %v2514_v59  ;;  %v2522_v59 = vld [vmem:[#allocation2 + $0x140] sm:$0xff] }
 0x864   :  { %3384 = vrot.lane.b32.xlu0 %v15539_v7, %s15183_s28 }
 0x866   :  { %3386 = vrot.lane.b32.xlu1 %v15551_v6, %s15183_s28  ;;  %v16253_v6 = vadd.f32 %v16105_v49, %v2515_v3  ;;  %v2523_v3 = vld [vmem:[#allocation2 + $0x148] sm:$0xff] }
 0x868   :  { %3388 = vrot.lane.b32.xlu0 %v15549_v12, %s15183_s28 }
 0x86a   :  { %3390 = vrot.lane.b32.xlu1 %v15561_v19, %s15183_s28  ;;  %v2516_v19 = vld [vmem:[#allocation2 + $0x110] sm:$0xff] }
 0x86b   :  { %v16259_v25 = vadd.f32 %v16111_v33, %v2516_v19 }
 0x86c   :  { %3392 = vrot.lane.b32.xlu0 %v15559_v15, %s15183_s28 }
 0x86e   :  { %3394 = vrot.lane.b32.xlu1 %v15571_v22, %s15183_s28 }
 0x870   :  { %3396 = vrot.lane.b32.xlu0 %v15569_v9, %s15183_s28 }
 0x874   :  { %3398 = vrot.lane.b32.xlu0 %v15581_v17, %s15183_s28 }
 0x885   :  { %v1865_v52 = vpop.xlane.xlu1 %1864 }
 0x886   :  { %v1863_v54 = vpop.xlane.xlu0 %1862 }
 0x887   :  { %14556 = vrcp.f32 %v1863_v54 }
 0x888   :  { %14558 = vrcp.f32 %v1865_v52  ;;  %v2520_v52 = vld [vmem:[#allocation2 + $0x130] sm:$0xff] }
 0x889   :  { %v1869_v57 = vpop.xlane.xlu1 %1868 }
 0x88d   :  { %v1867_v62 = vpop.xlane.xlu1 %1866 }
 0x88e   :  { %14560 = vrcp.f32 %v1867_v62  ;;  %v1871_v7 = vpop.xlane.xlu0 %1870  ;;  %v16288_v62 = vadd.f32 %v16123_v38, %v2522_v59 }
 0x88f   :  { %14562 = vrcp.f32 %v1869_v57 }
 0x890   :  { %14564 = vrcp.f32 %v1871_v7 }
 0x891   :  { %v14557_v12 = vpop.eup %14556  ;;  %v1873_v15 = vpop.xlane.xlu1 %1872 }
 0x892   :  { %2803 = vmax.xlane.f32.xlu1 %v16250_v0  ;;  %v14013_v9 = vpop.permute.xlu0 %14012  ;;  %v1910_v22 = vmul.f32 %v14557_v12, %v16146_v34  ;;  %14566 = vrcp.f32 %v1873_v15  ;;  %v14559_v18 = vpop.eup %14558  ;;  %v16263_v34 = vadd.f32 %v16109_v41, %v2517_v44  ;;  %v2525_v15 = vld [vmem:[#allocation2 + $0x158] sm:$0xff] }
 0x893   :  { %v14015_v17 = vunpack.i.h.bf16 %v14013_v9  ;;  %v14014_v55 = vunpack.i.l.bf16 %v14013_v9  ;;  %2805 = vmax.xlane.f32.xlu0 %v16253_v6  ;;  %v1911_v46 = vmul.f32 %v14559_v18, %v16144_v16  ;;  %v2526_v9 = vld [vmem:[#allocation2 + $0x160] sm:$0xff] }
 0x894   :  { %11587 = vmatprep.mubr.f32.mxu1 %v1910_v22 }
 0x895   :  { %v1877_v29 = vpop.xlane.xlu1 %1876  ;;  %v13061_v49 = vpack.c.bf16 %v14015_v17, %v14014_v55  ;;  %v2527_v55 = vld [vmem:[#allocation2 + $0x168] sm:$0xff] }
 0x896   :  { %14568 = vrcp.f32 %v1877_v29 }
 0x897   :  { %2807 = vmax.xlane.f32.xlu0 %v16259_v25  ;;  %13062 = vmatprep.subr.bf16.mxu1 %v13061_v49 }
 0x898   :  { %v14561_v23 = vpop.eup %14560  ;;  %13064 = vmatpush3.bf16.msra.mxu1 %v13061_v49 }
 0x899   :  { %v1875_v8 = vpop.xlane.xlu1 %1874  ;;  %v1912_v33 = vmul.f32 %v14561_v23, %v16155_v63  ;;  %v14563_v28 = vpop.eup %14562  ;;  %v16275_v63 = vadd.f32 %v16113_v42, %v2519_v61  ;;  %v2521_v61 = vld [vmem:[#allocation2 + $0x138] sm:$0xff] }
 0x89a   :  { %14570 = vrcp.f32 %v1875_v8  ;;  %v14565_v48 = vpop.eup %14564  ;;  %v1913_v41 = vmul.f32 %v14563_v28, %v16151_v36  ;;  %v2528_v8 = vld [vmem:[#allocation2 + $0x170] sm:$0xff] }
 0x89b   :  { %2809 = vmax.xlane.f32.xlu0 %v16263_v34  ;;  %11588 = vmatmul.mubr.f32.vlgmr.msra.gmra.mrb[34].mxu1 %v1911_v46  ;;  %v1914_v16 = vmul.f32 %v14565_v48, %v16157_v20  ;;  %v16282_v20 = vadd.f32 %v16119_v1, %v2520_v52  ;;  %v16293_v1 = vadd.f32 %v16121_v51, %v2523_v3  ;;  %v19137_v51 = vld [vmem:[#allocation26_spill] sm:$0xff]  ;;  %v19140_v48 = vld [vmem:[#allocation28_spill] sm:$0xff] }
 0x89c   :  { %11590 = vmatprep.mubr.f32.mxu1 %v1912_v33  ;;  %v14567_v13 = vpop.eup %14566  ;;  %v16305_v17 = vadd.f32 %v19137_v51, %v2526_v9 }
 0x89d   :  { %v1879_v2 = vpop.xlane.xlu1 %1878  ;;  %v1915_v54 = vmul.f32 %v14567_v13, %v16161_v50 }
 0x89e   :  { %14572 = vrcp.f32 %v1879_v2  ;;  %v16317_v2 = vadd.f32 %v19140_v48, %v2528_v8 }
 0x89f   :  { %2811 = vmax.xlane.f32.xlu0 %v16269_v30  ;;  %11591 = vmatmul.mubr.f32.gmra.mrb[36].mxu1 %v1913_v41 }
 0x8a0   :  { %11593 = vmatprep.mubr.f32.mxu1 %v1914_v16  ;;  %v14569_v32 = vpop.eup %14568  ;;  %v2529_v16 = vld [vmem:[#allocation2 + $0x178] sm:$0xff] }
 0x8a1   :  { %v1917_v42 = vmul.f32 %v14569_v32, %v16165_v45 }
 0x8a2   :  { %v1883_v7 = vpop.xlane.xlu1 %1882 }
 0x8a3   :  { %2813 = vmax.xlane.f32.xlu0 %v16275_v63  ;;  %3400 = vrot.lane.b32.xlu1 %v15579_v27, %s15183_s28  ;;  %14574 = vrcp.f32 %v1883_v7 }
 0x8a4   :  { %v14571_v36 = vpop.eup %14570  ;;  %11594 = vmatmul.mubr.f32.gmra.mrb[38].mxu1 %v1915_v54  ;;  %v19141_v54 = vld [vmem:[#allocation23_spill] sm:$0xff] }
 0x8a5   :  { %v1916_v57 = vmul.f32 %v14571_v36, %v16168_v40  ;;  %v2524_v40 = vld [vmem:[#allocation2 + $0x150] sm:$0xff]  ;;  %v16323_v32 = vadd.f32 %v19141_v54, %v2521_v61 }
 0x8a6   :  { %v16297_v12 = vadd.f32 %v16127_v35, %v2524_v40  ;;  %v19138_v35 = vld [vmem:[#allocation25_spill] sm:$0xff]  ;;  %v19142_v36 = vld [vmem:[#allocation27_spill] sm:$0xff] }
 0x8a7   :  { %2815 = vmax.xlane.f32.xlu0 %v16282_v20  ;;  %11596 = vmatprep.mubr.f32.mxu1 %v1916_v57  ;;  %v16309_v44 = vadd.f32 %v19138_v35, %v2527_v55  ;;  %v16326_v57 = vadd.f32 %v19142_v36, %v2529_v16  ;;  %v15105_v16 = vld [vmem:[%s19074_s3 + $0x10] sm:$0xff] }
 0x8a8   :  { %v14573_v50 = vpop.eup %14572  ;;  %11597 = vmatmul.mubr.f32.gmra.mrb[40].mxu1 %v1917_v42 }
 0x8a9   :  { %v1918_v27 = vmul.f32 %v14573_v50, %v16172_v37  ;;  %v19136_v37 = vld [vmem:[#allocation24_spill] sm:$0xff] }
 0x8aa   :  { %v1887_v45 = vpop.xlane.xlu1 %1886  ;;  %v16301_v19 = vadd.f32 %v19136_v37, %v2525_v15 }
 0x8ab   :  { %2819 = vmax.xlane.f32.xlu0 %v16288_v62  ;;  %11599 = vmatprep.mubr.f32.mxu1 %v1918_v27 }
 0x8ad   :  { %v14575_v3 = vpop.eup %14574 }
 0x8ae   :  { %v1920_v37 = vmul.f32 %v14575_v3, %v16175_v53 }
 0x8af   :  { %2821 = vmax.xlane.f32.xlu0 %v16293_v1 }
 0x8b2   :  { %v1891_v38 = vpop.xlane.xlu1 %1890 }
 0x8b3   :  { %2823 = vmax.xlane.f32.xlu0 %v16297_v12 }
 0x8b6   :  { %v1893_v22 = vpop.xlane.xlu1 %1892 }
 0x8b7   :  { %2825 = vmax.xlane.f32.xlu0 %v16301_v19 }
 0x8ba   :  { %v14018_v29 = vpop.permute.xlu1 %14017 }
 0x8bb   :  { %v14020_v49 = vunpack.i.h.bf16 %v14018_v29  ;;  %v14019_v18 = vunpack.i.l.bf16 %v14018_v29  ;;  %2827 = vmax.xlane.f32.xlu0 %v16305_v17 }
 0x8bd   :  { %v13145_v23 = vpack.c.bf16 %v14020_v49, %v14019_v18 }
 0x8be   :  { %v14023_v46 = vpop.permute.xlu1 %14022 }
 0x8bf   :  { %v14025_v33 = vunpack.i.h.bf16 %v14023_v46  ;;  %v14024_v28 = vunpack.i.l.bf16 %v14023_v46  ;;  %2829 = vmax.xlane.f32.xlu0 %v16309_v44  ;;  %13147 = vmatprep.subr.msk.bf16.mxu0 %vm15617_vm3, %v13145_v23 }
 0x8c0   :  { %13150 = vmatpush3.bf16.xpose.msk.msra.mxu0 %vm15617_vm3, %v13145_v23 }
 0x8c1   :  { %v13151_v41 = vpack.c.bf16 %v14025_v33, %v14024_v28 }
 0x8c2   :  { %v14033_v13 = vpop.permute.xlu1 %14032 }
 0x8c3   :  { %2831 = vmax.xlane.f32.xlu0 %v16317_v2  ;;  %13153 = vmatprep.subr.msk.bf16.mxu0 %vm15617_vm3, %v13151_v41  ;;  %v1881_v52 = vpop.xlane.xlu0 %1880  ;;  %v14035_v9 = vunpack.i.h.bf16 %v14033_v13  ;;  %v14034_v51 = vunpack.i.l.bf16 %v14033_v13 }
 0x8c4   :  { %14576 = vrcp.f32 %v1881_v52 }
 0x8c5   :  { %14578 = vrcp.f32 %v1887_v45  ;;  %v13163_v8 = vpack.c.bf16 %v14035_v9, %v14034_v51 }
 0x8c6   :  { %v14038_v59 = vpop.permute.xlu1 %14037 }
 0x8c7   :  { %2833 = vmax.xlane.f32.xlu0 %v16326_v57  ;;  %2817 = vmax.xlane.f32.xlu1 %v16323_v32  ;;  %v1885_v42 = vpop.xlane.xlu0 %1884  ;;  %v14040_v48 = vunpack.i.h.bf16 %v14038_v59 }
 0x8c8   :  { %14580 = vrcp.f32 %v1885_v42  ;;  %13156 = vmatpush3.bf16.xpose.msk.msra.mxu0 %vm15617_vm3, %v13151_v41  ;;  %v14039_v41 = vunpack.i.l.bf16 %v14038_v59 }
 0x8c9   :  { %14582 = vrcp.f32 %v1891_v38 }
 0x8ca   :  { %v14043_v50 = vpop.permute.xlu1 %14042 }
 0x8cb   :  { %v1889_v27 = vpop.xlane.xlu0 %1888 }
 0x8cc   :  { %14584 = vrcp.f32 %v1889_v27 }
 0x8cd   :  { %14586 = vrcp.f32 %v1893_v22 }
 0x8ce   :  { %v14577_v7 = vpop.eup %14576  ;;  %v14048_v40 = vpop.permute.xlu1 %14047 }
 0x8cf   :  { %v14028_v15 = vpop.permute.xlu0 %14027  ;;  %v1919_v45 = vmul.f32 %v14577_v7, %v16194_v24  ;;  %v14579_v49 = vpop.eup %14578  ;;  %v14050_v52 = vunpack.i.h.bf16 %v14048_v40  ;;  %v14049_v54 = vunpack.i.l.bf16 %v14048_v40 }
 0x8d0   :  { %v14030_v55 = vunpack.i.h.bf16 %v14028_v15  ;;  %v14029_v29 = vunpack.i.l.bf16 %v14028_v15  ;;  %v1922_v24 = vmul.f32 %v14579_v49, %v16182_v43  ;;  %v15104_v43 = vld [vmem:[%s19074_s3] sm:$0xff] }
 0x8d1   :  { %11600 = vmatmul.mubr.f32.gmra.mrb[42].mxu1 %v1919_v45  ;;  %v13181_v36 = vpack.c.bf16 %v14050_v52, %v14049_v54 }
 0x8d2   :  { %v14581_v18 = vpop.eup %14580  ;;  %v13157_v35 = vpack.c.bf16 %v14030_v55, %v14029_v29  ;;  %v14053_v38 = vpop.permute.xlu1 %14052  ;;  %11602 = vmatprep.mubr.f32.mxu1 %v1920_v37 }
 0x8d3   :  { %v1921_v23 = vmul.f32 %v14581_v18, %v16197_v10  ;;  %v14583_v22 = vpop.eup %14582  ;;  %v14055_v59 = vunpack.i.h.bf16 %v14053_v38  ;;  %v14054_v42 = vunpack.i.l.bf16 %v14053_v38 }
 0x8d4   :  { %13159 = vmatprep.subr.msk.bf16.mxu0 %vm15617_vm3, %v13157_v35  ;;  %v1924_v28 = vmul.f32 %v14583_v22, %v16186_v39  ;;  %v14045_v39 = vunpack.i.h.bf16 %v14043_v50 }
 0x8d5   :  { %11603 = vmatmul.mubr.f32.gmra.mrb[44].mxu1 %v1921_v23  ;;  %13162 = vmatpush3.bf16.xpose.msk.msra.mxu0 %vm15617_vm3, %v13157_v35  ;;  %v13187_v27 = vpack.c.bf16 %v14055_v59, %v14054_v42 }
 0x8d6   :  { %v14585_v53 = vpop.eup %14584  ;;  %v3371_v46 = vpop.permute.xlu1 %3370  ;;  %11605 = vmatprep.mubr.f32.mxu1 %v1922_v24  ;;  %13165 = vmatprep.subr.msk.bf16.mxu0 %vm15617_vm3, %v13163_v8 }
 0x8d7   :  { %11833 = vmatprep.mubr.msk.f32.mxu0 %vm945_vm2, %v3371_v46  ;;  %v1923_v10 = vmul.f32 %v14585_v53, %v16202_v4  ;;  %v14587_v33 = vpop.eup %14586  ;;  %v13169_v4 = vpack.c.bf16 %v14040_v48, %v14039_v41 }
 0x8d8   :  { %2317 = vrot.lane.b32.xlu1 %v15104_v43, %s15184_s8  ;;  %v1925_v61 = vmul.f32 %v14587_v33, %v16190_v58  ;;  %v14044_v58 = vunpack.i.l.bf16 %v14043_v50  ;;  %v3373_v50 = vpop.permute.xlu0 %3372 }
 0x8d9   :  { %11606 = vmatmul.mubr.f32.gmra.mrb[46].mxu1 %v1923_v10 }
 0x8da   :  { %11608 = vmatprep.mubr.f32.mxu1 %v1924_v28  ;;  %v13175_v13 = vpack.c.bf16 %v14045_v39, %v14044_v58  ;;  %v3375_v7 = vpop.permute.xlu1 %3374 }
 0x8dc   :  { %14057 = vrot.lane.b32.xlu1 %v15517_v56, %s15185_s9  ;;  %v3377_v3 = vpop.permute.xlu0 %3376 }
 0x8dd   :  { %2120 = vrot.lane.b32.xlu0 %v15105_v16, %s15184_s8  ;;  %11609 = vmatmul.mubr.f32.gmra.mrb[48].mxu1 %v1925_v61 }
 0x8de   :  { %13168 = vmatpush3.bf16.xpose.msk.msra.mxu0 %vm15617_vm3, %v13163_v8  ;;  %v3379_v15 = vpop.permute.xlu1 %3378 }
 0x8df   :  { %13171 = vmatprep.subr.msk.bf16.mxu0 %vm15617_vm3, %v13169_v4 }
 0x8e0   :  { %14062 = vrot.lane.b32.xlu1 %v15527_v60, %s15185_s9  ;;  %v3381_v40 = vpop.permute.xlu0 %3380 }
 0x8e1   :  { %14067 = vrot.lane.b32.xlu0 %v15537_v5, %s15185_s9 }
 0x8e2   :  { %v3383_v37 = vpop.permute.xlu1 %3382 }
 0x8e4   :  { %14072 = vrot.lane.b32.xlu1 %v15547_v11, %s15185_s9  ;;  %v3385_v45 = vpop.permute.xlu0 %3384 }
 0x8e5   :  { %14077 = vrot.lane.b32.xlu0 %v15557_v14, %s15185_s9 }
 0x8e6   :  { %13174 = vmatpush3.bf16.xpose.msk.msra.mxu0 %vm15617_vm3, %v13169_v4  ;;  %v3387_v51 = vpop.permute.xlu1 %3386 }
 0x8e7   :  { %13177 = vmatprep.subr.msk.bf16.mxu0 %vm15617_vm3, %v13175_v13 }
 0x8e8   :  { %14087 = vrot.lane.b32.xlu1 %v15577_v26, %s15185_s9  ;;  %v3389_v9 = vpop.permute.xlu0 %3388 }
 0x8e9   :  { %14082 = vrot.lane.b32.xlu0 %v15567_v21, %s15185_s9 }
 0x8ea   :  { %v3391_v29 = vpop.permute.xlu1 %3390 }
 0x8ec   :  { %v3393_v55 = vpop.permute.xlu0 %3392 }
 0x8ee   :  { %13180 = vmatpush3.bf16.xpose.msk.msra.mxu0 %vm15617_vm3, %v13175_v13  ;;  %v3395_v18 = vpop.permute.xlu1 %3394 }
 0x8ef   :  { %13183 = vmatprep.subr.msk.bf16.mxu0 %vm15617_vm3, %v13181_v36 }
 0x8f0   :  { %v3397_v49 = vpop.permute.xlu0 %3396 }
 0x8f4   :  { %v3399_v35 = vpop.permute.xlu0 %3398 }
 0x8f6   :  { %13186 = vmatpush3.bf16.xpose.msk.msra.mxu0 %vm15617_vm3, %v13181_v36 }
 0x8f7   :  { %13189 = vmatprep.subr.msk.bf16.mxu0 %vm15617_vm3, %v13187_v27 }
 0x8fe   :  { %13192 = vmatpush3.bf16.xpose.msk.msra.mxu0 %vm15617_vm3, %v13187_v27 }
 0x905   :  { %11834 = vmatmul.mubr.msk.f32.vlgmr.msra.gmra.mrb[82].mxu0 %vm945_vm2, %v3373_v50 }
 0x906   :  { %11836 = vmatprep.mubr.msk.f32.mxu0 %vm945_vm2, %v3375_v7 }
 0x909   :  { %11837 = vmatmul.mubr.msk.f32.gmra.mrb[84].mxu0 %vm945_vm2, %v3377_v3 }
 0x90a   :  { %11839 = vmatprep.mubr.msk.f32.mxu0 %vm945_vm2, %v3379_v15 }
 0x90d   :  { %11840 = vmatmul.mubr.msk.f32.gmra.mrb[86].mxu0 %vm945_vm2, %v3381_v40 }
 0x90e   :  { %11842 = vmatprep.mubr.msk.f32.mxu0 %vm945_vm2, %v3383_v37 }
 0x911   :  { %11843 = vmatmul.mubr.msk.f32.gmra.mrb[88].mxu0 %vm945_vm2, %v3385_v45 }
 0x912   :  { %11845 = vmatprep.mubr.msk.f32.mxu0 %vm945_vm2, %v3387_v51 }
 0x915   :  { %11846 = vmatmul.mubr.msk.f32.gmra.mrb[90].mxu0 %vm945_vm2, %v3389_v9 }
 0x916   :  { %11848 = vmatprep.mubr.msk.f32.mxu0 %vm945_vm2, %v3391_v29 }
 0x919   :  { %11849 = vmatmul.mubr.msk.f32.gmra.mrb[92].mxu0 %vm945_vm2, %v3393_v55 }
 0x91a   :  { %11851 = vmatprep.mubr.msk.f32.mxu0 %vm945_vm2, %v3395_v18 }
 0x91d   :  { %11852 = vmatmul.mubr.msk.f32.gmra.mrb[94].mxu0 %vm945_vm2, %v3397_v49 }
 0x91e   :  { %11854 = vmatprep.mubr.msk.f32.mxu0 %vm945_vm2, %v3399_v35 }
 0x91f   :  { %v2804_v38 = vpop.xlane.xlu1 %2803 }
 0x920   :  { %v2835_v23 = vsub.f32 %v16250_v0, %v2804_v38  ;;  %v2806_v8 = vpop.xlane.xlu0 %2805 }
 0x921   :  { %v2836_v24 = vsub.f32 %v16253_v6, %v2806_v8 }
 0x922   :  { %v2851_v22 = vmul.f32 1.442695, %v2835_v23 }
 0x923   :  { %v2853_v53 = vmul.f32 1.442695, %v2836_v24  ;;  %v3401_v46 = vpop.permute.xlu1 %3400 }
 0x924   :  { %14588 = vpow2.f32 %v2851_v22  ;;  %v2808_v10 = vpop.xlane.xlu0 %2807  ;;  %11855 = vmatmul.mubr.msk.f32.gmra.mrb[96].mxu0 %vm945_vm2, %v3401_v46 }
 0x925   :  { %14590 = vpow2.f32 %v2853_v53  ;;  %v2837_v33 = vsub.f32 %v16259_v25, %v2808_v10 }
 0x927   :  { %v2855_v41 = vmul.f32 1.442695, %v2837_v33 }
 0x928   :  { %v2810_v43 = vpop.xlane.xlu0 %2809 }
 0x929   :  { %v2838_v28 = vsub.f32 %v16263_v34, %v2810_v43 }
 0x92b   :  { %v2857_v48 = vmul.f32 1.442695, %v2838_v28 }
 0x92c   :  { %v2812_v61 = vpop.xlane.xlu0 %2811 }
 0x92d   :  { %14592 = vpow2.f32 %v2857_v48  ;;  %v2839_v0 = vsub.f32 %v16269_v30, %v2812_v61 }
 0x92e   :  { %v16406_v6 = vpop.eup %14588  ;;  %14594 = vpow2.f32 %v2855_v41 }
 0x92f   :  { %v16408_v4 = vpop.eup %14590  ;;  %v2859_v16 = vmul.f32 1.442695, %v2839_v0  ;;  %2883 = vadd.xlane.f32.xlu0 %v16406_v6 }
 0x930   :  { %2885 = vadd.xlane.f32.xlu1 %v16408_v4  ;;  %v2814_v25 = vpop.xlane.xlu0 %2813 }
 0x931   :  { %14596 = vpow2.f32 %v2859_v16  ;;  %v2840_v34 = vsub.f32 %v16275_v63, %v2814_v25 }
 0x933   :  { %v2861_v39 = vmul.f32 1.442695, %v2840_v34 }
 0x934   :  { %v2816_v58 = vpop.xlane.xlu0 %2815 }
 0x935   :  { %14598 = vpow2.f32 %v2861_v39  ;;  %v2841_v15 = vsub.f32 %v16282_v20, %v2816_v58 }
 0x937   :  { %v16413_v13 = vpop.eup %14592  ;;  %v2863_v51 = vmul.f32 1.442695, %v2841_v15 }
 0x938   :  { %2889 = vadd.xlane.f32.xlu1 %v16413_v13  ;;  %v2820_v30 = vpop.xlane.xlu0 %2819  ;;  %v16416_v52 = vpop.eup %14594 }
 0x939   :  { %v2843_v55 = vsub.f32 %v16288_v62, %v2820_v30 }
 0x93b   :  { %v16418_v54 = vpop.eup %14596  ;;  %v2867_v49 = vmul.f32 1.442695, %v2843_v55 }
 0x93c   :  { %2887 = vadd.xlane.f32.xlu1 %v16416_v52  ;;  %2891 = vadd.xlane.f32.xlu0 %v16418_v54  ;;  %v2822_v36 = vpop.xlane.xlu0 %2821 }
 0x93d   :  { %v2844_v35 = vsub.f32 %v16293_v1, %v2822_v36 }
 0x93f   :  { %v16422_v59 = vpop.eup %14598  ;;  %v2869_v38 = vmul.f32 1.442695, %v2844_v35 }
 0x940   :  { %2893 = vadd.xlane.f32.xlu1 %v16422_v59  ;;  %v2824_v63 = vpop.xlane.xlu0 %2823 }
 0x941   :  { %v2845_v18 = vsub.f32 %v16297_v12, %v2824_v63 }
 0x943   :  { %v2871_v20 = vmul.f32 1.442695, %v2845_v18 }
 0x944   :  { %v2826_v42 = vpop.xlane.xlu0 %2825 }
 0x945   :  { %v2846_v23 = vsub.f32 %v16301_v19, %v2826_v42 }
 0x947   :  { %v2873_v22 = vmul.f32 1.442695, %v2846_v23 }
 0x948   :  { %v2828_v50 = vpop.xlane.xlu0 %2827 }
 0x94c   :  { %v2830_v27 = vpop.xlane.xlu0 %2829 }
 0x94d   :  { %v2848_v12 = vsub.f32 %v16309_v44, %v2830_v27 }
 0x94f   :  { %v2877_v53 = vmul.f32 1.442695, %v2848_v12  ;;  %v19146_v12 = vld [vmem:[#allocation9_spill] sm:$0xff] }
 0x950   :  { %v2832_v3 = vpop.xlane.xlu0 %2831 }
 0x951   :  { %v2849_v24 = vsub.f32 %v16317_v2, %v2832_v3 }
 0x952   :  { %14092 = vrot.lane.b32.xlu0 %v15587_v31, %s15185_s9 }
 0x954   :  { %v2818_v7 = vpop.xlane.xlu1 %2817  ;;  %v2834_v40 = vpop.xlane.xlu0 %2833 }
 0x955   :  { %v2842_v45 = vsub.f32 %v16323_v32, %v2818_v7  ;;  %v2847_v32 = vsub.f32 %v16305_v17, %v2828_v50  ;;  %v2879_v17 = vmul.f32 1.442695, %v2849_v24  ;;  %v2850_v19 = vsub.f32 %v16326_v57, %v2834_v40 }
 0x957   :  { %v2865_v37 = vmul.f32 1.442695, %v2842_v45  ;;  %v2875_v62 = vmul.f32 1.442695, %v2847_v32  ;;  %v2881_v2 = vmul.f32 1.442695, %v2850_v19 }
 0x958   :  { %v2121_v9 = vpop.permute.xlu0 %2120  ;;  %v2318_v29 = vpop.permute.xlu1 %2317  ;;  %v19144_v32 = vld [vmem:[#allocation7_spill] sm:$0xff]  ;;  %v19147_v19 = vld [vmem:[#allocation12_spill] sm:$0xff] }
 0x959   :  { %14600 = vpow2.f32 %v2865_v37  ;;  %11611 = vmatprep.subr.mxu1 %v2121_v9 }
 0x95a   :  { %11612 = vmatpush3.msra.mxu1 %v2121_v9  ;;  %14602 = vpow2.f32 %v2863_v51 }
 0x95b   :  { %11637 = vmatprep.subr.mxu1 %v2318_v29  ;;  %14604 = vpow2.f32 %v2867_v49  ;;  %v19143_v49 = vld [vmem:[#allocation8_spill] sm:$0xff] }
 0x95c   :  { %14606 = vpow2.f32 %v2871_v20  ;;  %v14058_v46 = vpop.permute.xlu1 %14057  ;;  %v14068_v51 = vpop.permute.xlu0 %14067 }
 0x95d   :  { %14608 = vpow2.f32 %v2869_v38  ;;  %v14060_v33 = vunpack.i.h.bf16 %v14058_v46  ;;  %v14059_v43 = vunpack.i.l.bf16 %v14058_v46  ;;  %v14070_v18 = vunpack.i.h.bf16 %v14068_v51 }
 0x95e   :  { %14610 = vpow2.f32 %v2875_v62  ;;  %v14069_v35 = vunpack.i.l.bf16 %v14068_v51  ;;  %v19145_v62 = vld [vmem:[#allocation10_spill] sm:$0xff] }
 0x95f   :  { %14612 = vpow2.f32 %v2873_v22  ;;  %v13113_v57 = vpack.c.bf16 %v14060_v33, %v14059_v43  ;;  %v19148_v43 = vld [vmem:[#allocation11_spill] sm:$0xff] }
 0x960   :  { %14614 = vpow2.f32 %v2879_v17  ;;  %v14063_v45 = vpop.permute.xlu1 %14062  ;;  %v14078_v23 = vpop.permute.xlu0 %14077  ;;  %v13121_v17 = vpack.c.bf16 %v14070_v18, %v14069_v35 }
 0x961   :  { %14616 = vpow2.f32 %v2877_v53  ;;  %v14065_v55 = vunpack.i.h.bf16 %v14063_v45  ;;  %v14079_v33 = vunpack.i.l.bf16 %v14078_v23 }
 0x962   :  { %14618 = vpow2.f32 %v2881_v2  ;;  %v14080_v2 = vunpack.i.h.bf16 %v14078_v23 }
 0x963   :  { %v16434_v8 = vpop.eup %14600 }
 0x964   :  { %2897 = vadd.xlane.f32.xlu1 %v16434_v8  ;;  %v16439_v1 = vpop.eup %14602  ;;  %v14073_v20 = vpop.permute.xlu1 %14072 }
 0x965   :  { %v16443_v10 = vpop.eup %14604  ;;  %v14075_v24 = vunpack.i.h.bf16 %v14073_v20  ;;  %v14074_v22 = vunpack.i.l.bf16 %v14073_v20  ;;  %v14083_v46 = vpop.permute.xlu0 %14082 }
 0x966   :  { %v16446_v28 = vpop.eup %14606 }
 0x967   :  { %v16448_v41 = vpop.eup %14608 }
 0x968   :  { %2895 = vadd.xlane.f32.xlu1 %v16439_v1  ;;  %v16454_v0 = vpop.eup %14610  ;;  %v14088_v53 = vpop.permute.xlu1 %14087 }
 0x969   :  { %v16456_v25 = vpop.eup %14612 }
 0x96a   :  { %v16462_v34 = vpop.eup %14614 }
 0x96b   :  { %v16464_v58 = vpop.eup %14616 }
 0x96c   :  { %2899 = vadd.xlane.f32.xlu1 %v16443_v10  ;;  %v16470_v36 = vpop.eup %14618 }
 0x96e   :  { %v11589_v44 = vpop.f32.mrb[34].mxu1 }
 0x96f   :  { %v2040_v48 = vpop.f32.mrb[35].mxu1 }
 0x970   :  { %2903 = vadd.xlane.f32.xlu1 %v16446_v28  ;;  %11613 = vmatprep.mubr.msk.f32.mxu1 %vm945_vm2, %v2040_v48  ;;  %v19149_v48 = vld [vmem:[#allocation14_spill] sm:$0xff] }
 0x971   :  { %2901 = vadd.xlane.f32.xlu0 %v16448_v41  ;;  %11614 = vmatmul.mubr.msk.f32.vlgmr.msra.gmra.mrb[50].mxu1 %vm945_vm2, %v11589_v44  ;;  %v13125_v44 = vpack.c.bf16 %v14075_v24, %v14074_v22  ;;  %v19158_v22 = vld [vmem:[#allocation21_spill] sm:$0xff] }
 0x972   :  { %11638 = vmatpush3.msra.mxu1 %v2318_v29  ;;  %v11592_v61 = vpop.f32.mrb[36].mxu1  ;;  %v14064_v29 = vunpack.i.l.bf16 %v14063_v45 }
 0x973   :  { %13114 = vmatprep.subr.bf16.mxu1 %v13113_v57  ;;  %v2050_v16 = vpop.f32.mrb[37].mxu1 }
 0x974   :  { %2907 = vadd.xlane.f32.xlu1 %v16454_v0  ;;  %11616 = vmatprep.mubr.msk.f32.mxu1 %vm945_vm2, %v2050_v16  ;;  %v13117_v38 = vpack.c.bf16 %v14065_v55, %v14064_v29  ;;  %v14085_v16 = vunpack.i.h.bf16 %v14083_v46  ;;  %v19155_v55 = vld [vmem:[#allocation20_spill] sm:$0xff] }
 0x975   :  { %2905 = vadd.xlane.f32.xlu0 %v16456_v25  ;;  %11617 = vmatmul.mubr.msk.f32.gmra.mrb[52].mxu1 %vm945_vm2, %v11592_v61 }
 0x977   :  { %v11595_v39 = vpop.f32.mrb[38].mxu1 }
 0x978   :  { %v2060_v30 = vpop.f32.mrb[39].mxu1  ;;  %2911 = vadd.xlane.f32.xlu1 %v16462_v34 }
 0x979   :  { %11619 = vmatprep.mubr.msk.f32.mxu1 %vm945_vm2, %v2060_v30  ;;  %2909 = vadd.xlane.f32.xlu0 %v16464_v58  ;;  %v19150_v30 = vld [vmem:[#allocation13_spill] sm:$0xff] }
 0x97a   :  { %11620 = vmatmul.mubr.msk.f32.gmra.mrb[54].mxu1 %vm945_vm2, %v11595_v39  ;;  %v14084_v39 = vunpack.i.l.bf16 %v14083_v46 }
 0x97b   :  { %v11598_v63 = vpop.f32.mrb[40].mxu1 }
 0x97c   :  { %2913 = vadd.xlane.f32.xlu1 %v16470_v36  ;;  %v2070_v42 = vpop.f32.mrb[41].mxu1 }
 0x97d   :  { %11622 = vmatprep.mubr.msk.f32.mxu1 %vm945_vm2, %v2070_v42  ;;  %v19151_v42 = vld [vmem:[#allocation16_spill] sm:$0xff] }
 0x97e   :  { %11623 = vmatmul.mubr.msk.f32.gmra.mrb[56].mxu1 %vm945_vm2, %v11598_v63  ;;  %v13129_v63 = vpack.c.bf16 %v14080_v2, %v14079_v33  ;;  %v3354_v2 = vld [vmem:[#allocation2 + $0x180] sm:$0xff] }
 0x9a4   :  { %v11601_v50 = vpop.f32.mrb[42].mxu1 }
 0x9a5   :  { %v2080_v27 = vpop.f32.mrb[43].mxu1 }
 0x9a6   :  { %11625 = vmatprep.mubr.msk.f32.mxu1 %vm945_vm2, %v2080_v27  ;;  %v14090_v27 = vunpack.i.h.bf16 %v14088_v53 }
 0x9a7   :  { %11626 = vmatmul.mubr.msk.f32.gmra.mrb[58].mxu1 %vm945_vm2, %v11601_v50 }
 0x9a8   :  { %v11604_v3 = vpop.f32.mrb[44].mxu1 }
 0x9a9   :  { %v2090_v7 = vpop.f32.mrb[45].mxu1 }
 0x9aa   :  { %11628 = vmatprep.mubr.msk.f32.mxu1 %vm945_vm2, %v2090_v7  ;;  %v19152_v7 = vld [vmem:[#allocation15_spill] sm:$0xff] }
 0x9ab   :  { %11629 = vmatmul.mubr.msk.f32.gmra.mrb[60].mxu1 %vm945_vm2, %v11604_v3  ;;  %v14089_v3 = vunpack.i.l.bf16 %v14088_v53 }
 0x9ac   :  { %v11607_v40 = vpop.f32.mrb[46].mxu1 }
 0x9ad   :  { %v2100_v15 = vpop.f32.mrb[47].mxu1  ;;  %v13137_v51 = vpack.c.bf16 %v14090_v27, %v14089_v3 }
 0x9ae   :  { %11631 = vmatprep.mubr.msk.f32.mxu1 %vm945_vm2, %v2100_v15  ;;  %v19153_v15 = vld [vmem:[#allocation18_spill] sm:$0xff] }
 0x9af   :  { %11632 = vmatmul.mubr.msk.f32.gmra.mrb[62].mxu1 %vm945_vm2, %v11607_v40  ;;  %v13133_v40 = vpack.c.bf16 %v14085_v16, %v14084_v39 }
 0x9b0   :  { %v11610_v37 = vpop.f32.mrb[48].mxu1 }
 0x9b1   :  { %v2110_v9 = vpop.f32.mrb[49].mxu1 }
 0x9b2   :  { %11634 = vmatprep.mubr.msk.f32.mxu1 %vm945_vm2, %v2110_v9  ;;  %v19154_v9 = vld [vmem:[#allocation17_spill] sm:$0xff] }
 0x9b3   :  { %11635 = vmatmul.mubr.msk.f32.gmra.mrb[64].mxu1 %vm945_vm2, %v11610_v37 }
 0x9b4   :  { %11639 = vmatprep.mubr.msk.f32.mxu1 %vm945_vm2, %v19143_v49 }
 0x9b7   :  { %11640 = vmatmul.mubr.msk.f32.vlgmr.msra.gmra.mrb[50].mxu1 %vm945_vm2, %v19144_v32  ;;  %v19156_v32 = vld [vmem:[#allocation19_spill] sm:$0xff] }
 0x9b8   :  { %13116 = vmatpush3.bf16.msra.mxu1 %v13113_v57  ;;  %11642 = vmatprep.mubr.msk.f32.mxu1 %vm945_vm2, %v19145_v62 }
 0x9b9   :  { %13118 = vmatprep.subr.bf16.mxu1 %v13117_v38 }
 0x9bb   :  { %11643 = vmatmul.mubr.msk.f32.gmra.mrb[52].mxu1 %vm945_vm2, %v19146_v12 }
 0x9bc   :  { %13120 = vmatpush3.bf16.msra.mxu1 %v13117_v38  ;;  %11645 = vmatprep.mubr.msk.f32.mxu1 %vm945_vm2, %v19147_v19  ;;  %v2884_v61 = vpop.xlane.xlu0 %2883  ;;  %v19157_v38 = vld [vmem:[#allocation22_spill] sm:$0xff] }
 0x9bd   :  { %13122 = vmatprep.subr.bf16.mxu1 %v13121_v17  ;;  %v2886_v57 = vpop.xlane.xlu1 %2885  ;;  %14620 = vrcp.f32 %v2884_v61  ;;  %v3355_v61 = vld [vmem:[#allocation2 + $0x188] sm:$0xff] }
 0x9be   :  { %14622 = vrcp.f32 %v2886_v57 }
 0x9bf   :  { %11646 = vmatmul.mubr.msk.f32.gmra.mrb[54].mxu1 %vm945_vm2, %v19148_v43 }
 0x9c0   :  { %13124 = vmatpush3.bf16.msra.mxu1 %v13121_v17  ;;  %11648 = vmatprep.mubr.msk.f32.mxu1 %vm945_vm2, %v19149_v48 }
 0x9c1   :  { %13126 = vmatprep.subr.bf16.mxu1 %v13125_v44 }
 0x9c3   :  { %11649 = vmatmul.mubr.msk.f32.gmra.mrb[56].mxu1 %vm945_vm2, %v19150_v30  ;;  %v3356_v30 = vld [vmem:[#allocation2 + $0x190] sm:$0xff] }
 0x9c4   :  { %13128 = vmatpush3.bf16.msra.mxu1 %v13125_v44  ;;  %11651 = vmatprep.mubr.msk.f32.mxu1 %vm945_vm2, %v19151_v42 }
 0x9c5   :  { %13130 = vmatprep.subr.bf16.mxu1 %v13129_v63  ;;  %v2890_v50 = vpop.xlane.xlu1 %2889 }
 0x9c7   :  { %11652 = vmatmul.mubr.msk.f32.gmra.mrb[58].mxu1 %vm945_vm2, %v19152_v7  ;;  %v14621_v20 = vpop.eup %14620 }
 0x9c8   :  { %13132 = vmatpush3.bf16.msra.mxu1 %v13129_v63  ;;  %11654 = vmatprep.mubr.msk.f32.mxu1 %vm945_vm2, %v19153_v15  ;;  %v14623_v62 = vpop.eup %14622  ;;  %v2931_v24 = vmul.f32 %v14621_v20, %v16406_v6  ;;  %v3362_v15 = vld [vmem:[#allocation2 + $0x1c0] sm:$0xff] }
 0x9c9   :  { %13134 = vmatprep.subr.bf16.mxu1 %v13133_v40  ;;  %v2888_v45 = vpop.xlane.xlu1 %2887  ;;  %v2892_v37 = vpop.xlane.xlu0 %2891  ;;  %v2932_v17 = vmul.f32 %v14623_v62, %v16408_v4 }
 0x9ca   :  { %14624 = vrcp.f32 %v2888_v45 }
 0x9cb   :  { %11655 = vmatmul.mubr.msk.f32.gmra.mrb[60].mxu1 %vm945_vm2, %v19154_v9  ;;  %14626 = vrcp.f32 %v2890_v50  ;;  %v3360_v50 = vld [vmem:[#allocation2 + $0x1b0] sm:$0xff] }
 0x9cc   :  { %13136 = vmatpush3.bf16.msra.mxu1 %v13133_v40  ;;  %11657 = vmatprep.mubr.msk.f32.mxu1 %vm945_vm2, %v19155_v55  ;;  %14628 = vrcp.f32 %v2892_v37  ;;  %v3359_v55 = vld [vmem:[#allocation2 + $0x1a8] sm:$0xff] }
 0x9cd   :  { %13138 = vmatprep.subr.bf16.mxu1 %v13137_v51  ;;  %v2894_v29 = vpop.xlane.xlu1 %2893  ;;  %v14093_v49 = vpop.permute.xlu0 %14092 }
 0x9ce   :  { %v14095_v18 = vunpack.i.h.bf16 %v14093_v49  ;;  %v14094_v35 = vunpack.i.l.bf16 %v14093_v49  ;;  %14630 = vrcp.f32 %v2894_v29  ;;  %v3364_v29 = vld [vmem:[#allocation2 + $0x1d0] sm:$0xff] }
 0x9cf   :  { %11658 = vmatmul.mubr.msk.f32.gmra.mrb[62].mxu1 %vm945_vm2, %v19156_v32  ;;  %v3361_v32 = vld [vmem:[#allocation2 + $0x1b8] sm:$0xff] }
 0x9d0   :  { %13140 = vmatpush3.bf16.msra.mxu1 %v13137_v51  ;;  %11660 = vmatprep.mubr.msk.f32.mxu1 %vm945_vm2, %v19157_v38  ;;  %v13141_v23 = vpack.c.bf16 %v14095_v18, %v14094_v35  ;;  %v3366_v38 = vld [vmem:[#allocation2 + $0x1e0] sm:$0xff] }
 0x9d2   :  { %13142 = vmatprep.subr.bf16.mxu1 %v13141_v23 }
 0x9d3   :  { %11661 = vmatmul.mubr.msk.f32.gmra.mrb[64].mxu1 %vm945_vm2, %v19158_v22 }
 0x9d4   :  { %v14625_v12 = vpop.eup %14624  ;;  %13144 = vmatpush3.bf16.msra.mxu1 %v13141_v23  ;;  %11751 = vmatprep.mubr.f32.mxu1 %v2931_v24 }
 0x9d5   :  { %v2933_v19 = vmul.f32 %v14625_v12, %v16416_v52  ;;  %v14627_v53 = vpop.eup %14626 }
 0x9d6   :  { %v14629_v46 = vpop.eup %14628  ;;  %v2934_v44 = vmul.f32 %v14627_v53, %v16413_v13 }
 0x9d7   :  { %11752 = vmatmul.mubr.f32.vlgmr.msra.gmra.mrb[66].mxu1 %v2932_v17  ;;  %v2935_v57 = vmul.f32 %v14629_v46, %v16418_v54  ;;  %v3357_v54 = vld [vmem:[#allocation2 + $0x198] sm:$0xff]  ;;  %v3363_v17 = vld [vmem:[#allocation2 + $0x1c8] sm:$0xff]  ;;  %v3368_v46 = vld [vmem:[#allocation2 + $0x1f0] sm:$0xff] }
 0x9d8   :  { %v11835_v33 = vpop.f32.mrb[82].mxu0  ;;  %11754 = vmatprep.mubr.f32.mxu1 %v2933_v19  ;;  %v14631_v6 = vpop.eup %14630 }
 0x9d9   :  { %v3564_v43 = vpop.f32.mrb[83].mxu0  ;;  %v2936_v52 = vmul.f32 %v14631_v6, %v16422_v59  ;;  %v16524_v39 = vadd.f32 %v11835_v33, %v3355_v61  ;;  %v3358_v59 = vld [vmem:[#allocation2 + $0x1a0] sm:$0xff]  ;;  %v3367_v61 = vld [vmem:[#allocation2 + $0x1e8] sm:$0xff] }
 0x9da   :  { %v16519_v48 = vadd.f32 %v3564_v43, %v3354_v2  ;;  %v3365_v2 = vld [vmem:[#allocation2 + $0x1d8] sm:$0xff] }
 0x9db   :  { %11755 = vmatmul.mubr.f32.gmra.mrb[68].mxu1 %v2934_v44 }
 0x9dc   :  { %v11838_v16 = vpop.f32.mrb[84].mxu0  ;;  %3643 = vmax.xlane.f32.xlu1 %v16519_v48  ;;  %11757 = vmatprep.mubr.f32.mxu1 %v2935_v57 }
 0x9dd   :  { %v3574_v4 = vpop.f32.mrb[85].mxu0  ;;  %v16530_v7 = vadd.f32 %v11838_v16, %v3357_v54 }
 0x9de   :  { %v16527_v42 = vadd.f32 %v3574_v4, %v3356_v30 }
 0x9df   :  { %11758 = vmatmul.mubr.f32.gmra.mrb[70].mxu1 %v2936_v52 }
 0x9e0   :  { %v11841_v63 = vpop.f32.mrb[86].mxu0  ;;  %3645 = vmax.xlane.f32.xlu1 %v16524_v39 }
 0x9e1   :  { %v3584_v13 = vpop.f32.mrb[87].mxu0  ;;  %v16542_v35 = vadd.f32 %v11841_v63, %v3359_v55  ;;  %v3369_v63 = vld [vmem:[#allocation2 + $0x1f8] sm:$0xff] }
 0x9e2   :  { %v16536_v9 = vadd.f32 %v3584_v13, %v3358_v59 }
 0x9e4   :  { %v11844_v27 = vpop.f32.mrb[88].mxu0  ;;  %3647 = vmax.xlane.f32.xlu1 %v16527_v42 }
 0x9e5   :  { %v3594_v3 = vpop.f32.mrb[89].mxu0  ;;  %v16548_v22 = vadd.f32 %v11844_v27, %v3361_v32 }
 0x9e6   :  { %v16532_v40 = vadd.f32 %v3594_v3, %v3360_v50 }
 0x9e8   :  { %v11847_v45 = vpop.f32.mrb[90].mxu0  ;;  %3655 = vmax.xlane.f32.xlu0 %v16532_v40  ;;  %3649 = vmax.xlane.f32.xlu1 %v16530_v7 }
 0x9e9   :  { %v3604_v37 = vpop.f32.mrb[91].mxu0  ;;  %v16554_v53 = vadd.f32 %v11847_v45, %v3363_v17  ;;  %v15106_v17 = vld [vmem:[%s19074_s3 + $0x20] sm:$0xff] }
 0x9ea   :  { %v16538_v51 = vadd.f32 %v3604_v37, %v3362_v15 }
 0x9ec   :  { %v11850_v49 = vpop.f32.mrb[92].mxu0  ;;  %3659 = vmax.xlane.f32.xlu0 %v16538_v51  ;;  %3651 = vmax.xlane.f32.xlu1 %v16536_v9 }
 0x9ed   :  { %v3614_v18 = vpop.f32.mrb[93].mxu0  ;;  %v16559_v57 = vadd.f32 %v11850_v49, %v3365_v2 }
 0x9ee   :  { %v16544_v20 = vadd.f32 %v3614_v18, %v3364_v29 }
 0x9f0   :  { %v11853_v23 = vpop.f32.mrb[94].mxu0  ;;  %3663 = vmax.xlane.f32.xlu0 %v16544_v20  ;;  %3653 = vmax.xlane.f32.xlu1 %v16542_v35 }
 0x9f1   :  { %v3624_v62 = vpop.f32.mrb[95].mxu0  ;;  %v2898_v24 = vpop.xlane.xlu1 %2897  ;;  %v16563_v4 = vadd.f32 %v11853_v23, %v3367_v61 }
 0x9f2   :  { %v16550_v12 = vadd.f32 %v3624_v62, %v3366_v38  ;;  %14632 = vrcp.f32 %v2898_v24 }
 0x9f4   :  { %3667 = vmax.xlane.f32.xlu0 %v16550_v12  ;;  %3657 = vmax.xlane.f32.xlu1 %v16548_v22 }
 0x9f5   :  { %v2896_v19 = vpop.xlane.xlu1 %2895 }
 0x9f6   :  { %14634 = vrcp.f32 %v2896_v19 }
 0x9f7   :  { %v11856_v33 = vpop.f32.mrb[96].mxu0 }
 0x9f8   :  { %3661 = vmax.xlane.f32.xlu1 %v16554_v53  ;;  %v3634_v43 = vpop.f32.mrb[97].mxu0  ;;  %v16567_v27 = vadd.f32 %v11856_v33, %v3369_v63 }
 0x9f9   :  { %v16557_v44 = vadd.f32 %v3634_v43, %v3368_v46  ;;  %v2900_v6 = vpop.xlane.xlu1 %2899 }
 0x9fa   :  { %14636 = vrcp.f32 %v2900_v6 }
 0x9fb   :  { %3671 = vmax.xlane.f32.xlu0 %v16557_v44 }
 0x9fc   :  { %3665 = vmax.xlane.f32.xlu1 %v16559_v57  ;;  %v14633_v30 = vpop.eup %14632 }
 0x9fd   :  { %v2904_v16 = vpop.xlane.xlu1 %2903  ;;  %v2938_v59 = vmul.f32 %v14633_v30, %v16434_v8 }
 0x9fe   :  { %14638 = vrcp.f32 %v2904_v16  ;;  %v2902_v52 = vpop.xlane.xlu0 %2901 }
 0x9ff   :  { %14640 = vrcp.f32 %v2902_v52 }
 0xa00   :  { %v14635_v13 = vpop.eup %14634  ;;  %3669 = vmax.xlane.f32.xlu1 %v16563_v4 }
 0xa01   :  { %v2908_v54 = vpop.xlane.xlu1 %2907  ;;  %v2937_v50 = vmul.f32 %v14635_v13, %v16439_v1 }
 0xa02   :  { %14642 = vrcp.f32 %v2908_v54  ;;  %v2906_v3 = vpop.xlane.xlu0 %2905 }
 0xa03   :  { %14644 = vrcp.f32 %v2906_v3  ;;  %11760 = vmatprep.mubr.f32.mxu1 %v2937_v50 }
 0xa04   :  { %v14637_v15 = vpop.eup %14636  ;;  %3673 = vmax.xlane.f32.xlu1 %v16567_v27  ;;  %11761 = vmatmul.mubr.f32.gmra.mrb[72].mxu1 %v2938_v59 }
 0xa05   :  { %v2912_v45 = vpop.xlane.xlu1 %2911  ;;  %v2939_v37 = vmul.f32 %v14637_v15, %v16443_v10 }
 0xa06   :  { %14646 = vrcp.f32 %v2912_v45  ;;  %v2910_v55 = vpop.xlane.xlu0 %2909 }
 0xa07   :  { %14648 = vrcp.f32 %v2910_v55  ;;  %11763 = vmatprep.mubr.f32.mxu1 %v2939_v37 }
 0xa08   :  { %v14639_v1 = vpop.eup %14638 }
 0xa09   :  { %v14641_v29 = vpop.eup %14640  ;;  %v2914_v49 = vpop.xlane.xlu1 %2913  ;;  %v2941_v8 = vmul.f32 %v14639_v1, %v16446_v28 }
 0xa0a   :  { %14650 = vrcp.f32 %v2914_v49  ;;  %v2940_v18 = vmul.f32 %v14641_v29, %v16448_v41 }
 0xa0c   :  { %v14643_v32 = vpop.eup %14642  ;;  %11764 = vmatmul.mubr.f32.gmra.mrb[74].mxu1 %v2940_v18 }
 0xa0d   :  { %v14645_v38 = vpop.eup %14644  ;;  %11766 = vmatprep.mubr.f32.mxu1 %v2941_v8  ;;  %v2943_v10 = vmul.f32 %v14643_v32, %v16454_v0 }
 0xa0e   :  { %v2942_v23 = vmul.f32 %v14645_v38, %v16456_v25 }
 0xa10   :  { %v14647_v62 = vpop.eup %14646  ;;  %11767 = vmatmul.mubr.f32.gmra.mrb[76].mxu1 %v2942_v23 }
 0xa11   :  { %v14649_v24 = vpop.eup %14648  ;;  %3141 = vrot.lane.b32.xlu0 %v15106_v17, %s15184_s8  ;;  %11769 = vmatprep.mubr.f32.mxu1 %v2943_v10  ;;  %v2945_v19 = vmul.f32 %v14647_v62, %v16462_v34 }
 0xa12   :  { %v2944_v28 = vmul.f32 %v14649_v24, %v16464_v58 }
 0xa14   :  { %v14651_v41 = vpop.eup %14650  ;;  %11770 = vmatmul.mubr.f32.gmra.mrb[78].mxu1 %v2944_v28 }
 0xa15   :  { %14097 = vrot.lane.b32.xlu1 %v15517_v56, %s15186_s14  ;;  %14107 = vrot.lane.b32.xlu0 %v15537_v5, %s15186_s14  ;;  %v2946_v0 = vmul.f32 %v14651_v41, %v16470_v36 }
 0xa16   :  { %11772 = vmatprep.mubr.f32.mxu1 %v2945_v19 }
 0xa18   :  { %11773 = vmatmul.mubr.f32.gmra.mrb[80].mxu1 %v2946_v0 }
 0xa19   :  { %14102 = vrot.lane.b32.xlu1 %v15527_v60, %s15186_s14  ;;  %14117 = vrot.lane.b32.xlu0 %v15557_v14, %s15186_s14 }
 0xa1d   :  { %14112 = vrot.lane.b32.xlu1 %v15547_v11, %s15186_s14  ;;  %14122 = vrot.lane.b32.xlu0 %v15567_v21, %s15186_s14 }
 0xa21   :  { %14127 = vrot.lane.b32.xlu1 %v15577_v26, %s15186_s14 }
 0xa69   :  { %v3644_v56 = vpop.xlane.xlu1 %3643 }
 0xa6a   :  { %v3675_v5 = vsub.f32 %v16519_v48, %v3644_v56 }
 0xa6c   :  { %v3691_v25 = vmul.f32 1.442695, %v3675_v5 }
 0xa6d   :  { %v3646_v34 = vpop.xlane.xlu1 %3645 }
 0xa6e   :  { %14652 = vpow2.f32 %v3691_v25  ;;  %v3676_v60 = vsub.f32 %v16524_v39, %v3646_v34 }
 0xa70   :  { %v3693_v58 = vmul.f32 1.442695, %v3676_v60 }
 0xa71   :  { %v3648_v36 = vpop.xlane.xlu1 %3647 }
 0xa72   :  { %14654 = vpow2.f32 %v3693_v58  ;;  %v3677_v11 = vsub.f32 %v16527_v42, %v3648_v36 }
 0xa74   :  { %v3695_v43 = vmul.f32 1.442695, %v3677_v11 }
 0xa75   :  { %v3656_v14 = vpop.xlane.xlu0 %3655  ;;  %v3650_v46 = vpop.xlane.xlu1 %3649 }
 0xa76   :  { %v3678_v21 = vsub.f32 %v16530_v7, %v3650_v46  ;;  %v3681_v13 = vsub.f32 %v16532_v40, %v3656_v14 }
 0xa78   :  { %v16601_v2 = vpop.eup %14652  ;;  %v3697_v26 = vmul.f32 1.442695, %v3678_v21  ;;  %v3703_v59 = vmul.f32 1.442695, %v3681_v13 }
 0xa79   :  { %v3660_v33 = vpop.xlane.xlu0 %3659  ;;  %3723 = vadd.xlane.f32.xlu0 %v16601_v2  ;;  %v3652_v48 = vpop.xlane.xlu1 %3651 }
 0xa7a   :  { %v3679_v6 = vsub.f32 %v16536_v9, %v3652_v48  ;;  %14656 = vpow2.f32 %v3697_v26  ;;  %v3683_v15 = vsub.f32 %v16538_v51, %v3660_v33 }
 0xa7b   :  { %14658 = vpow2.f32 %v3695_v43 }
 0xa7c   :  { %v16605_v39 = vpop.eup %14654  ;;  %v3699_v61 = vmul.f32 1.442695, %v3679_v6  ;;  %v3707_v40 = vmul.f32 1.442695, %v3683_v15 }
 0xa7d   :  { %3725 = vadd.xlane.f32.xlu1 %v16605_v39  ;;  %v3654_v16 = vpop.xlane.xlu1 %3653  ;;  %v3664_v42 = vpop.xlane.xlu0 %3663 }
 0xa7e   :  { %v3680_v7 = vsub.f32 %v16542_v35, %v3654_v16  ;;  %14660 = vpow2.f32 %v3699_v61  ;;  %v3685_v55 = vsub.f32 %v16544_v20, %v3664_v42 }
 0xa80   :  { %v3701_v52 = vmul.f32 1.442695, %v3680_v7  ;;  %v3711_v49 = vmul.f32 1.442695, %v3685_v55 }
 0xa81   :  { %v3658_v30 = vpop.xlane.xlu1 %3657  ;;  %v3668_v9 = vpop.xlane.xlu0 %3667 }
 0xa82   :  { %v3682_v63 = vsub.f32 %v16548_v22, %v3658_v30  ;;  %14662 = vpow2.f32 %v3701_v52  ;;  %v3687_v18 = vsub.f32 %v16550_v12, %v3668_v9 }
 0xa84   :  { %v3705_v54 = vmul.f32 1.442695, %v3682_v63  ;;  %v16611_v50 = vpop.eup %14656  ;;  %v3715_v20 = vmul.f32 1.442695, %v3687_v18 }
 0xa85   :  { %v16613_v3 = vpop.xlane.xlu1 %3661  ;;  %3729 = vadd.xlane.f32.xlu1 %v16611_v50  ;;  %v16617_v35 = vpop.eup %14658 }
 0xa86   :  { %14664 = vpow2.f32 %v3705_v54 }
 0xa87   :  { %14666 = vpow2.f32 %v3703_v59 }
 0xa88   :  { %v3672_v45 = vpop.xlane.xlu0 %3671  ;;  %v16619_v37 = vpop.eup %14660  ;;  %14668 = vpow2.f32 %v3707_v40 }
 0xa89   :  { %v16621_v22 = vpop.xlane.xlu1 %3665  ;;  %3727 = vadd.xlane.f32.xlu1 %v16617_v35  ;;  %3731 = vadd.xlane.f32.xlu0 %v16619_v37  ;;  %14670 = vpow2.f32 %v3711_v49  ;;  %v3689_v38 = vsub.f32 %v16557_v44, %v3672_v45 }
 0xa8a   :  { %14672 = vpow2.f32 %v3715_v20  ;;  %v3686_v43 = vsub.f32 %v16559_v57, %v16621_v22 }
 0xa8b   :  { %v3719_v17 = vmul.f32 1.442695, %v3689_v38 }
 0xa8c   :  { %v3142_v1 = vpop.permute.xlu0 %3141  ;;  %v16626_v29 = vpop.eup %14662  ;;  %v3713_v52 = vmul.f32 1.442695, %v3686_v43 }
 0xa8d   :  { %v16628_v51 = vpop.xlane.xlu1 %3669  ;;  %11775 = vmatprep.subr.mxu1 %v3142_v1  ;;  %3733 = vadd.xlane.f32.xlu1 %v16626_v29  ;;  %14674 = vpow2.f32 %v3719_v17 }
 0xa8e   :  { %11776 = vmatpush3.msra.mxu1 %v3142_v1  ;;  %v3688_v30 = vsub.f32 %v16563_v4, %v16628_v51  ;;  %v15107_v4 = vld [vmem:[%s19074_s3 + $0x30] sm:$0xff] }
 0xa90   :  { %v16632_v8 = vpop.eup %14664  ;;  %v14108_v60 = vpop.permute.xlu0 %14107  ;;  %v3717_v54 = vmul.f32 1.442695, %v3688_v30 }
 0xa91   :  { %v3674_v32 = vpop.xlane.xlu1 %3673  ;;  %3737 = vadd.xlane.f32.xlu1 %v16632_v8  ;;  %v16636_v23 = vpop.eup %14666  ;;  %v14110_v14 = vunpack.i.h.bf16 %v14108_v60  ;;  %v14109_v46 = vunpack.i.l.bf16 %v14108_v60 }
 0xa92   :  { %v3690_v12 = vsub.f32 %v16567_v27, %v3674_v32  ;;  %v16640_v41 = vpop.eup %14668 }
 0xa93   :  { %v16643_v44 = vpop.eup %14670  ;;  %v13201_v16 = vpack.c.bf16 %v14110_v14, %v14109_v46 }
 0xa94   :  { %v3721_v19 = vmul.f32 1.442695, %v3690_v12  ;;  %v16648_v0 = vpop.eup %14672  ;;  %v14118_v6 = vpop.permute.xlu0 %14117 }
 0xa95   :  { %v14098_v10 = vpop.permute.xlu1 %14097  ;;  %3735 = vadd.xlane.f32.xlu1 %v16636_v23  ;;  %v14120_v57 = vunpack.i.h.bf16 %v14118_v6  ;;  %v14119_v63 = vunpack.i.l.bf16 %v14118_v6 }
 0xa96   :  { %v14100_v62 = vunpack.i.h.bf16 %v14098_v10  ;;  %v14099_v24 = vunpack.i.l.bf16 %v14098_v10  ;;  %14676 = vpow2.f32 %v3721_v19 }
 0xa97   :  { %v16651_v27 = vpop.eup %14674  ;;  %v13209_v15 = vpack.c.bf16 %v14120_v57, %v14119_v63 }
 0xa98   :  { %v13193_v28 = vpack.c.bf16 %v14100_v62, %v14099_v24  ;;  %v14123_v9 = vpop.permute.xlu0 %14122 }
 0xa99   :  { %3739 = vadd.xlane.f32.xlu1 %v16640_v41  ;;  %v14103_v56 = vpop.permute.xlu1 %14102  ;;  %v14124_v59 = vunpack.i.l.bf16 %v14123_v9 }
 0xa9a   :  { %13194 = vmatprep.subr.bf16.mxu1 %v13193_v28  ;;  %v14105_v25 = vunpack.i.h.bf16 %v14103_v56  ;;  %v14104_v34 = vunpack.i.l.bf16 %v14103_v56 }
 0xa9c   :  { %v13197_v11 = vpack.c.bf16 %v14105_v25, %v14104_v34 }
 0xa9d   :  { %3743 = vadd.xlane.f32.xlu1 %v16643_v44  ;;  %v14113_v21 = vpop.permute.xlu1 %14112 }
 0xa9e   :  { %v14114_v61 = vunpack.i.l.bf16 %v14113_v21 }
 0xa9f   :  { %14132 = vrot.lane.b32.xlu0 %v15587_v31, %s15186_s14  ;;  %v3684_v31 = vsub.f32 %v16554_v53, %v16613_v3  ;;  %v14115_v53 = vunpack.i.h.bf16 %v14113_v21  ;;  %v14125_v3 = vunpack.i.h.bf16 %v14123_v9 }
 0xaa0   :  { %v16654_v5 = vpop.eup %14676 }
 0xaa1   :  { %3747 = vadd.xlane.f32.xlu1 %v16648_v0  ;;  %v3709_v48 = vmul.f32 1.442695, %v3684_v31  ;;  %v13205_v13 = vpack.c.bf16 %v14115_v53, %v14114_v61  ;;  %v14128_v45 = vpop.permute.xlu1 %14127  ;;  %v13213_v55 = vpack.c.bf16 %v14125_v3, %v14124_v59 }
 0xaa2   :  { %v14130_v22 = vunpack.i.h.bf16 %v14128_v45  ;;  %v14129_v40 = vunpack.i.l.bf16 %v14128_v45 }
 0xaa3   :  { %14678 = vpow2.f32 %v3709_v48 }
 0xaa4   :  { %14680 = vpow2.f32 %v3713_v52  ;;  %v13217_v51 = vpack.c.bf16 %v14130_v22, %v14129_v40 }
 0xaa5   :  { %3751 = vadd.xlane.f32.xlu1 %v16651_v27  ;;  %14682 = vpow2.f32 %v3717_v54 }
 0xaa9   :  { %3753 = vadd.xlane.f32.xlu1 %v16654_v5 }
 0xaaa   :  { %v11753_v58 = vpop.f32.mrb[66].mxu1 }
 0xaab   :  { %v3061_v36 = vpop.f32.mrb[67].mxu1 }
 0xaac   :  { %11777 = vmatprep.mubr.msk.f32.mxu1 %vm945_vm2, %v3061_v36 }
 0xaad   :  { %11778 = vmatmul.mubr.msk.f32.vlgmr.msra.gmra.mrb[50].mxu1 %vm945_vm2, %v11753_v58  ;;  %v16673_v1 = vpop.eup %14678 }
 0xaae   :  { %13196 = vmatpush3.bf16.msra.mxu1 %v13193_v28  ;;  %v11756_v26 = vpop.f32.mrb[68].mxu1  ;;  %v16676_v49 = vpop.eup %14680 }
 0xaaf   :  { %13198 = vmatprep.subr.bf16.mxu1 %v13197_v11  ;;  %v3071_v33 = vpop.f32.mrb[69].mxu1  ;;  %v16679_v18 = vpop.eup %14682 }
 0xab0   :  { %11780 = vmatprep.mubr.msk.f32.mxu1 %vm945_vm2, %v3071_v33 }
 0xab1   :  { %11781 = vmatmul.mubr.msk.f32.gmra.mrb[52].mxu1 %vm945_vm2, %v11756_v26 }
 0xab2   :  { %13200 = vmatpush3.bf16.msra.mxu1 %v13197_v11  ;;  %v11759_v42 = vpop.f32.mrb[70].mxu1 }
 0xab3   :  { %13202 = vmatprep.subr.bf16.mxu1 %v13201_v16  ;;  %v3081_v7 = vpop.f32.mrb[71].mxu1 }
 0xab4   :  { %11783 = vmatprep.mubr.msk.f32.mxu1 %vm945_vm2, %v3081_v7 }
 0xab5   :  { %11784 = vmatmul.mubr.msk.f32.gmra.mrb[54].mxu1 %vm945_vm2, %v11759_v42 }
 0xab6   :  { %13204 = vmatpush3.bf16.msra.mxu1 %v13201_v16 }
 0xab7   :  { %13206 = vmatprep.subr.bf16.mxu1 %v13205_v13 }
 0xaba   :  { %13208 = vmatpush3.bf16.msra.mxu1 %v13205_v13  ;;  %3981 = vrot.lane.b32.xlu1 %v15107_v4, %s15184_s8 }
 0xabb   :  { %13210 = vmatprep.subr.bf16.mxu1 %v13209_v15 }
 0xabe   :  { %13212 = vmatpush3.bf16.msra.mxu1 %v13209_v15  ;;  %3741 = vadd.xlane.f32.xlu0 %v16673_v1 }
 0xabf   :  { %13214 = vmatprep.subr.bf16.mxu1 %v13213_v55 }
 0xac2   :  { %13216 = vmatpush3.bf16.msra.mxu1 %v13213_v55  ;;  %3745 = vadd.xlane.f32.xlu0 %v16676_v49 }
 0xac3   :  { %13218 = vmatprep.subr.bf16.mxu1 %v13217_v51 }
 0xac6   :  { %13220 = vmatpush3.bf16.msra.mxu1 %v13217_v51  ;;  %3749 = vadd.xlane.f32.xlu0 %v16679_v18 }
 0xad7   :  { %v11762_v32 = vpop.f32.mrb[72].mxu1 }
 0xad8   :  { %v3091_v20 = vpop.f32.mrb[73].mxu1 }
 0xad9   :  { %11786 = vmatprep.mubr.msk.f32.mxu1 %vm945_vm2, %v3091_v20 }
 0xada   :  { %11787 = vmatmul.mubr.msk.f32.gmra.mrb[56].mxu1 %vm945_vm2, %v11762_v32 }
 0xadf   :  { %v11765_v38 = vpop.f32.mrb[74].mxu1 }
 0xae0   :  { %v3101_v10 = vpop.f32.mrb[75].mxu1 }
 0xae1   :  { %11789 = vmatprep.mubr.msk.f32.mxu1 %vm945_vm2, %v3101_v10 }
 0xae2   :  { %11790 = vmatmul.mubr.msk.f32.gmra.mrb[58].mxu1 %vm945_vm2, %v11765_v38 }
 0xae3   :  { %v11768_v62 = vpop.f32.mrb[76].mxu1 }
 0xae4   :  { %v3111_v24 = vpop.f32.mrb[77].mxu1 }
 0xae5   :  { %11792 = vmatprep.mubr.msk.f32.mxu1 %vm945_vm2, %v3111_v24 }
 0xae6   :  { %11793 = vmatmul.mubr.msk.f32.gmra.mrb[60].mxu1 %vm945_vm2, %v11768_v62 }
 0xae7   :  { %v11771_v17 = vpop.f32.mrb[78].mxu1 }
 0xae8   :  { %v3121_v12 = vpop.f32.mrb[79].mxu1 }
 0xae9   :  { %11795 = vmatprep.mubr.msk.f32.mxu1 %vm945_vm2, %v3121_v12 }
 0xaea   :  { %11796 = vmatmul.mubr.msk.f32.gmra.mrb[62].mxu1 %vm945_vm2, %v11771_v17 }
 0xaeb   :  { %v11774_v28 = vpop.f32.mrb[80].mxu1 }
 0xaec   :  { %v3131_v19 = vpop.f32.mrb[81].mxu1 }
 0xaed   :  { %11798 = vmatprep.mubr.msk.f32.mxu1 %vm945_vm2, %v3131_v19 }
 0xaee   :  { %11799 = vmatmul.mubr.msk.f32.gmra.mrb[64].mxu1 %vm945_vm2, %v11774_v28 }
 0xb06   :  { %v3724_v56 = vpop.xlane.xlu0 %3723 }
 0xb07   :  { %14684 = vrcp.f32 %v3724_v56 }
 0xb0a   :  { %v3726_v25 = vpop.xlane.xlu1 %3725 }
 0xb0b   :  { %14686 = vrcp.f32 %v3726_v25 }
 0xb11   :  { %v14685_v34 = vpop.eup %14684 }
 0xb12   :  { %v3771_v60 = vmul.f32 %v14685_v34, %v16601_v2  ;;  %v3730_v58 = vpop.xlane.xlu1 %3729 }
 0xb13   :  { %14688 = vrcp.f32 %v3730_v58 }
 0xb14   :  { %11889 = vmatprep.mubr.f32.mxu1 %v3771_v60 }
 0xb15   :  { %v14687_v33 = vpop.eup %14686 }
 0xb16   :  { %v3732_v36 = vpop.xlane.xlu0 %3731  ;;  %v3728_v31 = vpop.xlane.xlu1 %3727  ;;  %v3772_v2 = vmul.f32 %v14687_v33, %v16605_v39 }
 0xb17   :  { %14690 = vrcp.f32 %v3728_v31  ;;  %v19159_v31 = vld [vmem:[#allocation5_spill] sm:$0xff] }
 0xb18   :  { %14692 = vrcp.f32 %v3732_v36 }
 0xb1a   :  { %v14133_v14 = vpop.permute.xlu0 %14132  ;;  %v3734_v46 = vpop.xlane.xlu1 %3733 }
 0xb1b   :  { %v14135_v11 = vunpack.i.h.bf16 %v14133_v14  ;;  %v14134_v21 = vunpack.i.l.bf16 %v14133_v14  ;;  %14694 = vrcp.f32 %v3734_v46  ;;  %v19088_v14 = vsub.s32 1, %v19159_v31  ;;  %v16728_v46 = vld [vmem:[%s19076_s5] sm:$0xff] }
 0xb1d   :  { %v13221_v26 = vpack.c.bf16 %v14135_v11, %v14134_v21  ;;  %v14689_v43 = vpop.eup %14688  ;;  %v16733_v11 = vrot.slane %v16728_v46, %v19088_v14  ;;  %v5719_v14 = vld [vmem:[#allocation2 + $0x260] sm:$0xff] }
 0xb1e   :  { %v3738_v48 = vpop.xlane.xlu1 %3737  ;;  %v3774_v42 = vmul.f32 %v14689_v43, %v16611_v50  ;;  %v15110_v43 = vld [vmem:[%s19071_s0] sm:$0xff] }
 0xb1f   :  { %13222 = vmatprep.subr.bf16.mxu1 %v13221_v26  ;;  %14696 = vrcp.f32 %v3738_v48 }
 0xb20   :  { %13224 = vmatpush3.bf16.msra.mxu1 %v13221_v26  ;;  %v15109_v26 = vld [vmem:[%s19071_s0 + $0x8] sm:$0xff] }
 0xb21   :  { %v14691_v6 = vpop.eup %14690 }
 0xb22   :  { %v3736_v53 = vpop.xlane.xlu1 %3735  ;;  %v14693_v61 = vpop.eup %14692  ;;  %v3773_v16 = vmul.f32 %v14691_v6, %v16617_v35 }
 0xb23   :  { %14698 = vrcp.f32 %v3736_v53  ;;  %11890 = vmatmul.mubr.f32.vlgmr.msra.gmra.mrb[82].mxu1 %v3772_v2  ;;  %v3775_v30 = vmul.f32 %v14693_v61, %v16619_v37 }
 0xb24   :  { %11892 = vmatprep.mubr.f32.mxu1 %v3773_v16  ;;  %v15111_v16 = vld [vmem:[%s19071_s0 + $0x18] sm:$0xff] }
 0xb25   :  { %v14695_v7 = vpop.eup %14694 }
 0xb26   :  { %v3740_v52 = vpop.xlane.xlu1 %3739  ;;  %v3776_v39 = vmul.f32 %v14695_v7, %v16626_v29 }
 0xb27   :  { %14700 = vrcp.f32 %v3740_v52  ;;  %11893 = vmatmul.mubr.f32.gmra.mrb[84].mxu1 %v3774_v42 }
 0xb28   :  { %11895 = vmatprep.mubr.f32.mxu1 %v3775_v30  ;;  %v15112_v30 = vld [vmem:[%s19071_s0 + $0x10] sm:$0xff] }
 0xb29   :  { %v14697_v63 = vpop.eup %14696 }
 0xb2a   :  { %v3744_v57 = vpop.xlane.xlu1 %3743  ;;  %v3778_v35 = vmul.f32 %v14697_v63, %v16632_v8 }
 0xb2b   :  { %11896 = vmatmul.mubr.f32.gmra.mrb[86].mxu1 %v3776_v39  ;;  %14702 = vrcp.f32 %v3744_v57 }
 0xb2d   :  { %v14699_v13 = vpop.eup %14698 }
 0xb2e   :  { %v3748_v9 = vpop.xlane.xlu1 %3747  ;;  %v3777_v54 = vmul.f32 %v14699_v13, %v16636_v23 }
 0xb30   :  { %11898 = vmatprep.mubr.f32.mxu1 %v3777_v54  ;;  %v15113_v54 = vld [vmem:[%s19071_s0 + $0x28] sm:$0xff] }
 0xb31   :  { %v14701_v50 = vpop.eup %14700  ;;  %11899 = vmatmul.mubr.f32.gmra.mrb[88].mxu1 %v3778_v35 }
 0xb32   :  { %v3752_v3 = vpop.xlane.xlu1 %3751  ;;  %v3779_v37 = vmul.f32 %v14701_v50, %v16640_v41 }
 0xb34   :  { %11901 = vmatprep.mubr.f32.mxu1 %v3779_v37 }
 0xb35   :  { %v14703_v8 = vpop.eup %14702 }
 0xb36   :  { %v3754_v59 = vpop.xlane.xlu1 %3753  ;;  %v3781_v41 = vmul.f32 %v14703_v8, %v16643_v44 }
 0xb3a   :  { %v3982_v15 = vpop.permute.xlu1 %3981 }
 0xb3b   :  { %11913 = vmatprep.subr.mxu1 %v3982_v15 }
 0xb3c   :  { %11914 = vmatpush3.msra.mxu1 %v3982_v15 }
 0xb4b   :  { %v3742_v29 = vpop.xlane.xlu0 %3741 }
 0xb4c   :  { %14704 = vrcp.f32 %v3742_v29 }
 0xb4d   :  { %14706 = vrcp.f32 %v3748_v9 }
 0xb4f   :  { %v3746_v45 = vpop.xlane.xlu0 %3745 }
 0xb50   :  { %14708 = vrcp.f32 %v3746_v45 }
 0xb51   :  { %14710 = vrcp.f32 %v3752_v3 }
 0xb53   :  { %v3750_v23 = vpop.xlane.xlu0 %3749 }
 0xb54   :  { %14712 = vrcp.f32 %v3750_v23 }
 0xb55   :  { %14714 = vrcp.f32 %v3754_v59  ;;  %v15114_v59 = vld [vmem:[%s19071_s0 + $0x20] sm:$0xff] }
 0xb56   :  { %v14705_v4 = vpop.eup %14704 }
 0xb57   :  { %v3780_v22 = vmul.f32 %v14705_v4, %v16673_v1  ;;  %v14707_v40 = vpop.eup %14706  ;;  %v15115_v4 = vld [vmem:[%s19071_s0 + $0x38] sm:$0xff] }
 0xb58   :  { %v3783_v32 = vmul.f32 %v14707_v40, %v16648_v0 }
 0xb59   :  { %11902 = vmatmul.mubr.f32.gmra.mrb[90].mxu1 %v3780_v22 }
 0xb5a   :  { %v14709_v55 = vpop.eup %14708  ;;  %11904 = vmatprep.mubr.f32.mxu1 %v3781_v41 }
 0xb5b   :  { %v3782_v51 = vmul.f32 %v14709_v55, %v16676_v49  ;;  %v14711_v20 = vpop.eup %14710  ;;  %v15116_v55 = vld [vmem:[%s19071_s0 + $0x30] sm:$0xff] }
 0xb5c   :  { %v3785_v24 = vmul.f32 %v14711_v20, %v16651_v27 }
 0xb5d   :  { %11905 = vmatmul.mubr.f32.gmra.mrb[92].mxu1 %v3782_v51 }
 0xb5e   :  { %v14713_v38 = vpop.eup %14712  ;;  %11907 = vmatprep.mubr.f32.mxu1 %v3783_v32 }
 0xb5f   :  { %v3784_v10 = vmul.f32 %v14713_v38, %v16679_v18  ;;  %v14715_v62 = vpop.eup %14714 }
 0xb60   :  { %v3786_v44 = vmul.f32 %v14715_v62, %v16654_v5 }
 0xb61   :  { %11908 = vmatmul.mubr.f32.gmra.mrb[94].mxu1 %v3784_v10 }
 0xb62   :  { %11910 = vmatprep.mubr.f32.mxu1 %v3785_v24  ;;  %v15117_v24 = vld [vmem:[%s19071_s0 + $0x48] sm:$0xff] }
 0xb65   :  { %11911 = vmatmul.mubr.f32.gmra.mrb[96].mxu1 %v3786_v44 }
 0xbf6   :  { %v11891_v1 = vpop.f32.mrb[82].mxu1 }
 0xbf7   :  { %v3901_v17 = vpop.f32.mrb[83].mxu1 }
 0xbf8   :  { %11915 = vmatprep.mubr.msk.f32.mxu1 %vm945_vm2, %v3901_v17  ;;  %v15118_v17 = vld [vmem:[%s19071_s0 + $0x40] sm:$0xff] }
 0xbf9   :  { %11916 = vmatmul.mubr.msk.f32.vlgmr.msra.gmra.mrb[50].mxu1 %vm945_vm2, %v11891_v1 }
 0xbfa   :  { %v11894_v0 = vpop.f32.mrb[84].mxu1 }
 0xbfb   :  { %v3911_v49 = vpop.f32.mrb[85].mxu1 }
 0xbfc   :  { %11918 = vmatprep.mubr.msk.f32.mxu1 %vm945_vm2, %v3911_v49 }
 0xbfd   :  { %11919 = vmatmul.mubr.msk.f32.gmra.mrb[52].mxu1 %vm945_vm2, %v11894_v0 }
 0xbfe   :  { %v11897_v18 = vpop.f32.mrb[86].mxu1 }
 0xbff   :  { %v3921_v12 = vpop.f32.mrb[87].mxu1 }
 0xc00   :  { %11921 = vmatprep.mubr.msk.f32.mxu1 %vm945_vm2, %v3921_v12 }
 0xc01   :  { %11922 = vmatmul.mubr.msk.f32.gmra.mrb[54].mxu1 %vm945_vm2, %v11897_v18 }
 0xc04   :  { %v11900_v27 = vpop.f32.mrb[88].mxu1 }
 0xc05   :  { %v3931_v5 = vpop.f32.mrb[89].mxu1 }
 0xc06   :  { %11924 = vmatprep.mubr.msk.f32.mxu1 %vm945_vm2, %v3931_v5 }
 0xc07   :  { %11925 = vmatmul.mubr.msk.f32.gmra.mrb[56].mxu1 %vm945_vm2, %v11900_v27  ;;  %v15119_v27 = vld [vmem:[%s19071_s0 + $0x58] sm:$0xff] }
 0xc2c   :  { %v11903_v28 = vpop.f32.mrb[90].mxu1 }
 0xc2d   :  { %v3941_v19 = vpop.f32.mrb[91].mxu1 }
 0xc2e   :  { %11927 = vmatprep.mubr.msk.f32.mxu1 %vm945_vm2, %v3941_v19 }
 0xc2f   :  { %11928 = vmatmul.mubr.msk.f32.gmra.mrb[58].mxu1 %vm945_vm2, %v11903_v28 }
 0xc30   :  { %v11906_v56 = vpop.f32.mrb[92].mxu1 }
 0xc31   :  { %v3951_v25 = vpop.f32.mrb[93].mxu1 }
 0xc32   :  { %11930 = vmatprep.mubr.msk.f32.mxu1 %vm945_vm2, %v3951_v25 }
 0xc33   :  { %11931 = vmatmul.mubr.msk.f32.gmra.mrb[60].mxu1 %vm945_vm2, %v11906_v56  ;;  %v15120_v56 = vld [vmem:[%s19071_s0 + $0x50] sm:$0xff] }
 0xc34   :  { %v11909_v34 = vpop.f32.mrb[94].mxu1 }
 0xc35   :  { %v3961_v60 = vpop.f32.mrb[95].mxu1 }
 0xc36   :  { %11933 = vmatprep.mubr.msk.f32.mxu1 %vm945_vm2, %v3961_v60 }
 0xc37   :  { %11934 = vmatmul.mubr.msk.f32.gmra.mrb[62].mxu1 %vm945_vm2, %v11909_v34 }
 0xc38   :  { %v11912_v58 = vpop.f32.mrb[96].mxu1 }
 0xc39   :  { %v3971_v36 = vpop.f32.mrb[97].mxu1 }
 0xc3a   :  { %11936 = vmatprep.mubr.msk.f32.mxu1 %vm945_vm2, %v3971_v36 }
 0xc3b   :  { %11937 = vmatmul.mubr.msk.f32.gmra.mrb[64].mxu1 %vm945_vm2, %v11912_v58 }
 0xccc   :  { %v11917_v21 = vpop.f32.mrb[50].mxu1 }
 0xccd   :  { %v4194_v33 = vadd.f32 %v15109_v26, %v11917_v21  ;;  %v4098_v48 = vpop.f32.mrb[51].mxu1  ;;  %v15121_v21 = vld [vmem:[%s19071_s0 + $0x68] sm:$0xff] }
 0xcce   :  { %v4193_v2 = vadd.f32 %v15110_v43, %v4098_v48  ;;  %v15122_v43 = vld [vmem:[%s19071_s0 + $0x60] sm:$0xff] }
 0xccf   :  { %v16742_v6 = vadd.f32 %v16733_v11, %v4194_v33 }
 0xcd0   :  { %v16745_v53 = vadd.f32 %v16733_v11, %v4193_v2  ;;  %v11920_v61 = vpop.f32.mrb[52].mxu1 }
 0xcd1   :  { %v4196_v42 = vadd.f32 %v15111_v16, %v11920_v61  ;;  %v4108_v7 = vpop.f32.mrb[53].mxu1  ;;  %v4232_v52 = vsel %vm292_vm0, %v16742_v6, 0.0 }
 0xcd2   :  { %v4195_v39 = vadd.f32 %v15112_v30, %v4108_v7  ;;  %4233 = vadd.xlane.f32.xlu0 %v4232_v52  ;;  %v4229_v57 = vsel %vm292_vm0, %v16745_v53, 0.0  ;;  %v15123_v52 = vld [vmem:[%s19071_s0 + $0x78] sm:$0xff] }
 0xcd3   :  { %v16758_v63 = vadd.f32 %v16733_v11, %v4196_v42  ;;  %4230 = vadd.xlane.f32.xlu1 %v4229_v57 }
 0xcd4   :  { %v11923_v13 = vpop.f32.mrb[54].mxu1  ;;  %v16761_v9 = vadd.f32 %v16733_v11, %v4195_v39 }
 0xcd5   :  { %v4198_v35 = vadd.f32 %v15113_v54, %v11923_v13  ;;  %v4118_v50 = vpop.f32.mrb[55].mxu1  ;;  %v4238_v3 = vsel %vm292_vm0, %v16758_v63, 0.0  ;;  %v15124_v13 = vld [vmem:[%s19071_s0 + $0x70] sm:$0xff] }
 0xcd6   :  { %4239 = vadd.xlane.f32.xlu0 %v4238_v3  ;;  %v4197_v15 = vadd.f32 %v15114_v59, %v4118_v50  ;;  %v4235_v29 = vsel %vm292_vm0, %v16761_v9, 0.0 }
 0xcd7   :  { %v16769_v37 = vadd.f32 %v16733_v11, %v4198_v35 }
 0xcd8   :  { %v16777_v8 = vadd.f32 %v16733_v11, %v4197_v15 }
 0xcd9   :  { %v4244_v41 = vsel %vm292_vm0, %v16769_v37, 0.0 }
 0xcda   :  { %4236 = vadd.xlane.f32.xlu0 %v4235_v29  ;;  %v11926_v45 = vpop.f32.mrb[56].mxu1  ;;  %v4241_v32 = vsel %vm292_vm0, %v16777_v8, 0.0 }
 0xcdb   :  { %v4128_v23 = vpop.f32.mrb[57].mxu1  ;;  %v4200_v22 = vadd.f32 %v15115_v4, %v11926_v45 }
 0xcdc   :  { %v4199_v51 = vadd.f32 %v15116_v55, %v4128_v23 }
 0xcdd   :  { %v16785_v40 = vadd.f32 %v16733_v11, %v4200_v22 }
 0xcde   :  { %4245 = vadd.xlane.f32.xlu0 %v4244_v41  ;;  %v16793_v20 = vadd.f32 %v16733_v11, %v4199_v51 }
 0xcdf   :  { %v4250_v38 = vsel %vm292_vm0, %v16785_v40, 0.0 }
 0xce0   :  { %v4247_v10 = vsel %vm292_vm0, %v16793_v20, 0.0 }
 0xce2   :  { %4242 = vadd.xlane.f32.xlu0 %v4241_v32 }
 0xce6   :  { %4251 = vadd.xlane.f32.xlu0 %v4250_v38 }
 0xcea   :  { %4248 = vadd.xlane.f32.xlu0 %v4247_v10 }
 0xd02   :  { %v11929_v62 = vpop.f32.mrb[58].mxu1 }
 0xd03   :  { %v4202_v44 = vadd.f32 %v15117_v24, %v11929_v62  ;;  %v4138_v1 = vpop.f32.mrb[59].mxu1 }
 0xd04   :  { %v4201_v0 = vadd.f32 %v15118_v17, %v4138_v1 }
 0xd05   :  { %v16806_v49 = vadd.f32 %v16733_v11, %v4202_v44 }
 0xd06   :  { %v16809_v18 = vadd.f32 %v16733_v11, %v4201_v0  ;;  %v11932_v12 = vpop.f32.mrb[60].mxu1 }
 0xd07   :  { %v4204_v5 = vadd.f32 %v15119_v27, %v11932_v12  ;;  %v4148_v28 = vpop.f32.mrb[61].mxu1  ;;  %v4256_v19 = vsel %vm292_vm0, %v16806_v49, 0.0 }
 0xd08   :  { %v4203_v25 = vadd.f32 %v15120_v56, %v4148_v28  ;;  %4257 = vadd.xlane.f32.xlu1 %v4256_v19  ;;  %v4253_v34 = vsel %vm292_vm0, %v16809_v18, 0.0 }
 0xd09   :  { %v16822_v60 = vadd.f32 %v16733_v11, %v4204_v5  ;;  %4254 = vadd.xlane.f32.xlu0 %v4253_v34 }
 0xd0a   :  { %v16825_v58 = vadd.f32 %v16733_v11, %v4203_v25  ;;  %v11935_v36 = vpop.f32.mrb[62].mxu1 }
 0xd0b   :  { %v4206_v26 = vadd.f32 %v15121_v21, %v11935_v36  ;;  %v4158_v33 = vpop.f32.mrb[63].mxu1  ;;  %v4262_v48 = vsel %vm292_vm0, %v16822_v60, 0.0 }
 0xd0c   :  { %v4205_v2 = vadd.f32 %v15122_v43, %v4158_v33  ;;  %4263 = vadd.xlane.f32.xlu1 %v4262_v48  ;;  %v4259_v61 = vsel %vm292_vm0, %v16825_v58, 0.0 }
 0xd0d   :  { %v16838_v16 = vadd.f32 %v16733_v11, %v4206_v26  ;;  %4260 = vadd.xlane.f32.xlu0 %v4259_v61 }
 0xd0e   :  { %v16841_v42 = vadd.f32 %v16733_v11, %v4205_v2  ;;  %v11938_v7 = vpop.f32.mrb[64].mxu1 }
 0xd0f   :  { %v4208_v30 = vadd.f32 %v15123_v52, %v11938_v7  ;;  %v4168_v39 = vpop.f32.mrb[65].mxu1  ;;  %v4268_v57 = vsel %vm292_vm0, %v16838_v16, 0.0 }
 0xd10   :  { %v4207_v54 = vadd.f32 %v15124_v13, %v4168_v39  ;;  %4269 = vadd.xlane.f32.xlu1 %v4268_v57  ;;  %v4265_v35 = vsel %vm292_vm0, %v16841_v42, 0.0 }
 0xd11   :  { %v16854_v50 = vadd.f32 %v16733_v11, %v4208_v30  ;;  %4266 = vadd.xlane.f32.xlu0 %v4265_v35  ;;  %v79_v35 = vld [vmem:[%s19074_s3 + $0x18] sm:$0xff] }
 0xd12   :  { %v16857_v3 = vadd.f32 %v16733_v11, %v4207_v54  ;;  %v77_v54 = vld [vmem:[%s19074_s3 + $0x8] sm:$0xff] }
 0xd13   :  { %v4274_v59 = vsel %vm292_vm0, %v16854_v50, 0.0 }
 0xd14   :  { %4275 = vadd.xlane.f32.xlu1 %v4274_v59  ;;  %v4271_v15 = vsel %vm292_vm0, %v16857_v3, 0.0  ;;  %v13225_v59 = vpack.c.bf16 %v79_v35, %v77_v54 }
 0xd15   :  { %4272 = vadd.xlane.f32.xlu0 %v4271_v15  ;;  %v81_v15 = vld [vmem:[%s19074_s3 + $0x28] sm:$0xff] }
 0xd16   :  { %13226 = vmatprep.subr.bf16.mxu0 %v13225_v59 }
 0xd17   :  { %13228 = vmatpush3.bf16.msra.mxu0 %v13225_v59 }
 0xd5f   :  { %v4234_v29 = vpop.xlane.xlu0 %4233 }
 0xd60   :  { %v4279_v45 = vmul.f32 0.03125, %v4234_v29  ;;  %v4231_v23 = vpop.xlane.xlu1 %4230  ;;  %v83_v29 = vld [vmem:[%s19074_s3 + $0x38] sm:$0xff] }
 0xd61   :  { %v4278_v4 = vmul.f32 0.03125, %v4231_v23 }
 0xd62   :  { %v16864_v22 = vsub.f32 %v16742_v6, %v4279_v45  ;;  %v13229_v45 = vpack.c.bf16 %v83_v29, %v81_v15 }
 0xd63   :  { %v16867_v41 = vsub.f32 %v16745_v53, %v4278_v4  ;;  %v4240_v11 = vpop.xlane.xlu0 %4239 }
 0xd64   :  { %v4281_v55 = vmul.f32 0.03125, %v4240_v11  ;;  %v4311_v51 = vmul.f32 %v16864_v22, %v16864_v22  ;;  %13230 = vmatprep.subr.bf16.mxu0 %v13229_v45 }
 0xd65   :  { %v4310_v32 = vmul.f32 %v16867_v41, %v16867_v41  ;;  %13232 = vmatpush3.bf16.msra.mxu0 %v13229_v45 }
 0xd66   :  { %v16874_v38 = vsub.f32 %v16758_v63, %v4281_v55  ;;  %v4329_v10 = vsel %vm292_vm0, %v4311_v51, 0.0 }
 0xd67   :  { %v4237_v62 = vpop.xlane.xlu0 %4236  ;;  %4330 = vadd.xlane.f32.xlu1 %v4329_v10  ;;  %v4326_v24 = vsel %vm292_vm0, %v4310_v32, 0.0 }
 0xd68   :  { %v4280_v44 = vmul.f32 0.03125, %v4237_v62  ;;  %4327 = vadd.xlane.f32.xlu0 %v4326_v24  ;;  %v4313_v1 = vmul.f32 %v16874_v38, %v16874_v38 }
 0xd6a   :  { %v16881_v17 = vsub.f32 %v16761_v9, %v4280_v44  ;;  %v4335_v0 = vsel %vm292_vm0, %v4313_v1, 0.0 }
 0xd6b   :  { %v4246_v12 = vpop.xlane.xlu0 %4245  ;;  %4336 = vadd.xlane.f32.xlu1 %v4335_v0 }
 0xd6c   :  { %v4283_v27 = vmul.f32 0.03125, %v4246_v12  ;;  %v4312_v5 = vmul.f32 %v16881_v17, %v16881_v17 }
 0xd6e   :  { %v16887_v28 = vsub.f32 %v16769_v37, %v4283_v27  ;;  %v4332_v19 = vsel %vm292_vm0, %v4312_v5, 0.0 }
 0xd6f   :  { %v4243_v56 = vpop.xlane.xlu0 %4242  ;;  %4333 = vadd.xlane.f32.xlu0 %v4332_v19 }
 0xd70   :  { %v4282_v25 = vmul.f32 0.03125, %v4243_v56  ;;  %v4315_v34 = vmul.f32 %v16887_v28, %v16887_v28 }
 0xd72   :  { %v16893_v36 = vsub.f32 %v16777_v8, %v4282_v25  ;;  %v4341_v21 = vsel %vm292_vm0, %v4315_v34, 0.0 }
 0xd73   :  { %v4252_v26 = vpop.xlane.xlu0 %4251  ;;  %4342 = vadd.xlane.f32.xlu1 %v4341_v21 }
 0xd74   :  { %v4285_v33 = vmul.f32 0.03125, %v4252_v26  ;;  %v4314_v48 = vmul.f32 %v16893_v36, %v16893_v36 }
 0xd76   :  { %v16899_v43 = vsub.f32 %v16785_v40, %v4285_v33  ;;  %v4338_v2 = vsel %vm292_vm0, %v4314_v48, 0.0 }
 0xd77   :  { %v4249_v61 = vpop.xlane.xlu0 %4248  ;;  %4339 = vadd.xlane.f32.xlu0 %v4338_v2 }
 0xd78   :  { %v4284_v7 = vmul.f32 0.03125, %v4249_v61  ;;  %v4317_v52 = vmul.f32 %v16899_v43, %v16899_v43 }
 0xd7a   :  { %v16905_v30 = vsub.f32 %v16793_v20, %v4284_v7  ;;  %v4347_v39 = vsel %vm292_vm0, %v4317_v52, 0.0 }
 0xd7b   :  { %4348 = vadd.xlane.f32.xlu1 %v4347_v39 }
 0xd7c   :  { %v4316_v57 = vmul.f32 %v16905_v30, %v16905_v30 }
 0xd7e   :  { %v4344_v13 = vsel %vm292_vm0, %v4316_v57, 0.0 }
 0xd7f   :  { %4345 = vadd.xlane.f32.xlu0 %v4344_v13 }
 0xd95   :  { %v4258_v23 = vpop.xlane.xlu1 %4257 }
 0xd96   :  { %v4287_v4 = vmul.f32 0.03125, %v4258_v23  ;;  %v4255_v11 = vpop.xlane.xlu0 %4254 }
 0xd97   :  { %v4286_v55 = vmul.f32 0.03125, %v4255_v11 }
 0xd98   :  { %v16924_v51 = vsub.f32 %v16806_v49, %v4287_v4 }
 0xd99   :  { %v16927_v32 = vsub.f32 %v16809_v18, %v4286_v55  ;;  %v4264_v10 = vpop.xlane.xlu1 %4263 }
 0xd9a   :  { %v4289_v62 = vmul.f32 0.03125, %v4264_v10  ;;  %v4261_v24 = vpop.xlane.xlu0 %4260  ;;  %v4319_v44 = vmul.f32 %v16924_v51, %v16924_v51  ;;  %v92_v10 = vld [vmem:[%s19075_s4] sm:$0xff] }
 0xd9b   :  { %v4288_v1 = vmul.f32 0.03125, %v4261_v24  ;;  %v4318_v0 = vmul.f32 %v16927_v32, %v16927_v32 }
 0xd9c   :  { %v16934_v12 = vsub.f32 %v16822_v60, %v4289_v62  ;;  %v4353_v27 = vsel %vm292_vm0, %v4319_v44, 0.0  ;;  %v93_v62 = vld [vmem:[%s19075_s4 + $0x8] sm:$0xff] }
 0xd9d   :  { %v16938_v5 = vsub.f32 %v16825_v58, %v4288_v1  ;;  %v4270_v19 = vpop.xlane.xlu1 %4269  ;;  %4354 = vadd.xlane.f32.xlu1 %v4353_v27  ;;  %v4350_v56 = vsel %vm292_vm0, %v4318_v0, 0.0  ;;  %v13233_v24 = vpack.c.bf16 %v93_v62, %v92_v10 }
 0xd9e   :  { %v4291_v25 = vmul.f32 0.03125, %v4270_v19  ;;  %v4267_v34 = vpop.xlane.xlu0 %4266  ;;  %4351 = vadd.xlane.f32.xlu0 %v4350_v56  ;;  %v4321_v21 = vmul.f32 %v16934_v12, %v16934_v12 }
 0xd9f   :  { %v4290_v26 = vmul.f32 0.03125, %v4267_v34  ;;  %v4320_v33 = vmul.f32 %v16938_v5, %v16938_v5  ;;  %13234 = vmatprep.subr.bf16.mxu0 %v13233_v24 }
 0xda0   :  { %v16946_v48 = vsub.f32 %v16838_v16, %v4291_v25  ;;  %v4359_v2 = vsel %vm292_vm0, %v4321_v21, 0.0 }
 0xda1   :  { %v16950_v61 = vsub.f32 %v16841_v42, %v4290_v26  ;;  %4360 = vadd.xlane.f32.xlu1 %v4359_v2  ;;  %v4276_v7 = vpop.xlane.xlu1 %4275  ;;  %v4356_v52 = vsel %vm292_vm0, %v4320_v33, 0.0  ;;  %v19087_v2 = vsub.s32 2, %v19159_v31 }
 0xda2   :  { %v4293_v39 = vmul.f32 0.03125, %v4276_v7  ;;  %4357 = vadd.xlane.f32.xlu0 %v4356_v52  ;;  %v4273_v57 = vpop.xlane.xlu0 %4272  ;;  %v4323_v13 = vmul.f32 %v16946_v48, %v16946_v48 }
 0xda3   :  { %v4292_v54 = vmul.f32 0.03125, %v4273_v57  ;;  %v4322_v35 = vmul.f32 %v16950_v61, %v16950_v61  ;;  %v19086_v57 = vsub.s32 3, %v19159_v31 }
 0xda4   :  { %v16958_v59 = vsub.f32 %v16854_v50, %v4293_v39  ;;  %v4365_v15 = vsel %vm292_vm0, %v4323_v13, 0.0  ;;  %v16982_v13 = vrot.slane %v16728_v46, %v19087_v2 }
 0xda5   :  { %v16962_v29 = vsub.f32 %v16857_v3, %v4292_v54  ;;  %4366 = vadd.xlane.f32.xlu1 %v4365_v15  ;;  %v4362_v45 = vsel %vm292_vm0, %v4322_v35, 0.0 }
 0xda6   :  { %4363 = vadd.xlane.f32.xlu0 %v4362_v45  ;;  %v4325_v23 = vmul.f32 %v16958_v59, %v16958_v59 }
 0xda7   :  { %v4324_v4 = vmul.f32 %v16962_v29, %v16962_v29 }
 0xda8   :  { %v4371_v11 = vsel %vm292_vm0, %v4325_v23, 0.0 }
 0xda9   :  { %4372 = vadd.xlane.f32.xlu1 %v4371_v11  ;;  %v4368_v55 = vsel %vm292_vm0, %v4324_v4, 0.0 }
 0xdaa   :  { %4369 = vadd.xlane.f32.xlu0 %v4368_v55  ;;  %v16989_v55 = vrot.slane %v16728_v46, %v19086_v57 }
 0xdf4   :  { %v4331_v44 = vpop.xlane.xlu1 %4330 }
 0xdf5   :  { %v4375_v1 = vmul.f32 0.03125, %v4331_v44  ;;  %v4328_v0 = vpop.xlane.xlu0 %4327 }
 0xdf6   :  { %v4374_v27 = vmul.f32 0.03125, %v4328_v0  ;;  %v95_v0 = vld [vmem:[%s19075_s4 + $0x18] sm:$0xff] }
 0xdf7   :  { %v4391_v19 = vadd.f32 1e-05, %v4375_v1 }
 0xdf8   :  { %v4390_v56 = vadd.f32 1e-05, %v4374_v27  ;;  %v4337_v25 = vpop.xlane.xlu1 %4336 }
 0xdf9   :  { %14716 = vrsqrt.f32 %v4391_v19  ;;  %v4377_v34 = vmul.f32 0.03125, %v4337_v25 }
 0xdfa   :  { %14718 = vrsqrt.f32 %v4390_v56 }
 0xdfb   :  { %v4393_v21 = vadd.f32 1e-05, %v4377_v34 }
 0xdfc   :  { %v4334_v26 = vpop.xlane.xlu0 %4333 }
 0xdfd   :  { %14720 = vrsqrt.f32 %v4393_v21  ;;  %v4376_v33 = vmul.f32 0.03125, %v4334_v26 }
 0xdff   :  { %v4392_v7 = vadd.f32 1e-05, %v4376_v33  ;;  %v96_v33 = vld [vmem:[%s19075_s4 + $0x20] sm:$0xff] }
 0xe00   :  { %v4343_v52 = vpop.xlane.xlu1 %4342 }
 0xe01   :  { %14722 = vrsqrt.f32 %v4392_v7  ;;  %v4379_v39 = vmul.f32 0.03125, %v4343_v52  ;;  %v97_v7 = vld [vmem:[%s19075_s4 + $0x28] sm:$0xff] }
 0xe03   :  { %v14717_v54 = vpop.eup %14716  ;;  %v4395_v35 = vadd.f32 1e-05, %v4379_v39 }
 0xe04   :  { %v14719_v15 = vpop.eup %14718  ;;  %v4423_v45 = vmul.f32 %v14717_v54, %v16864_v22  ;;  %v4340_v23 = vpop.xlane.xlu0 %4339  ;;  %v94_v22 = vld [vmem:[%s19075_s4 + $0x10] sm:$0xff] }
 0xe05   :  { %14724 = vrsqrt.f32 %v4395_v35  ;;  %v4378_v4 = vmul.f32 0.03125, %v4340_v23  ;;  %v4422_v11 = vmul.f32 %v14719_v15, %v16867_v41  ;;  %v13237_v34 = vpack.c.bf16 %v95_v0, %v94_v22 }
 0xe06   :  { %v4443_v10 = vmul.f32 %v16982_v13, %v4423_v45  ;;  %v13241_v15 = vpack.c.bf16 %v97_v7, %v96_v33 }
 0xe07   :  { %v14721_v62 = vpop.eup %14720  ;;  %v4394_v44 = vadd.f32 1e-05, %v4378_v4  ;;  %v4442_v1 = vmul.f32 %v16982_v13, %v4422_v11 }
 0xe08   :  { %v4349_v41 = vpop.xlane.xlu1 %4348  ;;  %v4425_v56 = vmul.f32 %v14721_v62, %v16874_v38  ;;  %v4463_v25 = vadd.f32 %v16989_v55, %v4443_v10 }
 0xe09   :  { %14726 = vrsqrt.f32 %v4394_v44  ;;  %v4381_v27 = vmul.f32 0.03125, %v4349_v41  ;;  %v4462_v19 = vadd.f32 %v16989_v55, %v4442_v1 }
 0xe0a   :  { %v4445_v54 = vmul.f32 %v16982_v13, %v4425_v56 }
 0xe0b   :  { %v14723_v21 = vpop.eup %14722  ;;  %v4397_v26 = vadd.f32 1e-05, %v4381_v27  ;;  %11947 = vmatprep.mubr.msk.f32.mxu0 %vm292_vm0, %v4462_v19 }
 0xe0c   :  { %11948 = vmatmul.mubr.msk.f32.vlgmr.msra.gmra.mrb[98].mxu0 %vm292_vm0, %v4463_v25  ;;  %v4346_v52 = vpop.xlane.xlu0 %4345  ;;  %v4424_v38 = vmul.f32 %v14723_v21, %v16881_v17  ;;  %v4465_v11 = vadd.f32 %v16989_v55, %v4445_v54 }
 0xe0d   :  { %14728 = vrsqrt.f32 %v4397_v26  ;;  %v4380_v39 = vmul.f32 0.03125, %v4346_v52  ;;  %13236 = vmatpush3.bf16.msra.mxu0 %v13233_v24 }
 0xe0e   :  { %v4444_v35 = vmul.f32 %v16982_v13, %v4424_v38  ;;  %13238 = vmatprep.subr.bf16.mxu0 %v13237_v34 }
 0xe0f   :  { %v14725_v45 = vpop.eup %14724  ;;  %v4396_v23 = vadd.f32 1e-05, %v4380_v39 }
 0xe10   :  { %v4464_v4 = vadd.f32 %v16989_v55, %v4444_v35  ;;  %v4427_v10 = vmul.f32 %v14725_v45, %v16887_v28 }
 0xe11   :  { %14730 = vrsqrt.f32 %v4396_v23  ;;  %13240 = vmatpush3.bf16.msra.mxu0 %v13237_v34 }
 0xe12   :  { %11950 = vmatprep.mubr.msk.f32.mxu0 %vm292_vm0, %v4464_v4  ;;  %13242 = vmatprep.subr.bf16.mxu0 %v13241_v15  ;;  %v4447_v62 = vmul.f32 %v16982_v13, %v4427_v10 }
 0xe13   :  { %v14727_v17 = vpop.eup %14726  ;;  %11951 = vmatmul.mubr.msk.f32.gmra.mrb[100].mxu0 %vm292_vm0, %v4465_v11 }
 0xe14   :  { %v4426_v24 = vmul.f32 %v14727_v17, %v16893_v36  ;;  %v4467_v0 = vadd.f32 %v16989_v55, %v4447_v62 }
 0xe15   :  { %13244 = vmatpush3.bf16.msra.mxu0 %v13241_v15 }
 0xe16   :  { %v4446_v44 = vmul.f32 %v16982_v13, %v4426_v24 }
 0xe17   :  { %v14729_v1 = vpop.eup %14728 }
 0xe18   :  { %v4466_v22 = vadd.f32 %v16989_v55, %v4446_v44  ;;  %v4429_v28 = vmul.f32 %v14729_v1, %v16899_v43 }
 0xe1a   :  { %11953 = vmatprep.mubr.msk.f32.mxu0 %vm292_vm0, %v4466_v22  ;;  %v4449_v36 = vmul.f32 %v16982_v13, %v4429_v28 }
 0xe1b   :  { %v14731_v41 = vpop.eup %14730  ;;  %11954 = vmatmul.mubr.msk.f32.gmra.mrb[102].mxu0 %vm292_vm0, %v4467_v0 }
 0xe1c   :  { %v4428_v27 = vmul.f32 %v14731_v41, %v16905_v30  ;;  %v4469_v25 = vadd.f32 %v16989_v55, %v4449_v36 }
 0xe1e   :  { %v4448_v19 = vmul.f32 %v16982_v13, %v4428_v27 }
 0xe20   :  { %v4468_v56 = vadd.f32 %v16989_v55, %v4448_v19 }
 0xe22   :  { %11956 = vmatprep.mubr.msk.f32.mxu0 %vm292_vm0, %v4468_v56 }
 0xe23   :  { %11957 = vmatmul.mubr.msk.f32.gmra.mrb[104].mxu0 %vm292_vm0, %v4469_v25 }
 0xe2a   :  { %v4355_v43 = vpop.xlane.xlu1 %4354 }
 0xe2b   :  { %v4383_v34 = vmul.f32 0.03125, %v4355_v43  ;;  %v4352_v21 = vpop.xlane.xlu0 %4351 }
 0xe2c   :  { %v4382_v26 = vmul.f32 0.03125, %v4352_v21 }
 0xe2d   :  { %v4399_v33 = vadd.f32 1e-05, %v4383_v34 }
 0xe2e   :  { %v4398_v7 = vadd.f32 1e-05, %v4382_v26  ;;  %v4361_v52 = vpop.xlane.xlu1 %4360 }
 0xe2f   :  { %14732 = vrsqrt.f32 %v4399_v33  ;;  %v4385_v30 = vmul.f32 0.03125, %v4361_v52  ;;  %v4358_v38 = vpop.xlane.xlu0 %4357 }
 0xe30   :  { %14734 = vrsqrt.f32 %v4398_v7  ;;  %v4384_v39 = vmul.f32 0.03125, %v4358_v38 }
 0xe31   :  { %v4401_v54 = vadd.f32 1e-05, %v4385_v30 }
 0xe32   :  { %v4400_v35 = vadd.f32 1e-05, %v4384_v39  ;;  %v4367_v15 = vpop.xlane.xlu1 %4366 }
 0xe33   :  { %14736 = vrsqrt.f32 %v4401_v54  ;;  %v4387_v45 = vmul.f32 0.03125, %v4367_v15  ;;  %v4364_v23 = vpop.xlane.xlu0 %4363 }
 0xe34   :  { %14738 = vrsqrt.f32 %v4400_v35  ;;  %v4386_v4 = vmul.f32 0.03125, %v4364_v23 }
 0xe35   :  { %v4403_v11 = vadd.f32 1e-05, %v4387_v45 }
 0xe36   :  { %v4402_v10 = vadd.f32 1e-05, %v4386_v4  ;;  %v4373_v17 = vpop.xlane.xlu1 %4372 }
 0xe37   :  { %14740 = vrsqrt.f32 %v4403_v11  ;;  %v4389_v24 = vmul.f32 0.03125, %v4373_v17  ;;  %v4370_v62 = vpop.xlane.xlu0 %4369 }
 0xe38   :  { %14742 = vrsqrt.f32 %v4402_v10  ;;  %v4388_v44 = vmul.f32 0.03125, %v4370_v62  ;;  %v102_v62 = vld [vmem:[%s19075_s4 + $0x50] sm:$0xff] }
 0xe39   :  { %v14733_v1 = vpop.eup %14732  ;;  %v4405_v22 = vadd.f32 1e-05, %v4389_v24 }
 0xe3a   :  { %v14735_v0 = vpop.eup %14734  ;;  %v4404_v28 = vadd.f32 1e-05, %v4388_v44  ;;  %v4431_v41 = vmul.f32 %v14733_v1, %v16924_v51  ;;  %v103_v44 = vld [vmem:[%s19075_s4 + $0x58] sm:$0xff] }
 0xe3b   :  { %14744 = vrsqrt.f32 %v4405_v22  ;;  %v4430_v27 = vmul.f32 %v14735_v0, %v16927_v32  ;;  %v13253_v1 = vpack.c.bf16 %v103_v44, %v102_v62  ;;  %v104_v22 = vld [vmem:[%s19075_s4 + $0x60] sm:$0xff]  ;;  %v105_v0 = vld [vmem:[%s19075_s4 + $0x68] sm:$0xff] }
 0xe3c   :  { %14746 = vrsqrt.f32 %v4404_v28  ;;  %v4451_v36 = vmul.f32 %v16982_v13, %v4431_v41  ;;  %v13257_v28 = vpack.c.bf16 %v105_v0, %v104_v22  ;;  %v106_v41 = vld [vmem:[%s19075_s4 + $0x70] sm:$0xff] }
 0xe3d   :  { %v14737_v19 = vpop.eup %14736  ;;  %v4450_v56 = vmul.f32 %v16982_v13, %v4430_v27  ;;  %v107_v27 = vld [vmem:[%s19075_s4 + $0x78] sm:$0xff] }
 0xe3e   :  { %v14739_v25 = vpop.eup %14738  ;;  %v4433_v43 = vmul.f32 %v14737_v19, %v16934_v12  ;;  %v4471_v26 = vadd.f32 %v16989_v55, %v4451_v36  ;;  %v13261_v36 = vpack.c.bf16 %v107_v27, %v106_v41  ;;  %v19085_v19 = vsub.s32 4, %v19159_v31 }
 0xe3f   :  { %v4470_v34 = vadd.f32 %v16989_v55, %v4450_v56  ;;  %v4432_v21 = vmul.f32 %v14739_v25, %v16938_v5 }
 0xe40   :  { %v4453_v51 = vmul.f32 %v16982_v13, %v4433_v43  ;;  %v17099_v56 = vrot.slane %v16728_v46, %v19085_v19 }
 0xe41   :  { %v14741_v33 = vpop.eup %14740  ;;  %11959 = vmatprep.mubr.msk.f32.mxu0 %vm292_vm0, %v4470_v34  ;;  %v4452_v32 = vmul.f32 %v16982_v13, %v4432_v21 }
 0xe42   :  { %v14743_v7 = vpop.eup %14742  ;;  %11960 = vmatmul.mubr.msk.f32.gmra.mrb[106].mxu0 %vm292_vm0, %v4471_v26  ;;  %v4435_v52 = vmul.f32 %v14741_v33, %v16946_v48  ;;  %v4473_v5 = vadd.f32 %v16989_v55, %v4453_v51 }
 0xe43   :  { %v4472_v12 = vadd.f32 %v16989_v55, %v4452_v32  ;;  %v4434_v30 = vmul.f32 %v14743_v7, %v16950_v61 }
 0xe44   :  { %v4455_v38 = vmul.f32 %v16982_v13, %v4435_v52 }
 0xe45   :  { %v14745_v39 = vpop.eup %14744  ;;  %11962 = vmatprep.mubr.msk.f32.mxu0 %vm292_vm0, %v4472_v12  ;;  %v4454_v54 = vmul.f32 %v16982_v13, %v4434_v30 }
 0xe46   :  { %v14747_v35 = vpop.eup %14746  ;;  %11963 = vmatmul.mubr.msk.f32.gmra.mrb[108].mxu0 %vm292_vm0, %v4473_v5  ;;  %v4437_v15 = vmul.f32 %v14745_v39, %v16958_v59  ;;  %v4475_v61 = vadd.f32 %v16989_v55, %v4455_v38  ;;  %v98_v59 = vld [vmem:[%s19075_s4 + $0x30] sm:$0xff] }
 0xe47   :  { %v4474_v48 = vadd.f32 %v16989_v55, %v4454_v54  ;;  %v4436_v45 = vmul.f32 %v14747_v35, %v16962_v29  ;;  %v99_v29 = vld [vmem:[%s19075_s4 + $0x38] sm:$0xff] }
 0xe48   :  { %v4457_v23 = vmul.f32 %v16982_v13, %v4437_v15  ;;  %v13245_v17 = vpack.c.bf16 %v99_v29, %v98_v59 }
 0xe49   :  { %11965 = vmatprep.mubr.msk.f32.mxu0 %vm292_vm0, %v4474_v48  ;;  %v4456_v4 = vmul.f32 %v16982_v13, %v4436_v45  ;;  %v100_v13 = vld [vmem:[%s19075_s4 + $0x40] sm:$0xff] }
 0xe4a   :  { %11966 = vmatmul.mubr.msk.f32.gmra.mrb[110].mxu0 %vm292_vm0, %v4475_v61  ;;  %v4477_v10 = vadd.f32 %v16989_v55, %v4457_v23  ;;  %13246 = vmatprep.subr.bf16.mxu0 %v13245_v17 }
 0xe4b   :  { %v4476_v11 = vadd.f32 %v16989_v55, %v4456_v4  ;;  %13248 = vmatpush3.bf16.msra.mxu0 %v13245_v17  ;;  %v101_v55 = vld [vmem:[%s19075_s4 + $0x48] sm:$0xff] }
 0xe4c   :  { %v13249_v24 = vpack.c.bf16 %v101_v55, %v100_v13 }
 0xe4d   :  { %11968 = vmatprep.mubr.msk.f32.mxu0 %vm292_vm0, %v4476_v11 }
 0xe4e   :  { %11969 = vmatmul.mubr.msk.f32.gmra.mrb[112].mxu0 %vm292_vm0, %v4477_v10  ;;  %13250 = vmatprep.subr.bf16.mxu0 %v13249_v24 }
 0xe4f   :  { %13252 = vmatpush3.bf16.msra.mxu0 %v13249_v24 }
 0xe50   :  { %13254 = vmatprep.subr.bf16.mxu0 %v13253_v1 }
 0xe53   :  { %13256 = vmatpush3.bf16.msra.mxu0 %v13253_v1 }
 0xe54   :  { %13258 = vmatprep.subr.bf16.mxu0 %v13257_v28 }
 0xe57   :  { %13260 = vmatpush3.bf16.msra.mxu0 %v13257_v28 }
 0xe58   :  { %13262 = vmatprep.subr.bf16.mxu0 %v13261_v36 }
 0xe5b   :  { %13264 = vmatpush3.bf16.msra.mxu0 %v13261_v36 }
 0xedf   :  { %v11949_v25 = vpop.f32.mrb[98].mxu0 }
 0xee0   :  { %v4602_v43 = vadd.f32 %v11949_v25, %v17099_v56  ;;  %v4596_v34 = vpop.f32.mrb[99].mxu0 }
 0xee1   :  { %v4597_v21 = vadd.f32 %v4596_v34, %v17099_v56 }
 0xee2   :  { %v4693_v26 = vmul.f32 0.70710677, %v4602_v43  ;;  %v4676_v61 = vmul.f32 0.5, %v4602_v43 }
 0xee3   :  { %v4692_v51 = vmul.f32 0.70710677, %v4597_v21  ;;  %v4675_v15 = vmul.f32 0.5, %v4597_v21 }
 0xee4   :  { %14748 = verf.f32 %v4693_v26 }
 0xee5   :  { %14750 = verf.f32 %v4692_v51 }
 0xee6   :  { %v11952_v33 = vpop.f32.mrb[100].mxu0 }
 0xee7   :  { %v4612_v32 = vadd.f32 %v11952_v33, %v17099_v56  ;;  %v4606_v7 = vpop.f32.mrb[101].mxu0 }
 0xee8   :  { %v4607_v52 = vadd.f32 %v4606_v7, %v17099_v56 }
 0xee9   :  { %v4695_v12 = vmul.f32 0.70710677, %v4612_v32  ;;  %v4678_v1 = vmul.f32 0.5, %v4612_v32 }
 0xeea   :  { %v4694_v30 = vmul.f32 0.70710677, %v4607_v52  ;;  %v4677_v55 = vmul.f32 0.5, %v4607_v52 }
 0xeeb   :  { %14752 = verf.f32 %v4695_v12 }
 0xeec   :  { %14754 = verf.f32 %v4694_v30 }
 0xeee   :  { %v14749_v46 = vpop.eup %14748  ;;  %v11955_v5 = vpop.f32.mrb[102].mxu0 }
 0xeef   :  { %v14751_v38 = vpop.eup %14750  ;;  %v4725_v39 = vadd.f32 1.0, %v14749_v46  ;;  %v4622_v54 = vadd.f32 %v11955_v5, %v17099_v56  ;;  %v4616_v35 = vpop.f32.mrb[103].mxu0 }
 0xef0   :  { %v4724_v48 = vadd.f32 1.0, %v14751_v38  ;;  %v4617_v45 = vadd.f32 %v4616_v35, %v17099_v56 }
 0xef1   :  { %v4697_v23 = vmul.f32 0.70710677, %v4622_v54  ;;  %v4741_v10 = vmul.f32 %v4725_v39, %v4676_v61  ;;  %v4680_v26 = vmul.f32 0.5, %v4622_v54 }
 0xef2   :  { %v4696_v4 = vmul.f32 0.70710677, %v4617_v45  ;;  %v4740_v11 = vmul.f32 %v4724_v48, %v4675_v15  ;;  %v4679_v34 = vmul.f32 0.5, %v4617_v45 }
 0xef3   :  { %14756 = verf.f32 %v4697_v23 }
 0xef4   :  { %14758 = verf.f32 %v4696_v4  ;;  %12003 = vmatprep.mubr.f32.mxu0 %v4740_v11 }
 0xef5   :  { %v14753_v59 = vpop.eup %14752  ;;  %12004 = vmatmul.mubr.f32.vlgmr.msra.gmra.mrb[114].mxu0 %v4741_v10 }
 0xef6   :  { %v14755_v29 = vpop.eup %14754  ;;  %v4727_v17 = vadd.f32 1.0, %v14753_v59  ;;  %v11958_v13 = vpop.f32.mrb[104].mxu0 }
 0xef7   :  { %v4726_v24 = vadd.f32 1.0, %v14755_v29  ;;  %v4632_v62 = vadd.f32 %v11958_v13, %v17099_v56  ;;  %v4626_v44 = vpop.f32.mrb[105].mxu0 }
 0xef8   :  { %v4627_v22 = vadd.f32 %v4626_v44, %v17099_v56  ;;  %v4743_v27 = vmul.f32 %v4727_v17, %v4678_v1 }
 0xef9   :  { %v4699_v0 = vmul.f32 0.70710677, %v4632_v62  ;;  %v4742_v28 = vmul.f32 %v4726_v24, %v4677_v55  ;;  %v4682_v46 = vmul.f32 0.5, %v4632_v62 }
 0xefa   :  { %v4698_v41 = vmul.f32 0.70710677, %v4627_v22  ;;  %v4681_v12 = vmul.f32 0.5, %v4627_v22 }
 0xefb   :  { %14760 = verf.f32 %v4699_v0  ;;  %12006 = vmatprep.mubr.f32.mxu0 %v4742_v28 }
 0xefc   :  { %14762 = verf.f32 %v4698_v41  ;;  %12007 = vmatmul.mubr.f32.gmra.mrb[116].mxu0 %v4743_v27 }
 0xefd   :  { %v14757_v36 = vpop.eup %14756 }
 0xefe   :  { %v14759_v25 = vpop.eup %14758  ;;  %v4729_v43 = vadd.f32 1.0, %v14757_v36 }
 0xeff   :  { %v4728_v21 = vadd.f32 1.0, %v14759_v25 }
 0xf00   :  { %v4745_v33 = vmul.f32 %v4729_v43, %v4680_v26 }
 0xf01   :  { %v4744_v51 = vmul.f32 %v4728_v21, %v4679_v34 }
 0xf03   :  { %12009 = vmatprep.mubr.f32.mxu0 %v4744_v51 }
 0xf04   :  { %12010 = vmatmul.mubr.f32.gmra.mrb[118].mxu0 %v4745_v33 }
 0xf05   :  { %v14761_v32 = vpop.eup %14760 }
 0xf06   :  { %v14763_v7 = vpop.eup %14762  ;;  %v4731_v52 = vadd.f32 1.0, %v14761_v32 }
 0xf07   :  { %v4730_v30 = vadd.f32 1.0, %v14763_v7 }
 0xf08   :  { %v4747_v38 = vmul.f32 %v4731_v52, %v4682_v46 }
 0xf09   :  { %v4746_v5 = vmul.f32 %v4730_v30, %v4681_v12 }
 0xf0b   :  { %12012 = vmatprep.mubr.f32.mxu0 %v4746_v5 }
 0xf0c   :  { %12013 = vmatmul.mubr.f32.gmra.mrb[120].mxu0 %v4747_v38 }
 0xf15   :  { %v11961_v39 = vpop.f32.mrb[106].mxu0 }
 0xf16   :  { %v4642_v35 = vadd.f32 %v11961_v39, %v17099_v56  ;;  %v4636_v15 = vpop.f32.mrb[107].mxu0 }
 0xf17   :  { %v4637_v54 = vadd.f32 %v4636_v15, %v17099_v56 }
 0xf18   :  { %v4701_v48 = vmul.f32 0.70710677, %v4642_v35  ;;  %v4684_v21 = vmul.f32 0.5, %v4642_v35 }
 0xf19   :  { %v4700_v45 = vmul.f32 0.70710677, %v4637_v54  ;;  %v11964_v61 = vpop.f32.mrb[108].mxu0  ;;  %v4683_v43 = vmul.f32 0.5, %v4637_v54 }
 0xf1a   :  { %14764 = verf.f32 %v4701_v48  ;;  %v4652_v23 = vadd.f32 %v11964_v61, %v17099_v56  ;;  %v4646_v4 = vpop.f32.mrb[109].mxu0 }
 0xf1b   :  { %14766 = verf.f32 %v4700_v45  ;;  %v4647_v11 = vadd.f32 %v4646_v4, %v17099_v56 }
 0xf1c   :  { %v4703_v10 = vmul.f32 0.70710677, %v4652_v23  ;;  %v4686_v30 = vmul.f32 0.5, %v4652_v23 }
 0xf1d   :  { %v4702_v59 = vmul.f32 0.70710677, %v4647_v11  ;;  %v11967_v29 = vpop.f32.mrb[110].mxu0  ;;  %v4685_v52 = vmul.f32 0.5, %v4647_v11 }
 0xf1e   :  { %14768 = verf.f32 %v4703_v10  ;;  %v4662_v17 = vadd.f32 %v11967_v29, %v17099_v56  ;;  %v4656_v13 = vpop.f32.mrb[111].mxu0 }
 0xf1f   :  { %14770 = verf.f32 %v4702_v59  ;;  %v4657_v55 = vadd.f32 %v4656_v13, %v17099_v56 }
 0xf20   :  { %v4705_v24 = vmul.f32 0.70710677, %v4662_v17  ;;  %v4688_v35 = vmul.f32 0.5, %v4662_v17  ;;  %v19084_v17 = vsub.s32 5, %v19159_v31 }
 0xf21   :  { %v4704_v62 = vmul.f32 0.70710677, %v4657_v55  ;;  %v11970_v44 = vpop.f32.mrb[112].mxu0  ;;  %v4687_v15 = vmul.f32 0.5, %v4657_v55  ;;  %v58_v55 = vld [vmem:[%s19072_s1 + $0x10] sm:$0xff] }
 0xf22   :  { %14772 = verf.f32 %v4705_v24  ;;  %v4672_v1 = vadd.f32 %v11970_v44, %v17099_v56  ;;  %v4666_v22 = vpop.f32.mrb[113].mxu0  ;;  %12059 = vmatprep.mubr.f32.mxu1 %v58_v55  ;;  %v15125_v24 = vld [vmem:[%s19076_s5] sm:$0xff] }
 0xf23   :  { %14774 = verf.f32 %v4704_v62  ;;  %v4667_v0 = vadd.f32 %v4666_v22, %v17099_v56  ;;  %v17126_v62 = vrot.slane %v15125_v24, %v19084_v17 }
 0xf24   :  { %v14765_v28 = vpop.eup %14764  ;;  %v4707_v41 = vmul.f32 0.70710677, %v4672_v1  ;;  %v4690_v23 = vmul.f32 0.5, %v4672_v1 }
 0xf25   :  { %v14767_v27 = vpop.eup %14766  ;;  %v4733_v36 = vadd.f32 1.0, %v14765_v28  ;;  %v4706_v25 = vmul.f32 0.70710677, %v4667_v0  ;;  %v4689_v11 = vmul.f32 0.5, %v4667_v0 }
 0xf26   :  { %v4732_v34 = vadd.f32 1.0, %v14767_v27  ;;  %14776 = verf.f32 %v4707_v41 }
 0xf27   :  { %14778 = verf.f32 %v4706_v25  ;;  %v4749_v7 = vmul.f32 %v4733_v36, %v4684_v21 }
 0xf28   :  { %v14769_v26 = vpop.eup %14768  ;;  %v4748_v51 = vmul.f32 %v4732_v34, %v4683_v43 }
 0xf29   :  { %v14771_v33 = vpop.eup %14770  ;;  %v4735_v32 = vadd.f32 1.0, %v14769_v26 }
 0xf2a   :  { %v4734_v12 = vadd.f32 1.0, %v14771_v33  ;;  %12015 = vmatprep.mubr.f32.mxu0 %v4748_v51 }
 0xf2b   :  { %12016 = vmatmul.mubr.f32.gmra.mrb[122].mxu0 %v4749_v7  ;;  %v4751_v39 = vmul.f32 %v4735_v32, %v4686_v30 }
 0xf2c   :  { %v14773_v56 = vpop.eup %14772  ;;  %v4750_v46 = vmul.f32 %v4734_v12, %v4685_v52 }
 0xf2d   :  { %v14775_v5 = vpop.eup %14774  ;;  %v4737_v38 = vadd.f32 1.0, %v14773_v56 }
 0xf2e   :  { %v4736_v54 = vadd.f32 1.0, %v14775_v5  ;;  %12018 = vmatprep.mubr.f32.mxu0 %v4750_v46 }
 0xf2f   :  { %12019 = vmatmul.mubr.f32.gmra.mrb[124].mxu0 %v4751_v39  ;;  %v4753_v10 = vmul.f32 %v4737_v38, %v4688_v35 }
 0xf30   :  { %v14777_v48 = vpop.eup %14776  ;;  %v4752_v45 = vmul.f32 %v4736_v54, %v4687_v15 }
 0xf31   :  { %v14779_v61 = vpop.eup %14778  ;;  %v4739_v4 = vadd.f32 1.0, %v14777_v48 }
 0xf32   :  { %v4738_v59 = vadd.f32 1.0, %v14779_v61  ;;  %12021 = vmatprep.mubr.f32.mxu0 %v4752_v45 }
 0xf33   :  { %12022 = vmatmul.mubr.f32.gmra.mrb[126].mxu0 %v4753_v10  ;;  %v4755_v13 = vmul.f32 %v4739_v4, %v4690_v23 }
 0xf34   :  { %v4754_v29 = vmul.f32 %v4738_v59, %v4689_v11 }
 0xf36   :  { %12024 = vmatprep.mubr.f32.mxu0 %v4754_v29 }
 0xf37   :  { %12025 = vmatmul.mubr.f32.gmra.mrb[128].mxu0 %v4755_v13 }
 0xf38   :  { %12094 = vmatprep.mubr.f32.mxu0 %v58_v55 }
 0xfc8   :  { %v12005_v44 = vpop.f32.mrb[114].mxu0 }
 0xfc9   :  { %v4902_v1 = vadd.f32 %v12005_v44, %v16742_v6  ;;  %v4822_v22 = vpop.f32.mrb[115].mxu0 }
 0xfca   :  { %v4901_v0 = vadd.f32 %v4822_v22, %v16745_v53 }
 0xfcb   :  { %v17131_v28 = vadd.f32 %v17126_v62, %v4902_v1 }
 0xfcc   :  { %v17134_v41 = vadd.f32 %v17126_v62, %v4901_v0 }
 0xfcd   :  { %19160 = vst [vmem:[#allocation24_spill] sm:$0xff] %v17131_v28  ;;  %v5013_v27 = vmul.f32 %v17131_v28, %v17131_v28 }
 0xfce   :  { %19161 = vst [vmem:[#allocation26_spill] sm:$0xff] %v17134_v41  ;;  %v13265_v36 = vpack.c.bf16 %v17131_v28, %v17134_v41  ;;  %v5012_v25 = vmul.f32 %v17134_v41, %v17134_v41 }
 0xfcf   :  { %v12008_v43 = vpop.f32.mrb[116].mxu0 }
 0xfd0   :  { %v4904_v6 = vadd.f32 %v12008_v43, %v16758_v63  ;;  %v4832_v34 = vpop.f32.mrb[117].mxu0  ;;  %13266 = vmatprep.subr.bf16.mxu1 %v13265_v36  ;;  %v13297_v53 = vpack.c.bf16 %v5013_v27, %v5012_v25 }
 0xfd1   :  { %v4903_v21 = vadd.f32 %v4832_v34, %v16761_v9  ;;  %13268 = vmatpush3.bf16.msra.mxu1 %v13265_v36 }
 0xfd2   :  { %v17145_v26 = vadd.f32 %v17126_v62, %v4904_v6  ;;  %13298 = vmatprep.subr.bf16.mxu0 %v13297_v53 }
 0xfd3   :  { %v17148_v51 = vadd.f32 %v17126_v62, %v4903_v21  ;;  %13300 = vmatpush3.bf16.msra.mxu0 %v13297_v53 }
 0xfd4   :  { %19162 = vst [vmem:[#allocation25_spill] sm:$0xff] %v17145_v26  ;;  %v5015_v33 = vmul.f32 %v17145_v26, %v17145_v26 }
 0xfd5   :  { %19163 = vst [vmem:[#allocation6_spill] sm:$0xff] %v17148_v51  ;;  %v13269_v63 = vpack.c.bf16 %v17145_v26, %v17148_v51  ;;  %v5014_v32 = vmul.f32 %v17148_v51, %v17148_v51 }
 0xfd7   :  { %v12011_v7 = vpop.f32.mrb[118].mxu0  ;;  %13270 = vmatprep.subr.bf16.mxu1 %v13269_v63  ;;  %v13301_v9 = vpack.c.bf16 %v5015_v33, %v5014_v32 }
 0xfd8   :  { %v4906_v52 = vadd.f32 %v12011_v7, %v16769_v37  ;;  %v4842_v12 = vpop.f32.mrb[119].mxu0  ;;  %13272 = vmatpush3.bf16.msra.mxu1 %v13269_v63 }
 0xfd9   :  { %v4905_v30 = vadd.f32 %v4842_v12, %v16777_v8  ;;  %13302 = vmatprep.subr.bf16.mxu0 %v13301_v9 }
 0xfda   :  { %v17159_v56 = vadd.f32 %v17126_v62, %v4906_v52  ;;  %13304 = vmatpush3.bf16.msra.mxu0 %v13301_v9 }
 0xfdb   :  { %v17162_v46 = vadd.f32 %v17126_v62, %v4905_v30 }
 0xfdc   :  { %19164 = vst [vmem:[#allocation28_spill] sm:$0xff] %v17159_v56  ;;  %v5017_v5 = vmul.f32 %v17159_v56, %v17159_v56 }
 0xfdd   :  { %19165 = vst [vmem:[#allocation23_spill] sm:$0xff] %v17162_v46  ;;  %v13273_v38 = vpack.c.bf16 %v17159_v56, %v17162_v46  ;;  %v5016_v37 = vmul.f32 %v17162_v46, %v17162_v46 }
 0xfdf   :  { %v12014_v39 = vpop.f32.mrb[120].mxu0  ;;  %13274 = vmatprep.subr.bf16.mxu1 %v13273_v38  ;;  %v13305_v8 = vpack.c.bf16 %v5017_v5, %v5016_v37 }
 0xfe0   :  { %v4908_v15 = vadd.f32 %v12014_v39, %v16785_v40  ;;  %v4852_v54 = vpop.f32.mrb[121].mxu0  ;;  %13276 = vmatpush3.bf16.msra.mxu1 %v13273_v38 }
 0xfe1   :  { %v4907_v35 = vadd.f32 %v4852_v54, %v16793_v20  ;;  %13306 = vmatprep.subr.bf16.mxu0 %v13305_v8 }
 0xfe2   :  { %v17173_v48 = vadd.f32 %v17126_v62, %v4908_v15  ;;  %13308 = vmatpush3.bf16.msra.mxu0 %v13305_v8 }
 0xfe3   :  { %v17176_v45 = vadd.f32 %v17126_v62, %v4907_v35 }
 0xfe4   :  { %19166 = vst [vmem:[#allocation27_spill] sm:$0xff] %v17173_v48  ;;  %v5019_v61 = vmul.f32 %v17173_v48, %v17173_v48 }
 0xfe5   :  { %19167 = vst [vmem:[#allocation8_spill] sm:$0xff] %v17176_v45  ;;  %v13277_v4 = vpack.c.bf16 %v17173_v48, %v17176_v45  ;;  %v5018_v40 = vmul.f32 %v17176_v45, %v17176_v45 }
 0xfe7   :  { %13278 = vmatprep.subr.bf16.mxu1 %v13277_v4  ;;  %v13309_v10 = vpack.c.bf16 %v5019_v61, %v5018_v40 }
 0xfe8   :  { %13280 = vmatpush3.bf16.msra.mxu1 %v13277_v4 }
 0xfe9   :  { %13310 = vmatprep.subr.bf16.mxu0 %v13309_v10 }
 0xfea   :  { %13312 = vmatpush3.bf16.msra.mxu0 %v13309_v10 }
 0xffe   :  { %v12017_v20 = vpop.f32.mrb[122].mxu0 }
 0xfff   :  { %v4910_v11 = vadd.f32 %v12017_v20, %v16806_v49  ;;  %v4862_v59 = vpop.f32.mrb[123].mxu0  ;;  %v15126_v20 = vld [vmem:[%s19073_s2 + $0x8] sm:$0xff] }
0x1000   :  { %v4909_v23 = vadd.f32 %v4862_v59, %v16809_v18  ;;  %v15128_v59 = vld [vmem:[%s19073_s2] sm:$0xff] }
0x1001   :  { %v17187_v29 = vadd.f32 %v17126_v62, %v4910_v11  ;;  %v15127_v11 = vld [vmem:[%s19073_s2 + $0x10] sm:$0xff] }
0x1002   :  { %v17190_v13 = vadd.f32 %v17126_v62, %v4909_v23  ;;  %v12020_v55 = vpop.f32.mrb[124].mxu0  ;;  %v15129_v23 = vld [vmem:[%s19073_s2 + $0x20] sm:$0xff] }
0x1003   :  { %19168 = vst [vmem:[#allocation7_spill] sm:$0xff] %v17187_v29  ;;  %v4912_v24 = vadd.f32 %v12020_v55, %v16822_v60  ;;  %v4872_v44 = vpop.f32.mrb[125].mxu0  ;;  %v5021_v1 = vmul.f32 %v17187_v29, %v17187_v29  ;;  %v15130_v55 = vld [vmem:[%s19073_s2 + $0x18] sm:$0xff] }
0x1004   :  { %19169 = vst [vmem:[#allocation10_spill] sm:$0xff] %v17190_v13  ;;  %v4911_v22 = vadd.f32 %v4872_v44, %v16825_v58  ;;  %v13281_v49 = vpack.c.bf16 %v17187_v29, %v17190_v13  ;;  %v5020_v18 = vmul.f32 %v17190_v13, %v17190_v13  ;;  %v15132_v44 = vld [vmem:[%s19073_s2 + $0x28] sm:$0xff] }
0x1005   :  { %v17201_v0 = vadd.f32 %v17126_v62, %v4912_v24  ;;  %v15131_v24 = vld [vmem:[%s19073_s2 + $0x30] sm:$0xff] }
0x1006   :  { %v17204_v27 = vadd.f32 %v17126_v62, %v4911_v22  ;;  %v12023_v36 = vpop.f32.mrb[126].mxu0  ;;  %13282 = vmatprep.subr.bf16.mxu1 %v13281_v49  ;;  %v13313_v60 = vpack.c.bf16 %v5021_v1, %v5020_v18  ;;  %v15133_v1 = vld [vmem:[%s19073_s2 + $0x40] sm:$0xff]  ;;  %v15134_v22 = vld [vmem:[%s19073_s2 + $0x38] sm:$0xff]  ;;  %v15136_v18 = vld [vmem:[%s19073_s2 + $0x48] sm:$0xff] }
0x1007   :  { %19170 = vst [vmem:[#allocation9_spill] sm:$0xff] %v17201_v0  ;;  %v4914_v25 = vadd.f32 %v12023_v36, %v16838_v16  ;;  %v4882_v43 = vpop.f32.mrb[127].mxu0  ;;  %13284 = vmatpush3.bf16.msra.mxu1 %v13281_v49  ;;  %v5023_v58 = vmul.f32 %v17201_v0, %v17201_v0  ;;  %v15135_v49 = vld [vmem:[%s19073_s2 + $0x50] sm:$0xff]  ;;  %v15137_v36 = vld [vmem:[%s19073_s2 + $0x60] sm:$0xff] }
0x1008   :  { %19171 = vst [vmem:[#allocation12_spill] sm:$0xff] %v17204_v27  ;;  %v4913_v6 = vadd.f32 %v4882_v43, %v16841_v42  ;;  %13314 = vmatprep.subr.bf16.mxu0 %v13313_v60  ;;  %v13285_v34 = vpack.c.bf16 %v17201_v0, %v17204_v27  ;;  %v5022_v53 = vmul.f32 %v17204_v27, %v17204_v27  ;;  %v15140_v43 = vld [vmem:[%s19073_s2 + $0x68] sm:$0xff] }
0x1009   :  { %v17215_v21 = vadd.f32 %v17126_v62, %v4914_v25  ;;  %13316 = vmatpush3.bf16.msra.mxu0 %v13313_v60  ;;  %v15138_v60 = vld [vmem:[%s19073_s2 + $0x58] sm:$0xff]  ;;  %v15139_v25 = vld [vmem:[%s19073_s2 + $0x70] sm:$0xff] }
0x100a   :  { %v17218_v16 = vadd.f32 %v17126_v62, %v4913_v6  ;;  %v12026_v33 = vpop.f32.mrb[128].mxu0  ;;  %13286 = vmatprep.subr.bf16.mxu1 %v13285_v34  ;;  %v13317_v63 = vpack.c.bf16 %v5023_v58, %v5022_v53  ;;  %v15141_v58 = vld [vmem:[%s19073_s2 + $0x78] sm:$0xff]  ;;  %v84_v6 = vld [vmem:[%s19074_s3 + $0x40] sm:$0xff] }
0x100b   :  { %19172 = vst [vmem:[#allocation11_spill] sm:$0xff] %v17215_v21  ;;  %v4916_v32 = vadd.f32 %v12026_v33, %v16854_v50  ;;  %v4892_v42 = vpop.f32.mrb[129].mxu0  ;;  %13288 = vmatpush3.bf16.msra.mxu1 %v13285_v34  ;;  %v5025_v7 = vmul.f32 %v17215_v21, %v17215_v21  ;;  %v86_v34 = vld [vmem:[%s19074_s3 + $0x50] sm:$0xff] }
0x100c   :  { %19173 = vst [vmem:[#allocation14_spill] sm:$0xff] %v17218_v16  ;;  %v4915_v9 = vadd.f32 %v4892_v42, %v16857_v3  ;;  %13318 = vmatprep.subr.bf16.mxu0 %v13317_v63  ;;  %v13289_v52 = vpack.c.bf16 %v17215_v21, %v17218_v16  ;;  %v5024_v12 = vmul.f32 %v17218_v16, %v17218_v16 }
0x100d   :  { %v17229_v30 = vadd.f32 %v17126_v62, %v4916_v32  ;;  %13320 = vmatpush3.bf16.msra.mxu0 %v13317_v63  ;;  %v13337_v32 = vpack.c.bf16 %v86_v34, %v84_v6 }
0x100e   :  { %v17232_v50 = vadd.f32 %v17126_v62, %v4915_v9  ;;  %13290 = vmatprep.subr.bf16.mxu1 %v13289_v52  ;;  %v13321_v5 = vpack.c.bf16 %v5025_v7, %v5024_v12  ;;  %v59_v62 = vld [vmem:[%s19072_s1 + $0x18] sm:$0xff] }
0x100f   :  { %19174 = vst [vmem:[#allocation13_spill] sm:$0xff] %v17229_v30  ;;  %13292 = vmatpush3.bf16.msra.mxu1 %v13289_v52  ;;  %v5027_v3 = vmul.f32 %v17229_v30, %v17229_v30 }
0x1010   :  { %19175 = vst [vmem:[#allocation16_spill] sm:$0xff] %v17232_v50  ;;  %13322 = vmatprep.subr.bf16.mxu0 %v13321_v5  ;;  %v13293_v38 = vpack.c.bf16 %v17229_v30, %v17232_v50  ;;  %v5026_v37 = vmul.f32 %v17232_v50, %v17232_v50 }
0x1011   :  { %13324 = vmatpush3.bf16.msra.mxu0 %v13321_v5 }
0x1012   :  { %13294 = vmatprep.subr.bf16.mxu1 %v13293_v38  ;;  %v13325_v39 = vpack.c.bf16 %v5027_v3, %v5026_v37 }
0x1013   :  { %13296 = vmatpush3.bf16.msra.mxu1 %v13293_v38 }
0x1014   :  { %13326 = vmatprep.subr.bf16.mxu0 %v13325_v39 }
0x1015   :  { %13328 = vmatpush3.bf16.msra.mxu0 %v13325_v39 }
0x1016   :  { %12060 = vmatmul.mubr.f32.vlgmr.msra.gmra.mrb[98].mxu1 %v59_v62 }
0x1018   :  { %12095 = vmatmul.mubr.f32.vlgmr.msra.gmra.mrb[130].mxu0 %v59_v62 }
0x10e9   :  { %v12061_v8 = vpop.f32.mrb[98].mxu1 }
0x10ea   :  { %v5106_v15 = vsel %vm292_vm0, %v12061_v8, 0.0  ;;  %v5003_v54 = vpop.f32.mrb[99].mxu1 }
0x10eb   :  { %v5103_v35 = vsel %vm292_vm0, %v5003_v54, 0.0  ;;  %5107 = vadd.xlane.f32.xlu1 %v5106_v15  ;;  %v12096_v61 = vpop.f32.mrb[130].mxu0 }
0x10ec   :  { %v5112_v4 = vsel %vm292_vm0, %v12096_v61, 0.0  ;;  %5104 = vadd.xlane.f32.xlu0 %v5103_v35  ;;  %v5094_v40 = vpop.f32.mrb[131].mxu0 }
0x10ed   :  { %v5109_v10 = vsel %vm292_vm0, %v5094_v40, 0.0 }
0x10ef   :  { %5113 = vadd.xlane.f32.xlu1 %v5112_v4 }
0x10f0   :  { %5110 = vadd.xlane.f32.xlu0 %v5109_v10 }
0x1100   :  { %5125 = vrot.lane.b32.xlu1 %v15126_v20, %s15180_s25 }
0x1104   :  { %5127 = vrot.lane.b32.xlu1 %v15127_v11, %s15180_s25 }
0x1106   :  { %5123 = vrot.lane.b32.xlu0 %v15128_v59, %s15180_s25 }
0x1108   :  { %5131 = vrot.lane.b32.xlu1 %v15129_v23, %s15180_s25 }
0x110a   :  { %5129 = vrot.lane.b32.xlu0 %v15130_v55, %s15180_s25 }
0x110c   :  { %5135 = vrot.lane.b32.xlu1 %v15131_v24, %s15180_s25 }
0x110e   :  { %5133 = vrot.lane.b32.xlu0 %v15132_v44, %s15180_s25 }
0x1110   :  { %5139 = vrot.lane.b32.xlu1 %v15133_v1, %s15180_s25 }
0x1112   :  { %5137 = vrot.lane.b32.xlu0 %v15134_v22, %s15180_s25  ;;  %v88_v22 = vld [vmem:[%s19074_s3 + $0x60] sm:$0xff] }
0x1114   :  { %5143 = vrot.lane.b32.xlu1 %v15135_v49, %s15180_s25  ;;  %v90_v49 = vld [vmem:[%s19074_s3 + $0x70] sm:$0xff] }
0x1116   :  { %5141 = vrot.lane.b32.xlu0 %v15136_v18, %s15180_s25  ;;  %v13341_v18 = vpack.c.bf16 %v90_v49, %v88_v22 }
0x1118   :  { %5147 = vrot.lane.b32.xlu1 %v15137_v36, %s15180_s25 }
0x111a   :  { %5145 = vrot.lane.b32.xlu0 %v15138_v60, %s15180_s25 }
0x111c   :  { %5151 = vrot.lane.b32.xlu1 %v15139_v25, %s15180_s25 }
0x111e   :  { %5149 = vrot.lane.b32.xlu0 %v15140_v43, %s15180_s25 }
0x1122   :  { %5153 = vrot.lane.b32.xlu0 %v15141_v58, %s15180_s25 }
0x1178   :  { %v5108_v53 = vpop.xlane.xlu1 %5107 }
0x1179   :  { %v5105_v33 = vpop.xlane.xlu0 %5104  ;;  %v5116_v42 = vmul.f32 %v5108_v53, %v5108_v53 }
0x117a   :  { %v13329_v63 = vpack.c.bf16 %v5108_v53, %v5105_v33  ;;  %v5115_v7 = vmul.f32 %v5105_v33, %v5105_v33 }
0x117c   :  { %v5114_v9 = vpop.xlane.xlu1 %5113  ;;  %13330 = vmatprep.subr.bf16.mxu1 %v13329_v63 }
0x117d   :  { %v5118_v52 = vsub.f32 %v5114_v9, %v5116_v42  ;;  %13332 = vmatpush3.bf16.msra.mxu1 %v13329_v63  ;;  %v5111_v12 = vpop.xlane.xlu0 %5110 }
0x117e   :  { %v5117_v5 = vsub.f32 %v5111_v12, %v5115_v7  ;;  %13338 = vmatprep.subr.bf16.mxu1 %v13337_v32 }
0x117f   :  { %v5120_v3 = vadd.f32 1e-05, %v5118_v52 }
0x1180   :  { %v5119_v38 = vadd.f32 1e-05, %v5117_v5  ;;  %v5126_v37 = vpop.permute.xlu1 %5125 }
0x1181   :  { %14780 = vrsqrt.f32 %v5120_v3  ;;  %v5124_v39 = vpop.permute.xlu0 %5123 }
0x1182   :  { %14782 = vrsqrt.f32 %v5119_v38  ;;  %12101 = vmatprep.mubr.msk.f32.mxu1 %vm313_vm1, %v5124_v39  ;;  %12129 = vmatprep.mubr.msk.f32.mxu0 %vm313_vm1, %v5124_v39 }
0x1183   :  { %12102 = vmatmul.mubr.msk.f32.vlgmr.msra.gmra.mrb[100].mxu1 %vm313_vm1, %v5126_v37 }
0x1184   :  { %v5128_v62 = vpop.permute.xlu1 %5127  ;;  %13340 = vmatpush3.bf16.msra.mxu1 %v13337_v32 }
0x1185   :  { %12104 = vmatprep.mubr.msk.f32.mxu1 %vm313_vm1, %v5128_v62  ;;  %v5130_v8 = vpop.permute.xlu0 %5129  ;;  %13342 = vmatprep.subr.bf16.mxu1 %v13341_v18 }
0x1187   :  { %12105 = vmatmul.mubr.msk.f32.gmra.mrb[102].mxu1 %vm313_vm1, %v5130_v8 }
0x1188   :  { %v5132_v15 = vpop.permute.xlu1 %5131  ;;  %13344 = vmatpush3.bf16.msra.mxu1 %v13341_v18 }
0x1189   :  { %12107 = vmatprep.mubr.msk.f32.mxu1 %vm313_vm1, %v5132_v15  ;;  %v5134_v54 = vpop.permute.xlu0 %5133 }
0x118b   :  { %v14781_v35 = vpop.eup %14780  ;;  %12108 = vmatmul.mubr.msk.f32.gmra.mrb[104].mxu1 %vm313_vm1, %v5134_v54 }
0x118c   :  { %v14783_v61 = vpop.eup %14782  ;;  %v5136_v4 = vpop.permute.xlu1 %5135 }
0x118d   :  { %12110 = vmatprep.mubr.msk.f32.mxu1 %vm313_vm1, %v5136_v4  ;;  %v5138_v40 = vpop.permute.xlu0 %5137  ;;  %v13333_v10 = vpack.c.bf16 %v14781_v35, %v14783_v61 }
0x118f   :  { %12111 = vmatmul.mubr.msk.f32.gmra.mrb[106].mxu1 %vm313_vm1, %v5138_v40  ;;  %13334 = vmatprep.subr.bf16.mxu0 %v13333_v10 }
0x1190   :  { %13336 = vmatpush3.bf16.msra.mxu0 %v13333_v10  ;;  %v5140_v20 = vpop.permute.xlu1 %5139 }
0x1191   :  { %12113 = vmatprep.mubr.msk.f32.mxu1 %vm313_vm1, %v5140_v20  ;;  %v5142_v11 = vpop.permute.xlu0 %5141 }
0x1193   :  { %12114 = vmatmul.mubr.msk.f32.gmra.mrb[108].mxu1 %vm313_vm1, %v5142_v11  ;;  %12130 = vmatmul.mubr.msk.f32.vlgmr.msra.gmra.mrb[132].mxu0 %vm313_vm1, %v5126_v37 }
0x1194   :  { %v5144_v59 = vpop.permute.xlu1 %5143  ;;  %12132 = vmatprep.mubr.msk.f32.mxu0 %vm313_vm1, %v5128_v62 }
0x1195   :  { %12116 = vmatprep.mubr.msk.f32.mxu1 %vm313_vm1, %v5144_v59  ;;  %v5146_v23 = vpop.permute.xlu0 %5145 }
0x1197   :  { %12117 = vmatmul.mubr.msk.f32.gmra.mrb[110].mxu1 %vm313_vm1, %v5146_v23  ;;  %12133 = vmatmul.mubr.msk.f32.gmra.mrb[134].mxu0 %vm313_vm1, %v5130_v8 }
0x1198   :  { %v5148_v55 = vpop.permute.xlu1 %5147  ;;  %12135 = vmatprep.mubr.msk.f32.mxu0 %vm313_vm1, %v5132_v15 }
0x1199   :  { %12119 = vmatprep.mubr.msk.f32.mxu1 %vm313_vm1, %v5148_v55  ;;  %v5150_v24 = vpop.permute.xlu0 %5149 }
0x119b   :  { %12120 = vmatmul.mubr.msk.f32.gmra.mrb[112].mxu1 %vm313_vm1, %v5150_v24  ;;  %12136 = vmatmul.mubr.msk.f32.gmra.mrb[136].mxu0 %vm313_vm1, %v5134_v54 }
0x119c   :  { %v5152_v44 = vpop.permute.xlu1 %5151  ;;  %12138 = vmatprep.mubr.msk.f32.mxu0 %vm313_vm1, %v5136_v4 }
0x119d   :  { %12122 = vmatprep.mubr.msk.f32.mxu1 %vm313_vm1, %v5152_v44  ;;  %v5154_v1 = vpop.permute.xlu0 %5153 }
0x119f   :  { %12123 = vmatmul.mubr.msk.f32.gmra.mrb[114].mxu1 %vm313_vm1, %v5154_v1  ;;  %12139 = vmatmul.mubr.msk.f32.gmra.mrb[138].mxu0 %vm313_vm1, %v5138_v40 }
0x11a0   :  { %12141 = vmatprep.mubr.msk.f32.mxu0 %vm313_vm1, %v5140_v20 }
0x11a3   :  { %12142 = vmatmul.mubr.msk.f32.gmra.mrb[140].mxu0 %vm313_vm1, %v5142_v11 }
0x11a4   :  { %12144 = vmatprep.mubr.msk.f32.mxu0 %vm313_vm1, %v5144_v59 }
0x11a7   :  { %12145 = vmatmul.mubr.msk.f32.gmra.mrb[142].mxu0 %vm313_vm1, %v5146_v23 }
0x11a8   :  { %12147 = vmatprep.mubr.msk.f32.mxu0 %vm313_vm1, %v5148_v55 }
0x11ab   :  { %12148 = vmatmul.mubr.msk.f32.gmra.mrb[144].mxu0 %vm313_vm1, %v5150_v24 }
0x11ac   :  { %12150 = vmatprep.mubr.msk.f32.mxu0 %vm313_vm1, %v5152_v44 }
0x11af   :  { %12151 = vmatmul.mubr.msk.f32.gmra.mrb[146].mxu0 %vm313_vm1, %v5154_v1 }
0x1256   :  { %v12103_v36 = vpop.f32.mrb[100].mxu1 }
0x1257   :  { %v5253_v60 = vpop.f32.mrb[101].mxu1  ;;  %v5478_v33 = vsub.f32 %v17131_v28, %v12103_v36 }
0x1258   :  { %v5477_v63 = vsub.f32 %v17134_v41, %v5253_v60 }
0x125a   :  { %v12106_v25 = vpop.f32.mrb[102].mxu1 }
0x125b   :  { %v5263_v43 = vpop.f32.mrb[103].mxu1  ;;  %v5480_v5 = vsub.f32 %v17145_v26, %v12106_v25 }
0x125c   :  { %v5479_v3 = vsub.f32 %v17148_v51, %v5263_v43 }
0x125e   :  { %v12109_v58 = vpop.f32.mrb[104].mxu1 }
0x125f   :  { %v5273_v6 = vpop.f32.mrb[105].mxu1  ;;  %v5482_v54 = vsub.f32 %v17159_v56, %v12109_v58 }
0x1260   :  { %v5481_v35 = vsub.f32 %v17162_v46, %v5273_v6 }
0x1262   :  { %v12112_v34 = vpop.f32.mrb[106].mxu1 }
0x1263   :  { %v5283_v53 = vpop.f32.mrb[107].mxu1  ;;  %v5484_v59 = vsub.f32 %v17173_v48, %v12112_v34 }
0x1264   :  { %v5483_v23 = vsub.f32 %v17176_v45, %v5283_v53 }
0x1266   :  { %v12115_v32 = vpop.f32.mrb[108].mxu1  ;;  %v12131_v42 = vpop.f32.mrb[132].mxu0 }
0x1267   :  { %v5494_v7 = vmul.f32 %v12131_v42, %v5478_v33  ;;  %v5293_v9 = vpop.f32.mrb[109].mxu1  ;;  %v5398_v52 = vpop.f32.mrb[133].mxu0  ;;  %v5486_v18 = vsub.f32 %v17187_v29, %v12115_v32  ;;  %v5718_v29 = vld [vmem:[#allocation2 + $0x258] sm:$0xff] }
0x1268   :  { %v5493_v12 = vmul.f32 %v5477_v63, %v5398_v52  ;;  %v5485_v36 = vsub.f32 %v17190_v13, %v5293_v9 }
0x126a   :  { %v12118_v38 = vpop.f32.mrb[110].mxu1  ;;  %v12134_v37 = vpop.f32.mrb[134].mxu0  ;;  %12161 = vmatprep.mubr.msk.f32.mxu1 %vm292_vm0, %v5493_v12 }
0x126b   :  { %v5496_v39 = vmul.f32 %v12134_v37, %v5480_v5  ;;  %v5303_v62 = vpop.f32.mrb[111].mxu1  ;;  %v5408_v8 = vpop.f32.mrb[135].mxu0  ;;  %12162 = vmatmul.mubr.msk.f32.vlgmr.msra.gmra.mrb[116].mxu1 %vm292_vm0, %v5494_v7  ;;  %v5488_v6 = vsub.f32 %v17201_v0, %v12118_v38  ;;  %v5714_v0 = vld [vmem:[#allocation2 + $0x238] sm:$0xff] }
0x126c   :  { %v5495_v15 = vmul.f32 %v5479_v3, %v5408_v8  ;;  %v5487_v34 = vsub.f32 %v17204_v27, %v5303_v62 }
0x126e   :  { %v12121_v61 = vpop.f32.mrb[112].mxu1  ;;  %v12137_v4 = vpop.f32.mrb[136].mxu0  ;;  %12164 = vmatprep.mubr.msk.f32.mxu1 %vm292_vm0, %v5495_v15  ;;  %v125_v15 = vld [vmem:[%s19076_s5 + $0x8] sm:$0xff] }
0x126f   :  { %v5498_v40 = vmul.f32 %v12137_v4, %v5482_v54  ;;  %v5313_v10 = vpop.f32.mrb[113].mxu1  ;;  %v5418_v20 = vpop.f32.mrb[137].mxu0  ;;  %12165 = vmatmul.mubr.msk.f32.gmra.mrb[118].mxu1 %vm292_vm0, %v5496_v39  ;;  %v5490_v42 = vsub.f32 %v17215_v21, %v12121_v61  ;;  %v19176_v54 = vsub.s32 0, %v19159_v31  ;;  %v5710_v21 = vld [vmem:[#allocation2 + $0x218] sm:$0xff] }
0x1270   :  { %v5497_v11 = vmul.f32 %v5481_v35, %v5418_v20  ;;  %v5489_v7 = vsub.f32 %v17218_v16, %v5313_v10  ;;  %v6329_v31 = vld [vmem:[#allocation2 + $0x2d8] sm:$0xff] }
0x1271   :  { %v5512_v35 = vrot.slane %v125_v15, %v19176_v54 }
0x1272   :  { %v12124_v55 = vpop.f32.mrb[114].mxu1  ;;  %v12140_v24 = vpop.f32.mrb[138].mxu0  ;;  %12167 = vmatprep.mubr.msk.f32.mxu1 %vm292_vm0, %v5497_v11 }
0x1273   :  { %v5500_v44 = vmul.f32 %v12140_v24, %v5484_v59  ;;  %v5323_v1 = vpop.f32.mrb[115].mxu1  ;;  %v5428_v22 = vpop.f32.mrb[139].mxu0  ;;  %12168 = vmatmul.mubr.msk.f32.gmra.mrb[120].mxu1 %vm292_vm0, %v5498_v40  ;;  %v5492_v3 = vsub.f32 %v17229_v30, %v12124_v55  ;;  %v5721_v30 = vld [vmem:[#allocation2 + $0x270] sm:$0xff] }
0x1274   :  { %v5499_v49 = vmul.f32 %v5483_v23, %v5428_v22  ;;  %v5491_v38 = vsub.f32 %v17232_v50, %v5323_v1 }
0x1276   :  { %v12143_v60 = vpop.f32.mrb[140].mxu0  ;;  %12170 = vmatprep.mubr.msk.f32.mxu1 %vm292_vm0, %v5499_v49 }
0x1277   :  { %v5502_v25 = vmul.f32 %v12143_v60, %v5486_v18  ;;  %v5438_v43 = vpop.f32.mrb[141].mxu0  ;;  %12171 = vmatmul.mubr.msk.f32.gmra.mrb[122].mxu1 %vm292_vm0, %v5500_v44 }
0x1278   :  { %v5501_v58 = vmul.f32 %v5485_v36, %v5438_v43 }
0x127a   :  { %v12146_v53 = vpop.f32.mrb[142].mxu0  ;;  %12173 = vmatprep.mubr.msk.f32.mxu1 %vm292_vm0, %v5501_v58 }
0x127b   :  { %v5504_v33 = vmul.f32 %v12146_v53, %v5488_v6  ;;  %v5448_v63 = vpop.f32.mrb[143].mxu0  ;;  %12174 = vmatmul.mubr.msk.f32.gmra.mrb[124].mxu1 %vm292_vm0, %v5502_v25 }
0x127c   :  { %v5503_v32 = vmul.f32 %v5487_v34, %v5448_v63 }
0x127e   :  { %v12149_v9 = vpop.f32.mrb[144].mxu0  ;;  %12176 = vmatprep.mubr.msk.f32.mxu1 %vm292_vm0, %v5503_v32 }
0x127f   :  { %v5506_v52 = vmul.f32 %v12149_v9, %v5490_v42  ;;  %v5458_v12 = vpop.f32.mrb[145].mxu0  ;;  %12177 = vmatmul.mubr.msk.f32.gmra.mrb[126].mxu1 %vm292_vm0, %v5504_v33 }
0x1280   :  { %v5505_v5 = vmul.f32 %v5489_v7, %v5458_v12 }
0x1282   :  { %v12152_v37 = vpop.f32.mrb[146].mxu0  ;;  %12179 = vmatprep.mubr.msk.f32.mxu1 %vm292_vm0, %v5505_v5 }
0x1283   :  { %v5508_v39 = vmul.f32 %v12152_v37, %v5492_v3  ;;  %v5468_v62 = vpop.f32.mrb[147].mxu0  ;;  %12180 = vmatmul.mubr.msk.f32.gmra.mrb[128].mxu1 %vm292_vm0, %v5506_v52 }
0x1284   :  { %v5507_v8 = vmul.f32 %v5491_v38, %v5468_v62 }
0x1286   :  { %12182 = vmatprep.mubr.msk.f32.mxu1 %vm292_vm0, %v5507_v8 }
0x1287   :  { %12183 = vmatmul.mubr.msk.f32.gmra.mrb[130].mxu1 %vm292_vm0, %v5508_v39 }
0x133e   :  { %v12163_v61 = vpop.f32.mrb[116].mxu1 }
0x133f   :  { %v17392_v4 = vadd.f32 %v12163_v61, %v5512_v35  ;;  %v5627_v40 = vpop.f32.mrb[117].mxu1 }
0x1340   :  { %v17394_v10 = vadd.f32 %v5627_v40, %v5512_v35 }
0x1342   :  { %v12166_v20 = vpop.f32.mrb[118].mxu1  ;;  %12217 = vmatprep.mubr.msk.f32.mxu0 %vm945_vm2, %v17394_v10  ;;  %v17400_v11 = vpack.i.bf16 %v17392_v4, %v17394_v10 }
0x1343   :  { %v17402_v59 = vadd.f32 %v12166_v20, %v5512_v35  ;;  %v5637_v23 = vpop.f32.mrb[119].mxu1 }
0x1344   :  { %19177 = vst [vmem:[#allocation15_spill] sm:$0xff] %v17400_v11  ;;  %v17404_v55 = vadd.f32 %v5637_v23, %v5512_v35  ;;  %14137 = vrot.lane.b32.xlu1 %v17400_v11, %s15175_s6 }
0x1346   :  { %v12169_v24 = vpop.f32.mrb[120].mxu1  ;;  %v17410_v44 = vpack.i.bf16 %v17402_v59, %v17404_v55 }
0x1347   :  { %v17412_v1 = vadd.f32 %v12169_v24, %v5512_v35  ;;  %v5647_v22 = vpop.f32.mrb[121].mxu1 }
0x1348   :  { %19178 = vst [vmem:[#allocation18_spill] sm:$0xff] %v17410_v44  ;;  %v17414_v49 = vadd.f32 %v5647_v22, %v5512_v35  ;;  %14142 = vrot.lane.b32.xlu0 %v17410_v44, %s15175_s6 }
0x134a   :  { %v12172_v18 = vpop.f32.mrb[122].mxu1  ;;  %v17420_v36 = vpack.i.bf16 %v17412_v1, %v17414_v49 }
0x134b   :  { %v17422_v60 = vadd.f32 %v12172_v18, %v5512_v35  ;;  %v5657_v25 = vpop.f32.mrb[123].mxu1 }
0x134c   :  { %v17424_v43 = vadd.f32 %v5657_v25, %v5512_v35  ;;  %14147 = vrot.lane.b32.xlu1 %v17420_v36, %s15175_s6 }
0x134e   :  { %v12175_v58 = vpop.f32.mrb[124].mxu1  ;;  %v17430_v6 = vpack.i.bf16 %v17422_v60, %v17424_v43 }
0x134f   :  { %v17432_v34 = vadd.f32 %v12175_v58, %v5512_v35  ;;  %v5667_v53 = vpop.f32.mrb[125].mxu1 }
0x1350   :  { %v17434_v33 = vadd.f32 %v5667_v53, %v5512_v35  ;;  %14152 = vrot.lane.b32.xlu0 %v17430_v6, %s15175_s6 }
0x1352   :  { %v12178_v63 = vpop.f32.mrb[126].mxu1  ;;  %v17440_v32 = vpack.i.bf16 %v17432_v34, %v17434_v33 }
0x1353   :  { %v17442_v42 = vadd.f32 %v12178_v63, %v5512_v35  ;;  %v5677_v7 = vpop.f32.mrb[127].mxu1 }
0x1354   :  { %v17444_v9 = vadd.f32 %v5677_v7, %v5512_v35  ;;  %14157 = vrot.lane.b32.xlu1 %v17440_v32, %s15175_s6 }
0x1356   :  { %v12181_v52 = vpop.f32.mrb[128].mxu1  ;;  %v17450_v12 = vpack.i.bf16 %v17442_v42, %v17444_v9 }
0x1357   :  { %v17452_v5 = vadd.f32 %v12181_v52, %v5512_v35  ;;  %v5687_v3 = vpop.f32.mrb[129].mxu1 }
0x1358   :  { %v17454_v38 = vadd.f32 %v5687_v3, %v5512_v35  ;;  %14162 = vrot.lane.b32.xlu0 %v17450_v12, %s15175_s6 }
0x135a   :  { %v12184_v37 = vpop.f32.mrb[130].mxu1  ;;  %v17460_v39 = vpack.i.bf16 %v17452_v5, %v17454_v38 }
0x135b   :  { %v17462_v62 = vadd.f32 %v12184_v37, %v5512_v35  ;;  %v5697_v8 = vpop.f32.mrb[131].mxu1 }
0x135c   :  { %v17464_v15 = vadd.f32 %v5697_v8, %v5512_v35  ;;  %14167 = vrot.lane.b32.xlu1 %v17460_v39, %s15175_s6 }
0x135e   :  { %v17470_v54 = vpack.i.bf16 %v17462_v62, %v17464_v15 }
0x1360   :  { %14182 = vrot.lane.b32.xlu1 %v17410_v44, %s15176_s21  ;;  %14172 = vrot.lane.b32.xlu0 %v17470_v54, %s15175_s6 }
0x1364   :  { %14187 = vrot.lane.b32.xlu1 %v17420_v36, %s15176_s21  ;;  %14177 = vrot.lane.b32.xlu0 %v17400_v11, %s15176_s21 }
0x1368   :  { %14192 = vrot.lane.b32.xlu1 %v17430_v6, %s15176_s21  ;;  %14197 = vrot.lane.b32.xlu0 %v17440_v32, %s15176_s21 }
0x136c   :  { %14202 = vrot.lane.b32.xlu1 %v17450_v12, %s15176_s21  ;;  %14207 = vrot.lane.b32.xlu0 %v17460_v39, %s15176_s21 }
0x1370   :  { %14212 = vrot.lane.b32.xlu1 %v17400_v11, %s15177_s22  ;;  %14217 = vrot.lane.b32.xlu0 %v17410_v44, %s15177_s22 }
0x1374   :  { %14222 = vrot.lane.b32.xlu0 %v17420_v36, %s15177_s22 }
0x1378   :  { %14227 = vrot.lane.b32.xlu0 %v17470_v54, %s15176_s21 }
0x13b6   :  { %v14138_v35 = vpop.permute.xlu1 %14137 }
0x13b7   :  { %v14140_v61 = vunpack.i.h.bf16 %v14138_v35  ;;  %v14139_v40 = vunpack.i.l.bf16 %v14138_v35 }
0x13b9   :  { %v13345_v20 = vpack.c.bf16 %v14140_v61, %v14139_v40 }
0x13ba   :  { %v14143_v23 = vpop.permute.xlu0 %14142 }
0x13bb   :  { %v14145_v24 = vunpack.i.h.bf16 %v14143_v23  ;;  %v14144_v22 = vunpack.i.l.bf16 %v14143_v23  ;;  %13347 = vmatprep.subr.msk.bf16.mxu0 %vm15617_vm3, %v13345_v20 }
0x13bc   :  { %13350 = vmatpush3.bf16.xpose.msk.msra.mxu0 %vm15617_vm3, %v13345_v20 }
0x13bd   :  { %v13351_v18 = vpack.c.bf16 %v14145_v24, %v14144_v22 }
0x13be   :  { %v14148_v25 = vpop.permute.xlu1 %14147 }
0x13bf   :  { %v14150_v58 = vunpack.i.h.bf16 %v14148_v25  ;;  %v14149_v53 = vunpack.i.l.bf16 %v14148_v25  ;;  %13353 = vmatprep.subr.msk.bf16.mxu0 %vm15617_vm3, %v13351_v18 }
0x13c1   :  { %v13357_v63 = vpack.c.bf16 %v14150_v58, %v14149_v53 }
0x13c2   :  { %v14153_v7 = vpop.permute.xlu0 %14152 }
0x13c3   :  { %v14155_v52 = vunpack.i.h.bf16 %v14153_v7  ;;  %v14154_v3 = vunpack.i.l.bf16 %v14153_v7 }
0x13c4   :  { %13356 = vmatpush3.bf16.xpose.msk.msra.mxu0 %vm15617_vm3, %v13351_v18 }
0x13c5   :  { %13359 = vmatprep.subr.msk.bf16.mxu0 %vm15617_vm3, %v13357_v63  ;;  %v13363_v8 = vpack.c.bf16 %v14155_v52, %v14154_v3 }
0x13c6   :  { %v14158_v37 = vpop.permute.xlu1 %14157 }
0x13c7   :  { %v14160_v40 = vunpack.i.h.bf16 %v14158_v37  ;;  %v14159_v20 = vunpack.i.l.bf16 %v14158_v37 }
0x13c9   :  { %v13369_v22 = vpack.c.bf16 %v14160_v40, %v14159_v20 }
0x13ca   :  { %v14163_v35 = vpop.permute.xlu0 %14162 }
0x13cb   :  { %v14165_v18 = vunpack.i.h.bf16 %v14163_v35  ;;  %v14164_v25 = vunpack.i.l.bf16 %v14163_v35 }
0x13cc   :  { %13362 = vmatpush3.bf16.xpose.msk.msra.mxu0 %vm15617_vm3, %v13357_v63 }
0x13cd   :  { %13365 = vmatprep.subr.msk.bf16.mxu0 %vm15617_vm3, %v13363_v8  ;;  %v13375_v37 = vpack.c.bf16 %v14165_v18, %v14164_v25 }
0x13ce   :  { %v14168_v61 = vpop.permute.xlu1 %14167 }
0x13d2   :  { %v14183_v23 = vpop.permute.xlu1 %14182  ;;  %v14173_v24 = vpop.permute.xlu0 %14172 }
0x13d3   :  { %v14185_v63 = vunpack.i.h.bf16 %v14183_v23  ;;  %v14184_v7 = vunpack.i.l.bf16 %v14183_v23  ;;  %v14169_v23 = vunpack.i.l.bf16 %v14168_v61 }
0x13d4   :  { %13368 = vmatpush3.bf16.xpose.msk.msra.mxu0 %vm15617_vm3, %v13363_v8  ;;  %v14170_v8 = vunpack.i.h.bf16 %v14168_v61 }
0x13d5   :  { %13371 = vmatprep.subr.msk.bf16.mxu0 %vm15617_vm3, %v13369_v22  ;;  %v13397_v40 = vpack.c.bf16 %v14185_v63, %v14184_v7 }
0x13d6   :  { %v14188_v58 = vpop.permute.xlu1 %14187  ;;  %v14178_v53 = vpop.permute.xlu0 %14177  ;;  %v13381_v25 = vpack.c.bf16 %v14170_v8, %v14169_v23 }
0x13d7   :  { %v14180_v52 = vunpack.i.h.bf16 %v14178_v53  ;;  %v14179_v3 = vunpack.i.l.bf16 %v14178_v53  ;;  %v14190_v57 = vunpack.i.h.bf16 %v14188_v58  ;;  %v14189_v2 = vunpack.i.l.bf16 %v14188_v58 }
0x13d9   :  { %v13393_v17 = vpack.c.bf16 %v14180_v52, %v14179_v3  ;;  %v13401_v3 = vpack.c.bf16 %v14190_v57, %v14189_v2  ;;  %v14174_v2 = vunpack.i.l.bf16 %v14173_v24 }
0x13da   :  { %v14198_v19 = vpop.permute.xlu0 %14197  ;;  %v14193_v20 = vpop.permute.xlu1 %14192 }
0x13db   :  { %13394 = vmatprep.subr.bf16.mxu1 %v13393_v17  ;;  %v14195_v53 = vunpack.i.h.bf16 %v14193_v20  ;;  %v14194_v52 = vunpack.i.l.bf16 %v14193_v20  ;;  %v14200_v58 = vunpack.i.h.bf16 %v14198_v19  ;;  %v14199_v63 = vunpack.i.l.bf16 %v14198_v19 }
0x13dc   :  { %13374 = vmatpush3.bf16.xpose.msk.msra.mxu0 %vm15617_vm3, %v13369_v22  ;;  %13396 = vmatpush3.bf16.msra.mxu1 %v13393_v17  ;;  %v14175_v17 = vunpack.i.h.bf16 %v14173_v24 }
0x13dd   :  { %13377 = vmatprep.subr.msk.bf16.mxu0 %vm15617_vm3, %v13375_v37  ;;  %13398 = vmatprep.subr.bf16.mxu1 %v13397_v40  ;;  %v13405_v7 = vpack.c.bf16 %v14195_v53, %v14194_v52  ;;  %v13409_v20 = vpack.c.bf16 %v14200_v58, %v14199_v63 }
0x13de   :  { %v14208_v35 = vpop.permute.xlu0 %14207  ;;  %v14203_v22 = vpop.permute.xlu1 %14202  ;;  %v13387_v19 = vpack.c.bf16 %v14175_v17, %v14174_v2  ;;  %v5707_v17 = vld [vmem:[#allocation2 + $0x200] sm:$0xff] }
0x13df   :  { %v14205_v57 = vunpack.i.h.bf16 %v14203_v22  ;;  %v14210_v8 = vunpack.i.h.bf16 %v14208_v35  ;;  %v14209_v23 = vunpack.i.l.bf16 %v14208_v35 }
0x13e0   :  { %13400 = vmatpush3.bf16.msra.mxu1 %v13397_v40  ;;  %v14204_v40 = vunpack.i.l.bf16 %v14203_v22 }
0x13e1   :  { %13402 = vmatprep.subr.bf16.mxu1 %v13401_v3 }
0x13e2   :  { %v17518_v18 = vpop.permute.xlu0 %14217  ;;  %v13413_v53 = vpack.c.bf16 %v14205_v57, %v14204_v40  ;;  %v14213_v22 = vpop.permute.xlu1 %14212 }
0x13e3   :  { %v14215_v58 = vunpack.i.h.bf16 %v14213_v22  ;;  %v14214_v63 = vunpack.i.l.bf16 %v14213_v22  ;;  %v5713_v22 = vld [vmem:[#allocation2 + $0x230] sm:$0xff] }
0x13e4   :  { %13380 = vmatpush3.bf16.xpose.msk.msra.mxu0 %vm15617_vm3, %v13375_v37  ;;  %13404 = vmatpush3.bf16.msra.mxu1 %v13401_v3  ;;  %v13417_v3 = vpack.c.bf16 %v14210_v8, %v14209_v23 }
0x13e5   :  { %13383 = vmatprep.subr.msk.bf16.mxu0 %vm15617_vm3, %v13381_v25  ;;  %13406 = vmatprep.subr.bf16.mxu1 %v13405_v7  ;;  %v17532_v35 = vpack.c.bf16 %v14215_v58, %v14214_v63 }
0x13e6   :  { %v17524_v61 = vpop.permute.xlu0 %14222 }
0x13e8   :  { %13408 = vmatpush3.bf16.msra.mxu1 %v13405_v7 }
0x13e9   :  { %13410 = vmatprep.subr.bf16.mxu1 %v13409_v20 }
0x13ea   :  { %v14228_v52 = vpop.permute.xlu0 %14227 }
0x13eb   :  { %v14230_v37 = vunpack.i.h.bf16 %v14228_v52  ;;  %v14229_v24 = vunpack.i.l.bf16 %v14228_v52  ;;  %v5711_v52 = vld [vmem:[#allocation2 + $0x220] sm:$0xff] }
0x13ec   :  { %13386 = vmatpush3.bf16.xpose.msk.msra.mxu0 %vm15617_vm3, %v13381_v25  ;;  %13412 = vmatpush3.bf16.msra.mxu1 %v13409_v20  ;;  %v5708_v25 = vld [vmem:[#allocation2 + $0x208] sm:$0xff] }
0x13ed   :  { %13389 = vmatprep.subr.msk.bf16.mxu0 %vm15617_vm3, %v13387_v19  ;;  %13414 = vmatprep.subr.bf16.mxu1 %v13413_v53  ;;  %v13421_v7 = vpack.c.bf16 %v14230_v37, %v14229_v24 }
0x13f0   :  { %13416 = vmatpush3.bf16.msra.mxu1 %v13413_v53 }
0x13f1   :  { %13418 = vmatprep.subr.bf16.mxu1 %v13417_v3 }
0x13f4   :  { %13392 = vmatpush3.bf16.xpose.msk.msra.mxu0 %vm15617_vm3, %v13387_v19  ;;  %13420 = vmatpush3.bf16.msra.mxu1 %v13417_v3  ;;  %v5709_v19 = vld [vmem:[#allocation2 + $0x210] sm:$0xff] }
0x13f5   :  { %13422 = vmatprep.subr.bf16.mxu1 %v13421_v7 }
0x13f8   :  { %13424 = vmatpush3.bf16.msra.mxu1 %v13421_v7 }
0x13f9   :  { %13427 = vmatprep.subr.msk.bf16.mxu1 %vm15617_vm3, %v17532_v35 }
0x13fb   :  { %12218 = vmatmul.mubr.msk.f32.vlgmr.msra.gmra.mrb[148].mxu0 %vm945_vm2, %v17392_v4 }
0x13fc   :  { %12220 = vmatprep.mubr.msk.f32.mxu0 %vm945_vm2, %v17404_v55 }
0x13ff   :  { %12221 = vmatmul.mubr.msk.f32.gmra.mrb[150].mxu0 %vm945_vm2, %v17402_v59 }
0x1400   :  { %12223 = vmatprep.mubr.msk.f32.mxu0 %vm945_vm2, %v17414_v49 }
0x1403   :  { %12224 = vmatmul.mubr.msk.f32.gmra.mrb[152].mxu0 %vm945_vm2, %v17412_v1 }
0x1404   :  { %12226 = vmatprep.mubr.msk.f32.mxu0 %vm945_vm2, %v17424_v43 }
0x1407   :  { %12227 = vmatmul.mubr.msk.f32.gmra.mrb[154].mxu0 %vm945_vm2, %v17422_v60 }
0x1408   :  { %12229 = vmatprep.mubr.msk.f32.mxu0 %vm945_vm2, %v17434_v33 }
0x140b   :  { %12230 = vmatmul.mubr.msk.f32.gmra.mrb[156].mxu0 %vm945_vm2, %v17432_v34 }
0x140c   :  { %12232 = vmatprep.mubr.msk.f32.mxu0 %vm945_vm2, %v17444_v9 }
0x140f   :  { %12233 = vmatmul.mubr.msk.f32.gmra.mrb[158].mxu0 %vm945_vm2, %v17442_v42 }
0x1410   :  { %12235 = vmatprep.mubr.msk.f32.mxu0 %vm945_vm2, %v17454_v38 }
0x1413   :  { %12236 = vmatmul.mubr.msk.f32.gmra.mrb[160].mxu0 %vm945_vm2, %v17452_v5 }
0x1414   :  { %12238 = vmatprep.mubr.msk.f32.mxu0 %vm945_vm2, %v17464_v15 }
0x1417   :  { %12239 = vmatmul.mubr.msk.f32.gmra.mrb[162].mxu0 %vm945_vm2, %v17462_v62 }
0x14ce   :  { %v12219_v2 = vpop.f32.mrb[148].mxu0 }
0x14cf   :  { %v17567_v57 = vadd.f32 %v12219_v2, %v5708_v25  ;;  %v5901_v40 = vpop.f32.mrb[149].mxu0  ;;  %v5715_v25 = vld [vmem:[#allocation2 + $0x240] sm:$0xff] }
0x14d0   :  { %v17569_v20 = vadd.f32 %v5901_v40, %v5707_v17 }
0x14d1   :  { %5982 = vmax.xlane.f32.xlu0 %v17567_v57 }
0x14d2   :  { %v12222_v8 = vpop.f32.mrb[150].mxu0  ;;  %5980 = vmax.xlane.f32.xlu1 %v17569_v20 }
0x14d3   :  { %v5911_v23 = vpop.f32.mrb[151].mxu0 }
0x14d4   :  { %v17573_v53 = vadd.f32 %v5911_v23, %v5709_v19  ;;  %v5717_v19 = vld [vmem:[#allocation2 + $0x250] sm:$0xff] }
0x14d6   :  { %v12225_v37 = vpop.f32.mrb[152].mxu0  ;;  %5984 = vmax.xlane.f32.xlu0 %v17573_v53 }
0x14d7   :  { %v5921_v24 = vpop.f32.mrb[153].mxu0 }
0x14d8   :  { %v17576_v3 = vadd.f32 %v5921_v24, %v5711_v52 }
0x14da   :  { %v12228_v58 = vpop.f32.mrb[154].mxu0  ;;  %5988 = vmax.xlane.f32.xlu0 %v17576_v3 }
0x14db   :  { %v5931_v63 = vpop.f32.mrb[155].mxu0 }
0x14dc   :  { %v17579_v7 = vadd.f32 %v5931_v63, %v5713_v22 }
0x14de   :  { %v12231_v17 = vpop.f32.mrb[156].mxu0  ;;  %5992 = vmax.xlane.f32.xlu0 %v17579_v7 }
0x14df   :  { %v5941_v2 = vpop.f32.mrb[157].mxu0 }
0x14e0   :  { %v17582_v40 = vadd.f32 %v5941_v2, %v5715_v25 }
0x14e2   :  { %v12234_v23 = vpop.f32.mrb[158].mxu0  ;;  %5996 = vmax.xlane.f32.xlu0 %v17582_v40 }
0x14e3   :  { %v5951_v52 = vpop.f32.mrb[159].mxu0  ;;  %14232 = vrot.lane.b32.xlu1 %v17430_v6, %s15177_s22 }
0x14e4   :  { %v17587_v24 = vadd.f32 %v5951_v52, %v5717_v19  ;;  %v5917_v19 = vadd.f32 %v12222_v8, %v5710_v21  ;;  %v5712_v52 = vld [vmem:[#allocation2 + $0x228] sm:$0xff]  ;;  %v5722_v21 = vld [vmem:[#allocation2 + $0x278] sm:$0xff] }
0x14e5   :  { %v5927_v27 = vadd.f32 %v12225_v37, %v5712_v52 }
0x14e6   :  { %v12237_v22 = vpop.f32.mrb[160].mxu0  ;;  %6000 = vmax.xlane.f32.xlu0 %v17587_v24 }
0x14e7   :  { %v5961_v63 = vpop.f32.mrb[161].mxu0 }
0x14e8   :  { %v17590_v50 = vadd.f32 %v5961_v63, %v5719_v14  ;;  %v5937_v14 = vadd.f32 %v12228_v58, %v5714_v0  ;;  %v5716_v63 = vld [vmem:[#allocation2 + $0x248] sm:$0xff] }
0x14e9   :  { %v17598_v13 = vadd.f32 %v12231_v17, %v5716_v63 }
0x14ea   :  { %v12240_v25 = vpop.f32.mrb[162].mxu0  ;;  %6004 = vmax.xlane.f32.xlu0 %v17590_v50 }
0x14eb   :  { %v5971_v2 = vpop.f32.mrb[163].mxu0  ;;  %v17607_v8 = vadd.f32 %v12240_v25, %v5722_v21 }
0x14ec   :  { %v17593_v16 = vadd.f32 %v5971_v2, %v5721_v30  ;;  %v17601_v30 = vadd.f32 %v12234_v23, %v5718_v29  ;;  %v5720_v2 = vld [vmem:[#allocation2 + $0x268] sm:$0xff] }
0x14ed   :  { %v17604_v45 = vadd.f32 %v12237_v22, %v5720_v2 }
0x14ee   :  { %6008 = vmax.xlane.f32.xlu0 %v17593_v16 }
0x1504   :  { %14237 = vrot.lane.b32.xlu0 %v17440_v32, %s15177_s22 }
0x1507   :  { %5986 = vmax.xlane.f32.xlu1 %v5917_v19 }
0x150b   :  { %5990 = vmax.xlane.f32.xlu1 %v5927_v27 }
0x150f   :  { %5994 = vmax.xlane.f32.xlu1 %v5937_v14 }
0x1513   :  { %5998 = vmax.xlane.f32.xlu1 %v17598_v13 }
0x1517   :  { %6002 = vmax.xlane.f32.xlu1 %v17601_v30 }
0x151b   :  { %6006 = vmax.xlane.f32.xlu1 %v17604_v45 }
0x151f   :  { %6010 = vmax.xlane.f32.xlu1 %v17607_v8 }
0x155e   :  { %v5983_v0 = vpop.xlane.xlu0 %5982 }
0x155f   :  { %v6013_v37 = vsub.f32 %v17567_v57, %v5983_v0  ;;  %v5981_v58 = vpop.xlane.xlu1 %5980 }
0x1560   :  { %v6012_v17 = vsub.f32 %v17569_v20, %v5981_v58 }
0x1561   :  { %v6030_v29 = vmul.f32 1.442695, %v6013_v37 }
0x1562   :  { %v6028_v23 = vmul.f32 1.442695, %v6012_v17 }
0x1563   :  { %14784 = vpow2.f32 %v6030_v29  ;;  %v5985_v25 = vpop.xlane.xlu0 %5984  ;;  %v17623_v21 = vpop.permute.xlu1 %14232 }
0x1564   :  { %14786 = vpow2.f32 %v6028_v23  ;;  %v6014_v2 = vsub.f32 %v17573_v53, %v5985_v25 }
0x1566   :  { %v6032_v0 = vmul.f32 1.442695, %v6014_v2 }
0x1567   :  { %v5989_v57 = vpop.xlane.xlu0 %5988 }
0x1568   :  { %v6016_v37 = vsub.f32 %v17576_v3, %v5989_v57  ;;  %14788 = vpow2.f32 %v6032_v0 }
0x156a   :  { %v6036_v48 = vmul.f32 1.442695, %v6016_v37 }
0x156b   :  { %v5993_v20 = vpop.xlane.xlu0 %5992 }
0x156c   :  { %v6018_v25 = vsub.f32 %v17579_v7, %v5993_v20 }
0x156d   :  { %v17612_v52 = vpop.eup %14784 }
0x156e   :  { %v17614_v22 = vpop.eup %14786  ;;  %6062 = vadd.xlane.f32.xlu1 %v17612_v52 }
0x156f   :  { %6060 = vadd.xlane.f32.xlu0 %v17614_v22  ;;  %v5997_v63 = vpop.xlane.xlu0 %5996 }
0x1572   :  { %v17629_v37 = vpop.eup %14788 }
0x1573   :  { %v6001_v17 = vpop.xlane.xlu0 %6000 }
0x1574   :  { %v6022_v46 = vsub.f32 %v17587_v24, %v6001_v17 }
0x1576   :  { %v6048_v41 = vmul.f32 1.442695, %v6022_v46 }
0x157f   :  { %14242 = vrot.lane.b32.xlu1 %v17450_v12, %s15177_s22 }
0x1585   :  { %14247 = vrot.lane.b32.xlu0 %v17460_v39, %s15177_s22 }
0x1594   :  { %v5987_v58 = vpop.xlane.xlu1 %5986 }
0x1595   :  { %v6015_v29 = vsub.f32 %v5917_v19, %v5987_v58  ;;  %v6040_v19 = vmul.f32 1.442695, %v6018_v25 }
0x1597   :  { %v6034_v23 = vmul.f32 1.442695, %v6015_v29 }
0x1598   :  { %v5991_v56 = vpop.xlane.xlu1 %5990 }
0x1599   :  { %14790 = vpow2.f32 %v6034_v23  ;;  %v6017_v51 = vsub.f32 %v5927_v27, %v5991_v56 }
0x159a   :  { %14792 = vpow2.f32 %v6036_v48 }
0x159b   :  { %v6038_v26 = vmul.f32 1.442695, %v6017_v51  ;;  %v6020_v51 = vsub.f32 %v17582_v40, %v5997_v63 }
0x159c   :  { %v5995_v53 = vpop.xlane.xlu1 %5994 }
0x159d   :  { %14794 = vpow2.f32 %v6038_v26  ;;  %v6019_v2 = vsub.f32 %v5937_v14, %v5995_v53  ;;  %v6005_v26 = vpop.xlane.xlu0 %6004  ;;  %v6044_v27 = vmul.f32 1.442695, %v6020_v51 }
0x159e   :  { %14796 = vpow2.f32 %v6048_v41 }
0x159f   :  { %v6042_v3 = vmul.f32 1.442695, %v6019_v2 }
0x15a0   :  { %v5999_v57 = vpop.xlane.xlu1 %5998 }
0x15a1   :  { %14798 = vpow2.f32 %v6042_v3  ;;  %v6021_v0 = vsub.f32 %v17598_v13, %v5999_v57  ;;  %v6024_v13 = vsub.f32 %v17590_v50, %v6005_v26  ;;  %v6009_v53 = vpop.xlane.xlu0 %6008 }
0x15a2   :  { %14800 = vpow2.f32 %v6040_v19 }
0x15a3   :  { %v17631_v24 = vpop.eup %14790  ;;  %6064 = vadd.xlane.f32.xlu1 %v17629_v37  ;;  %v6046_v46 = vmul.f32 1.442695, %v6021_v0  ;;  %v6052_v17 = vmul.f32 1.442695, %v6024_v13 }
0x15a4   :  { %6066 = vadd.xlane.f32.xlu0 %v17631_v24  ;;  %v6003_v56 = vpop.xlane.xlu1 %6002  ;;  %v17636_v41 = vpop.eup %14792 }
0x15a5   :  { %14802 = vpow2.f32 %v6046_v46  ;;  %v6023_v40 = vsub.f32 %v17601_v30, %v6003_v56  ;;  %v14238_v56 = vpop.permute.xlu0 %14237 }
0x15a6   :  { %14804 = vpow2.f32 %v6044_v27 }
0x15a7   :  { %v17638_v48 = vpop.eup %14794  ;;  %v6050_v29 = vmul.f32 1.442695, %v6023_v40  ;;  %v14219_v40 = vunpack.i.l.bf16 %v17518_v18 }
0x15a8   :  { %6068 = vadd.xlane.f32.xlu0 %v17636_v41  ;;  %6070 = vadd.xlane.f32.xlu1 %v17638_v48  ;;  %v6007_v7 = vpop.xlane.xlu1 %6006  ;;  %v17645_v20 = vpop.eup %14796 }
0x15a9   :  { %v6025_v14 = vsub.f32 %v17604_v45, %v6007_v7  ;;  %v6026_v45 = vsub.f32 %v17593_v16, %v6009_v53  ;;  %v14220_v7 = vunpack.i.h.bf16 %v17518_v18  ;;  %v14225_v18 = vunpack.i.h.bf16 %v17524_v61 }
0x15ab   :  { %v17647_v63 = vpop.eup %14798  ;;  %v6054_v58 = vmul.f32 1.442695, %v6025_v14  ;;  %v6056_v3 = vmul.f32 1.442695, %v6026_v45 }
0x15ac   :  { %6080 = vadd.xlane.f32.xlu0 %v17645_v20  ;;  %6074 = vadd.xlane.f32.xlu1 %v17647_v63  ;;  %v6011_v50 = vpop.xlane.xlu1 %6010  ;;  %v17652_v30 = vpop.eup %14800 }
0x15ad   :  { %14806 = vpow2.f32 %v6054_v58  ;;  %v6027_v23 = vsub.f32 %v17607_v8, %v6011_v50 }
0x15ae   :  { %14808 = vpow2.f32 %v6052_v17  ;;  %v13431_v17 = vpack.c.bf16 %v14220_v7, %v14219_v40 }
0x15af   :  { %14810 = vpow2.f32 %v6050_v29  ;;  %v6058_v25 = vmul.f32 1.442695, %v6027_v23  ;;  %v17656_v2 = vpop.eup %14802  ;;  %v14239_v29 = vunpack.i.l.bf16 %v14238_v56 }
0x15b0   :  { %6072 = vadd.xlane.f32.xlu1 %v17652_v30  ;;  %v17659_v57 = vpop.eup %14804 }
0x15b1   :  { %14812 = vpow2.f32 %v6058_v25 }
0x15b2   :  { %14814 = vpow2.f32 %v6056_v3 }
0x15b4   :  { %6078 = vadd.xlane.f32.xlu1 %v17656_v2 }
0x15b7   :  { %v17661_v19 = vpop.eup %14806 }
0x15b8   :  { %6076 = vadd.xlane.f32.xlu1 %v17659_v57  ;;  %6086 = vadd.xlane.f32.xlu0 %v17661_v19  ;;  %v17665_v8 = vpop.eup %14808 }
0x15b9   :  { %v17667_v16 = vpop.eup %14810 }
0x15bb   :  { %v17671_v0 = vpop.eup %14812 }
0x15bc   :  { %6082 = vadd.xlane.f32.xlu1 %v17667_v16  ;;  %6084 = vadd.xlane.f32.xlu0 %v17665_v8  ;;  %v17674_v51 = vpop.eup %14814 }
0x15c0   :  { %6090 = vadd.xlane.f32.xlu1 %v17671_v0 }
0x15c4   :  { %6088 = vadd.xlane.f32.xlu1 %v17674_v51 }
0x15d2   :  { %14252 = vrot.lane.b32.xlu0 %v17470_v54, %s15177_s22 }
0x15d5   :  { %6338 = vrot.lane.b32.xlu1 %v17404_v55, %s15178_s23 }
0x15d6   :  { %6334 = vrot.lane.b32.xlu0 %v17394_v10, %s15178_s23 }
0x15d9   :  { %6342 = vrot.lane.b32.xlu1 %v17414_v49, %s15178_s23 }
0x15da   :  { %6336 = vrot.lane.b32.xlu0 %v17392_v4, %s15178_s23 }
0x15dd   :  { %6346 = vrot.lane.b32.xlu1 %v17424_v43, %s15178_s23 }
0x15de   :  { %6340 = vrot.lane.b32.xlu0 %v17402_v59, %s15178_s23 }
0x15e1   :  { %6350 = vrot.lane.b32.xlu1 %v17434_v33, %s15178_s23 }
0x15e2   :  { %6344 = vrot.lane.b32.xlu0 %v17412_v1, %s15178_s23 }
0x15e5   :  { %6354 = vrot.lane.b32.xlu1 %v17444_v9, %s15178_s23 }
0x15e6   :  { %6348 = vrot.lane.b32.xlu0 %v17422_v60, %s15178_s23 }
0x15e9   :  { %6358 = vrot.lane.b32.xlu1 %v17454_v38, %s15178_s23 }
0x15ea   :  { %6352 = vrot.lane.b32.xlu0 %v17432_v34, %s15178_s23 }
0x15ed   :  { %6362 = vrot.lane.b32.xlu1 %v17464_v15, %s15178_s23 }
0x15ee   :  { %6356 = vrot.lane.b32.xlu0 %v17442_v42, %s15178_s23 }
0x15f1   :  { %14257 = vrot.lane.b32.xlu1 %v17400_v11, %s15179_s24 }
0x15f2   :  { %6360 = vrot.lane.b32.xlu0 %v17452_v5, %s15178_s23 }
0x15f5   :  { %14267 = vrot.lane.b32.xlu1 %v17420_v36, %s15179_s24 }
0x15f6   :  { %6364 = vrot.lane.b32.xlu0 %v17462_v62, %s15178_s23 }
0x15f9   :  { %14277 = vrot.lane.b32.xlu1 %v17440_v32, %s15179_s24 }
0x15fa   :  { %14262 = vrot.lane.b32.xlu0 %v17410_v44, %s15179_s24 }
0x15fb   :  { %v6063_v26 = vpop.xlane.xlu1 %6062 }
0x15fc   :  { %14816 = vrcp.f32 %v6063_v26  ;;  %v6061_v46 = vpop.xlane.xlu0 %6060 }
0x15fd   :  { %14818 = vrcp.f32 %v6061_v46  ;;  %14287 = vrot.lane.b32.xlu1 %v17460_v39, %s15179_s24 }
0x15fe   :  { %14272 = vrot.lane.b32.xlu0 %v17430_v6, %s15179_s24 }
0x15ff   :  { %v14243_v53 = vpop.permute.xlu1 %14242 }
0x1600   :  { %v14245_v45 = vunpack.i.h.bf16 %v14243_v53  ;;  %v14244_v25 = vunpack.i.l.bf16 %v14243_v53 }
0x1601   :  { %7355 = vrot.lane.b32.xlu1 %v17394_v10, %s15180_s25 }
0x1602   :  { %14282 = vrot.lane.b32.xlu0 %v17450_v12, %s15179_s24  ;;  %v13455_v3 = vpack.c.bf16 %v14245_v45, %v14244_v25 }
0x1605   :  { %7361 = vrot.lane.b32.xlu1 %v17402_v59, %s15180_s25 }
0x1606   :  { %v14817_v27 = vpop.eup %14816  ;;  %14292 = vrot.lane.b32.xlu0 %v17470_v54, %s15179_s24 }
0x1607   :  { %v14819_v13 = vpop.eup %14818  ;;  %v6109_v58 = vmul.f32 %v14817_v27, %v17612_v52  ;;  %v14224_v52 = vunpack.i.l.bf16 %v17524_v61  ;;  %v14235_v61 = vunpack.i.h.bf16 %v17623_v21 }
0x1608   :  { %v6108_v14 = vmul.f32 %v14819_v13, %v17614_v22  ;;  %v14234_v22 = vunpack.i.l.bf16 %v17623_v21  ;;  %v14240_v21 = vunpack.i.h.bf16 %v14238_v56  ;;  %v14248_v56 = vpop.permute.xlu0 %14247 }
0x1609   :  { %7367 = vrot.lane.b32.xlu1 %v17424_v43, %s15180_s25  ;;  %v14250_v26 = vunpack.i.h.bf16 %v14248_v56  ;;  %v14249_v46 = vunpack.i.l.bf16 %v14248_v56 }
0x160a   :  { %12273 = vmatprep.mubr.f32.mxu1 %v6108_v14  ;;  %7357 = vrot.lane.b32.xlu0 %v17392_v4, %s15180_s25  ;;  %v13443_v50 = vpack.c.bf16 %v14235_v61, %v14234_v22  ;;  %v13449_v23 = vpack.c.bf16 %v14240_v21, %v14239_v29 }
0x160b   :  { %12274 = vmatmul.mubr.f32.vlgmr.msra.gmra.mrb[132].mxu1 %v6109_v58  ;;  %v13461_v7 = vpack.c.bf16 %v14250_v26, %v14249_v46 }
0x160c   :  { %13430 = vmatpush3.bf16.xpose.msk.msra.mxu1 %vm15617_vm3, %v17532_v35  ;;  %v13437_v35 = vpack.c.bf16 %v14225_v18, %v14224_v52 }
0x160d   :  { %13433 = vmatprep.subr.msk.bf16.mxu1 %vm15617_vm3, %v13431_v17  ;;  %7369 = vrot.lane.b32.xlu1 %v17422_v60, %s15180_s25 }
0x160e   :  { %7359 = vrot.lane.b32.xlu0 %v17404_v55, %s15180_s25 }
0x1611   :  { %7371 = vrot.lane.b32.xlu1 %v17434_v33, %s15180_s25 }
0x1612   :  { %7363 = vrot.lane.b32.xlu0 %v17414_v49, %s15180_s25 }
0x1614   :  { %13436 = vmatpush3.bf16.xpose.msk.msra.mxu1 %vm15617_vm3, %v13431_v17 }
0x1615   :  { %13439 = vmatprep.subr.msk.bf16.mxu1 %vm15617_vm3, %v13437_v35  ;;  %7373 = vrot.lane.b32.xlu1 %v17432_v34, %s15180_s25 }
0x1616   :  { %7365 = vrot.lane.b32.xlu0 %v17412_v1, %s15180_s25 }
0x1619   :  { %7375 = vrot.lane.b32.xlu1 %v17444_v9, %s15180_s25 }
0x161a   :  { %7383 = vrot.lane.b32.xlu0 %v17464_v15, %s15180_s25 }
0x161c   :  { %13442 = vmatpush3.bf16.xpose.msk.msra.mxu1 %vm15617_vm3, %v13437_v35 }
0x161d   :  { %13445 = vmatprep.subr.msk.bf16.mxu1 %vm15617_vm3, %v13443_v50  ;;  %7377 = vrot.lane.b32.xlu1 %v17442_v42, %s15180_s25 }
0x161e   :  { %14312 = vrot.lane.b32.xlu0 %v17430_v6, %s15181_s26 }
0x1621   :  { %7379 = vrot.lane.b32.xlu1 %v17454_v38, %s15180_s25 }
0x1622   :  { %14327 = vrot.lane.b32.xlu0 %v17460_v39, %s15181_s26 }
0x1624   :  { %13448 = vmatpush3.bf16.xpose.msk.msra.mxu1 %vm15617_vm3, %v13443_v50 }
0x1625   :  { %13451 = vmatprep.subr.msk.bf16.mxu1 %vm15617_vm3, %v13449_v23  ;;  %7381 = vrot.lane.b32.xlu1 %v17452_v5, %s15180_s25 }
0x1629   :  { %7385 = vrot.lane.b32.xlu1 %v17462_v62, %s15180_s25 }
0x162c   :  { %13454 = vmatpush3.bf16.xpose.msk.msra.mxu1 %vm15617_vm3, %v13449_v23 }
0x162d   :  { %13457 = vmatprep.subr.msk.bf16.mxu1 %vm15617_vm3, %v13455_v3  ;;  %14297 = vrot.lane.b32.xlu1 %v17400_v11, %s15181_s26 }
0x1630   :  { %v6065_v27 = vpop.xlane.xlu1 %6064 }
0x1631   :  { %14820 = vrcp.f32 %v6065_v27  ;;  %v6067_v13 = vpop.xlane.xlu0 %6066  ;;  %14302 = vrot.lane.b32.xlu1 %v17410_v44, %s15181_s26 }
0x1632   :  { %14822 = vrcp.f32 %v6067_v13 }
0x1634   :  { %13460 = vmatpush3.bf16.xpose.msk.msra.mxu1 %vm15617_vm3, %v13455_v3 }
0x1635   :  { %13463 = vmatprep.subr.msk.bf16.mxu1 %vm15617_vm3, %v13461_v7  ;;  %v6069_v40 = vpop.xlane.xlu0 %6068  ;;  %14307 = vrot.lane.b32.xlu1 %v17420_v36, %s15181_s26  ;;  %v6071_v14 = vpop.xlane.xlu1 %6070 }
0x1636   :  { %14824 = vrcp.f32 %v6069_v40 }
0x1637   :  { %14826 = vrcp.f32 %v6071_v14 }
0x1639   :  { %14317 = vrot.lane.b32.xlu1 %v17440_v32, %s15181_s26  ;;  %v6075_v58 = vpop.xlane.xlu1 %6074  ;;  %v6081_v21 = vpop.xlane.xlu0 %6080 }
0x163a   :  { %14828 = vrcp.f32 %v6075_v58 }
0x163b   :  { %v14821_v17 = vpop.eup %14820 }
0x163c   :  { %v14823_v18 = vpop.eup %14822  ;;  %13466 = vmatpush3.bf16.xpose.msk.msra.mxu1 %vm15617_vm3, %v13461_v7  ;;  %v6110_v52 = vmul.f32 %v14821_v17, %v17629_v37 }
0x163d   :  { %14322 = vrot.lane.b32.xlu1 %v17450_v12, %s15181_s26  ;;  %v6073_v35 = vpop.xlane.xlu1 %6072  ;;  %v6111_v61 = vmul.f32 %v14823_v18, %v17631_v24 }
0x163e   :  { %14830 = vrcp.f32 %v6073_v35  ;;  %12276 = vmatprep.mubr.f32.mxu1 %v6110_v52 }
0x163f   :  { %12277 = vmatmul.mubr.f32.gmra.mrb[134].mxu1 %v6111_v61  ;;  %14832 = vrcp.f32 %v6081_v21 }
0x1640   :  { %v14825_v22 = vpop.eup %14824 }
0x1641   :  { %v14827_v50 = vpop.eup %14826  ;;  %v6079_v29 = vpop.xlane.xlu1 %6078  ;;  %v6112_v23 = vmul.f32 %v14825_v22, %v17636_v41 }
0x1642   :  { %v6113_v53 = vmul.f32 %v14827_v50, %v17638_v48  ;;  %14834 = vrcp.f32 %v6079_v29 }
0x1643   :  { %12279 = vmatprep.mubr.f32.mxu1 %v6112_v23 }
0x1644   :  { %12280 = vmatmul.mubr.f32.gmra.mrb[136].mxu1 %v6113_v53  ;;  %v14829_v25 = vpop.eup %14828 }
0x1645   :  { %v6087_v37 = vpop.xlane.xlu0 %6086  ;;  %v6077_v45 = vpop.xlane.xlu1 %6076  ;;  %v6115_v46 = vmul.f32 %v14829_v25, %v17647_v63 }
0x1646   :  { %14836 = vrcp.f32 %v6077_v45 }
0x1648   :  { %v14831_v24 = vpop.eup %14830 }
0x1649   :  { %v6085_v3 = vpop.xlane.xlu0 %6084  ;;  %v6083_v56 = vpop.xlane.xlu1 %6082  ;;  %v6114_v26 = vmul.f32 %v14831_v24, %v17652_v30 }
0x164a   :  { %14838 = vrcp.f32 %v6085_v3  ;;  %v14833_v7 = vpop.eup %14832 }
0x164b   :  { %14840 = vrcp.f32 %v6083_v56  ;;  %12282 = vmatprep.mubr.f32.mxu1 %v6114_v26  ;;  %v6118_v35 = vmul.f32 %v14833_v7, %v17645_v20 }
0x164c   :  { %12283 = vmatmul.mubr.f32.gmra.mrb[138].mxu1 %v6115_v46  ;;  %14842 = vrcp.f32 %v6087_v37  ;;  %v14835_v40 = vpop.eup %14834 }
0x164d   :  { %v14253_v41 = vpop.permute.xlu0 %14252  ;;  %v6091_v48 = vpop.xlane.xlu1 %6090  ;;  %v6117_v30 = vmul.f32 %v14835_v40, %v17656_v2 }
0x164e   :  { %v14255_v27 = vunpack.i.h.bf16 %v14253_v41  ;;  %v14254_v13 = vunpack.i.l.bf16 %v14253_v41  ;;  %14844 = vrcp.f32 %v6091_v48 }
0x1650   :  { %v13467_v14 = vpack.c.bf16 %v14255_v27, %v14254_v13  ;;  %v14837_v58 = vpop.eup %14836 }
0x1651   :  { %v6335_v17 = vpop.permute.xlu0 %6334  ;;  %v6089_v18 = vpop.xlane.xlu1 %6088  ;;  %v6116_v63 = vmul.f32 %v14837_v58, %v17659_v57 }
0x1652   :  { %14846 = vrcp.f32 %v6089_v18  ;;  %13469 = vmatprep.subr.msk.bf16.mxu1 %vm15617_vm3, %v13467_v14 }
0x1653   :  { %13472 = vmatpush3.bf16.xpose.msk.msra.mxu1 %vm15617_vm3, %v13467_v14  ;;  %12285 = vmatprep.mubr.f32.mxu1 %v6116_v63 }
0x1654   :  { %v14839_v52 = vpop.eup %14838  ;;  %12286 = vmatmul.mubr.f32.gmra.mrb[140].mxu1 %v6117_v30 }
0x1655   :  { %v14841_v61 = vpop.eup %14840  ;;  %v6337_v22 = vpop.permute.xlu0 %6336  ;;  %12288 = vmatprep.mubr.f32.mxu1 %v6118_v35  ;;  %v6120_v23 = vmul.f32 %v14839_v52, %v17665_v8 }
0x1656   :  { %v6339_v50 = vpop.permute.xlu1 %6338  ;;  %v6119_v21 = vmul.f32 %v14841_v61, %v17667_v16  ;;  %v14843_v29 = vpop.eup %14842 }
0x1657   :  { %v6121_v2 = vmul.f32 %v14843_v29, %v17661_v19 }
0x1658   :  { %12289 = vmatmul.mubr.f32.gmra.mrb[142].mxu1 %v6119_v21  ;;  %v14845_v37 = vpop.eup %14844 }
0x1659   :  { %v6341_v57 = vpop.permute.xlu0 %6340  ;;  %12291 = vmatprep.mubr.f32.mxu1 %v6120_v23  ;;  %v6123_v3 = vmul.f32 %v14845_v37, %v17671_v0 }
0x165a   :  { %v6343_v53 = vpop.permute.xlu1 %6342 }
0x165c   :  { %v14847_v45 = vpop.eup %14846  ;;  %12292 = vmatmul.mubr.f32.gmra.mrb[144].mxu1 %v6121_v2 }
0x165d   :  { %v6345_v20 = vpop.permute.xlu0 %6344  ;;  %v6122_v24 = vmul.f32 %v14847_v45, %v17674_v51 }
0x165e   :  { %v6347_v25 = vpop.permute.xlu1 %6346 }
0x165f   :  { %12294 = vmatprep.mubr.f32.mxu1 %v6122_v24 }
0x1660   :  { %12295 = vmatmul.mubr.f32.gmra.mrb[146].mxu1 %v6123_v3 }
0x1661   :  { %v6349_v16 = vpop.permute.xlu0 %6348  ;;  %12329 = vmatprep.mubr.msk.f32.mxu1 %vm945_vm2, %v6335_v17 }
0x1662   :  { %v6351_v56 = vpop.permute.xlu1 %6350 }
0x1664   :  { %12330 = vmatmul.mubr.msk.f32.vlgmr.msra.gmra.mrb[148].mxu1 %vm945_vm2, %v6337_v22 }
0x1665   :  { %v6353_v8 = vpop.permute.xlu0 %6352  ;;  %12332 = vmatprep.mubr.msk.f32.mxu1 %vm945_vm2, %v6339_v50 }
0x1666   :  { %v6355_v26 = vpop.permute.xlu1 %6354 }
0x1668   :  { %12333 = vmatmul.mubr.msk.f32.gmra.mrb[150].mxu1 %vm945_vm2, %v6341_v57 }
0x1669   :  { %v6357_v19 = vpop.permute.xlu0 %6356  ;;  %12335 = vmatprep.mubr.msk.f32.mxu1 %vm945_vm2, %v6343_v53 }
0x166a   :  { %v6359_v46 = vpop.permute.xlu1 %6358 }
0x166c   :  { %12336 = vmatmul.mubr.msk.f32.gmra.mrb[152].mxu1 %vm945_vm2, %v6345_v20 }
0x166d   :  { %v6361_v0 = vpop.permute.xlu0 %6360  ;;  %12338 = vmatprep.mubr.msk.f32.mxu1 %vm945_vm2, %v6347_v25 }
0x166e   :  { %v6363_v51 = vpop.permute.xlu1 %6362 }
0x1670   :  { %12339 = vmatmul.mubr.msk.f32.gmra.mrb[154].mxu1 %vm945_vm2, %v6349_v16 }
0x1671   :  { %v6365_v41 = vpop.permute.xlu0 %6364  ;;  %12341 = vmatprep.mubr.msk.f32.mxu1 %vm945_vm2, %v6351_v56 }
0x1672   :  { %v14258_v48 = vpop.permute.xlu1 %14257 }
0x1673   :  { %v14260_v27 = vunpack.i.h.bf16 %v14258_v48  ;;  %v14259_v13 = vunpack.i.l.bf16 %v14258_v48 }
0x1674   :  { %12342 = vmatmul.mubr.msk.f32.gmra.mrb[156].mxu1 %vm945_vm2, %v6353_v8 }
0x1675   :  { %v13505_v7 = vpack.c.bf16 %v14260_v27, %v14259_v13  ;;  %v14263_v40 = vpop.permute.xlu0 %14262  ;;  %12344 = vmatprep.mubr.msk.f32.mxu1 %vm945_vm2, %v6355_v26 }
0x1676   :  { %v14268_v14 = vpop.permute.xlu1 %14267  ;;  %v14265_v58 = vunpack.i.h.bf16 %v14263_v40  ;;  %v14264_v17 = vunpack.i.l.bf16 %v14263_v40 }
0x1677   :  { %13507 = vmatprep.subr.msk.bf16.mxu1 %vm15617_vm3, %v13505_v7  ;;  %v14270_v30 = vunpack.i.h.bf16 %v14268_v14  ;;  %v14269_v52 = vunpack.i.l.bf16 %v14268_v14 }
0x1678   :  { %13510 = vmatpush3.bf16.xpose.msk.msra.mxu1 %vm15617_vm3, %v13505_v7  ;;  %v13511_v18 = vpack.c.bf16 %v14265_v58, %v14264_v17 }
0x1679   :  { %12345 = vmatmul.mubr.msk.f32.gmra.mrb[158].mxu1 %vm945_vm2, %v6357_v19  ;;  %v13517_v61 = vpack.c.bf16 %v14270_v30, %v14269_v52  ;;  %v14273_v22 = vpop.permute.xlu0 %14272 }
0x167a   :  { %v14278_v63 = vpop.permute.xlu1 %14277  ;;  %12347 = vmatprep.mubr.msk.f32.mxu1 %vm945_vm2, %v6359_v46  ;;  %13513 = vmatprep.subr.msk.bf16.mxu1 %vm15617_vm3, %v13511_v18  ;;  %v14275_v21 = vunpack.i.h.bf16 %v14273_v22  ;;  %v14274_v29 = vunpack.i.l.bf16 %v14273_v22 }
0x167b   :  { %v14280_v2 = vunpack.i.h.bf16 %v14278_v63  ;;  %v14279_v45 = vunpack.i.l.bf16 %v14278_v63 }
0x167c   :  { %v13523_v57 = vpack.c.bf16 %v14275_v21, %v14274_v29 }
0x167d   :  { %12348 = vmatmul.mubr.msk.f32.gmra.mrb[160].mxu1 %vm945_vm2, %v6361_v0  ;;  %v14283_v53 = vpop.permute.xlu0 %14282  ;;  %v13529_v25 = vpack.c.bf16 %v14280_v2, %v14279_v45 }
0x167e   :  { %v14288_v35 = vpop.permute.xlu1 %14287  ;;  %12350 = vmatprep.mubr.msk.f32.mxu1 %vm945_vm2, %v6363_v51  ;;  %v14285_v16 = vunpack.i.h.bf16 %v14283_v53  ;;  %v14284_v56 = vunpack.i.l.bf16 %v14283_v53 }
0x167f   :  { %v14290_v0 = vunpack.i.h.bf16 %v14288_v35  ;;  %v14289_v51 = vunpack.i.l.bf16 %v14288_v35 }
0x1680   :  { %13516 = vmatpush3.bf16.xpose.msk.msra.mxu1 %vm15617_vm3, %v13511_v18  ;;  %v13535_v19 = vpack.c.bf16 %v14285_v16, %v14284_v56 }
0x1681   :  { %13519 = vmatprep.subr.msk.bf16.mxu1 %vm15617_vm3, %v13517_v61  ;;  %12351 = vmatmul.mubr.msk.f32.gmra.mrb[162].mxu1 %vm945_vm2, %v6365_v41  ;;  %v14293_v24 = vpop.permute.xlu0 %14292  ;;  %v13541_v27 = vpack.c.bf16 %v14290_v0, %v14289_v51 }
0x1682   :  { %v7356_v50 = vpop.permute.xlu1 %7355  ;;  %v14295_v40 = vunpack.i.h.bf16 %v14293_v24  ;;  %v14294_v14 = vunpack.i.l.bf16 %v14293_v24 }
0x1683   :  { %12493 = vmatprep.mubr.msk.f32.mxu1 %vm945_vm2, %v7356_v50 }
0x1684   :  { %v13547_v17 = vpack.c.bf16 %v14295_v40, %v14294_v14 }
0x1685   :  { %v7358_v8 = vpop.permute.xlu0 %7357 }
0x1686   :  { %v17853_v23 = vpop.permute.xlu1 %7361 }
0x1688   :  { %13522 = vmatpush3.bf16.xpose.msk.msra.mxu1 %vm15617_vm3, %v13517_v61 }
0x1689   :  { %13525 = vmatprep.subr.msk.bf16.mxu1 %vm15617_vm3, %v13523_v57  ;;  %v7360_v41 = vpop.permute.xlu0 %7359 }
0x168a   :  { %v17859_v37 = vpop.permute.xlu1 %7367 }
0x168d   :  { %v7364_v13 = vpop.permute.xlu0 %7363 }
0x168e   :  { %v17861_v20 = vpop.permute.xlu1 %7369 }
0x1690   :  { %13528 = vmatpush3.bf16.xpose.msk.msra.mxu1 %vm15617_vm3, %v13523_v57 }
0x1691   :  { %13531 = vmatprep.subr.msk.bf16.mxu1 %vm15617_vm3, %v13529_v25  ;;  %v7366_v18 = vpop.permute.xlu0 %7365 }
0x1692   :  { %v17867_v3 = vpop.permute.xlu1 %7371 }
0x1695   :  { %v7384_v30 = vpop.permute.xlu0 %7383 }
0x1696   :  { %v17869_v26 = vpop.permute.xlu1 %7373 }
0x1698   :  { %13534 = vmatpush3.bf16.xpose.msk.msra.mxu1 %vm15617_vm3, %v13529_v25 }
0x1699   :  { %13537 = vmatprep.subr.msk.bf16.mxu1 %vm15617_vm3, %v13535_v19  ;;  %v14313_v57 = vpop.permute.xlu0 %14312 }
0x169a   :  { %v17875_v46 = vpop.permute.xlu1 %7375  ;;  %v14315_v45 = vunpack.i.h.bf16 %v14313_v57  ;;  %v14314_v25 = vunpack.i.l.bf16 %v14313_v57  ;;  %v6319_v57 = vld [vmem:[#allocation2 + $0x288] sm:$0xff] }
0x169e   :  { %v17877_v48 = vpop.permute.xlu1 %7377 }
0x16a0   :  { %13540 = vmatpush3.bf16.xpose.msk.msra.mxu1 %vm15617_vm3, %v13535_v19 }
0x16a1   :  { %13543 = vmatprep.subr.msk.bf16.mxu1 %vm15617_vm3, %v13541_v27 }
0x16a2   :  { %v17883_v7 = vpop.permute.xlu1 %7379 }
0x16a6   :  { %v7382_v58 = vpop.permute.xlu1 %7381 }
0x16a8   :  { %13546 = vmatpush3.bf16.xpose.msk.msra.mxu1 %vm15617_vm3, %v13541_v27  ;;  %v13485_v27 = vpack.c.bf16 %v14315_v45, %v14314_v25 }
0x16a9   :  { %13549 = vmatprep.subr.msk.bf16.mxu1 %vm15617_vm3, %v13547_v17 }
0x16aa   :  { %v7386_v63 = vpop.permute.xlu1 %7385 }
0x16ae   :  { %v14298_v52 = vpop.permute.xlu1 %14297 }
0x16af   :  { %v14300_v35 = vunpack.i.h.bf16 %v14298_v52  ;;  %v14299_v61 = vunpack.i.l.bf16 %v14298_v52 }
0x16b0   :  { %13552 = vmatpush3.bf16.xpose.msk.msra.mxu1 %vm15617_vm3, %v13547_v17 }
0x16b1   :  { %v13473_v22 = vpack.c.bf16 %v14300_v35, %v14299_v61 }
0x16b2   :  { %v14303_v50 = vpop.permute.xlu1 %14302 }
0x16b3   :  { %v14305_v21 = vunpack.i.h.bf16 %v14303_v50  ;;  %v14304_v29 = vunpack.i.l.bf16 %v14303_v50  ;;  %13474 = vmatprep.subr.bf16.mxu0 %v13473_v22 }
0x16b4   :  { %13476 = vmatpush3.bf16.msra.mxu0 %v13473_v22 }
0x16b5   :  { %v13477_v53 = vpack.c.bf16 %v14305_v21, %v14304_v29 }
0x16b6   :  { %v14308_v2 = vpop.permute.xlu1 %14307 }
0x16b7   :  { %v14310_v24 = vunpack.i.h.bf16 %v14308_v2  ;;  %v14309_v16 = vunpack.i.l.bf16 %v14308_v2  ;;  %13478 = vmatprep.subr.bf16.mxu0 %v13477_v53  ;;  %12494 = vmatmul.mubr.msk.f32.vlgmr.msra.gmra.mrb[164].mxu1 %vm945_vm2, %v7358_v8 }
0x16b8   :  { %13480 = vmatpush3.bf16.msra.mxu0 %v13477_v53  ;;  %12496 = vmatprep.mubr.msk.f32.mxu1 %vm945_vm2, %v7360_v41  ;;  %v14328_v41 = vpop.permute.xlu0 %14327  ;;  %v6318_v53 = vld [vmem:[#allocation2 + $0x280] sm:$0xff] }
0x16b9   :  { %v13481_v56 = vpack.c.bf16 %v14310_v24, %v14309_v16  ;;  %v14330_v52 = vunpack.i.h.bf16 %v14328_v41  ;;  %v14329_v35 = vunpack.i.l.bf16 %v14328_v41  ;;  %v6321_v16 = vld [vmem:[#allocation2 + $0x298] sm:$0xff] }
0x16ba   :  { %v14318_v19 = vpop.permute.xlu1 %14317 }
0x16bb   :  { %v14320_v0 = vunpack.i.h.bf16 %v14318_v19  ;;  %v14319_v51 = vunpack.i.l.bf16 %v14318_v19  ;;  %13482 = vmatprep.subr.bf16.mxu0 %v13481_v56  ;;  %12497 = vmatmul.mubr.msk.f32.gmra.mrb[166].mxu1 %vm945_vm2, %v17853_v23 }
0x16bc   :  { %13484 = vmatpush3.bf16.msra.mxu0 %v13481_v56  ;;  %12499 = vmatprep.mubr.msk.f32.mxu1 %vm945_vm2, %v7364_v13  ;;  %v13497_v13 = vpack.c.bf16 %v14330_v52, %v14329_v35  ;;  %v6325_v52 = vld [vmem:[#allocation2 + $0x2b8] sm:$0xff] }
0x16bd   :  { %13486 = vmatprep.subr.bf16.mxu0 %v13485_v27  ;;  %v13489_v8 = vpack.c.bf16 %v14320_v0, %v14319_v51  ;;  %v6320_v51 = vld [vmem:[#allocation2 + $0x290] sm:$0xff] }
0x16be   :  { %v14323_v40 = vpop.permute.xlu1 %14322 }
0x16bf   :  { %v14325_v14 = vunpack.i.h.bf16 %v14323_v40  ;;  %v14324_v17 = vunpack.i.l.bf16 %v14323_v40  ;;  %12500 = vmatmul.mubr.msk.f32.gmra.mrb[168].mxu1 %vm945_vm2, %v7366_v18 }
0x16c0   :  { %13488 = vmatpush3.bf16.msra.mxu0 %v13485_v27  ;;  %12502 = vmatprep.mubr.msk.f32.mxu1 %vm945_vm2, %v17859_v37  ;;  %v6322_v27 = vld [vmem:[#allocation2 + $0x2a0] sm:$0xff] }
0x16c1   :  { %13490 = vmatprep.subr.bf16.mxu0 %v13489_v8  ;;  %v13493_v23 = vpack.c.bf16 %v14325_v14, %v14324_v17 }
0x16c3   :  { %12503 = vmatmul.mubr.msk.f32.gmra.mrb[170].mxu1 %vm945_vm2, %v17861_v20 }
0x16c4   :  { %13492 = vmatpush3.bf16.msra.mxu0 %v13489_v8  ;;  %12505 = vmatprep.mubr.msk.f32.mxu1 %vm945_vm2, %v17867_v3  ;;  %v6323_v8 = vld [vmem:[#allocation2 + $0x2a8] sm:$0xff] }
0x16c5   :  { %13494 = vmatprep.subr.bf16.mxu0 %v13493_v23 }
0x16c7   :  { %12506 = vmatmul.mubr.msk.f32.gmra.mrb[172].mxu1 %vm945_vm2, %v17869_v26 }
0x16c8   :  { %13496 = vmatpush3.bf16.msra.mxu0 %v13493_v23  ;;  %12508 = vmatprep.mubr.msk.f32.mxu1 %vm945_vm2, %v17875_v46 }
0x16c9   :  { %13498 = vmatprep.subr.bf16.mxu0 %v13497_v13 }
0x16cb   :  { %12509 = vmatmul.mubr.msk.f32.gmra.mrb[174].mxu1 %vm945_vm2, %v17877_v48 }
0x16cc   :  { %13500 = vmatpush3.bf16.msra.mxu0 %v13497_v13  ;;  %12511 = vmatprep.mubr.msk.f32.mxu1 %vm945_vm2, %v17883_v7 }
0x16cf   :  { %12512 = vmatmul.mubr.msk.f32.gmra.mrb[176].mxu1 %vm945_vm2, %v7382_v58 }
0x16d0   :  { %12514 = vmatprep.mubr.msk.f32.mxu1 %vm945_vm2, %v7384_v30 }
0x16d3   :  { %12515 = vmatmul.mubr.msk.f32.gmra.mrb[178].mxu1 %vm945_vm2, %v7386_v63 }
0x16de   :  { %v17914_v37 = vpop.f32.mrb[132].mxu1 }
0x16df   :  { %19179 = vst [vmem:[#allocation17_spill] sm:$0xff] %v17914_v37  ;;  %v17916_v20 = vpop.f32.mrb[133].mxu1 }
0x16e0   :  { %19180 = vst [vmem:[#allocation20_spill] sm:$0xff] %v17916_v20 }
0x1712   :  { %v17918_v3 = vpop.f32.mrb[134].mxu1 }
0x1713   :  { %19181 = vst [vmem:[#allocation19_spill] sm:$0xff] %v17918_v3  ;;  %v17920_v26 = vpop.f32.mrb[135].mxu1 }
0x1714   :  { %19182 = vst [vmem:[#allocation22_spill] sm:$0xff] %v17920_v26 }
0x1717   :  { %v17922_v46 = vpop.f32.mrb[136].mxu1 }
0x1718   :  { %19183 = vst [vmem:[#allocation21_spill] sm:$0xff] %v17922_v46  ;;  %v17924_v48 = vpop.f32.mrb[137].mxu1 }
0x1719   :  { %19184 = vst [vmem:[#allocation29_spill] sm:$0xff] %v17924_v48 }
0x171f   :  { %v17926_v18 = vpop.f32.mrb[138].mxu1 }
0x1720   :  { %19185 = vst [vmem:[#allocation30_spill] sm:$0xff] %v17926_v18  ;;  %v17928_v7 = vpop.f32.mrb[139].mxu1 }
0x1721   :  { %19186 = vst [vmem:[#allocation31_spill] sm:$0xff] %v17928_v7 }
0x1727   :  { %v17930_v58 = vpop.f32.mrb[140].mxu1 }
0x1728   :  { %19187 = vst [vmem:[#allocation32_spill] sm:$0xff] %v17930_v58  ;;  %v17932_v30 = vpop.f32.mrb[141].mxu1 }
0x1729   :  { %19188 = vst [vmem:[#allocation33_spill] sm:$0xff] %v17932_v30 }
0x172b   :  { %v17934_v63 = vpop.f32.mrb[142].mxu1 }
0x172c   :  { %19189 = vst [vmem:[#allocation34_spill] sm:$0xff] %v17934_v63  ;;  %v17936_v61 = vpop.f32.mrb[143].mxu1 }
0x172d   :  { %19190 = vst [vmem:[#allocation35_spill] sm:$0xff] %v17936_v61 }
0x172f   :  { %v17938_v22 = vpop.f32.mrb[144].mxu1 }
0x1730   :  { %19191 = vst [vmem:[#allocation36_spill] sm:$0xff] %v17938_v22  ;;  %v17940_v50 = vpop.f32.mrb[145].mxu1 }
0x1731   :  { %19192 = vst [vmem:[#allocation37_spill] sm:$0xff] %v17940_v50 }
0x1733   :  { %v17942_v21 = vpop.f32.mrb[146].mxu1 }
0x1734   :  { %19193 = vst [vmem:[#allocation38_spill] sm:$0xff] %v17942_v21  ;;  %v17944_v29 = vpop.f32.mrb[147].mxu1 }
0x1735   :  { %19194 = vst [vmem:[#allocation39_spill] sm:$0xff] %v17944_v29 }
0x1737   :  { %v12331_v2 = vpop.f32.mrb[148].mxu1 }
0x1738   :  { %v17946_v45 = vadd.f32 %v12331_v2, %v6319_v57  ;;  %v6528_v25 = vpop.f32.mrb[149].mxu1 }
0x1739   :  { %v17948_v24 = vadd.f32 %v6528_v25, %v6318_v53 }
0x173a   :  { %6609 = vmax.xlane.f32.xlu0 %v17946_v45 }
0x173b   :  { %v12334_v56 = vpop.f32.mrb[150].mxu1  ;;  %6607 = vmax.xlane.f32.xlu1 %v17948_v24 }
0x173c   :  { %v17952_v19 = vadd.f32 %v12334_v56, %v6321_v16  ;;  %v6538_v0 = vpop.f32.mrb[151].mxu1 }
0x173d   :  { %v17955_v14 = vadd.f32 %v6538_v0, %v6320_v51 }
0x173e   :  { %6613 = vmax.xlane.f32.xlu0 %v17952_v19 }
0x173f   :  { %v12337_v40 = vpop.f32.mrb[152].mxu1 }
0x1740   :  { %v6548_v17 = vpop.f32.mrb[153].mxu1  ;;  %v17961_v23 = vadd.f32 %v12337_v40, %v6323_v8  ;;  %v6324_v40 = vld [vmem:[#allocation2 + $0x2b0] sm:$0xff]  ;;  %v6327_v8 = vld [vmem:[#allocation2 + $0x2c8] sm:$0xff] }
0x1741   :  { %v17957_v41 = vadd.f32 %v6548_v17, %v6322_v27 }
0x1742   :  { %6611 = vmax.xlane.f32.xlu0 %v17955_v14 }
0x1743   :  { %v12340_v35 = vpop.f32.mrb[154].mxu1  ;;  %6615 = vmax.xlane.f32.xlu1 %v17957_v41 }
0x1744   :  { %v17963_v13 = vadd.f32 %v12340_v35, %v6325_v52  ;;  %v6558_v57 = vpop.f32.mrb[155].mxu1  ;;  %v6326_v35 = vld [vmem:[#allocation2 + $0x2c0] sm:$0xff] }
0x1745   :  { %v17973_v17 = vadd.f32 %v6558_v57, %v6324_v40  ;;  %v6328_v57 = vld [vmem:[#allocation2 + $0x2d0] sm:$0xff] }
0x1746   :  { %6617 = vmax.xlane.f32.xlu0 %v17961_v23 }
0x1747   :  { %v12343_v53 = vpop.f32.mrb[156].mxu1  ;;  %6621 = vmax.xlane.f32.xlu1 %v17963_v13 }
0x1748   :  { %v6568_v2 = vpop.f32.mrb[157].mxu1  ;;  %v17976_v52 = vadd.f32 %v12343_v53, %v6327_v8 }
0x1749   :  { %v17979_v28 = vadd.f32 %v6568_v2, %v6326_v35  ;;  %v6331_v2 = vld [vmem:[#allocation2 + $0x2e8] sm:$0xff] }
0x174c   :  { %v12346_v25 = vpop.f32.mrb[158].mxu1 }
0x174d   :  { %v6578_v16 = vpop.f32.mrb[159].mxu1  ;;  %v17984_v29 = vadd.f32 %v12346_v25, %v6329_v31  ;;  %v6330_v25 = vld [vmem:[#allocation2 + $0x2e0] sm:$0xff] }
0x174e   :  { %v17991_v53 = vadd.f32 %v6578_v16, %v6328_v57  ;;  %v6333_v57 = vld [vmem:[#allocation2 + $0x2f8] sm:$0xff] }
0x1750   :  { %v12349_v56 = vpop.f32.mrb[160].mxu1 }
0x1751   :  { %v6588_v0 = vpop.f32.mrb[161].mxu1  ;;  %v17998_v50 = vadd.f32 %v12349_v56, %v6331_v2  ;;  %v6332_v2 = vld [vmem:[#allocation2 + $0x2f0] sm:$0xff] }
0x1752   :  { %v18005_v61 = vadd.f32 %v6588_v0, %v6330_v25 }
0x1754   :  { %v12352_v51 = vpop.f32.mrb[162].mxu1 }
0x1755   :  { %v6598_v27 = vpop.f32.mrb[163].mxu1  ;;  %v18012_v30 = vadd.f32 %v12352_v51, %v6333_v57 }
0x1756   :  { %v18019_v7 = vadd.f32 %v6598_v27, %v6332_v2 }
0x1758   :  { %14332 = vrot.lane.b32.xlu1 %v17470_v54, %s15181_s26 }
0x175c   :  { %14337 = vrot.lane.b32.xlu0 %v17400_v11, %s15182_s27 }
0x1760   :  { %14342 = vrot.lane.b32.xlu0 %v17410_v44, %s15182_s27 }
0x177f   :  { %6619 = vmax.xlane.f32.xlu0 %v17973_v17 }
0x1783   :  { %6625 = vmax.xlane.f32.xlu0 %v17976_v52 }
0x1787   :  { %6623 = vmax.xlane.f32.xlu0 %v17979_v28 }
0x178a   :  { %v17982_v21 = vpop.f32.mrb[164].mxu1 }
0x178b   :  { %v17986_v22 = vpop.f32.mrb[165].mxu1  ;;  %6629 = vmax.xlane.f32.xlu0 %v17984_v29 }
0x178e   :  { %v17989_v40 = vpop.f32.mrb[166].mxu1 }
0x178f   :  { %v17993_v8 = vpop.f32.mrb[167].mxu1  ;;  %6627 = vmax.xlane.f32.xlu0 %v17991_v53 }
0x1792   :  { %v17996_v35 = vpop.f32.mrb[168].mxu1 }
0x1793   :  { %19195 = vst [vmem:[#allocation40_spill] sm:$0xff] %v17996_v35  ;;  %v18000_v31 = vpop.f32.mrb[169].mxu1  ;;  %6633 = vmax.xlane.f32.xlu0 %v17998_v50 }
0x1796   :  { %v18003_v63 = vpop.f32.mrb[170].mxu1 }
0x1797   :  { %v18007_v16 = vpop.f32.mrb[171].mxu1  ;;  %6631 = vmax.xlane.f32.xlu0 %v18005_v61 }
0x179a   :  { %v18010_v58 = vpop.f32.mrb[172].mxu1 }
0x179b   :  { %v18014_v56 = vpop.f32.mrb[173].mxu1  ;;  %6637 = vmax.xlane.f32.xlu0 %v18012_v30 }
0x179e   :  { %v18017_v18 = vpop.f32.mrb[174].mxu1 }
0x179f   :  { %v18021_v0 = vpop.f32.mrb[175].mxu1  ;;  %6635 = vmax.xlane.f32.xlu0 %v18019_v7 }
0x17a2   :  { %v18024_v25 = vpop.f32.mrb[176].mxu1 }
0x17a3   :  { %19196 = vst [vmem:[#allocation41_spill] sm:$0xff] %v18024_v25  ;;  %v18026_v46 = vpop.f32.mrb[177].mxu1 }
0x17a4   :  { %19197 = vst [vmem:[#allocation42_spill] sm:$0xff] %v18026_v46 }
0x17a6   :  { %v18028_v48 = vpop.f32.mrb[178].mxu1 }
0x17a7   :  { %19198 = vst [vmem:[#allocation43_spill] sm:$0xff] %v18028_v48  ;;  %v18030_v51 = vpop.f32.mrb[179].mxu1 }
0x17a8   :  { %19199 = vst [vmem:[#allocation44_spill] sm:$0xff] %v18030_v51 }
0x17c7   :  { %v6610_v57 = vpop.xlane.xlu0 %6609 }
0x17c8   :  { %v6640_v3 = vsub.f32 %v17946_v45, %v6610_v57  ;;  %v6608_v26 = vpop.xlane.xlu1 %6607 }
0x17c9   :  { %v6639_v37 = vsub.f32 %v17948_v24, %v6608_v26 }
0x17ca   :  { %v6657_v27 = vmul.f32 1.442695, %v6640_v3 }
0x17cb   :  { %v6655_v2 = vmul.f32 1.442695, %v6639_v37  ;;  %v6614_v20 = vpop.xlane.xlu0 %6613 }
0x17cc   :  { %14848 = vpow2.f32 %v6657_v27  ;;  %v6642_v44 = vsub.f32 %v17952_v19, %v6614_v20 }
0x17cd   :  { %14850 = vpow2.f32 %v6655_v2 }
0x17ce   :  { %v6661_v11 = vmul.f32 1.442695, %v6642_v44 }
0x17cf   :  { %v6612_v35 = vpop.xlane.xlu0 %6611 }
0x17d0   :  { %14852 = vpow2.f32 %v6661_v11  ;;  %v6641_v48 = vsub.f32 %v17955_v14, %v6612_v35  ;;  %v6616_v25 = vpop.xlane.xlu1 %6615 }
0x17d1   :  { %v6643_v51 = vsub.f32 %v17957_v41, %v6616_v25 }
0x17d2   :  { %v6659_v46 = vmul.f32 1.442695, %v6641_v48 }
0x17d3   :  { %v6663_v45 = vmul.f32 1.442695, %v6643_v51  ;;  %v6618_v57 = vpop.xlane.xlu0 %6617 }
0x17d4   :  { %14854 = vpow2.f32 %v6659_v46  ;;  %v6644_v3 = vsub.f32 %v17961_v23, %v6618_v57  ;;  %v6622_v37 = vpop.xlane.xlu1 %6621 }
0x17d5   :  { %14856 = vpow2.f32 %v6663_v45 }
0x17d6   :  { %v18038_v26 = vpop.eup %14848  ;;  %v6665_v20 = vmul.f32 1.442695, %v6644_v3 }
0x17d7   :  { %v18040_v24 = vpop.eup %14850  ;;  %6689 = vadd.xlane.f32.xlu0 %v18038_v26  ;;  %v14338_v11 = vpop.permute.xlu0 %14337 }
0x17d8   :  { %14858 = vpow2.f32 %v6665_v20  ;;  %v14340_v44 = vunpack.i.h.bf16 %v14338_v11  ;;  %v14339_v19 = vunpack.i.l.bf16 %v14338_v11  ;;  %6687 = vadd.xlane.f32.xlu1 %v18040_v24  ;;  %v14333_v48 = vpop.permute.xlu1 %14332  ;;  %v6646_v20 = vsub.f32 %v17963_v13, %v6622_v37 }
0x17d9   :  { %v14335_v14 = vunpack.i.h.bf16 %v14333_v48  ;;  %v14334_v46 = vunpack.i.l.bf16 %v14333_v48 }
0x17da   :  { %v18044_v41 = vpop.eup %14852  ;;  %v13585_v23 = vpack.c.bf16 %v14340_v44, %v14339_v19  ;;  %v6669_v44 = vmul.f32 1.442695, %v6646_v20 }
0x17db   :  { %6693 = vadd.xlane.f32.xlu0 %v18044_v41  ;;  %v14343_v35 = vpop.permute.xlu0 %14342  ;;  %v13501_v25 = vpack.c.bf16 %v14335_v14, %v14334_v46 }
0x17dc   :  { %v14345_v51 = vunpack.i.h.bf16 %v14343_v35  ;;  %v14344_v27 = vunpack.i.l.bf16 %v14343_v35  ;;  %13587 = vmatprep.subr.msk.bf16.mxu1 %vm15617_vm3, %v13585_v23  ;;  %14860 = vpow2.f32 %v6669_v44 }
0x17dd   :  { %13502 = vmatprep.subr.bf16.mxu0 %v13501_v25  ;;  %13590 = vmatpush3.bf16.xpose.msk.msra.mxu1 %vm15617_vm3, %v13585_v23 }
0x17de   :  { %v18051_v2 = vpop.eup %14854  ;;  %v13591_v45 = vpack.c.bf16 %v14345_v51, %v14344_v27  ;;  %13504 = vmatpush3.bf16.msra.mxu0 %v13501_v25 }
0x17df   :  { %v18053_v57 = vpop.eup %14856  ;;  %6691 = vadd.xlane.f32.xlu0 %v18051_v2 }
0x17e0   :  { %13593 = vmatprep.subr.msk.bf16.mxu1 %vm15617_vm3, %v13591_v45  ;;  %6695 = vadd.xlane.f32.xlu1 %v18053_v57 }
0x17e2   :  { %v18059_v3 = vpop.eup %14858 }
0x17e3   :  { %6697 = vadd.xlane.f32.xlu0 %v18059_v3 }
0x17e5   :  { %13596 = vmatpush3.bf16.xpose.msk.msra.mxu1 %vm15617_vm3, %v13591_v45 }
0x17e6   :  { %v18075_v37 = vpop.eup %14860 }
0x17f1   :  { %14347 = vrot.lane.b32.xlu1 %v17420_v36, %s15182_s27 }
0x17f9   :  { %14352 = vrot.lane.b32.xlu0 %v17430_v6, %s15182_s27 }
0x17fd   :  { %14357 = vrot.lane.b32.xlu0 %v17440_v32, %s15182_s27 }
0x180c   :  { %v6620_v11 = vpop.xlane.xlu0 %6619 }
0x180d   :  { %v6645_v19 = vsub.f32 %v17973_v17, %v6620_v11 }
0x180f   :  { %v6667_v48 = vmul.f32 1.442695, %v6645_v19 }
0x1810   :  { %v6626_v14 = vpop.xlane.xlu0 %6625 }
0x1811   :  { %v6648_v46 = vsub.f32 %v17976_v52, %v6626_v14  ;;  %14862 = vpow2.f32 %v6667_v48 }
0x1813   :  { %v6673_v23 = vmul.f32 1.442695, %v6648_v46 }
0x1814   :  { %v6624_v35 = vpop.xlane.xlu0 %6623 }
0x1815   :  { %14864 = vpow2.f32 %v6673_v23  ;;  %v6647_v25 = vsub.f32 %v17979_v28, %v6624_v35 }
0x1817   :  { %v6671_v51 = vmul.f32 1.442695, %v6647_v25 }
0x1818   :  { %v6630_v27 = vpop.xlane.xlu0 %6629 }
0x1819   :  { %14866 = vpow2.f32 %v6671_v51  ;;  %v6650_v13 = vsub.f32 %v17984_v29, %v6630_v27 }
0x181b   :  { %v6677_v45 = vmul.f32 1.442695, %v6650_v13  ;;  %v18079_v20 = vpop.eup %14862 }
0x181c   :  { %v6628_v17 = vpop.xlane.xlu0 %6627  ;;  %6701 = vadd.xlane.f32.xlu0 %v18075_v37 }
0x181d   :  { %14868 = vpow2.f32 %v6677_v45  ;;  %v6649_v52 = vsub.f32 %v17991_v53, %v6628_v17 }
0x181f   :  { %v18081_v11 = vpop.eup %14864  ;;  %v6675_v44 = vmul.f32 1.442695, %v6649_v52 }
0x1820   :  { %v6634_v28 = vpop.xlane.xlu0 %6633  ;;  %6705 = vadd.xlane.f32.xlu1 %v18081_v11  ;;  %6699 = vadd.xlane.f32.xlu0 %v18079_v20 }
0x1821   :  { %14870 = vpow2.f32 %v6675_v44  ;;  %v6652_v29 = vsub.f32 %v17998_v50, %v6634_v28 }
0x1823   :  { %v18086_v19 = vpop.eup %14866  ;;  %v6681_v48 = vmul.f32 1.442695, %v6652_v29 }
0x1824   :  { %v6632_v14 = vpop.xlane.xlu0 %6631  ;;  %6703 = vadd.xlane.f32.xlu0 %v18086_v19 }
0x1825   :  { %14872 = vpow2.f32 %v6681_v48  ;;  %v6651_v53 = vsub.f32 %v18005_v61, %v6632_v14 }
0x1827   :  { %v18090_v46 = vpop.eup %14868  ;;  %v6679_v23 = vmul.f32 1.442695, %v6651_v53 }
0x1828   :  { %v6638_v35 = vpop.xlane.xlu0 %6637  ;;  %6709 = vadd.xlane.f32.xlu1 %v18090_v46 }
0x1829   :  { %14874 = vpow2.f32 %v6679_v23  ;;  %v6654_v25 = vsub.f32 %v18012_v30, %v6638_v35 }
0x182b   :  { %v18094_v51 = vpop.eup %14870  ;;  %v6685_v50 = vmul.f32 1.442695, %v6654_v25 }
0x182c   :  { %v6636_v27 = vpop.xlane.xlu0 %6635  ;;  %6707 = vadd.xlane.f32.xlu0 %v18094_v51 }
0x182d   :  { %14876 = vpow2.f32 %v6685_v50  ;;  %v6653_v13 = vsub.f32 %v18019_v7, %v6636_v27 }
0x182f   :  { %v18098_v45 = vpop.eup %14872  ;;  %v6683_v61 = vmul.f32 1.442695, %v6653_v13 }
0x1830   :  { %6713 = vadd.xlane.f32.xlu1 %v18098_v45 }
0x1831   :  { %14878 = vpow2.f32 %v6683_v61 }
0x1833   :  { %v18101_v17 = vpop.eup %14874 }
0x1834   :  { %6711 = vadd.xlane.f32.xlu0 %v18101_v17 }
0x1837   :  { %v18104_v30 = vpop.eup %14876 }
0x1838   :  { %6717 = vadd.xlane.f32.xlu0 %v18104_v30 }
0x183b   :  { %v18107_v52 = vpop.eup %14878 }
0x183c   :  { %6715 = vadd.xlane.f32.xlu0 %v18107_v52 }
0x1841   :  { %14372 = vrot.lane.b32.xlu1 %v17470_v54, %s15182_s27 }
0x1845   :  { %8197 = vrot.lane.b32.xlu1 %v17392_v4, %s15183_s28 }
0x1849   :  { %8201 = vrot.lane.b32.xlu1 %v17402_v59, %s15183_s28 }
0x184d   :  { %8205 = vrot.lane.b32.xlu1 %v17412_v1, %s15183_s28 }
0x1851   :  { %8209 = vrot.lane.b32.xlu1 %v17422_v60, %s15183_s28 }
0x1852   :  { %14362 = vrot.lane.b32.xlu0 %v17450_v12, %s15182_s27 }
0x1855   :  { %8213 = vrot.lane.b32.xlu1 %v17432_v34, %s15183_s28 }
0x1856   :  { %14367 = vrot.lane.b32.xlu0 %v17460_v39, %s15182_s27 }
0x1859   :  { %8217 = vrot.lane.b32.xlu1 %v17442_v42, %s15183_s28 }
0x185a   :  { %8195 = vrot.lane.b32.xlu0 %v17394_v10, %s15183_s28 }
0x185d   :  { %8221 = vrot.lane.b32.xlu1 %v17452_v5, %s15183_s28 }
0x185e   :  { %8199 = vrot.lane.b32.xlu0 %v17404_v55, %s15183_s28 }
0x1861   :  { %8223 = vrot.lane.b32.xlu1 %v17464_v15, %s15183_s28 }
0x1862   :  { %8203 = vrot.lane.b32.xlu0 %v17414_v49, %s15183_s28 }
0x1864   :  { %v6690_v4 = vpop.xlane.xlu0 %6689 }
0x1865   :  { %14880 = vrcp.f32 %v6690_v4  ;;  %v6688_v59 = vpop.xlane.xlu1 %6687 }
0x1866   :  { %14882 = vrcp.f32 %v6688_v59  ;;  %8207 = vrot.lane.b32.xlu0 %v17424_v43, %s15183_s28  ;;  %v7339_v59 = vld [vmem:[#allocation2 + $0x300] sm:$0xff] }
0x1868   :  { %v6694_v10 = vpop.xlane.xlu0 %6693 }
0x1869   :  { %14884 = vrcp.f32 %v6694_v10  ;;  %v7343_v10 = vld [vmem:[#allocation2 + $0x320] sm:$0xff] }
0x186a   :  { %8211 = vrot.lane.b32.xlu0 %v17434_v33, %s15183_s28 }
0x186c   :  { %v6692_v1 = vpop.xlane.xlu0 %6691 }
0x186d   :  { %14886 = vrcp.f32 %v6692_v1  ;;  %v6696_v55 = vpop.xlane.xlu1 %6695  ;;  %v18180_v1 = vadd.f32 %v18000_v31, %v7343_v10  ;;  %v7348_v31 = vld [vmem:[#allocation2 + $0x348] sm:$0xff] }
0x186e   :  { %14888 = vrcp.f32 %v6696_v55  ;;  %8215 = vrot.lane.b32.xlu0 %v17444_v9, %s15183_s28 }
0x186f   :  { %v14881_v49 = vpop.eup %14880 }
0x1870   :  { %v14883_v60 = vpop.eup %14882  ;;  %v6698_v34 = vpop.xlane.xlu0 %6697  ;;  %v6736_v33 = vmul.f32 %v14881_v49, %v18038_v26 }
0x1871   :  { %14890 = vrcp.f32 %v6698_v34  ;;  %v14348_v42 = vpop.permute.xlu1 %14347  ;;  %v6735_v5 = vmul.f32 %v14883_v60, %v18040_v24  ;;  %v7347_v60 = vld [vmem:[#allocation2 + $0x340] sm:$0xff]  ;;  %v18197_v34 = vadd.f32 %v18010_v58, %v7348_v31 }
0x1872   :  { %v14350_v43 = vunpack.i.h.bf16 %v14348_v42  ;;  %v14349_v15 = vunpack.i.l.bf16 %v14348_v42  ;;  %8219 = vrot.lane.b32.xlu0 %v17454_v38, %s15183_s28 }
0x1873   :  { %12385 = vmatprep.mubr.f32.mxu0 %v6735_v5  ;;  %v14885_v29 = vpop.eup %14884 }
0x1874   :  { %v13597_v7 = vpack.c.bf16 %v14350_v43, %v14349_v15  ;;  %v14353_v44 = vpop.permute.xlu0 %14352  ;;  %12386 = vmatmul.mubr.f32.vlgmr.msra.gmra.mrb[164].mxu0 %v6736_v33  ;;  %v6738_v26 = vmul.f32 %v14885_v29, %v18044_v41  ;;  %v19200_v43 = vld [vmem:[#allocation42_spill] sm:$0xff] }
0x1875   :  { %v14355_v28 = vunpack.i.h.bf16 %v14353_v44  ;;  %v14354_v9 = vunpack.i.l.bf16 %v14353_v44  ;;  %v7352_v33 = vld [vmem:[#allocation2 + $0x368] sm:$0xff]  ;;  %v19201_v44 = vld [vmem:[#allocation41_spill] sm:$0xff] }
0x1876   :  { %13599 = vmatprep.subr.msk.bf16.mxu1 %vm15617_vm3, %v13597_v7 }
0x1877   :  { %v14887_v48 = vpop.eup %14886  ;;  %v13603_v14 = vpack.c.bf16 %v14355_v28, %v14354_v9  ;;  %13602 = vmatpush3.bf16.xpose.msk.msra.mxu1 %vm15617_vm3, %v13597_v7  ;;  %v7354_v28 = vld [vmem:[#allocation2 + $0x378] sm:$0xff]  ;;  %v19202_v9 = vld [vmem:[#allocation43_spill] sm:$0xff] }
0x1878   :  { %v14889_v24 = vpop.eup %14888  ;;  %v14358_v53 = vpop.permute.xlu0 %14357  ;;  %v6737_v38 = vmul.f32 %v14887_v48, %v18051_v2  ;;  %v7340_v2 = vld [vmem:[#allocation2 + $0x308] sm:$0xff]  ;;  %v18219_v29 = vadd.f32 %v19202_v9, %v7354_v28 }
0x1879   :  { %13605 = vmatprep.subr.msk.bf16.mxu1 %vm15617_vm3, %v13603_v14  ;;  %v6739_v23 = vmul.f32 %v14889_v24, %v18053_v57  ;;  %v14360_v35 = vunpack.i.h.bf16 %v14358_v53  ;;  %v14359_v25 = vunpack.i.l.bf16 %v14358_v53  ;;  %v18163_v41 = vadd.f32 %v17982_v21, %v7340_v2  ;;  %v7341_v57 = vld [vmem:[#allocation2 + $0x310] sm:$0xff] }
0x187a   :  { %12388 = vmatprep.mubr.f32.mxu0 %v6737_v38  ;;  %v18167_v61 = vadd.f32 %v17993_v8, %v7341_v57  ;;  %v18177_v21 = vadd.f32 %v17986_v22, %v7339_v59  ;;  %v7345_v8 = vld [vmem:[#allocation2 + $0x330] sm:$0xff]  ;;  %v18193_v22 = vadd.f32 %v18014_v56, %v7347_v60  ;;  %v7351_v56 = vld [vmem:[#allocation2 + $0x360] sm:$0xff] }
0x187b   :  { %v14891_v50 = vpop.eup %14890  ;;  %12389 = vmatmul.mubr.f32.gmra.mrb[166].mxu0 %v6738_v26  ;;  %v13609_v13 = vpack.c.bf16 %v14360_v35, %v14359_v25  ;;  %v18185_v55 = vadd.f32 %v18007_v16, %v7345_v8  ;;  %v7349_v16 = vld [vmem:[#allocation2 + $0x350] sm:$0xff]  ;;  %v18211_v15 = vadd.f32 %v19200_v43, %v7351_v56 }
0x187c   :  { %12391 = vmatprep.mubr.f32.mxu0 %v6739_v23  ;;  %v6740_v27 = vmul.f32 %v14891_v50, %v18059_v3  ;;  %v7342_v3 = vld [vmem:[#allocation2 + $0x318] sm:$0xff]  ;;  %v18201_v42 = vadd.f32 %v18021_v0, %v7349_v16 }
0x187d   :  { %v18173_v4 = vadd.f32 %v17989_v40, %v7342_v3  ;;  %v7346_v40 = vld [vmem:[#allocation2 + $0x338] sm:$0xff] }
0x187e   :  { %v18189_v49 = vadd.f32 %v18003_v63, %v7346_v40  ;;  %v7350_v63 = vld [vmem:[#allocation2 + $0x358] sm:$0xff] }
0x187f   :  { %12392 = vmatmul.mubr.f32.gmra.mrb[168].mxu0 %v6740_v27  ;;  %13608 = vmatpush3.bf16.xpose.msk.msra.mxu1 %vm15617_vm3, %v13603_v14  ;;  %v18205_v5 = vadd.f32 %v18017_v18, %v7350_v63  ;;  %v18215_v18 = vadd.f32 %v19201_v44, %v7352_v33  ;;  %v19203_v3 = vld [vmem:[#allocation40_spill] sm:$0xff] }
0x1880   :  { %13611 = vmatprep.subr.msk.bf16.mxu1 %vm15617_vm3, %v13609_v13  ;;  %v19204_v40 = vld [vmem:[#allocation44_spill] sm:$0xff] }
0x1885   :  { %7630 = vmax.xlane.f32.xlu1 %v18163_v41 }
0x1887   :  { %13614 = vmatpush3.bf16.xpose.msk.msra.mxu1 %vm15617_vm3, %v13609_v13  ;;  %v7344_v13 = vld [vmem:[#allocation2 + $0x328] sm:$0xff] }
0x1888   :  { %v18227_v59 = vadd.f32 %v19203_v3, %v7344_v13 }
0x1889   :  { %7632 = vmax.xlane.f32.xlu1 %v18167_v61 }
0x188d   :  { %7634 = vmax.xlane.f32.xlu1 %v18173_v4 }
0x1891   :  { %7636 = vmax.xlane.f32.xlu1 %v18180_v1  ;;  %7628 = vmax.xlane.f32.xlu0 %v18177_v21 }
0x1895   :  { %7640 = vmax.xlane.f32.xlu1 %v18185_v55 }
0x1899   :  { %7642 = vmax.xlane.f32.xlu1 %v18189_v49 }
0x189d   :  { %7644 = vmax.xlane.f32.xlu1 %v18193_v22 }
0x18a1   :  { %7646 = vmax.xlane.f32.xlu1 %v18197_v34 }
0x18a5   :  { %7648 = vmax.xlane.f32.xlu1 %v18201_v42 }
0x18a7   :  { %8225 = vrot.lane.b32.xlu0 %v17462_v62, %s15183_s28 }
0x18a9   :  { %7650 = vmax.xlane.f32.xlu1 %v18205_v5  ;;  %v6702_v58 = vpop.xlane.xlu0 %6701 }
0x18aa   :  { %14892 = vrcp.f32 %v6702_v58 }
0x18ad   :  { %7652 = vmax.xlane.f32.xlu1 %v18211_v15  ;;  %v6700_v0 = vpop.xlane.xlu0 %6699  ;;  %v6706_v7 = vpop.xlane.xlu1 %6705 }
0x18ae   :  { %14894 = vrcp.f32 %v6700_v0 }
0x18af   :  { %14896 = vrcp.f32 %v6706_v7 }
0x18b1   :  { %7654 = vmax.xlane.f32.xlu1 %v18215_v18  ;;  %v6704_v62 = vpop.xlane.xlu0 %6703 }
0x18b2   :  { %14898 = vrcp.f32 %v6704_v62 }
0x18b4   :  { %v14893_v14 = vpop.eup %14892 }
0x18b5   :  { %7658 = vmax.xlane.f32.xlu1 %v18219_v29  ;;  %v6710_v48 = vpop.xlane.xlu1 %6709  ;;  %v6742_v26 = vmul.f32 %v14893_v14, %v18075_v37  ;;  %v7353_v37 = vld [vmem:[#allocation2 + $0x370] sm:$0xff] }
0x18b6   :  { %14900 = vrcp.f32 %v6710_v48  ;;  %v18237_v60 = vadd.f32 %v19204_v40, %v7353_v37 }
0x18b8   :  { %v14895_v24 = vpop.eup %14894 }
0x18b9   :  { %v6708_v53 = vpop.xlane.xlu0 %6707  ;;  %v6741_v38 = vmul.f32 %v14895_v24, %v18079_v20  ;;  %v14897_v23 = vpop.eup %14896 }
0x18ba   :  { %14902 = vrcp.f32 %v6708_v53  ;;  %v6744_v27 = vmul.f32 %v14897_v23, %v18081_v11 }
0x18bb   :  { %12394 = vmatprep.mubr.f32.mxu0 %v6741_v38 }
0x18bc   :  { %v14899_v35 = vpop.eup %14898  ;;  %12395 = vmatmul.mubr.f32.gmra.mrb[170].mxu0 %v6742_v26 }
0x18bd   :  { %v6743_v25 = vmul.f32 %v14899_v35, %v18086_v19  ;;  %v6714_v50 = vpop.xlane.xlu1 %6713  ;;  %v15142_v19 = vld [vmem:[%s19074_s3 + $0x40] sm:$0xff] }
0x18be   :  { %14904 = vrcp.f32 %v6714_v50  ;;  %v19206_v50 = vld [vmem:[#allocation18_spill] sm:$0xff] }
0x18bf   :  { %12397 = vmatprep.mubr.f32.mxu0 %v6743_v25  ;;  %v15143_v25 = vld [vmem:[%s19074_s3 + $0x50] sm:$0xff] }
0x18c0   :  { %12398 = vmatmul.mubr.f32.gmra.mrb[172].mxu0 %v6744_v27  ;;  %v14901_v57 = vpop.eup %14900 }
0x18c1   :  { %v6712_v2 = vpop.xlane.xlu0 %6711  ;;  %v6746_v11 = vmul.f32 %v14901_v57, %v18090_v46  ;;  %v14373_v44 = vpop.permute.xlu1 %14372 }
0x18c2   :  { %14906 = vrcp.f32 %v6712_v2  ;;  %v14375_v24 = vunpack.i.h.bf16 %v14373_v44  ;;  %v14374_v53 = vunpack.i.l.bf16 %v14373_v44 }
0x18c4   :  { %v14903_v20 = vpop.eup %14902  ;;  %v13627_v23 = vpack.c.bf16 %v14375_v24, %v14374_v53 }
0x18c5   :  { %v6718_v10 = vpop.xlane.xlu0 %6717  ;;  %v6745_v8 = vmul.f32 %v14903_v20, %v18094_v51  ;;  %v19205_v51 = vld [vmem:[#allocation15_spill] sm:$0xff]  ;;  %v8198_v26 = vpop.permute.xlu1 %8197 }
0x18c6   :  { %7142 = vrot.lane.b32.xlu1 %v15142_v19, %s15184_s8  ;;  %7638 = vmax.xlane.f32.xlu0 %v18227_v59  ;;  %14908 = vrcp.f32 %v6718_v10 }
0x18c7   :  { %12400 = vmatprep.mubr.f32.mxu0 %v6745_v8 }
0x18c8   :  { %12401 = vmatmul.mubr.f32.gmra.mrb[174].mxu0 %v6746_v11  ;;  %v14905_v16 = vpop.eup %14904 }
0x18c9   :  { %v6716_v31 = vpop.xlane.xlu0 %6715  ;;  %v6748_v33 = vmul.f32 %v14905_v16, %v18098_v45 }
0x18ca   :  { %14910 = vrcp.f32 %v6716_v31  ;;  %14377 = vrot.lane.b32.xlu1 %v19205_v51, %s15185_s9  ;;  %7656 = vmax.xlane.f32.xlu0 %v18237_v60 }
0x18cc   :  { %v14907_v63 = vpop.eup %14906 }
0x18cd   :  { %v14363_v56 = vpop.permute.xlu0 %14362  ;;  %v6747_v58 = vmul.f32 %v14907_v63, %v18101_v17 }
0x18ce   :  { %v14365_v43 = vunpack.i.h.bf16 %v14363_v56  ;;  %v14364_v46 = vunpack.i.l.bf16 %v14363_v56  ;;  %14392 = vrot.lane.b32.xlu1 %v17430_v6, %s15185_s9 }
0x18cf   :  { %12403 = vmatprep.mubr.f32.mxu0 %v6747_v58 }
0x18d0   :  { %v13615_v0 = vpack.c.bf16 %v14365_v43, %v14364_v46  ;;  %12404 = vmatmul.mubr.f32.gmra.mrb[176].mxu0 %v6748_v33  ;;  %v14909_v17 = vpop.eup %14908 }
0x18d1   :  { %v14368_v7 = vpop.permute.xlu0 %14367  ;;  %v6750_v38 = vmul.f32 %v14909_v17, %v18104_v30 }
0x18d2   :  { %v14370_v28 = vunpack.i.h.bf16 %v14368_v7  ;;  %v14369_v62 = vunpack.i.l.bf16 %v14368_v7  ;;  %14402 = vrot.lane.b32.xlu1 %v17450_v12, %s15185_s9  ;;  %13617 = vmatprep.subr.msk.bf16.mxu1 %vm15617_vm3, %v13615_v0 }
0x18d3   :  { %13620 = vmatpush3.bf16.xpose.msk.msra.mxu1 %vm15617_vm3, %v13615_v0 }
0x18d4   :  { %v14911_v9 = vpop.eup %14910  ;;  %v13621_v48 = vpack.c.bf16 %v14370_v28, %v14369_v62 }
0x18d5   :  { %v8196_v45 = vpop.permute.xlu0 %8195  ;;  %v6749_v14 = vmul.f32 %v14911_v9, %v18107_v52  ;;  %v8202_v52 = vpop.permute.xlu1 %8201 }
0x18d6   :  { %13623 = vmatprep.subr.msk.bf16.mxu1 %vm15617_vm3, %v13621_v48  ;;  %12631 = vmatprep.mubr.msk.f32.mxu1 %vm945_vm2, %v8196_v45 }
0x18d7   :  { %12406 = vmatprep.mubr.f32.mxu0 %v6749_v14 }
0x18d8   :  { %12407 = vmatmul.mubr.f32.gmra.mrb[178].mxu0 %v6750_v38 }
0x18d9   :  { %v8200_v35 = vpop.permute.xlu0 %8199  ;;  %v8206_v30 = vpop.permute.xlu1 %8205 }
0x18db   :  { %13626 = vmatpush3.bf16.xpose.msk.msra.mxu1 %vm15617_vm3, %v13621_v48 }
0x18dc   :  { %13629 = vmatprep.subr.msk.bf16.mxu1 %vm15617_vm3, %v13627_v23 }
0x18dd   :  { %v8204_v27 = vpop.permute.xlu0 %8203  ;;  %v8210_v13 = vpop.permute.xlu1 %8209 }
0x18e0   :  { %6945 = vrot.lane.b32.xlu0 %v15143_v25, %s15184_s8 }
0x18e1   :  { %v8208_v2 = vpop.permute.xlu0 %8207  ;;  %v8214_v47 = vpop.permute.xlu1 %8213 }
0x18e3   :  { %13632 = vmatpush3.bf16.xpose.msk.msra.mxu1 %vm15617_vm3, %v13627_v23 }
0x18e4   :  { %14382 = vrot.lane.b32.xlu0 %v19206_v50, %s15185_s9 }
0x18e5   :  { %v8212_v57 = vpop.permute.xlu0 %8211  ;;  %v8218_v20 = vpop.permute.xlu1 %8217 }
0x18e8   :  { %14387 = vrot.lane.b32.xlu0 %v17420_v36, %s15185_s9 }
0x18e9   :  { %v8216_v3 = vpop.permute.xlu0 %8215  ;;  %v8222_v37 = vpop.permute.xlu1 %8221 }
0x18ea   :  { %12632 = vmatmul.mubr.msk.f32.vlgmr.msra.gmra.mrb[180].mxu1 %vm945_vm2, %v8198_v26 }
0x18eb   :  { %12634 = vmatprep.mubr.msk.f32.mxu1 %vm945_vm2, %v8200_v35 }
0x18ec   :  { %14397 = vrot.lane.b32.xlu0 %v17440_v32, %s15185_s9 }
0x18ed   :  { %v8220_v10 = vpop.permute.xlu0 %8219  ;;  %v8224_v8 = vpop.permute.xlu1 %8223 }
0x18ee   :  { %12635 = vmatmul.mubr.msk.f32.gmra.mrb[182].mxu1 %vm945_vm2, %v8202_v52 }
0x18ef   :  { %12637 = vmatprep.mubr.msk.f32.mxu1 %vm945_vm2, %v8204_v27 }
0x18f2   :  { %12638 = vmatmul.mubr.msk.f32.gmra.mrb[184].mxu1 %vm945_vm2, %v8206_v30 }
0x18f3   :  { %12640 = vmatprep.mubr.msk.f32.mxu1 %vm945_vm2, %v8208_v2 }
0x18f6   :  { %12641 = vmatmul.mubr.msk.f32.gmra.mrb[186].mxu1 %vm945_vm2, %v8210_v13 }
0x18f7   :  { %12643 = vmatprep.mubr.msk.f32.mxu1 %vm945_vm2, %v8212_v57 }
0x18fa   :  { %12644 = vmatmul.mubr.msk.f32.gmra.mrb[188].mxu1 %vm945_vm2, %v8214_v47 }
0x18fb   :  { %12646 = vmatprep.mubr.msk.f32.mxu1 %vm945_vm2, %v8216_v3 }
0x18fe   :  { %12647 = vmatmul.mubr.msk.f32.gmra.mrb[190].mxu1 %vm945_vm2, %v8218_v20 }
0x18ff   :  { %12649 = vmatprep.mubr.msk.f32.mxu1 %vm945_vm2, %v8220_v10 }
0x1902   :  { %12650 = vmatmul.mubr.msk.f32.gmra.mrb[192].mxu1 %vm945_vm2, %v8222_v37 }
0x1903   :  { %12652 = vmatprep.mubr.msk.f32.mxu1 %vm945_vm2, %v8224_v8 }
0x1912   :  { %v7631_v19 = vpop.xlane.xlu1 %7630 }
0x1913   :  { %v7661_v11 = vsub.f32 %v18163_v41, %v7631_v19 }
0x1915   :  { %v7678_v40 = vmul.f32 1.442695, %v7661_v11 }
0x1916   :  { %v7633_v31 = vpop.xlane.xlu1 %7632 }
0x1917   :  { %14912 = vpow2.f32 %v7678_v40  ;;  %v7662_v28 = vsub.f32 %v18167_v61, %v7633_v31 }
0x191a   :  { %v7635_v16 = vpop.xlane.xlu1 %7634 }
0x191b   :  { %v7663_v58 = vsub.f32 %v18173_v4, %v7635_v16 }
0x191d   :  { %v7682_v62 = vmul.f32 1.442695, %v7663_v58 }
0x191e   :  { %v7629_v63 = vpop.xlane.xlu0 %7628  ;;  %v7637_v56 = vpop.xlane.xlu1 %7636 }
0x191f   :  { %v7660_v43 = vsub.f32 %v18177_v21, %v7629_v63  ;;  %v7664_v46 = vsub.f32 %v18180_v1, %v7637_v56  ;;  %v7680_v21 = vmul.f32 1.442695, %v7662_v28 }
0x1921   :  { %v18291_v33 = vpop.eup %14912  ;;  %v7676_v0 = vmul.f32 1.442695, %v7660_v43  ;;  %v7684_v7 = vmul.f32 1.442695, %v7664_v46 }
0x1922   :  { %v8226_v44 = vpop.permute.xlu0 %8225  ;;  %7710 = vadd.xlane.f32.xlu0 %v18291_v33  ;;  %v18294_v41 = vpop.xlane.xlu1 %7640 }
0x1923   :  { %14914 = vpow2.f32 %v7676_v0  ;;  %12653 = vmatmul.mubr.msk.f32.gmra.mrb[194].mxu1 %vm945_vm2, %v8226_v44  ;;  %v7666_v44 = vsub.f32 %v18185_v55, %v18294_v41 }
0x1924   :  { %14916 = vpow2.f32 %v7684_v7 }
0x1925   :  { %14918 = vpow2.f32 %v7682_v62  ;;  %v7688_v62 = vmul.f32 1.442695, %v7666_v44 }
0x1926   :  { %v18298_v4 = vpop.xlane.xlu1 %7642  ;;  %14920 = vpow2.f32 %v7680_v21 }
0x1927   :  { %v7667_v7 = vsub.f32 %v18189_v49, %v18298_v4 }
0x1929   :  { %v7690_v28 = vmul.f32 1.442695, %v7667_v7 }
0x192a   :  { %v7645_v1 = vpop.xlane.xlu1 %7644 }
0x192b   :  { %v7668_v30 = vsub.f32 %v18193_v22, %v7645_v1 }
0x192d   :  { %v18300_v17 = vpop.eup %14914  ;;  %v7692_v20 = vmul.f32 1.442695, %v7668_v30 }
0x192e   :  { %v18302_v9 = vpop.eup %14916  ;;  %7708 = vadd.xlane.f32.xlu1 %v18300_v17  ;;  %v18305_v48 = vpop.xlane.xlu1 %7646 }
0x192f   :  { %7716 = vadd.xlane.f32.xlu0 %v18302_v9  ;;  %v18308_v61 = vpop.eup %14918  ;;  %v7669_v21 = vsub.f32 %v18197_v34, %v18305_v48 }
0x1930   :  { %v18313_v14 = vpop.eup %14920 }
0x1932   :  { %7714 = vadd.xlane.f32.xlu1 %v18308_v61  ;;  %v18311_v45 = vpop.xlane.xlu1 %7648 }
0x1936   :  { %7712 = vadd.xlane.f32.xlu1 %v18313_v14  ;;  %v7651_v24 = vpop.xlane.xlu1 %7650 }
0x1937   :  { %v7671_v3 = vsub.f32 %v18205_v5, %v7651_v24 }
0x1939   :  { %v7698_v19 = vmul.f32 1.442695, %v7671_v3 }
0x193a   :  { %v18316_v53 = vpop.xlane.xlu1 %7652 }
0x193b   :  { %v7672_v41 = vsub.f32 %v18211_v15, %v18316_v53 }
0x193e   :  { %v7655_v38 = vpop.xlane.xlu1 %7654 }
0x193f   :  { %v7673_v11 = vsub.f32 %v18215_v18, %v7655_v38  ;;  %v7694_v38 = vmul.f32 1.442695, %v7669_v21 }
0x1941   :  { %v7702_v16 = vmul.f32 1.442695, %v7673_v11  ;;  %v19209_v11 = vld [vmem:[#allocation22_spill] sm:$0xff] }
0x1942   :  { %v7659_v52 = vpop.xlane.xlu1 %7658 }
0x1943   :  { %v7675_v5 = vsub.f32 %v18219_v29, %v7659_v52 }
0x1945   :  { %14407 = vrot.lane.b32.xlu0 %v17460_v39, %s15185_s9  ;;  %v7706_v58 = vmul.f32 1.442695, %v7675_v5  ;;  %v19211_v5 = vld [vmem:[#allocation29_spill] sm:$0xff] }
0x1946   :  { %v7143_v27 = vpop.permute.xlu1 %7142 }
0x1947   :  { %v12387_v26 = vpop.f32.mrb[164].mxu0 }
0x1948   :  { %v6865_v23 = vpop.f32.mrb[165].mxu0 }
0x1949   :  { %12411 = vmatprep.mubr.msk.f32.mxu0 %vm945_vm2, %v6865_v23 }
0x194a   :  { %v14378_v10 = vpop.permute.xlu1 %14377 }
0x194b   :  { %v14380_v40 = vunpack.i.h.bf16 %v14378_v10  ;;  %v14379_v31 = vunpack.i.l.bf16 %v14378_v10 }
0x194e   :  { %v12390_v35 = vpop.f32.mrb[166].mxu0 }
0x194f   :  { %v6875_v25 = vpop.f32.mrb[167].mxu0 }
0x1952   :  { %v12393_v13 = vpop.f32.mrb[168].mxu0 }
0x1953   :  { %v7639_v2 = vpop.xlane.xlu0 %7638  ;;  %v6885_v47 = vpop.f32.mrb[169].mxu0 }
0x1954   :  { %v7665_v57 = vsub.f32 %v18227_v59, %v7639_v2  ;;  %v18326_v59 = vpack.c.bf16 %v14380_v40, %v14379_v31 }
0x1956   :  { %v7686_v37 = vmul.f32 1.442695, %v7665_v57 }
0x1957   :  { %v7657_v8 = vpop.xlane.xlu0 %7656 }
0x1958   :  { %14922 = vpow2.f32 %v7686_v37  ;;  %v7674_v63 = vsub.f32 %v18237_v60, %v7657_v8  ;;  %v19208_v8 = vld [vmem:[#allocation17_spill] sm:$0xff] }
0x1959   :  { %14924 = vpow2.f32 %v7692_v20  ;;  %v19207_v20 = vld [vmem:[#allocation20_spill] sm:$0xff] }
0x195a   :  { %14926 = vpow2.f32 %v7698_v19  ;;  %v7704_v18 = vmul.f32 1.442695, %v7674_v63  ;;  %v14393_v19 = vpop.permute.xlu1 %14392  ;;  %v19210_v63 = vld [vmem:[#allocation19_spill] sm:$0xff] }
0x195b   :  { %v6946_v22 = vpop.permute.xlu0 %6945  ;;  %14928 = vpow2.f32 %v7702_v16  ;;  %v14395_v31 = vunpack.i.h.bf16 %v14393_v19 }
0x195c   :  { %12409 = vmatprep.subr.mxu0 %v6946_v22  ;;  %14930 = vpow2.f32 %v7704_v18 }
0x195d   :  { %12410 = vmatpush3.msra.mxu0 %v6946_v22  ;;  %14932 = vpow2.f32 %v7706_v58  ;;  %v14394_v22 = vunpack.i.l.bf16 %v14393_v19 }
0x195e   :  { %12412 = vmatmul.mubr.msk.f32.vlgmr.msra.gmra.mrb[180].mxu0 %vm945_vm2, %v12387_v26  ;;  %12435 = vmatprep.subr.mxu0 %v7143_v27  ;;  %14934 = vpow2.f32 %v7690_v28  ;;  %v7670_v26 = vsub.f32 %v18201_v42, %v18311_v45  ;;  %v7700_v42 = vmul.f32 1.442695, %v7672_v41  ;;  %v14403_v58 = vpop.permute.xlu1 %14402  ;;  %v19212_v28 = vld [vmem:[#allocation21_spill] sm:$0xff] }
0x195f   :  { %12414 = vmatprep.mubr.msk.f32.mxu0 %vm945_vm2, %v6875_v25  ;;  %12436 = vmatpush3.msra.mxu0 %v7143_v27  ;;  %14936 = vpow2.f32 %v7688_v62  ;;  %v14383_v30 = vpop.permute.xlu0 %14382  ;;  %v19213_v62 = vld [vmem:[#allocation31_spill] sm:$0xff] }
0x1960   :  { %13554 = vmatprep.subr.bf16.mxu0 %v18326_v59  ;;  %14938 = vpow2.f32 %v7694_v38  ;;  %v7696_v55 = vmul.f32 1.442695, %v7670_v26  ;;  %v14385_v2 = vunpack.i.h.bf16 %v14383_v30  ;;  %v14405_v26 = vunpack.i.h.bf16 %v14403_v58 }
0x1962   :  { %v18332_v56 = vpop.eup %14922  ;;  %12415 = vmatmul.mubr.msk.f32.gmra.mrb[182].mxu0 %vm945_vm2, %v12390_v35  ;;  %14940 = vpow2.f32 %v7696_v55  ;;  %v19214_v55 = vld [vmem:[#allocation30_spill] sm:$0xff] }
0x1963   :  { %v18335_v60 = vpop.eup %14924  ;;  %7718 = vadd.xlane.f32.xlu1 %v18332_v56  ;;  %12417 = vmatprep.mubr.msk.f32.mxu0 %vm945_vm2, %v6885_v47  ;;  %14942 = vpow2.f32 %v7700_v42  ;;  %v14384_v47 = vunpack.i.l.bf16 %v14383_v30  ;;  %v14388_v57 = vpop.permute.xlu0 %14387 }
0x1964   :  { %7724 = vadd.xlane.f32.xlu0 %v18335_v60  ;;  %v18341_v43 = vpop.eup %14926  ;;  %v14390_v37 = vunpack.i.h.bf16 %v14388_v57  ;;  %v14389_v10 = vunpack.i.l.bf16 %v14388_v57  ;;  %v19216_v57 = vld [vmem:[#allocation32_spill] sm:$0xff] }
0x1965   :  { %v18344_v29 = vpop.eup %14928  ;;  %v13557_v3 = vpack.c.bf16 %v14385_v2, %v14384_v47 }
0x1966   :  { %12418 = vmatmul.mubr.msk.f32.gmra.mrb[184].mxu0 %vm945_vm2, %v12393_v13  ;;  %v18347_v46 = vpop.eup %14930  ;;  %v13561_v16 = vpack.c.bf16 %v14390_v37, %v14389_v10  ;;  %v19217_v37 = vld [vmem:[#allocation35_spill] sm:$0xff]  ;;  %v8184_v10 = vld [vmem:[#allocation2 + $0x3a8] sm:$0xff] }
0x1967   :  { %v18350_v0 = vpop.eup %14932  ;;  %v14398_v40 = vpop.permute.xlu0 %14397 }
0x1968   :  { %7730 = vadd.xlane.f32.xlu0 %v18341_v43  ;;  %v18369_v34 = vpop.eup %14934  ;;  %v14400_v7 = vunpack.i.h.bf16 %v14398_v40  ;;  %v14399_v44 = vunpack.i.l.bf16 %v14398_v40 }
0x1969   :  { %v18372_v48 = vpop.eup %14936 }
0x196a   :  { %v18377_v15 = vpop.eup %14938 }
0x196c   :  { %7734 = vadd.xlane.f32.xlu0 %v18344_v29  ;;  %v18380_v53 = vpop.eup %14940 }
0x196d   :  { %v18385_v25 = vpop.eup %14942 }
0x1970   :  { %7736 = vadd.xlane.f32.xlu0 %v18347_v46 }
0x1974   :  { %7738 = vadd.xlane.f32.xlu0 %v18350_v0  ;;  %14412 = vrot.lane.b32.xlu1 %v17470_v54, %s15185_s9 }
0x198f   :  { %v12396_v1 = vpop.f32.mrb[170].mxu0 }
0x1990   :  { %v6895_v24 = vpop.f32.mrb[171].mxu0 }
0x1991   :  { %12420 = vmatprep.mubr.msk.f32.mxu0 %vm945_vm2, %v6895_v24 }
0x1992   :  { %12421 = vmatmul.mubr.msk.f32.gmra.mrb[186].mxu0 %vm945_vm2, %v12396_v1  ;;  %v8179_v1 = vld [vmem:[#allocation2 + $0x380] sm:$0xff] }
0x1993   :  { %v12399_v49 = vpop.f32.mrb[172].mxu0 }
0x1994   :  { %v6905_v4 = vpop.f32.mrb[173].mxu0 }
0x1995   :  { %12423 = vmatprep.mubr.msk.f32.mxu0 %vm945_vm2, %v6905_v4  ;;  %v13569_v4 = vpack.c.bf16 %v14400_v7, %v14399_v44 }
0x1996   :  { %12424 = vmatmul.mubr.msk.f32.gmra.mrb[188].mxu0 %vm945_vm2, %v12399_v49  ;;  %v14404_v49 = vunpack.i.l.bf16 %v14403_v58  ;;  %v8183_v58 = vld [vmem:[#allocation2 + $0x3a0] sm:$0xff] }
0x1998   :  { %7722 = vadd.xlane.f32.xlu1 %v18369_v34 }
0x199b   :  { %v12402_v45 = vpop.f32.mrb[174].mxu0 }
0x199c   :  { %7720 = vadd.xlane.f32.xlu1 %v18372_v48  ;;  %v6915_v23 = vpop.f32.mrb[175].mxu0 }
0x199d   :  { %12426 = vmatprep.mubr.msk.f32.mxu0 %vm945_vm2, %v6915_v23  ;;  %v8182_v23 = vld [vmem:[#allocation2 + $0x398] sm:$0xff] }
0x199e   :  { %12427 = vmatmul.mubr.msk.f32.gmra.mrb[190].mxu0 %vm945_vm2, %v12402_v45  ;;  %v19215_v45 = vld [vmem:[#allocation33_spill] sm:$0xff] }
0x19a0   :  { %7726 = vadd.xlane.f32.xlu1 %v18377_v15 }
0x19a3   :  { %v12405_v52 = vpop.f32.mrb[176].mxu0 }
0x19a4   :  { %7728 = vadd.xlane.f32.xlu1 %v18380_v53  ;;  %v6925_v35 = vpop.f32.mrb[177].mxu0 }
0x19a5   :  { %12429 = vmatprep.mubr.msk.f32.mxu0 %vm945_vm2, %v6925_v35 }
0x19a6   :  { %12430 = vmatmul.mubr.msk.f32.gmra.mrb[192].mxu0 %vm945_vm2, %v12405_v52  ;;  %v8180_v52 = vld [vmem:[#allocation2 + $0x388] sm:$0xff] }
0x19a8   :  { %7732 = vadd.xlane.f32.xlu1 %v18385_v25 }
0x19ab   :  { %v12408_v27 = vpop.f32.mrb[178].mxu0 }
0x19ac   :  { %v6935_v13 = vpop.f32.mrb[179].mxu0 }
0x19ad   :  { %12432 = vmatprep.mubr.msk.f32.mxu0 %vm945_vm2, %v6935_v13 }
0x19ae   :  { %12433 = vmatmul.mubr.msk.f32.gmra.mrb[194].mxu0 %vm945_vm2, %v12408_v27  ;;  %v13573_v27 = vpack.c.bf16 %v14405_v26, %v14404_v49  ;;  %v8185_v26 = vld [vmem:[#allocation2 + $0x3b0] sm:$0xff] }
0x19af   :  { %12437 = vmatprep.mubr.msk.f32.mxu0 %vm945_vm2, %v19207_v20  ;;  %v18401_v18 = vpop.xlane.xlu0 %7710 }
0x19b2   :  { %12438 = vmatmul.mubr.msk.f32.vlgmr.msra.gmra.mrb[180].mxu0 %vm945_vm2, %v19208_v8  ;;  %v8181_v8 = vld [vmem:[#allocation2 + $0x390] sm:$0xff] }
0x19b3   :  { %13556 = vmatpush3.bf16.msra.mxu0 %v18326_v59  ;;  %12440 = vmatprep.mubr.msk.f32.mxu0 %vm945_vm2, %v19209_v11  ;;  %v13565_v59 = vpack.c.bf16 %v14395_v31, %v14394_v22  ;;  %v19218_v31 = vld [vmem:[#allocation34_spill] sm:$0xff] }
0x19b4   :  { %13558 = vmatprep.subr.bf16.mxu0 %v13557_v3 }
0x19b6   :  { %12441 = vmatmul.mubr.msk.f32.gmra.mrb[182].mxu0 %vm945_vm2, %v19210_v63  ;;  %v19219_v63 = vld [vmem:[#allocation37_spill] sm:$0xff] }
0x19b7   :  { %13560 = vmatpush3.bf16.msra.mxu0 %v13557_v3  ;;  %12443 = vmatprep.mubr.msk.f32.mxu0 %vm945_vm2, %v19211_v5  ;;  %v8186_v5 = vld [vmem:[#allocation2 + $0x3b8] sm:$0xff] }
0x19b8   :  { %13562 = vmatprep.subr.bf16.mxu0 %v13561_v16 }
0x19ba   :  { %12444 = vmatmul.mubr.msk.f32.gmra.mrb[184].mxu0 %vm945_vm2, %v19212_v28  ;;  %v19220_v28 = vld [vmem:[#allocation36_spill] sm:$0xff] }
0x19bb   :  { %13564 = vmatpush3.bf16.msra.mxu0 %v13561_v16  ;;  %12446 = vmatprep.mubr.msk.f32.mxu0 %vm945_vm2, %v19213_v62  ;;  %v7709_v24 = vpop.xlane.xlu1 %7708 }
0x19bc   :  { %v18407_v21 = vpop.xlane.xlu0 %7716  ;;  %13566 = vmatprep.subr.bf16.mxu0 %v13565_v59  ;;  %14944 = vrcp.f32 %v7709_v24  ;;  %v19221_v24 = vld [vmem:[#allocation39_spill] sm:$0xff] }
0x19bd   :  { %v12633_v38 = vpop.f32.mrb[180].mxu1  ;;  %14946 = vrcp.f32 %v18401_v18 }
0x19be   :  { %12447 = vmatmul.mubr.msk.f32.gmra.mrb[186].mxu0 %vm945_vm2, %v19214_v55  ;;  %v8389_v41 = vpop.f32.mrb[181].mxu1  ;;  %v18420_v3 = vadd.f32 %v12633_v38, %v8180_v52  ;;  %v8188_v38 = vld [vmem:[#allocation2 + $0x3c8] sm:$0xff]  ;;  %v8190_v52 = vld [vmem:[#allocation2 + $0x3d8] sm:$0xff] }
0x19bf   :  { %13568 = vmatpush3.bf16.msra.mxu0 %v13565_v59  ;;  %v18411_v42 = vadd.f32 %v8389_v41, %v8179_v1  ;;  %12449 = vmatprep.mubr.msk.f32.mxu0 %vm945_vm2, %v19215_v45  ;;  %v19222_v41 = vld [vmem:[#allocation38_spill] sm:$0xff] }
0x19c0   :  { %v14408_v35 = vpop.permute.xlu0 %14407  ;;  %13570 = vmatprep.subr.bf16.mxu0 %v13569_v4 }
0x19c1   :  { %v12636_v30 = vpop.f32.mrb[182].mxu1  ;;  %8468 = vmax.xlane.f32.xlu0 %v18411_v42  ;;  %v14410_v13 = vunpack.i.h.bf16 %v14408_v35  ;;  %v14409_v2 = vunpack.i.l.bf16 %v14408_v35  ;;  %v8187_v35 = vld [vmem:[#allocation2 + $0x3c0] sm:$0xff] }
0x19c2   :  { %v18416_v47 = vadd.f32 %v12636_v30, %v8182_v23  ;;  %12450 = vmatmul.mubr.msk.f32.gmra.mrb[188].mxu0 %vm945_vm2, %v19216_v57  ;;  %v8399_v20 = vpop.f32.mrb[183].mxu1  ;;  %v8189_v57 = vld [vmem:[#allocation2 + $0x3d0] sm:$0xff] }
0x19c3   :  { %13572 = vmatpush3.bf16.msra.mxu0 %v13569_v4  ;;  %12452 = vmatprep.mubr.msk.f32.mxu0 %vm945_vm2, %v19217_v37  ;;  %v13577_v11 = vpack.c.bf16 %v14410_v13, %v14409_v2  ;;  %v18430_v16 = vadd.f32 %v8399_v20, %v8181_v8  ;;  %v8192_v2 = vld [vmem:[#allocation2 + $0x3e8] sm:$0xff] }
0x19c4   :  { %13574 = vmatprep.subr.bf16.mxu0 %v13573_v27  ;;  %8474 = vmax.xlane.f32.xlu1 %v18416_v47 }
0x19c5   :  { %v12639_v19 = vpop.f32.mrb[184].mxu1  ;;  %8470 = vmax.xlane.f32.xlu0 %v18420_v3 }
0x19c6   :  { %v18426_v40 = vadd.f32 %v12639_v19, %v8184_v10  ;;  %12453 = vmatmul.mubr.msk.f32.gmra.mrb[190].mxu0 %vm945_vm2, %v19218_v31  ;;  %v8409_v22 = vpop.f32.mrb[185].mxu1  ;;  %v14945_v7 = vpop.eup %14944  ;;  %v8191_v19 = vld [vmem:[#allocation2 + $0x3e0] sm:$0xff] }
0x19c7   :  { %13576 = vmatpush3.bf16.msra.mxu0 %v13573_v27  ;;  %12455 = vmatprep.mubr.msk.f32.mxu0 %vm945_vm2, %v19219_v63  ;;  %v18440_v1 = vadd.f32 %v8409_v22, %v8183_v58  ;;  %v7756_v4 = vmul.f32 %v14945_v7, %v18300_v17  ;;  %v7715_v31 = vpop.xlane.xlu1 %7714  ;;  %v8194_v58 = vld [vmem:[#allocation2 + $0x3f8] sm:$0xff] }
0x19c8   :  { %13578 = vmatprep.subr.bf16.mxu0 %v13577_v11  ;;  %8478 = vmax.xlane.f32.xlu1 %v18426_v40 }
0x19c9   :  { %v12642_v59 = vpop.f32.mrb[186].mxu1  ;;  %8472 = vmax.xlane.f32.xlu0 %v18430_v16 }
0x19ca   :  { %v18436_v44 = vadd.f32 %v12642_v59, %v8186_v5  ;;  %12456 = vmatmul.mubr.msk.f32.gmra.mrb[192].mxu0 %vm945_vm2, %v19220_v28  ;;  %v8419_v62 = vpop.f32.mrb[187].mxu1  ;;  %v8193_v28 = vld [vmem:[#allocation2 + $0x3f0] sm:$0xff] }
0x19cb   :  { %13580 = vmatpush3.bf16.msra.mxu0 %v13577_v11  ;;  %12458 = vmatprep.mubr.msk.f32.mxu0 %vm945_vm2, %v19221_v24  ;;  %v18451_v23 = vadd.f32 %v8419_v62, %v8185_v26  ;;  %v7713_v22 = vpop.xlane.xlu1 %7712 }
0x19cc   :  { %8482 = vmax.xlane.f32.xlu1 %v18436_v44  ;;  %14948 = vrcp.f32 %v7713_v22 }
0x19cd   :  { %v12645_v49 = vpop.f32.mrb[188].mxu1  ;;  %8476 = vmax.xlane.f32.xlu0 %v18440_v1  ;;  %14950 = vrcp.f32 %v7715_v31 }
0x19ce   :  { %v18447_v55 = vadd.f32 %v12645_v49, %v8188_v38  ;;  %12459 = vmatmul.mubr.msk.f32.gmra.mrb[194].mxu0 %vm945_vm2, %v19222_v41  ;;  %v8429_v45 = vpop.f32.mrb[189].mxu1  ;;  %14952 = vrcp.f32 %v18407_v21  ;;  %v14947_v49 = vpop.eup %14946 }
0x19cf   :  { %12549 = vmatprep.mubr.f32.mxu0 %v7756_v4  ;;  %v18457_v17 = vadd.f32 %v8429_v45, %v8187_v35  ;;  %v7757_v21 = vmul.f32 %v14947_v49, %v18291_v33  ;;  %v15144_v33 = vld [vmem:[%s19074_s3 + $0x60] sm:$0xff] }
0x19d0   :  { %8486 = vmax.xlane.f32.xlu1 %v18447_v55 }
0x19d1   :  { %v12648_v30 = vpop.f32.mrb[190].mxu1  ;;  %8480 = vmax.xlane.f32.xlu0 %v18451_v23 }
0x19d2   :  { %v18455_v27 = vadd.f32 %v12648_v30, %v8190_v52  ;;  %v8439_v13 = vpop.f32.mrb[191].mxu1 }
0x19d3   :  { %v18463_v8 = vadd.f32 %v8439_v13, %v8189_v57 }
0x19d4   :  { %8490 = vmax.xlane.f32.xlu1 %v18455_v27 }
0x19d5   :  { %v12651_v20 = vpop.f32.mrb[192].mxu1  ;;  %8484 = vmax.xlane.f32.xlu0 %v18457_v17 }
0x19d6   :  { %v18461_v37 = vadd.f32 %v12651_v20, %v8192_v2  ;;  %v8449_v10 = vpop.f32.mrb[193].mxu1  ;;  %v14949_v18 = vpop.eup %14948 }
0x19d7   :  { %v18467_v11 = vadd.f32 %v8449_v10, %v8191_v19  ;;  %v14951_v41 = vpop.eup %14950  ;;  %v7758_v45 = vmul.f32 %v14949_v18, %v18313_v14 }
0x19d8   :  { %8494 = vmax.xlane.f32.xlu1 %v18461_v37  ;;  %v14953_v52 = vpop.eup %14952  ;;  %v7759_v35 = vmul.f32 %v14951_v41, %v18308_v61 }
0x19d9   :  { %8488 = vmax.xlane.f32.xlu0 %v18463_v8  ;;  %v7760_v13 = vmul.f32 %v14953_v52, %v18302_v9 }
0x19dd   :  { %8492 = vmax.xlane.f32.xlu0 %v18467_v11 }
0x19f0   :  { %v7719_v63 = vpop.xlane.xlu1 %7718 }
0x19f1   :  { %14954 = vrcp.f32 %v7719_v63 }
0x19f4   :  { %v14413_v5 = vpop.permute.xlu1 %14412 }
0x19f5   :  { %v14415_v59 = vunpack.i.h.bf16 %v14413_v5  ;;  %v14414_v7 = vunpack.i.l.bf16 %v14413_v5 }
0x19f6   :  { %v12654_v62 = vpop.f32.mrb[194].mxu1 }
0x19f7   :  { %v13581_v24 = vpack.c.bf16 %v14415_v59, %v14414_v7  ;;  %v18472_v38 = vadd.f32 %v12654_v62, %v8194_v58  ;;  %v8459_v26 = vpop.f32.mrb[195].mxu1 }
0x19f8   :  { %v18474_v4 = vadd.f32 %v8459_v26, %v8193_v28 }
0x19f9   :  { %8498 = vmax.xlane.f32.xlu1 %v18472_v38  ;;  %13582 = vmatprep.subr.bf16.mxu0 %v13581_v24 }
0x19fa   :  { %8496 = vmax.xlane.f32.xlu0 %v18474_v4  ;;  %13584 = vmatpush3.bf16.msra.mxu0 %v13581_v24 }
0x19fb   :  { %v14955_v30 = vpop.eup %14954 }
0x19fc   :  { %v7761_v2 = vmul.f32 %v14955_v30, %v18332_v56 }
0x19fd   :  { %12550 = vmatmul.mubr.f32.vlgmr.msra.gmra.mrb[196].mxu0 %v7757_v21 }
0x19fe   :  { %12552 = vmatprep.mubr.f32.mxu0 %v7758_v45 }
0x1a01   :  { %12553 = vmatmul.mubr.f32.gmra.mrb[198].mxu0 %v7759_v35 }
0x1a02   :  { %12555 = vmatprep.mubr.f32.mxu0 %v7760_v13 }
0x1a05   :  { %12556 = vmatmul.mubr.f32.gmra.mrb[200].mxu0 %v7761_v2 }
0x1a0a   :  { %14417 = vrot.lane.b32.xlu1 %v19205_v51, %s15186_s14  ;;  %v7725_v51 = vpop.xlane.xlu0 %7724 }
0x1a0b   :  { %14956 = vrcp.f32 %v7725_v51 }
0x1a0e   :  { %14422 = vrot.lane.b32.xlu1 %v19206_v50, %s15186_s14  ;;  %v7731_v50 = vpop.xlane.xlu0 %7730 }
0x1a10   :  { %7966 = vrot.lane.b32.xlu0 %v15144_v33, %s15184_s8 }
0x1a12   :  { %14432 = vrot.lane.b32.xlu1 %v17430_v6, %s15186_s14  ;;  %v7735_v14 = vpop.xlane.xlu0 %7734 }
0x1a14   :  { %14427 = vrot.lane.b32.xlu0 %v17420_v36, %s15186_s14 }
0x1a16   :  { %14447 = vrot.lane.b32.xlu1 %v17460_v39, %s15186_s14  ;;  %v7737_v36 = vpop.xlane.xlu0 %7736  ;;  %v14957_v39 = vpop.eup %14956 }
0x1a17   :  { %v7764_v31 = vmul.f32 %v14957_v39, %v18335_v60 }
0x1a18   :  { %14437 = vrot.lane.b32.xlu0 %v17440_v32, %s15186_s14 }
0x1a1a   :  { %v7739_v10 = vpop.xlane.xlu0 %7738 }
0x1a1c   :  { %14442 = vrot.lane.b32.xlu0 %v17450_v12, %s15186_s14 }
0x1a25   :  { %v7723_v9 = vpop.xlane.xlu1 %7722 }
0x1a26   :  { %14958 = vrcp.f32 %v7723_v9 }
0x1a29   :  { %v7721_v61 = vpop.xlane.xlu1 %7720 }
0x1a2a   :  { %14960 = vrcp.f32 %v7721_v61 }
0x1a2d   :  { %v7727_v6 = vpop.xlane.xlu1 %7726 }
0x1a2e   :  { %14962 = vrcp.f32 %v7727_v6 }
0x1a2f   :  { %14964 = vrcp.f32 %v7731_v50 }
0x1a30   :  { %v14959_v57 = vpop.eup %14958 }
0x1a31   :  { %v7729_v56 = vpop.xlane.xlu1 %7728  ;;  %v7763_v19 = vmul.f32 %v14959_v57, %v18369_v34 }
0x1a32   :  { %14966 = vrcp.f32 %v7729_v56 }
0x1a33   :  { %14968 = vrcp.f32 %v7735_v14 }
0x1a34   :  { %v14961_v32 = vpop.eup %14960  ;;  %14970 = vrcp.f32 %v7737_v36 }
0x1a35   :  { %v7733_v12 = vpop.xlane.xlu1 %7732  ;;  %v7762_v20 = vmul.f32 %v14961_v32, %v18372_v48 }
0x1a36   :  { %14972 = vrcp.f32 %v7733_v12 }
0x1a37   :  { %12558 = vmatprep.mubr.f32.mxu0 %v7762_v20  ;;  %14974 = vrcp.f32 %v7739_v10 }
0x1a38   :  { %v14963_v22 = vpop.eup %14962  ;;  %12559 = vmatmul.mubr.f32.gmra.mrb[202].mxu0 %v7763_v19 }
0x1a39   :  { %12561 = vmatprep.mubr.f32.mxu0 %v7764_v31  ;;  %v7765_v63 = vmul.f32 %v14963_v22, %v18377_v15  ;;  %v14965_v5 = vpop.eup %14964 }
0x1a3a   :  { %v7767_v48 = vmul.f32 %v14965_v5, %v18341_v43 }
0x1a3c   :  { %v14967_v58 = vpop.eup %14966  ;;  %12562 = vmatmul.mubr.f32.gmra.mrb[204].mxu0 %v7765_v63 }
0x1a3d   :  { %v7766_v59 = vmul.f32 %v14967_v58, %v18380_v53  ;;  %v14969_v7 = vpop.eup %14968 }
0x1a3e   :  { %v14971_v28 = vpop.eup %14970  ;;  %v7769_v62 = vmul.f32 %v14969_v7, %v18344_v29 }
0x1a3f   :  { %12564 = vmatprep.mubr.f32.mxu0 %v7766_v59  ;;  %v7770_v15 = vmul.f32 %v14971_v28, %v18347_v46 }
0x1a40   :  { %v14973_v34 = vpop.eup %14972  ;;  %12565 = vmatmul.mubr.f32.gmra.mrb[206].mxu0 %v7767_v48 }
0x1a41   :  { %v7768_v60 = vmul.f32 %v14973_v34, %v18385_v25  ;;  %v14975_v24 = vpop.eup %14974 }
0x1a42   :  { %v7771_v26 = vmul.f32 %v14975_v24, %v18350_v0 }
0x1a43   :  { %12567 = vmatprep.mubr.f32.mxu0 %v7768_v60 }
0x1a44   :  { %12568 = vmatmul.mubr.f32.gmra.mrb[208].mxu0 %v7769_v62 }
0x1a45   :  { %12570 = vmatprep.mubr.f32.mxu0 %v7770_v15 }
0x1a48   :  { %12571 = vmatmul.mubr.f32.gmra.mrb[210].mxu0 %v7771_v26 }
0x1a4e   :  { %v8469_v53 = vpop.xlane.xlu0 %8468 }
0x1a4f   :  { %v8500_v43 = vsub.f32 %v18411_v42, %v8469_v53 }
0x1a51   :  { %v8516_v49 = vmul.f32 1.442695, %v8500_v43  ;;  %v8475_v18 = vpop.xlane.xlu1 %8474 }
0x1a52   :  { %v8471_v21 = vpop.xlane.xlu0 %8470  ;;  %v8503_v25 = vsub.f32 %v18416_v47, %v8475_v18 }
0x1a53   :  { %14976 = vpow2.f32 %v8516_v49  ;;  %v8501_v29 = vsub.f32 %v18420_v3, %v8471_v21 }
0x1a54   :  { %v8522_v46 = vmul.f32 1.442695, %v8503_v25  ;;  %v15145_v25 = vld [vmem:[%s19074_s3 + $0x70] sm:$0xff] }
0x1a55   :  { %v8518_v41 = vmul.f32 1.442695, %v8501_v29  ;;  %v8479_v45 = vpop.xlane.xlu1 %8478 }
0x1a56   :  { %v8473_v52 = vpop.xlane.xlu0 %8472  ;;  %v8505_v42 = vsub.f32 %v18426_v40, %v8479_v45 }
0x1a57   :  { %14978 = vpow2.f32 %v8518_v41  ;;  %v8502_v35 = vsub.f32 %v18430_v16, %v8473_v52 }
0x1a58   :  { %14980 = vpow2.f32 %v8522_v46  ;;  %v8526_v51 = vmul.f32 1.442695, %v8505_v42 }
0x1a59   :  { %v8520_v0 = vmul.f32 1.442695, %v8502_v35  ;;  %v8483_v2 = vpop.xlane.xlu1 %8482 }
0x1a5a   :  { %v8477_v30 = vpop.xlane.xlu0 %8476  ;;  %v8507_v50 = vsub.f32 %v18436_v44, %v8483_v2 }
0x1a5b   :  { %v8504_v13 = vsub.f32 %v18440_v1, %v8477_v30  ;;  %14982 = vpow2.f32 %v8520_v0 }
0x1a5c   :  { %v8530_v40 = vmul.f32 1.442695, %v8507_v50 }
0x1a5d   :  { %v18517_v33 = vpop.eup %14976  ;;  %v8524_v47 = vmul.f32 1.442695, %v8504_v13  ;;  %v8487_v31 = vpop.xlane.xlu1 %8486 }
0x1a5e   :  { %8548 = vadd.xlane.f32.xlu0 %v18517_v33  ;;  %v8481_v3 = vpop.xlane.xlu0 %8480  ;;  %v8509_v15 = vsub.f32 %v18447_v55, %v8487_v31 }
0x1a5f   :  { %14984 = vpow2.f32 %v8524_v47  ;;  %v8506_v1 = vsub.f32 %v18451_v23, %v8481_v3 }
0x1a60   :  { %14986 = vpow2.f32 %v8526_v51  ;;  %v8534_v53 = vmul.f32 1.442695, %v8509_v15 }
0x1a61   :  { %v18521_v16 = vpop.eup %14978  ;;  %14988 = vpow2.f32 %v8530_v40  ;;  %v8528_v6 = vmul.f32 1.442695, %v8506_v1  ;;  %v8491_v22 = vpop.xlane.xlu1 %8490 }
0x1a62   :  { %8550 = vadd.xlane.f32.xlu1 %v18521_v16  ;;  %v8485_v9 = vpop.xlane.xlu0 %8484  ;;  %v18525_v61 = vpop.eup %14980  ;;  %v8511_v43 = vsub.f32 %v18455_v27, %v8491_v22 }
0x1a63   :  { %v8508_v36 = vsub.f32 %v18457_v17, %v8485_v9  ;;  %14990 = vpow2.f32 %v8528_v6 }
0x1a65   :  { %v18529_v44 = vpop.eup %14982  ;;  %v8532_v39 = vmul.f32 1.442695, %v8508_v36  ;;  %v8495_v5 = vpop.xlane.xlu1 %8494 }
0x1a66   :  { %8554 = vadd.xlane.f32.xlu1 %v18525_v61  ;;  %v8489_v14 = vpop.xlane.xlu0 %8488 }
0x1a67   :  { %v8510_v23 = vsub.f32 %v18463_v8, %v8489_v14  ;;  %14992 = vpow2.f32 %v8532_v39 }
0x1a69   :  { %v18531_v56 = vpop.eup %14984  ;;  %v8536_v12 = vmul.f32 1.442695, %v8510_v23 }
0x1a6a   :  { %8552 = vadd.xlane.f32.xlu1 %v18529_v44  ;;  %8556 = vadd.xlane.f32.xlu0 %v18531_v56  ;;  %v8493_v57 = vpop.xlane.xlu0 %8492  ;;  %v18536_v32 = vpop.eup %14986 }
0x1a6b   :  { %v8512_v17 = vsub.f32 %v18467_v11, %v8493_v57  ;;  %v18540_v20 = vpop.eup %14988  ;;  %14994 = vpow2.f32 %v8536_v12 }
0x1a6d   :  { %v8540_v10 = vmul.f32 1.442695, %v8512_v17  ;;  %v18543_v19 = vpop.eup %14990 }
0x1a6e   :  { %8558 = vadd.xlane.f32.xlu1 %v18536_v32 }
0x1a6f   :  { %14996 = vpow2.f32 %v8540_v10 }
0x1a71   :  { %v18546_v8 = vpop.eup %14992 }
0x1a72   :  { %8562 = vadd.xlane.f32.xlu1 %v18540_v20 }
0x1a75   :  { %v18549_v63 = vpop.eup %14994 }
0x1a76   :  { %8560 = vadd.xlane.f32.xlu1 %v18543_v19 }
0x1a79   :  { %v18554_v11 = vpop.eup %14996 }
0x1a7a   :  { %8564 = vadd.xlane.f32.xlu1 %v18546_v8 }
0x1a7e   :  { %8568 = vadd.xlane.f32.xlu1 %v18549_v63 }
0x1a80   :  { %14452 = vrot.lane.b32.xlu0 %v17470_v54, %s15186_s14 }
0x1a82   :  { %8572 = vadd.xlane.f32.xlu1 %v18554_v11 }
0x1a86   :  { %v8499_v58 = vpop.xlane.xlu1 %8498 }
0x1a87   :  { %v8497_v59 = vpop.xlane.xlu0 %8496  ;;  %v8515_v7 = vsub.f32 %v18472_v38, %v8499_v58  ;;  %v8538_v38 = vmul.f32 1.442695, %v8511_v43 }
0x1a88   :  { %v8514_v48 = vsub.f32 %v18474_v4, %v8497_v59  ;;  %v8513_v4 = vsub.f32 %v18461_v37, %v8495_v5 }
0x1a89   :  { %v8546_v26 = vmul.f32 1.442695, %v8515_v7 }
0x1a8a   :  { %v8544_v28 = vmul.f32 1.442695, %v8514_v48  ;;  %v14418_v34 = vpop.permute.xlu1 %14417  ;;  %v8542_v55 = vmul.f32 1.442695, %v8513_v4 }
0x1a8b   :  { %v14420_v60 = vunpack.i.h.bf16 %v14418_v34  ;;  %v14419_v62 = vunpack.i.l.bf16 %v14418_v34  ;;  %v7967_v24 = vpop.permute.xlu0 %7966 }
0x1a8c   :  { %14998 = vpow2.f32 %v8544_v28  ;;  %12573 = vmatprep.subr.mxu0 %v7967_v24 }
0x1a8d   :  { %v13633_v54 = vpack.c.bf16 %v14420_v60, %v14419_v62  ;;  %12574 = vmatpush3.msra.mxu0 %v7967_v24  ;;  %15000 = vpow2.f32 %v8546_v26 }
0x1a8e   :  { %15002 = vpow2.f32 %v8534_v53  ;;  %v14423_v29 = vpop.permute.xlu1 %14422 }
0x1a8f   :  { %13634 = vmatprep.subr.bf16.mxu0 %v13633_v54  ;;  %15004 = vpow2.f32 %v8538_v38  ;;  %v14425_v41 = vunpack.i.h.bf16 %v14423_v29  ;;  %v14424_v45 = vunpack.i.l.bf16 %v14423_v29  ;;  %v14428_v52 = vpop.permute.xlu0 %14427 }
0x1a90   :  { %15006 = vpow2.f32 %v8542_v55  ;;  %v14430_v30 = vunpack.i.h.bf16 %v14428_v52  ;;  %v14429_v42 = vunpack.i.l.bf16 %v14428_v52 }
0x1a91   :  { %v13637_v0 = vpack.c.bf16 %v14425_v41, %v14424_v45 }
0x1a92   :  { %v14433_v13 = vpop.permute.xlu1 %14432  ;;  %v13641_v51 = vpack.c.bf16 %v14430_v30, %v14429_v42 }
0x1a93   :  { %v14438_v3 = vpop.permute.xlu0 %14437  ;;  %v14435_v50 = vunpack.i.h.bf16 %v14433_v13  ;;  %v14434_v9 = vunpack.i.l.bf16 %v14433_v13 }
0x1a94   :  { %v14440_v6 = vunpack.i.h.bf16 %v14438_v3  ;;  %v14439_v36 = vunpack.i.l.bf16 %v14438_v3 }
0x1a95   :  { %v13645_v14 = vpack.c.bf16 %v14435_v50, %v14434_v9 }
0x1a96   :  { %v18562_v49 = vpop.eup %14998  ;;  %v13649_v23 = vpack.c.bf16 %v14440_v6, %v14439_v36  ;;  %v14448_v17 = vpop.permute.xlu1 %14447 }
0x1a97   :  { %8576 = vadd.xlane.f32.xlu1 %v18562_v49  ;;  %v18565_v18 = vpop.eup %15000  ;;  %v14443_v39 = vpop.permute.xlu0 %14442  ;;  %v14450_v10 = vunpack.i.h.bf16 %v14448_v17  ;;  %v14449_v31 = vunpack.i.l.bf16 %v14448_v17 }
0x1a98   :  { %v18568_v21 = vpop.eup %15002  ;;  %v14445_v57 = vunpack.i.h.bf16 %v14443_v39  ;;  %v14444_v12 = vunpack.i.l.bf16 %v14443_v39 }
0x1a99   :  { %v18571_v27 = vpop.eup %15004  ;;  %v13657_v5 = vpack.c.bf16 %v14450_v10, %v14449_v31 }
0x1a9a   :  { %v18574_v37 = vpop.eup %15006  ;;  %v13653_v22 = vpack.c.bf16 %v14445_v57, %v14444_v12 }
0x1a9b   :  { %8578 = vadd.xlane.f32.xlu1 %v18565_v18 }
0x1a9f   :  { %8566 = vadd.xlane.f32.xlu0 %v18568_v21 }
0x1aa3   :  { %8570 = vadd.xlane.f32.xlu0 %v18571_v27 }
0x1aa7   :  { %8574 = vadd.xlane.f32.xlu0 %v18574_v37 }
0x1aac   :  { %8806 = vrot.lane.b32.xlu1 %v15145_v25, %s15184_s8 }
0x1ad0   :  { %v12551_v46 = vpop.f32.mrb[196].mxu0 }
0x1ad1   :  { %v7886_v35 = vpop.f32.mrb[197].mxu0 }
0x1ad2   :  { %12575 = vmatprep.mubr.msk.f32.mxu0 %vm945_vm2, %v7886_v35 }
0x1ad3   :  { %12576 = vmatmul.mubr.msk.f32.vlgmr.msra.gmra.mrb[180].mxu0 %vm945_vm2, %v12551_v46 }
0x1ad4   :  { %13636 = vmatpush3.bf16.msra.mxu0 %v13633_v54  ;;  %v12554_v2 = vpop.f32.mrb[198].mxu0 }
0x1ad5   :  { %13638 = vmatprep.subr.bf16.mxu0 %v13637_v0  ;;  %v7896_v47 = vpop.f32.mrb[199].mxu0 }
0x1ad6   :  { %12578 = vmatprep.mubr.msk.f32.mxu0 %vm945_vm2, %v7896_v47 }
0x1ad7   :  { %12579 = vmatmul.mubr.msk.f32.gmra.mrb[182].mxu0 %vm945_vm2, %v12554_v2 }
0x1ad8   :  { %13640 = vmatpush3.bf16.msra.mxu0 %v13637_v0  ;;  %v12557_v40 = vpop.f32.mrb[200].mxu0 }
0x1ad9   :  { %13642 = vmatprep.subr.bf16.mxu0 %v13641_v51  ;;  %v7906_v1 = vpop.f32.mrb[201].mxu0 }
0x1ada   :  { %12581 = vmatprep.mubr.msk.f32.mxu0 %vm945_vm2, %v7906_v1 }
0x1adb   :  { %12582 = vmatmul.mubr.msk.f32.gmra.mrb[184].mxu0 %vm945_vm2, %v12557_v40 }
0x1adc   :  { %13644 = vmatpush3.bf16.msra.mxu0 %v13641_v51 }
0x1add   :  { %13646 = vmatprep.subr.bf16.mxu0 %v13645_v14 }
0x1ae0   :  { %13648 = vmatpush3.bf16.msra.mxu0 %v13645_v14 }
0x1ae1   :  { %13650 = vmatprep.subr.bf16.mxu0 %v13649_v23 }
0x1ae4   :  { %13652 = vmatpush3.bf16.msra.mxu0 %v13649_v23 }
0x1ae5   :  { %13654 = vmatprep.subr.bf16.mxu0 %v13653_v22 }
0x1ae8   :  { %13656 = vmatpush3.bf16.msra.mxu0 %v13653_v22 }
0x1ae9   :  { %13658 = vmatprep.subr.bf16.mxu0 %v13657_v5 }
0x1aeb   :  { %v8549_v59 = vpop.xlane.xlu0 %8548 }
0x1aec   :  { %13660 = vmatpush3.bf16.msra.mxu0 %v13657_v5  ;;  %15008 = vrcp.f32 %v8549_v59 }
0x1aef   :  { %v8551_v58 = vpop.xlane.xlu1 %8550 }
0x1af0   :  { %15010 = vrcp.f32 %v8551_v58 }
0x1af3   :  { %v8555_v7 = vpop.xlane.xlu1 %8554 }
0x1af6   :  { %v15009_v52 = vpop.eup %15008 }
0x1af7   :  { %v8557_v48 = vpop.xlane.xlu0 %8556  ;;  %v8553_v34 = vpop.xlane.xlu1 %8552  ;;  %v8596_v42 = vmul.f32 %v15009_v52, %v18517_v33 }
0x1af8   :  { %15012 = vrcp.f32 %v8553_v34 }
0x1af9   :  { %15014 = vrcp.f32 %v8555_v7 }
0x1afa   :  { %15016 = vrcp.f32 %v8557_v48  ;;  %v15011_v30 = vpop.eup %15010 }
0x1afb   :  { %v14453_v28 = vpop.permute.xlu0 %14452  ;;  %v8559_v15 = vpop.xlane.xlu1 %8558  ;;  %v8597_v2 = vmul.f32 %v15011_v30, %v18521_v16 }
0x1afc   :  { %v14455_v60 = vunpack.i.h.bf16 %v14453_v28  ;;  %v14454_v62 = vunpack.i.l.bf16 %v14453_v28  ;;  %15018 = vrcp.f32 %v8559_v15 }
0x1afe   :  { %v13661_v24 = vpack.c.bf16 %v14455_v60, %v14454_v62 }
0x1aff   :  { %v8563_v26 = vpop.xlane.xlu1 %8562 }
0x1b00   :  { %13662 = vmatprep.subr.bf16.mxu0 %v13661_v24 }
0x1b01   :  { %13664 = vmatpush3.bf16.msra.mxu0 %v13661_v24 }
0x1b02   :  { %v15013_v13 = vpop.eup %15012 }
0x1b03   :  { %v8561_v43 = vpop.xlane.xlu1 %8560  ;;  %v15015_v3 = vpop.eup %15014  ;;  %v8598_v51 = vmul.f32 %v15013_v13, %v18529_v44 }
0x1b04   :  { %15020 = vrcp.f32 %v8561_v43  ;;  %v15017_v50 = vpop.eup %15016  ;;  %v8599_v40 = vmul.f32 %v15015_v3, %v18525_v61 }
0x1b05   :  { %15022 = vrcp.f32 %v8563_v26  ;;  %v8600_v33 = vmul.f32 %v15017_v50, %v18531_v56  ;;  %v19228_v50 = vld [vmem:[#allocation6_spill] sm:$0xff] }
0x1b06   :  { %v15019_v1 = vpop.eup %15018 }
0x1b07   :  { %v8565_v25 = vpop.xlane.xlu1 %8564  ;;  %v8601_v16 = vmul.f32 %v15019_v1, %v18536_v32 }
0x1b08   :  { %15024 = vrcp.f32 %v8565_v25 }
0x1b0b   :  { %v12560_v54 = vpop.f32.mrb[202].mxu0  ;;  %v8569_v46 = vpop.xlane.xlu1 %8568 }
0x1b0c   :  { %v7916_v53 = vpop.f32.mrb[203].mxu0  ;;  %15026 = vrcp.f32 %v8569_v46 }
0x1b0d   :  { %12584 = vmatprep.mubr.msk.f32.mxu0 %vm945_vm2, %v7916_v53 }
0x1b0e   :  { %12585 = vmatmul.mubr.msk.f32.gmra.mrb[186].mxu0 %vm945_vm2, %v12560_v54  ;;  %v15021_v14 = vpop.eup %15020 }
0x1b0f   :  { %v12563_v38 = vpop.f32.mrb[204].mxu0  ;;  %v8573_v47 = vpop.xlane.xlu1 %8572  ;;  %v8602_v39 = vmul.f32 %v15021_v14, %v18543_v19 }
0x1b10   :  { %v7926_v4 = vpop.f32.mrb[205].mxu0  ;;  %v15023_v36 = vpop.eup %15022 }
0x1b11   :  { %12587 = vmatprep.mubr.msk.f32.mxu0 %vm945_vm2, %v7926_v4  ;;  %v8603_v57 = vmul.f32 %v15023_v36, %v18540_v20  ;;  %v18632_v4 = vld [vmem:[%s19076_s5 + $0x8] sm:$0xff] }
0x1b12   :  { %12588 = vmatmul.mubr.msk.f32.gmra.mrb[188].mxu0 %vm945_vm2, %v12563_v38  ;;  %v15025_v23 = vpop.eup %15024 }
0x1b13   :  { %v12566_v55 = vpop.f32.mrb[206].mxu0  ;;  %v8604_v56 = vmul.f32 %v15025_v23, %v18546_v8 }
0x1b14   :  { %v7936_v29 = vpop.f32.mrb[207].mxu0 }
0x1b15   :  { %12590 = vmatprep.mubr.msk.f32.mxu0 %vm945_vm2, %v7936_v29 }
0x1b16   :  { %12591 = vmatmul.mubr.msk.f32.gmra.mrb[190].mxu0 %vm945_vm2, %v12566_v55  ;;  %v15027_v12 = vpop.eup %15026  ;;  %v19223_v55 = vld [vmem:[#allocation5_spill] sm:$0xff] }
0x1b17   :  { %v12569_v41 = vpop.f32.mrb[208].mxu0  ;;  %v8606_v20 = vmul.f32 %v15027_v12, %v18549_v63  ;;  %v19224_v25 = vsub.s32 1, %v19223_v55  ;;  %v19231_v12 = vld [vmem:[#allocation27_spill] sm:$0xff] }
0x1b18   :  { %v7946_v45 = vpop.f32.mrb[209].mxu0 }
0x1b19   :  { %12593 = vmatprep.mubr.msk.f32.mxu0 %vm945_vm2, %v7946_v45  ;;  %v18637_v29 = vrot.slane %v18632_v4, %v19224_v25  ;;  %v19225_v45 = vld [vmem:[#allocation24_spill] sm:$0xff] }
0x1b1a   :  { %12594 = vmatmul.mubr.msk.f32.gmra.mrb[192].mxu0 %vm945_vm2, %v12569_v41 }
0x1b1b   :  { %v12572_v35 = vpop.f32.mrb[210].mxu0 }
0x1b1c   :  { %v7956_v0 = vpop.f32.mrb[211].mxu0 }
0x1b1d   :  { %12596 = vmatprep.mubr.msk.f32.mxu0 %vm945_vm2, %v7956_v0 }
0x1b1e   :  { %12597 = vmatmul.mubr.msk.f32.gmra.mrb[194].mxu0 %vm945_vm2, %v12572_v35  ;;  %v19226_v35 = vld [vmem:[#allocation26_spill] sm:$0xff] }
0x1b1f   :  { %12687 = vmatprep.mubr.f32.mxu0 %v8596_v42 }
0x1b22   :  { %12688 = vmatmul.mubr.f32.vlgmr.msra.gmra.mrb[212].mxu0 %v8597_v2  ;;  %v19227_v2 = vld [vmem:[#allocation25_spill] sm:$0xff] }
0x1b23   :  { %12690 = vmatprep.mubr.f32.mxu0 %v8598_v51 }
0x1b24   :  { %v8577_v9 = vpop.xlane.xlu1 %8576 }
0x1b26   :  { %12691 = vmatmul.mubr.f32.gmra.mrb[214].mxu0 %v8599_v40 }
0x1b27   :  { %12693 = vmatprep.mubr.f32.mxu0 %v8600_v33 }
0x1b28   :  { %v8579_v6 = vpop.xlane.xlu1 %8578 }
0x1b2a   :  { %12694 = vmatmul.mubr.f32.gmra.mrb[216].mxu0 %v8601_v16 }
0x1b2b   :  { %12696 = vmatprep.mubr.f32.mxu0 %v8602_v39 }
0x1b2c   :  { %v8567_v44 = vpop.xlane.xlu0 %8566  ;;  %v8807_v61 = vpop.permute.xlu1 %8806 }
0x1b2d   :  { %15028 = vrcp.f32 %v8567_v44  ;;  %12711 = vmatprep.subr.mxu0 %v8807_v61 }
0x1b2e   :  { %12697 = vmatmul.mubr.f32.gmra.mrb[218].mxu0 %v8603_v57  ;;  %15030 = vrcp.f32 %v8573_v47  ;;  %v19230_v57 = vld [vmem:[#allocation23_spill] sm:$0xff] }
0x1b2f   :  { %12699 = vmatprep.mubr.f32.mxu0 %v8604_v56  ;;  %12712 = vmatpush3.msra.mxu0 %v8807_v61 }
0x1b30   :  { %v8571_v32 = vpop.xlane.xlu0 %8570 }
0x1b31   :  { %15032 = vrcp.f32 %v8571_v32 }
0x1b32   :  { %15034 = vrcp.f32 %v8577_v9 }
0x1b34   :  { %v8575_v19 = vpop.xlane.xlu0 %8574 }
0x1b35   :  { %15036 = vrcp.f32 %v8575_v19 }
0x1b36   :  { %15038 = vrcp.f32 %v8579_v6  ;;  %v19229_v6 = vld [vmem:[#allocation28_spill] sm:$0xff] }
0x1b37   :  { %v15029_v17 = vpop.eup %15028 }
0x1b38   :  { %v8605_v10 = vmul.f32 %v15029_v17, %v18568_v21  ;;  %v15031_v31 = vpop.eup %15030 }
0x1b39   :  { %v8608_v5 = vmul.f32 %v15031_v31, %v18554_v11  ;;  %v19232_v31 = vld [vmem:[#allocation8_spill] sm:$0xff] }
0x1b3a   :  { %12700 = vmatmul.mubr.f32.gmra.mrb[220].mxu0 %v8605_v10 }
0x1b3b   :  { %v15033_v8 = vpop.eup %15032  ;;  %12702 = vmatprep.mubr.f32.mxu0 %v8606_v20 }
0x1b3c   :  { %v8607_v22 = vmul.f32 %v15033_v8, %v18571_v27  ;;  %v15035_v58 = vpop.eup %15034 }
0x1b3d   :  { %v8610_v28 = vmul.f32 %v15035_v58, %v18562_v49 }
0x1b3e   :  { %12703 = vmatmul.mubr.f32.gmra.mrb[222].mxu0 %v8607_v22 }
0x1b3f   :  { %v15037_v59 = vpop.eup %15036  ;;  %12705 = vmatprep.mubr.f32.mxu0 %v8608_v5 }
0x1b40   :  { %v8609_v7 = vmul.f32 %v15037_v59, %v18574_v37  ;;  %v15039_v48 = vpop.eup %15038  ;;  %v19233_v59 = vld [vmem:[#allocation7_spill] sm:$0xff] }
0x1b41   :  { %v8611_v63 = vmul.f32 %v15039_v48, %v18565_v18 }
0x1b42   :  { %12706 = vmatmul.mubr.f32.gmra.mrb[224].mxu0 %v8609_v7 }
0x1b43   :  { %12708 = vmatprep.mubr.f32.mxu0 %v8610_v28 }
0x1b46   :  { %12709 = vmatmul.mubr.f32.gmra.mrb[226].mxu0 %v8611_v63  ;;  %v19234_v63 = vld [vmem:[#allocation10_spill] sm:$0xff] }
0x1bf5   :  { %v12689_v21 = vpop.f32.mrb[212].mxu0 }
0x1bf6   :  { %v8726_v34 = vpop.f32.mrb[213].mxu0 }
0x1bf7   :  { %12713 = vmatprep.mubr.msk.f32.mxu0 %vm945_vm2, %v8726_v34 }
0x1bf8   :  { %12714 = vmatmul.mubr.msk.f32.vlgmr.msra.gmra.mrb[180].mxu0 %vm945_vm2, %v12689_v21 }
0x1bf9   :  { %v12692_v11 = vpop.f32.mrb[214].mxu0 }
0x1bfa   :  { %v8736_v27 = vpop.f32.mrb[215].mxu0 }
0x1bfb   :  { %12716 = vmatprep.mubr.msk.f32.mxu0 %vm945_vm2, %v8736_v27 }
0x1bfc   :  { %12717 = vmatmul.mubr.msk.f32.gmra.mrb[182].mxu0 %vm945_vm2, %v12692_v11 }
0x1bfd   :  { %v12695_v37 = vpop.f32.mrb[216].mxu0 }
0x1bfe   :  { %v8746_v60 = vpop.f32.mrb[217].mxu0 }
0x1bff   :  { %12719 = vmatprep.mubr.msk.f32.mxu0 %vm945_vm2, %v8746_v60 }
0x1c00   :  { %12720 = vmatmul.mubr.msk.f32.gmra.mrb[184].mxu0 %vm945_vm2, %v12695_v37  ;;  %v19235_v37 = vld [vmem:[#allocation9_spill] sm:$0xff] }
0x1c01   :  { %v12698_v49 = vpop.f32.mrb[218].mxu0 }
0x1c02   :  { %v8756_v18 = vpop.f32.mrb[219].mxu0 }
0x1c03   :  { %12722 = vmatprep.mubr.msk.f32.mxu0 %vm945_vm2, %v8756_v18 }
0x1c04   :  { %12723 = vmatmul.mubr.msk.f32.gmra.mrb[186].mxu0 %vm945_vm2, %v12698_v49 }
0x1c0d   :  { %v12701_v62 = vpop.f32.mrb[220].mxu0 }
0x1c0e   :  { %v8766_v24 = vpop.f32.mrb[221].mxu0 }
0x1c0f   :  { %12725 = vmatprep.mubr.msk.f32.mxu0 %vm945_vm2, %v8766_v24  ;;  %v19236_v24 = vld [vmem:[#allocation12_spill] sm:$0xff] }
0x1c10   :  { %12726 = vmatmul.mubr.msk.f32.gmra.mrb[188].mxu0 %vm945_vm2, %v12701_v62 }
0x1c11   :  { %v12704_v15 = vpop.f32.mrb[222].mxu0 }
0x1c12   :  { %v8776_v26 = vpop.f32.mrb[223].mxu0 }
0x1c13   :  { %12728 = vmatprep.mubr.msk.f32.mxu0 %vm945_vm2, %v8776_v26 }
0x1c14   :  { %12729 = vmatmul.mubr.msk.f32.gmra.mrb[190].mxu0 %vm945_vm2, %v12704_v15 }
0x1c15   :  { %v12707_v54 = vpop.f32.mrb[224].mxu0 }
0x1c16   :  { %v8786_v53 = vpop.f32.mrb[225].mxu0 }
0x1c17   :  { %12731 = vmatprep.mubr.msk.f32.mxu0 %vm945_vm2, %v8786_v53 }
0x1c18   :  { %12732 = vmatmul.mubr.msk.f32.gmra.mrb[192].mxu0 %vm945_vm2, %v12707_v54 }
0x1c19   :  { %v12710_v43 = vpop.f32.mrb[226].mxu0 }
0x1c1a   :  { %v8796_v38 = vpop.f32.mrb[227].mxu0 }
0x1c1b   :  { %12734 = vmatprep.mubr.msk.f32.mxu0 %vm945_vm2, %v8796_v38 }
0x1c1c   :  { %12735 = vmatmul.mubr.msk.f32.gmra.mrb[194].mxu0 %vm945_vm2, %v12710_v43  ;;  %v19237_v43 = vld [vmem:[#allocation11_spill] sm:$0xff] }
0x1ccb   :  { %v12715_v41 = vpop.f32.mrb[180].mxu0 }
0x1ccc   :  { %v9019_v52 = vadd.f32 %v12715_v41, %v19225_v45  ;;  %v8923_v46 = vpop.f32.mrb[181].mxu0 }
0x1ccd   :  { %v9018_v0 = vadd.f32 %v8923_v46, %v19226_v35 }
0x1cce   :  { %v18642_v30 = vadd.f32 %v18637_v29, %v9019_v52  ;;  %v19238_v52 = vld [vmem:[#allocation14_spill] sm:$0xff] }
0x1ccf   :  { %v18645_v42 = vadd.f32 %v18637_v29, %v9018_v0  ;;  %v12718_v13 = vpop.f32.mrb[182].mxu0 }
0x1cd0   :  { %v9021_v47 = vadd.f32 %v12718_v13, %v19227_v2  ;;  %v8933_v3 = vpop.f32.mrb[183].mxu0  ;;  %v9057_v51 = vsel %vm292_vm0, %v18642_v30, 0.0  ;;  %v19239_v2 = vld [vmem:[#allocation13_spill] sm:$0xff] }
0x1cd1   :  { %v9020_v9 = vadd.f32 %v8933_v3, %v19228_v50  ;;  %9058 = vadd.xlane.f32.xlu0 %v9057_v51  ;;  %v9054_v40 = vsel %vm292_vm0, %v18645_v42, 0.0 }
0x1cd2   :  { %v18654_v1 = vadd.f32 %v18637_v29, %v9021_v47  ;;  %9055 = vadd.xlane.f32.xlu1 %v9054_v40 }
0x1cd3   :  { %v12721_v33 = vpop.f32.mrb[184].mxu0  ;;  %v18657_v14 = vadd.f32 %v18637_v29, %v9020_v9  ;;  %v19240_v9 = vld [vmem:[#allocation16_spill] sm:$0xff] }
0x1cd4   :  { %v9023_v16 = vadd.f32 %v12721_v33, %v19229_v6  ;;  %v8943_v36 = vpop.f32.mrb[185].mxu0  ;;  %v9063_v39 = vsel %vm292_vm0, %v18654_v1, 0.0 }
0x1cd5   :  { %9064 = vadd.xlane.f32.xlu0 %v9063_v39  ;;  %v9022_v61 = vadd.f32 %v8943_v36, %v19230_v57  ;;  %v9060_v32 = vsel %vm292_vm0, %v18657_v14, 0.0 }
0x1cd6   :  { %v18663_v44 = vadd.f32 %v18637_v29, %v9023_v16 }
0x1cd7   :  { %v12724_v23 = vpop.f32.mrb[186].mxu0  ;;  %v18669_v19 = vadd.f32 %v18637_v29, %v9022_v61 }
0x1cd8   :  { %v8953_v56 = vpop.f32.mrb[187].mxu0  ;;  %v9025_v17 = vadd.f32 %v12724_v23, %v19231_v12  ;;  %v9069_v10 = vsel %vm292_vm0, %v18663_v44, 0.0 }
0x1cd9   :  { %9061 = vadd.xlane.f32.xlu0 %v9060_v32  ;;  %v9024_v8 = vadd.f32 %v8953_v56, %v19232_v31  ;;  %v9066_v22 = vsel %vm292_vm0, %v18669_v19, 0.0 }
0x1cda   :  { %v18675_v20 = vadd.f32 %v18637_v29, %v9025_v17 }
0x1cdb   :  { %v18681_v58 = vadd.f32 %v18637_v29, %v9024_v8 }
0x1cdc   :  { %v9075_v28 = vsel %vm292_vm0, %v18675_v20, 0.0 }
0x1cdd   :  { %9070 = vadd.xlane.f32.xlu0 %v9069_v10  ;;  %v9072_v18 = vsel %vm292_vm0, %v18681_v58, 0.0 }
0x1ce1   :  { %9067 = vadd.xlane.f32.xlu0 %v9066_v22 }
0x1ce3   :  { %v12727_v5 = vpop.f32.mrb[188].mxu0 }
0x1ce4   :  { %v9027_v7 = vadd.f32 %v12727_v5, %v19233_v59  ;;  %v8963_v48 = vpop.f32.mrb[189].mxu0 }
0x1ce5   :  { %v9026_v21 = vadd.f32 %v8963_v48, %v19234_v63  ;;  %9076 = vadd.xlane.f32.xlu0 %v9075_v28 }
0x1ce6   :  { %v18688_v34 = vadd.f32 %v18637_v29, %v9027_v7 }
0x1ce7   :  { %v12730_v11 = vpop.f32.mrb[190].mxu0  ;;  %v18691_v27 = vadd.f32 %v18637_v29, %v9026_v21 }
0x1ce8   :  { %v9029_v60 = vadd.f32 %v12730_v11, %v19235_v37  ;;  %v8973_v49 = vpop.f32.mrb[191].mxu0  ;;  %v9081_v62 = vsel %vm292_vm0, %v18688_v34, 0.0 }
0x1ce9   :  { %v9028_v15 = vadd.f32 %v8973_v49, %v19236_v24  ;;  %9073 = vadd.xlane.f32.xlu0 %v9072_v18  ;;  %9082 = vadd.xlane.f32.xlu1 %v9081_v62  ;;  %v9078_v41 = vsel %vm292_vm0, %v18691_v27, 0.0 }
0x1cea   :  { %v18700_v26 = vadd.f32 %v18637_v29, %v9029_v60 }
0x1ceb   :  { %v12733_v54 = vpop.f32.mrb[192].mxu0  ;;  %v18703_v53 = vadd.f32 %v18637_v29, %v9028_v15 }
0x1cec   :  { %v9031_v38 = vadd.f32 %v12733_v54, %v19237_v43  ;;  %v8983_v25 = vpop.f32.mrb[193].mxu0  ;;  %v9087_v45 = vsel %vm292_vm0, %v18700_v26, 0.0 }
0x1ced   :  { %v9030_v46 = vadd.f32 %v8983_v25, %v19238_v52  ;;  %9079 = vadd.xlane.f32.xlu0 %v9078_v41  ;;  %9088 = vadd.xlane.f32.xlu1 %v9087_v45  ;;  %v9084_v51 = vsel %vm292_vm0, %v18703_v53, 0.0 }
0x1cee   :  { %v18712_v35 = vadd.f32 %v18637_v29, %v9031_v38 }
0x1cef   :  { %v12736_v0 = vpop.f32.mrb[194].mxu0  ;;  %v18715_v13 = vadd.f32 %v18637_v29, %v9030_v46 }
0x1cf0   :  { %v9033_v47 = vadd.f32 %v12736_v0, %v19239_v2  ;;  %v8993_v3 = vpop.f32.mrb[195].mxu0  ;;  %v9093_v50 = vsel %vm292_vm0, %v18712_v35, 0.0 }
0x1cf1   :  { %v9032_v40 = vadd.f32 %v8993_v3, %v19240_v9  ;;  %9085 = vadd.xlane.f32.xlu0 %v9084_v51  ;;  %9094 = vadd.xlane.f32.xlu1 %v9093_v50  ;;  %v9090_v16 = vsel %vm292_vm0, %v18715_v13, 0.0 }
0x1cf2   :  { %v18724_v33 = vadd.f32 %v18637_v29, %v9033_v47 }
0x1cf3   :  { %v18727_v6 = vadd.f32 %v18637_v29, %v9032_v40 }
0x1cf4   :  { %v9099_v36 = vsel %vm292_vm0, %v18724_v33, 0.0 }
0x1cf5   :  { %9091 = vadd.xlane.f32.xlu0 %v9090_v16  ;;  %9100 = vadd.xlane.f32.xlu1 %v9099_v36  ;;  %v9096_v39 = vsel %vm292_vm0, %v18727_v6, 0.0 }
0x1cf9   :  { %9097 = vadd.xlane.f32.xlu0 %v9096_v39 }
0x1d5e   :  { %v9059_v23 = vpop.xlane.xlu0 %9058 }
0x1d5f   :  { %v9103_v57 = vmul.f32 0.03125, %v9059_v23  ;;  %v9056_v61 = vpop.xlane.xlu1 %9055 }
0x1d60   :  { %v9102_v56 = vmul.f32 0.03125, %v9056_v61 }
0x1d61   :  { %v18736_v32 = vsub.f32 %v18642_v30, %v9103_v57 }
0x1d62   :  { %v18739_v29 = vsub.f32 %v18645_v42, %v9102_v56  ;;  %v9065_v12 = vpop.xlane.xlu0 %9064 }
0x1d63   :  { %v9105_v17 = vmul.f32 0.03125, %v9065_v12  ;;  %v9135_v10 = vmul.f32 %v18736_v32, %v18736_v32 }
0x1d64   :  { %v9134_v31 = vmul.f32 %v18739_v29, %v18739_v29 }
0x1d65   :  { %v18746_v8 = vsub.f32 %v18654_v1, %v9105_v17  ;;  %v9153_v22 = vsel %vm292_vm0, %v9135_v10, 0.0 }
0x1d66   :  { %v9062_v5 = vpop.xlane.xlu0 %9061  ;;  %9154 = vadd.xlane.f32.xlu1 %v9153_v22  ;;  %v9150_v59 = vsel %vm292_vm0, %v9134_v31, 0.0 }
0x1d67   :  { %v9104_v7 = vmul.f32 0.03125, %v9062_v5  ;;  %9151 = vadd.xlane.f32.xlu0 %v9150_v59  ;;  %v9137_v48 = vmul.f32 %v18746_v8, %v18746_v8 }
0x1d69   :  { %v18753_v28 = vsub.f32 %v18657_v14, %v9104_v7  ;;  %v9159_v63 = vsel %vm292_vm0, %v9137_v48, 0.0 }
0x1d6a   :  { %v9071_v21 = vpop.xlane.xlu0 %9070  ;;  %9160 = vadd.xlane.f32.xlu1 %v9159_v63 }
0x1d6b   :  { %v9107_v11 = vmul.f32 0.03125, %v9071_v21  ;;  %v9136_v37 = vmul.f32 %v18753_v28, %v18753_v28 }
0x1d6d   :  { %v18759_v60 = vsub.f32 %v18663_v44, %v9107_v11  ;;  %v9156_v49 = vsel %vm292_vm0, %v9136_v37, 0.0  ;;  %v85_v11 = vld [vmem:[%s19074_s3 + $0x48] sm:$0xff]  ;;  %v87_v37 = vld [vmem:[%s19074_s3 + $0x58] sm:$0xff] }
0x1d6e   :  { %v9068_v18 = vpop.xlane.xlu0 %9067  ;;  %9157 = vadd.xlane.f32.xlu0 %v9156_v49 }
0x1d6f   :  { %v9106_v62 = vmul.f32 0.03125, %v9068_v18  ;;  %v9139_v24 = vmul.f32 %v18759_v60, %v18759_v60 }
0x1d71   :  { %v18765_v15 = vsub.f32 %v18669_v19, %v9106_v62  ;;  %v9165_v54 = vsel %vm292_vm0, %v9139_v24, 0.0  ;;  %v13665_v62 = vpack.c.bf16 %v87_v37, %v85_v11 }
0x1d72   :  { %v9077_v43 = vpop.xlane.xlu0 %9076  ;;  %9166 = vadd.xlane.f32.xlu1 %v9165_v54 }
0x1d73   :  { %v9109_v38 = vmul.f32 0.03125, %v9077_v43  ;;  %v9138_v25 = vmul.f32 %v18765_v15, %v18765_v15  ;;  %13666 = vmatprep.subr.bf16.mxu1 %v13665_v62 }
0x1d74   :  { %13668 = vmatpush3.bf16.msra.mxu1 %v13665_v62 }
0x1d75   :  { %v18771_v41 = vsub.f32 %v18675_v20, %v9109_v38  ;;  %v9162_v45 = vsel %vm292_vm0, %v9138_v25, 0.0 }
0x1d76   :  { %v9074_v52 = vpop.xlane.xlu0 %9073  ;;  %v9083_v46 = vpop.xlane.xlu1 %9082  ;;  %9163 = vadd.xlane.f32.xlu0 %v9162_v45 }
0x1d77   :  { %v9108_v0 = vmul.f32 0.03125, %v9074_v52  ;;  %v9111_v2 = vmul.f32 0.03125, %v9083_v46  ;;  %v9141_v47 = vmul.f32 %v18771_v41, %v18771_v41 }
0x1d79   :  { %v18777_v3 = vsub.f32 %v18681_v58, %v9108_v0  ;;  %v18780_v51 = vsub.f32 %v18688_v34, %v9111_v2  ;;  %v9171_v50 = vsel %vm292_vm0, %v9141_v47, 0.0  ;;  %v89_v0 = vld [vmem:[%s19074_s3 + $0x68] sm:$0xff]  ;;  %v91_v2 = vld [vmem:[%s19074_s3 + $0x78] sm:$0xff] }
0x1d7a   :  { %v9080_v9 = vpop.xlane.xlu0 %9079  ;;  %v9089_v40 = vpop.xlane.xlu1 %9088  ;;  %9172 = vadd.xlane.f32.xlu1 %v9171_v50  ;;  %v13669_v50 = vpack.c.bf16 %v91_v2, %v89_v0 }
0x1d7b   :  { %v9110_v16 = vmul.f32 0.03125, %v9080_v9  ;;  %v9113_v36 = vmul.f32 0.03125, %v9089_v40  ;;  %v9143_v39 = vmul.f32 %v18780_v51, %v18780_v51  ;;  %v9140_v23 = vmul.f32 %v18777_v3, %v18777_v3 }
0x1d7c   :  { %13670 = vmatprep.subr.bf16.mxu1 %v13669_v50 }
0x1d7d   :  { %v18788_v57 = vsub.f32 %v18691_v27, %v9110_v16  ;;  %v18791_v61 = vsub.f32 %v18700_v26, %v9113_v36  ;;  %v9177_v56 = vsel %vm292_vm0, %v9143_v39, 0.0  ;;  %v9168_v12 = vsel %vm292_vm0, %v9140_v23, 0.0  ;;  %13672 = vmatpush3.bf16.msra.mxu1 %v13669_v50 }
0x1d7e   :  { %v9086_v17 = vpop.xlane.xlu0 %9085  ;;  %v9095_v10 = vpop.xlane.xlu1 %9094  ;;  %9178 = vadd.xlane.f32.xlu1 %v9177_v56  ;;  %9169 = vadd.xlane.f32.xlu0 %v9168_v12 }
0x1d7f   :  { %v9112_v31 = vmul.f32 0.03125, %v9086_v17  ;;  %v9115_v22 = vmul.f32 0.03125, %v9095_v10  ;;  %v9145_v5 = vmul.f32 %v18791_v61, %v18791_v61  ;;  %v9142_v59 = vmul.f32 %v18788_v57, %v18788_v57  ;;  %v108_v17 = vld [vmem:[%s19075_s4 + $0x80] sm:$0xff]  ;;  %v109_v10 = vld [vmem:[%s19075_s4 + $0x88] sm:$0xff] }
0x1d81   :  { %v18800_v7 = vsub.f32 %v18703_v53, %v9112_v31  ;;  %v18803_v48 = vsub.f32 %v18712_v35, %v9115_v22  ;;  %v9183_v63 = vsel %vm292_vm0, %v9145_v5, 0.0  ;;  %v9174_v21 = vsel %vm292_vm0, %v9142_v59, 0.0 }
0x1d82   :  { %v9092_v49 = vpop.xlane.xlu0 %9091  ;;  %9184 = vadd.xlane.f32.xlu1 %v9183_v63  ;;  %v9101_v18 = vpop.xlane.xlu1 %9100  ;;  %9175 = vadd.xlane.f32.xlu0 %v9174_v21  ;;  %v13673_v31 = vpack.c.bf16 %v109_v10, %v108_v17 }
0x1d83   :  { %v9114_v24 = vmul.f32 0.03125, %v9092_v49  ;;  %v9117_v54 = vmul.f32 0.03125, %v9101_v18  ;;  %v9147_v43 = vmul.f32 %v18803_v48, %v18803_v48  ;;  %v9144_v38 = vmul.f32 %v18800_v7, %v18800_v7 }
0x1d84   :  { %13674 = vmatprep.subr.bf16.mxu1 %v13673_v31 }
0x1d85   :  { %v18818_v25 = vsub.f32 %v18715_v13, %v9114_v24  ;;  %v18821_v45 = vsub.f32 %v18724_v33, %v9117_v54  ;;  %v9189_v52 = vsel %vm292_vm0, %v9147_v43, 0.0  ;;  %v9180_v46 = vsel %vm292_vm0, %v9144_v38, 0.0 }
0x1d86   :  { %9190 = vadd.xlane.f32.xlu1 %v9189_v52  ;;  %9181 = vadd.xlane.f32.xlu0 %v9180_v46  ;;  %v9098_v47 = vpop.xlane.xlu0 %9097  ;;  %v19241_v52 = vsub.s32 2, %v19223_v55 }
0x1d87   :  { %v9116_v9 = vmul.f32 0.03125, %v9098_v47  ;;  %v9149_v40 = vmul.f32 %v18821_v45, %v18821_v45  ;;  %v9146_v16 = vmul.f32 %v18818_v25, %v18818_v25 }
0x1d88   :  { %v18852_v46 = vrot.slane %v18632_v4, %v19241_v52 }
0x1d89   :  { %v18836_v36 = vsub.f32 %v18727_v6, %v9116_v9  ;;  %v9195_v39 = vsel %vm292_vm0, %v9149_v40, 0.0  ;;  %v9186_v23 = vsel %vm292_vm0, %v9146_v16, 0.0  ;;  %v19242_v40 = vsub.s32 3, %v19223_v55 }
0x1d8a   :  { %9196 = vadd.xlane.f32.xlu1 %v9195_v39  ;;  %9187 = vadd.xlane.f32.xlu0 %v9186_v23 }
0x1d8b   :  { %v9148_v56 = vmul.f32 %v18836_v36, %v18836_v36  ;;  %v18858_v16 = vrot.slane %v18632_v4, %v19242_v40 }
0x1d8d   :  { %v9192_v12 = vsel %vm292_vm0, %v9148_v56, 0.0 }
0x1d8e   :  { %9193 = vadd.xlane.f32.xlu0 %v9192_v12 }
0x1df3   :  { %v9155_v22 = vpop.xlane.xlu1 %9154 }
0x1df4   :  { %v9199_v5 = vmul.f32 0.03125, %v9155_v22  ;;  %v9152_v59 = vpop.xlane.xlu0 %9151  ;;  %v111_v22 = vld [vmem:[%s19075_s4 + $0x98] sm:$0xff] }
0x1df5   :  { %v9198_v63 = vmul.f32 0.03125, %v9152_v59 }
0x1df6   :  { %v9215_v21 = vadd.f32 1e-05, %v9199_v5 }
0x1df7   :  { %v9214_v11 = vadd.f32 1e-05, %v9198_v63  ;;  %v9161_v37 = vpop.xlane.xlu1 %9160 }
0x1df8   :  { %15040 = vrsqrt.f32 %v9215_v21  ;;  %v9201_v49 = vmul.f32 0.03125, %v9161_v37 }
0x1df9   :  { %15042 = vrsqrt.f32 %v9214_v11 }
0x1dfa   :  { %v9217_v18 = vadd.f32 1e-05, %v9201_v49 }
0x1dfb   :  { %v9158_v62 = vpop.xlane.xlu0 %9157 }
0x1dfc   :  { %15044 = vrsqrt.f32 %v9217_v18  ;;  %v9200_v24 = vmul.f32 0.03125, %v9158_v62  ;;  %v112_v18 = vld [vmem:[%s19075_s4 + $0xa0] sm:$0xff]  ;;  %v113_v62 = vld [vmem:[%s19075_s4 + $0xa8] sm:$0xff] }
0x1dfe   :  { %v9216_v54 = vadd.f32 1e-05, %v9200_v24 }
0x1dff   :  { %v9167_v43 = vpop.xlane.xlu1 %9166 }
0x1e00   :  { %15046 = vrsqrt.f32 %v9216_v54  ;;  %v9203_v38 = vmul.f32 0.03125, %v9167_v43 }
0x1e02   :  { %v15041_v0 = vpop.eup %15040  ;;  %v9219_v2 = vadd.f32 1e-05, %v9203_v38 }
0x1e03   :  { %v15043_v47 = vpop.eup %15042  ;;  %v9247_v50 = vmul.f32 %v15041_v0, %v18736_v32  ;;  %v9164_v9 = vpop.xlane.xlu0 %9163  ;;  %v110_v32 = vld [vmem:[%s19075_s4 + $0x90] sm:$0xff] }
0x1e04   :  { %15048 = vrsqrt.f32 %v9219_v2  ;;  %v9202_v39 = vmul.f32 0.03125, %v9164_v9  ;;  %v9246_v23 = vmul.f32 %v15043_v47, %v18739_v29  ;;  %v13677_v11 = vpack.c.bf16 %v111_v22, %v110_v32 }
0x1e05   :  { %v9267_v56 = vmul.f32 %v18852_v46, %v9247_v50  ;;  %v13681_v2 = vpack.c.bf16 %v113_v62, %v112_v18 }
0x1e06   :  { %v15045_v12 = vpop.eup %15044  ;;  %v9218_v17 = vadd.f32 1e-05, %v9202_v39  ;;  %v9266_v10 = vmul.f32 %v18852_v46, %v9246_v23 }
0x1e07   :  { %v9173_v5 = vpop.xlane.xlu1 %9172  ;;  %v9249_v59 = vmul.f32 %v15045_v12, %v18746_v8  ;;  %v9287_v21 = vadd.f32 %v18858_v16, %v9267_v56 }
0x1e08   :  { %15050 = vrsqrt.f32 %v9218_v17  ;;  %v9205_v63 = vmul.f32 0.03125, %v9173_v5  ;;  %v9286_v29 = vadd.f32 %v18858_v16, %v9266_v10 }
0x1e09   :  { %v9269_v43 = vmul.f32 %v18852_v46, %v9249_v59 }
0x1e0a   :  { %v15047_v37 = vpop.eup %15046  ;;  %v9221_v49 = vadd.f32 1e-05, %v9205_v63  ;;  %12745 = vmatprep.mubr.msk.f32.mxu1 %vm292_vm0, %v9286_v29 }
0x1e0b   :  { %v9179_v8 = vpop.xlane.xlu1 %9178  ;;  %12746 = vmatmul.mubr.msk.f32.vlgmr.msra.gmra.mrb[196].mxu1 %vm292_vm0, %v9287_v21  ;;  %v9170_v24 = vpop.xlane.xlu0 %9169  ;;  %v9248_v54 = vmul.f32 %v15047_v37, %v18753_v28  ;;  %v9289_v56 = vadd.f32 %v18858_v16, %v9269_v43 }
0x1e0c   :  { %15052 = vrsqrt.f32 %v9221_v49  ;;  %v9207_v38 = vmul.f32 0.03125, %v9179_v8  ;;  %v9204_v52 = vmul.f32 0.03125, %v9170_v24  ;;  %13676 = vmatpush3.bf16.msra.mxu1 %v13673_v31 }
0x1e0d   :  { %v9268_v0 = vmul.f32 %v18852_v46, %v9248_v54  ;;  %13678 = vmatprep.subr.bf16.mxu1 %v13677_v11 }
0x1e0e   :  { %v15049_v47 = vpop.eup %15048  ;;  %v9223_v50 = vadd.f32 1e-05, %v9207_v38  ;;  %v9220_v9 = vadd.f32 1e-05, %v9204_v52 }
0x1e0f   :  { %v9185_v40 = vpop.xlane.xlu1 %9184  ;;  %v9176_v39 = vpop.xlane.xlu0 %9175  ;;  %v9288_v23 = vadd.f32 %v18858_v16, %v9268_v0  ;;  %v9251_v17 = vmul.f32 %v15049_v47, %v18759_v60 }
0x1e10   :  { %15054 = vrsqrt.f32 %v9223_v50  ;;  %v9209_v28 = vmul.f32 0.03125, %v9185_v40  ;;  %v9206_v12 = vmul.f32 0.03125, %v9176_v39  ;;  %13680 = vmatpush3.bf16.msra.mxu1 %v13677_v11 }
0x1e11   :  { %15056 = vrsqrt.f32 %v9220_v9  ;;  %12748 = vmatprep.mubr.msk.f32.mxu1 %vm292_vm0, %v9288_v23  ;;  %13682 = vmatprep.subr.bf16.mxu1 %v13681_v2  ;;  %v9271_v21 = vmul.f32 %v18852_v46, %v9251_v17 }
0x1e12   :  { %v15051_v31 = vpop.eup %15050  ;;  %v9225_v10 = vadd.f32 1e-05, %v9209_v28  ;;  %v9222_v32 = vadd.f32 1e-05, %v9206_v12  ;;  %12749 = vmatmul.mubr.msk.f32.gmra.mrb[198].mxu1 %vm292_vm0, %v9289_v56 }
0x1e13   :  { %v9191_v22 = vpop.xlane.xlu1 %9190  ;;  %v9182_v5 = vpop.xlane.xlu0 %9181  ;;  %v9250_v59 = vmul.f32 %v15051_v31, %v18765_v15  ;;  %v9291_v15 = vadd.f32 %v18858_v16, %v9271_v21 }
0x1e14   :  { %15058 = vrsqrt.f32 %v9225_v10  ;;  %v9211_v63 = vmul.f32 0.03125, %v9191_v22  ;;  %v9208_v29 = vmul.f32 0.03125, %v9182_v5  ;;  %13684 = vmatpush3.bf16.msra.mxu1 %v13681_v2 }
0x1e15   :  { %15060 = vrsqrt.f32 %v9222_v32  ;;  %v9270_v60 = vmul.f32 %v18852_v46, %v9250_v59 }
0x1e16   :  { %v15053_v11 = vpop.eup %15052  ;;  %v9227_v37 = vadd.f32 1e-05, %v9211_v63  ;;  %v9224_v49 = vadd.f32 1e-05, %v9208_v29 }
0x1e17   :  { %v9197_v18 = vpop.xlane.xlu1 %9196  ;;  %v9188_v62 = vpop.xlane.xlu0 %9187  ;;  %v9290_v8 = vadd.f32 %v18858_v16, %v9270_v60  ;;  %v9253_v43 = vmul.f32 %v15053_v11, %v18771_v41 }
0x1e18   :  { %15062 = vrsqrt.f32 %v9227_v37  ;;  %v9213_v24 = vmul.f32 0.03125, %v9197_v18  ;;  %v9210_v54 = vmul.f32 0.03125, %v9188_v62 }
0x1e19   :  { %15064 = vrsqrt.f32 %v9224_v49  ;;  %12751 = vmatprep.mubr.msk.f32.mxu1 %vm292_vm0, %v9290_v8  ;;  %v9273_v40 = vmul.f32 %v18852_v46, %v9253_v43 }
0x1e1a   :  { %v15055_v38 = vpop.eup %15054  ;;  %v9229_v52 = vadd.f32 1e-05, %v9213_v24  ;;  %v9226_v0 = vadd.f32 1e-05, %v9210_v54  ;;  %12752 = vmatmul.mubr.msk.f32.gmra.mrb[200].mxu1 %vm292_vm0, %v9291_v15 }
0x1e1b   :  { %v15057_v2 = vpop.eup %15056  ;;  %v9194_v47 = vpop.xlane.xlu0 %9193  ;;  %v9255_v39 = vmul.f32 %v15055_v38, %v18780_v51  ;;  %v9293_v31 = vadd.f32 %v18858_v16, %v9273_v40  ;;  %v121_v40 = vld [vmem:[%s19075_s4 + $0xe8] sm:$0xff] }
0x1e1c   :  { %15066 = vrsqrt.f32 %v9229_v52  ;;  %v9212_v50 = vmul.f32 0.03125, %v9194_v47  ;;  %v9252_v9 = vmul.f32 %v15057_v2, %v18777_v3  ;;  %v116_v52 = vld [vmem:[%s19075_s4 + $0xc0] sm:$0xff]  ;;  %v118_v2 = vld [vmem:[%s19075_s4 + $0xd0] sm:$0xff]  ;;  %v119_v47 = vld [vmem:[%s19075_s4 + $0xd8] sm:$0xff] }
0x1e1d   :  { %15068 = vrsqrt.f32 %v9226_v0  ;;  %v9275_v10 = vmul.f32 %v18852_v46, %v9255_v39 }
0x1e1e   :  { %v15059_v23 = vpop.eup %15058  ;;  %v9228_v56 = vadd.f32 1e-05, %v9212_v50  ;;  %v9272_v41 = vmul.f32 %v18852_v46, %v9252_v9  ;;  %v13693_v50 = vpack.c.bf16 %v119_v47, %v118_v2  ;;  %v120_v9 = vld [vmem:[%s19075_s4 + $0xe0] sm:$0xff] }
0x1e1f   :  { %v15061_v28 = vpop.eup %15060  ;;  %v9257_v3 = vmul.f32 %v15059_v23, %v18791_v61  ;;  %v13697_v39 = vpack.c.bf16 %v121_v40, %v120_v9  ;;  %v122_v23 = vld [vmem:[%s19075_s4 + $0xf0] sm:$0xff] }
0x1e20   :  { %15070 = vrsqrt.f32 %v9228_v56  ;;  %v9292_v12 = vadd.f32 %v18858_v16, %v9272_v41  ;;  %v9254_v17 = vmul.f32 %v15061_v28, %v18788_v57  ;;  %v9295_v57 = vadd.f32 %v18858_v16, %v9275_v10  ;;  %v123_v56 = vld [vmem:[%s19075_s4 + $0xf8] sm:$0xff] }
0x1e21   :  { %v9277_v63 = vmul.f32 %v18852_v46, %v9257_v3  ;;  %v13701_v41 = vpack.c.bf16 %v123_v56, %v122_v23  ;;  %v19243_v28 = vsub.s32 4, %v19223_v55 }
0x1e22   :  { %v15063_v32 = vpop.eup %15062  ;;  %12754 = vmatprep.mubr.msk.f32.mxu1 %vm292_vm0, %v9292_v12  ;;  %v9274_v51 = vmul.f32 %v18852_v46, %v9254_v17 }
0x1e23   :  { %v15065_v22 = vpop.eup %15064  ;;  %12755 = vmatmul.mubr.msk.f32.gmra.mrb[202].mxu1 %vm292_vm0, %v9293_v31  ;;  %v9259_v29 = vmul.f32 %v15063_v32, %v18803_v48  ;;  %v18968_v12 = vrot.slane %v18632_v4, %v19243_v28 }
0x1e24   :  { %v9294_v5 = vadd.f32 %v18858_v16, %v9274_v51  ;;  %v9256_v59 = vmul.f32 %v15065_v22, %v18800_v7  ;;  %v9297_v7 = vadd.f32 %v18858_v16, %v9277_v63 }
0x1e25   :  { %v9279_v49 = vmul.f32 %v18852_v46, %v9259_v29 }
0x1e26   :  { %v15067_v21 = vpop.eup %15066  ;;  %12757 = vmatprep.mubr.msk.f32.mxu1 %vm292_vm0, %v9294_v5  ;;  %v9276_v61 = vmul.f32 %v18852_v46, %v9256_v59 }
0x1e27   :  { %v15069_v60 = vpop.eup %15068  ;;  %12758 = vmatmul.mubr.msk.f32.gmra.mrb[204].mxu1 %vm292_vm0, %v9295_v57  ;;  %v9261_v18 = vmul.f32 %v15067_v21, %v18821_v45  ;;  %v9299_v54 = vadd.f32 %v18858_v16, %v9279_v49 }
0x1e28   :  { %v9296_v11 = vadd.f32 %v18858_v16, %v9276_v61  ;;  %v9258_v37 = vmul.f32 %v15069_v60, %v18818_v25 }
0x1e29   :  { %v9281_v15 = vmul.f32 %v18852_v46, %v9261_v18 }
0x1e2a   :  { %v15071_v62 = vpop.eup %15070  ;;  %12760 = vmatprep.mubr.msk.f32.mxu1 %vm292_vm0, %v9296_v11  ;;  %v9278_v48 = vmul.f32 %v18852_v46, %v9258_v37 }
0x1e2b   :  { %12761 = vmatmul.mubr.msk.f32.gmra.mrb[206].mxu1 %vm292_vm0, %v9297_v7  ;;  %v9260_v8 = vmul.f32 %v15071_v62, %v18836_v36  ;;  %v9301_v43 = vadd.f32 %v18858_v16, %v9281_v15  ;;  %v114_v36 = vld [vmem:[%s19075_s4 + $0xb0] sm:$0xff] }
0x1e2c   :  { %v9298_v24 = vadd.f32 %v18858_v16, %v9278_v48 }
0x1e2d   :  { %v9280_v25 = vmul.f32 %v18852_v46, %v9260_v8  ;;  %v115_v46 = vld [vmem:[%s19075_s4 + $0xb8] sm:$0xff] }
0x1e2e   :  { %12763 = vmatprep.mubr.msk.f32.mxu1 %vm292_vm0, %v9298_v24  ;;  %v13685_v38 = vpack.c.bf16 %v115_v46, %v114_v36 }
0x1e2f   :  { %12764 = vmatmul.mubr.msk.f32.gmra.mrb[208].mxu1 %vm292_vm0, %v9299_v54  ;;  %v9300_v45 = vadd.f32 %v18858_v16, %v9280_v25  ;;  %v117_v16 = vld [vmem:[%s19075_s4 + $0xc8] sm:$0xff] }
0x1e30   :  { %13686 = vmatprep.subr.bf16.mxu1 %v13685_v38  ;;  %v13689_v0 = vpack.c.bf16 %v117_v16, %v116_v52 }
0x1e31   :  { %12766 = vmatprep.mubr.msk.f32.mxu1 %vm292_vm0, %v9300_v45  ;;  %13688 = vmatpush3.bf16.msra.mxu1 %v13685_v38 }
0x1e32   :  { %13690 = vmatprep.subr.bf16.mxu1 %v13689_v0 }
0x1e33   :  { %12767 = vmatmul.mubr.msk.f32.gmra.mrb[210].mxu1 %vm292_vm0, %v9301_v43 }
0x1e35   :  { %13692 = vmatpush3.bf16.msra.mxu1 %v13689_v0 }
0x1e36   :  { %13694 = vmatprep.subr.bf16.mxu1 %v13693_v50 }
0x1e39   :  { %13696 = vmatpush3.bf16.msra.mxu1 %v13693_v50 }
0x1e3a   :  { %13698 = vmatprep.subr.bf16.mxu1 %v13697_v39 }
0x1e3d   :  { %13700 = vmatpush3.bf16.msra.mxu1 %v13697_v39 }
0x1e3e   :  { %13702 = vmatprep.subr.bf16.mxu1 %v13701_v41 }
0x1e41   :  { %13704 = vmatpush3.bf16.msra.mxu1 %v13701_v41 }
0x1ede   :  { %v12747_v17 = vpop.f32.mrb[196].mxu1 }
0x1edf   :  { %v9426_v31 = vadd.f32 %v12747_v17, %v18968_v12  ;;  %v9420_v10 = vpop.f32.mrb[197].mxu1 }
0x1ee0   :  { %v9421_v3 = vadd.f32 %v9420_v10, %v18968_v12 }
0x1ee1   :  { %v9516_v32 = vmul.f32 0.70710677, %v9426_v31  ;;  %v9500_v62 = vmul.f32 0.5, %v9426_v31 }
0x1ee2   :  { %v9515_v51 = vmul.f32 0.70710677, %v9421_v3  ;;  %v9499_v7 = vmul.f32 0.5, %v9421_v3 }
0x1ee3   :  { %15072 = verf.f32 %v9516_v32 }
0x1ee4   :  { %15074 = verf.f32 %v9515_v51 }
0x1ee5   :  { %v12750_v22 = vpop.f32.mrb[198].mxu1 }
0x1ee6   :  { %v9436_v5 = vadd.f32 %v12750_v22, %v18968_v12  ;;  %v9430_v59 = vpop.f32.mrb[199].mxu1 }
0x1ee7   :  { %v9431_v57 = vadd.f32 %v9430_v59, %v18968_v12 }
0x1ee8   :  { %v9518_v63 = vmul.f32 0.70710677, %v9436_v5  ;;  %v9502_v38 = vmul.f32 0.5, %v9436_v5 }
0x1ee9   :  { %v9517_v29 = vmul.f32 0.70710677, %v9431_v57  ;;  %v9501_v43 = vmul.f32 0.5, %v9431_v57 }
0x1eea   :  { %15076 = verf.f32 %v9518_v63 }
0x1eeb   :  { %15078 = verf.f32 %v9517_v29 }
0x1eed   :  { %v15073_v4 = vpop.eup %15072  ;;  %v12753_v21 = vpop.f32.mrb[200].mxu1 }
0x1eee   :  { %v15075_v61 = vpop.eup %15074  ;;  %v9548_v60 = vadd.f32 1.0, %v15073_v4  ;;  %v9446_v11 = vadd.f32 %v12753_v21, %v18968_v12  ;;  %v9440_v37 = vpop.f32.mrb[201].mxu1 }
0x1eef   :  { %v9547_v49 = vadd.f32 1.0, %v15075_v61  ;;  %v9441_v18 = vadd.f32 %v9440_v37, %v18968_v12 }
0x1ef0   :  { %v9520_v48 = vmul.f32 0.70710677, %v9446_v11  ;;  %v9564_v54 = vmul.f32 %v9548_v60, %v9500_v62  ;;  %v9504_v22 = vmul.f32 0.5, %v9446_v11 }
0x1ef1   :  { %v9519_v8 = vmul.f32 0.70710677, %v9441_v18  ;;  %v9563_v24 = vmul.f32 %v9547_v49, %v9499_v7  ;;  %v9503_v10 = vmul.f32 0.5, %v9441_v18 }
0x1ef2   :  { %15080 = verf.f32 %v9520_v48 }
0x1ef3   :  { %15082 = verf.f32 %v9519_v8  ;;  %12801 = vmatprep.mubr.f32.mxu1 %v9563_v24 }
0x1ef4   :  { %v15077_v25 = vpop.eup %15076  ;;  %12802 = vmatmul.mubr.f32.vlgmr.msra.gmra.mrb[212].mxu1 %v9564_v54 }
0x1ef5   :  { %v15079_v15 = vpop.eup %15078  ;;  %v9550_v45 = vadd.f32 1.0, %v15077_v25 }
0x1ef6   :  { %v9549_v36 = vadd.f32 1.0, %v15079_v15  ;;  %v12756_v46 = vpop.f32.mrb[202].mxu1 }
0x1ef7   :  { %v9456_v52 = vadd.f32 %v12756_v46, %v18968_v12  ;;  %v9450_v16 = vpop.f32.mrb[203].mxu1  ;;  %v9566_v50 = vmul.f32 %v9550_v45, %v9502_v38 }
0x1ef8   :  { %v9451_v0 = vadd.f32 %v9450_v16, %v18968_v12  ;;  %v9565_v2 = vmul.f32 %v9549_v36, %v9501_v43 }
0x1ef9   :  { %v9522_v47 = vmul.f32 0.70710677, %v9456_v52  ;;  %v9506_v45 = vmul.f32 0.5, %v9456_v52 }
0x1efa   :  { %v9521_v9 = vmul.f32 0.70710677, %v9451_v0  ;;  %v12759_v40 = vpop.f32.mrb[204].mxu1  ;;  %12804 = vmatprep.mubr.f32.mxu1 %v9565_v2  ;;  %v9505_v24 = vmul.f32 0.5, %v9451_v0 }
0x1efb   :  { %15084 = verf.f32 %v9522_v47  ;;  %v9466_v39 = vadd.f32 %v12759_v40, %v18968_v12  ;;  %v9460_v23 = vpop.f32.mrb[205].mxu1  ;;  %12805 = vmatmul.mubr.f32.gmra.mrb[214].mxu1 %v9566_v50 }
0x1efc   :  { %v15081_v56 = vpop.eup %15080  ;;  %15086 = verf.f32 %v9521_v9  ;;  %v9461_v41 = vadd.f32 %v9460_v23, %v18968_v12 }
0x1efd   :  { %v15083_v28 = vpop.eup %15082  ;;  %v9552_v17 = vadd.f32 1.0, %v15081_v56  ;;  %v9524_v31 = vmul.f32 0.70710677, %v9466_v39  ;;  %v9508_v0 = vmul.f32 0.5, %v9466_v39 }
0x1efe   :  { %v9551_v3 = vadd.f32 1.0, %v15083_v28  ;;  %v9523_v32 = vmul.f32 0.70710677, %v9461_v41  ;;  %v12762_v51 = vpop.f32.mrb[206].mxu1  ;;  %v9507_v9 = vmul.f32 0.5, %v9461_v41 }
0x1eff   :  { %15088 = verf.f32 %v9524_v31  ;;  %v9476_v5 = vadd.f32 %v12762_v51, %v18968_v12  ;;  %v9470_v59 = vpop.f32.mrb[207].mxu1  ;;  %v9568_v4 = vmul.f32 %v9552_v17, %v9504_v22 }
0x1f00   :  { %15090 = verf.f32 %v9523_v32  ;;  %v9471_v57 = vadd.f32 %v9470_v59, %v18968_v12  ;;  %v9567_v63 = vmul.f32 %v9551_v3, %v9503_v10 }
0x1f01   :  { %v9526_v29 = vmul.f32 0.70710677, %v9476_v5  ;;  %v9510_v10 = vmul.f32 0.5, %v9476_v5 }
0x1f02   :  { %v9525_v21 = vmul.f32 0.70710677, %v9471_v57  ;;  %v12765_v61 = vpop.f32.mrb[208].mxu1  ;;  %12807 = vmatprep.mubr.f32.mxu1 %v9567_v63 }
0x1f03   :  { %15092 = verf.f32 %v9526_v29  ;;  %v9486_v60 = vadd.f32 %v12765_v61, %v18968_v12  ;;  %v9480_v37 = vpop.f32.mrb[209].mxu1  ;;  %12808 = vmatmul.mubr.f32.gmra.mrb[216].mxu1 %v9568_v4 }
0x1f04   :  { %15094 = verf.f32 %v9525_v21  ;;  %v9481_v11 = vadd.f32 %v9480_v37, %v18968_v12 }
0x1f05   :  { %v15085_v7 = vpop.eup %15084  ;;  %v9528_v49 = vmul.f32 0.70710677, %v9486_v60  ;;  %v9512_v39 = vmul.f32 0.5, %v9486_v60  ;;  %v19244_v60 = vsub.s32 5, %v19223_v55 }
0x1f06   :  { %v15087_v18 = vpop.eup %15086  ;;  %v9554_v62 = vadd.f32 1.0, %v15085_v7  ;;  %v9527_v48 = vmul.f32 0.70710677, %v9481_v11  ;;  %v12768_v8 = vpop.f32.mrb[210].mxu1  ;;  %v9511_v59 = vmul.f32 0.5, %v9481_v11  ;;  %v15147_v11 = vld [vmem:[%s19076_s5 + $0x8] sm:$0xff] }
0x1f07   :  { %v9553_v54 = vadd.f32 1.0, %v15087_v18  ;;  %15096 = verf.f32 %v9528_v49  ;;  %v9496_v25 = vadd.f32 %v12768_v8, %v18968_v12  ;;  %v9490_v15 = vpop.f32.mrb[211].mxu1 }
0x1f08   :  { %15098 = verf.f32 %v9527_v48  ;;  %v9491_v43 = vadd.f32 %v9490_v15, %v18968_v12  ;;  %v9570_v50 = vmul.f32 %v9554_v62, %v9506_v45  ;;  %v9509_v12 = vmul.f32 0.5, %v9471_v57 }
0x1f09   :  { %v15089_v36 = vpop.eup %15088  ;;  %v9530_v46 = vmul.f32 0.70710677, %v9496_v25  ;;  %v9569_v38 = vmul.f32 %v9553_v54, %v9505_v24  ;;  %v9514_v5 = vmul.f32 0.5, %v9496_v25  ;;  %v9743_v62 = vrot.slane %v15147_v11, %v19244_v60 }
0x1f0a   :  { %v15091_v16 = vpop.eup %15090  ;;  %v9556_v2 = vadd.f32 1.0, %v15089_v36  ;;  %v9529_v47 = vmul.f32 0.70710677, %v9491_v43  ;;  %v9513_v57 = vmul.f32 0.5, %v9491_v43 }
0x1f0b   :  { %v9555_v40 = vadd.f32 1.0, %v15091_v16  ;;  %15100 = verf.f32 %v9530_v46  ;;  %12810 = vmatprep.mubr.f32.mxu1 %v9569_v38 }
0x1f0c   :  { %15102 = verf.f32 %v9529_v47  ;;  %12811 = vmatmul.mubr.f32.gmra.mrb[218].mxu1 %v9570_v50  ;;  %v9572_v17 = vmul.f32 %v9556_v2, %v9508_v0 }
0x1f0d   :  { %v15093_v23 = vpop.eup %15092  ;;  %v9571_v56 = vmul.f32 %v9555_v40, %v9507_v9 }
0x1f0e   :  { %v15095_v52 = vpop.eup %15094  ;;  %v9558_v28 = vadd.f32 1.0, %v15093_v23 }
0x1f0f   :  { %v9557_v31 = vadd.f32 1.0, %v15095_v52  ;;  %12813 = vmatprep.mubr.f32.mxu1 %v9571_v56 }
0x1f10   :  { %12814 = vmatmul.mubr.f32.gmra.mrb[220].mxu1 %v9572_v17  ;;  %v9574_v22 = vmul.f32 %v9558_v28, %v9510_v10 }
0x1f11   :  { %v15097_v3 = vpop.eup %15096  ;;  %v9573_v32 = vmul.f32 %v9557_v31, %v9509_v12 }
0x1f12   :  { %v15099_v51 = vpop.eup %15098  ;;  %v9560_v41 = vadd.f32 1.0, %v15097_v3 }
0x1f13   :  { %v9559_v63 = vadd.f32 1.0, %v15099_v51  ;;  %12816 = vmatprep.mubr.f32.mxu1 %v9573_v32 }
0x1f14   :  { %12817 = vmatmul.mubr.f32.gmra.mrb[222].mxu1 %v9574_v22  ;;  %v9576_v37 = vmul.f32 %v9560_v41, %v9512_v39 }
0x1f15   :  { %v15101_v29 = vpop.eup %15100  ;;  %v9575_v4 = vmul.f32 %v9559_v63, %v9511_v59 }
0x1f16   :  { %v15103_v21 = vpop.eup %15102  ;;  %v9562_v61 = vadd.f32 1.0, %v15101_v29 }
0x1f17   :  { %v9561_v7 = vadd.f32 1.0, %v15103_v21  ;;  %12819 = vmatprep.mubr.f32.mxu1 %v9575_v4 }
0x1f18   :  { %12820 = vmatmul.mubr.f32.gmra.mrb[224].mxu1 %v9576_v37  ;;  %v9578_v18 = vmul.f32 %v9562_v61, %v9514_v5 }
0x1f19   :  { %v9577_v49 = vmul.f32 %v9561_v7, %v9513_v57 }
0x1f1b   :  { %12822 = vmatprep.mubr.f32.mxu1 %v9577_v49 }
0x1f1c   :  { %12823 = vmatmul.mubr.f32.gmra.mrb[226].mxu1 %v9578_v18 }
0x1fc7   :  { %v12803_v48 = vpop.f32.mrb[212].mxu1 }
0x1fc8   :  { %v9725_v8 = vadd.f32 %v12803_v48, %v18642_v30  ;;  %v9645_v24 = vpop.f32.mrb[213].mxu1 }
0x1fc9   :  { %v9724_v54 = vadd.f32 %v9645_v24, %v18645_v42 }
0x1fca   :  { %v9745_v15 = vadd.f32 %v9743_v62, %v9725_v8 }
0x1fcb   :  { %v9744_v25 = vadd.f32 %v9743_v62, %v9724_v54 }
0x1fcc   :  { %9761 = vst.msk [vmem:[%s19078_s7 + $0x8] sm:$0xff] %vm292_vm0, %v9745_v15 }
0x1fcd   :  { %9760 = vst.msk [vmem:[%s19078_s7] sm:$0xff] %vm292_vm0, %v9744_v25 }
0x1fce   :  { %v12806_v55 = vpop.f32.mrb[214].mxu1 }
0x1fcf   :  { %v9727_v45 = vadd.f32 %v12806_v55, %v18654_v1  ;;  %v9655_v43 = vpop.f32.mrb[215].mxu1 }
0x1fd0   :  { %v9726_v30 = vadd.f32 %v9655_v43, %v18657_v14 }
0x1fd1   :  { %v9747_v36 = vadd.f32 %v9743_v62, %v9727_v45 }
0x1fd2   :  { %v9746_v42 = vadd.f32 %v9743_v62, %v9726_v30 }
0x1fd3   :  { %9763 = vst.msk [vmem:[%s19078_s7 + $0x18] sm:$0xff] %vm292_vm0, %v9747_v36 }
0x1fd4   :  { %9762 = vst.msk [vmem:[%s19078_s7 + $0x10] sm:$0xff] %vm292_vm0, %v9746_v42 }
0x1fd6   :  { %v12809_v46 = vpop.f32.mrb[216].mxu1 }
0x1fd7   :  { %v9729_v38 = vadd.f32 %v12809_v46, %v18663_v44  ;;  %v9665_v16 = vpop.f32.mrb[217].mxu1 }
0x1fd8   :  { %v9728_v1 = vadd.f32 %v9665_v16, %v18669_v19 }
0x1fd9   :  { %v9749_v2 = vadd.f32 %v9743_v62, %v9729_v38 }
0x1fda   :  { %v9748_v14 = vadd.f32 %v9743_v62, %v9728_v1 }
0x1fdb   :  { %9765 = vst.msk [vmem:[%s19078_s7 + $0x28] sm:$0xff] %vm292_vm0, %v9749_v2 }
0x1fdc   :  { %9764 = vst.msk [vmem:[%s19078_s7 + $0x20] sm:$0xff] %vm292_vm0, %v9748_v14 }
0x1fdf   :  { %v12812_v47 = vpop.f32.mrb[218].mxu1 }
0x1fe0   :  { %v9731_v50 = vadd.f32 %v12812_v47, %v18675_v20  ;;  %v9675_v9 = vpop.f32.mrb[219].mxu1 }
0x1fe1   :  { %v9730_v44 = vadd.f32 %v9675_v9, %v18681_v58 }
0x1fe2   :  { %v9751_v40 = vadd.f32 %v9743_v62, %v9731_v50 }
0x1fe3   :  { %v9750_v19 = vadd.f32 %v9743_v62, %v9730_v44  ;;  %v12815_v0 = vpop.f32.mrb[220].mxu1 }
0x1fe4   :  { %9767 = vst.msk [vmem:[%s19078_s7 + $0x38] sm:$0xff] %vm292_vm0, %v9751_v40  ;;  %v9733_v23 = vadd.f32 %v12815_v0, %v18688_v34  ;;  %v9685_v56 = vpop.f32.mrb[221].mxu1 }
0x1fe5   :  { %9766 = vst.msk [vmem:[%s19078_s7 + $0x30] sm:$0xff] %vm292_vm0, %v9750_v19  ;;  %v9732_v20 = vadd.f32 %v9685_v56, %v18691_v27 }
0x1fe6   :  { %v9753_v52 = vadd.f32 %v9743_v62, %v9733_v23 }
0x1fe7   :  { %v9752_v58 = vadd.f32 %v9743_v62, %v9732_v20  ;;  %v12818_v28 = vpop.f32.mrb[222].mxu1 }
0x1fe8   :  { %9769 = vst.msk [vmem:[%s19078_s7 + $0x48] sm:$0xff] %vm292_vm0, %v9753_v52  ;;  %v9735_v17 = vadd.f32 %v12818_v28, %v18700_v26  ;;  %v9695_v12 = vpop.f32.mrb[223].mxu1 }
0x1fe9   :  { %9768 = vst.msk [vmem:[%s19078_s7 + $0x40] sm:$0xff] %vm292_vm0, %v9752_v58  ;;  %v9734_v34 = vadd.f32 %v9695_v12, %v18703_v53 }
0x1fea   :  { %v9755_v31 = vadd.f32 %v9743_v62, %v9735_v17 }
0x1feb   :  { %v9754_v27 = vadd.f32 %v9743_v62, %v9734_v34  ;;  %v12821_v10 = vpop.f32.mrb[224].mxu1 }
0x1fec   :  { %9771 = vst.msk [vmem:[%s19078_s7 + $0x58] sm:$0xff] %vm292_vm0, %v9755_v31  ;;  %v9737_v3 = vadd.f32 %v12821_v10, %v18712_v35  ;;  %v9705_v32 = vpop.f32.mrb[225].mxu1 }
0x1fed   :  { %9770 = vst.msk [vmem:[%s19078_s7 + $0x50] sm:$0xff] %vm292_vm0, %v9754_v27  ;;  %v9736_v26 = vadd.f32 %v9705_v32, %v18715_v13 }
0x1fee   :  { %v9757_v51 = vadd.f32 %v9743_v62, %v9737_v3 }
0x1fef   :  { %v9756_v53 = vadd.f32 %v9743_v62, %v9736_v26  ;;  %v12824_v41 = vpop.f32.mrb[226].mxu1 }
0x1ff0   :  { %9773 = vst.msk [vmem:[%s19078_s7 + $0x68] sm:$0xff] %vm292_vm0, %v9757_v51  ;;  %v9739_v22 = vadd.f32 %v12824_v41, %v18724_v33  ;;  %v9715_v59 = vpop.f32.mrb[227].mxu1 }
0x1ff1   :  { %9772 = vst.msk [vmem:[%s19078_s7 + $0x60] sm:$0xff] %vm292_vm0, %v9756_v53  ;;  %v9738_v35 = vadd.f32 %v9715_v59, %v18727_v6 }
0x1ff2   :  { %v9759_v63 = vadd.f32 %v9743_v62, %v9739_v22 }
0x1ff3   :  { %v9758_v13 = vadd.f32 %v9743_v62, %v9738_v35 }
0x1ff4   :  { %9775 = vst.msk [vmem:[%s19078_s7 + $0x78] sm:$0xff] %vm292_vm0, %v9759_v63 }
0x1ff5   :  { %9774 = vst.msk [vmem:[%s19078_s7 + $0x70] sm:$0xff] %vm292_vm0, %v9758_v13 }
0x1ff6   :  { %9780 = vsyncpa [#allocation3], 1 }

</bundles_post_ra>
